<compile_context>
chip_gen: v7x
topology: tpu7x:2x2x1
jax: 0.10.0
libtpu: 0.0.40
codegen_flags: <defaults>
</compile_context>

<pallas_src>
import functools
import numpy as np
import jax
import jax.numpy as jnp
from jax.experimental import pallas as pl
from jax.experimental.pallas import tpu as pltpu

EPS = 1e-5  # PyTorch LayerNorm default


def _hardswish(x):
    # nn.Hardswish: x * relu6(x + 3) / 6
    return x * jnp.clip(x + 3.0, 0.0, 6.0) * (1.0 / 6.0)


# ---------------------------------------------------------------------------
# Fused (optional LayerNorm) -> matmul -> (bias) -> (act) -> (residual) kernel
# M-tiled over the row dimension, weights/scales resident per step.
# ---------------------------------------------------------------------------
def _fused_mm_kernel(*refs, ln, has_bias, act, has_res):
    it = iter(refs)
    x = next(it)[...].astype(jnp.float32)
    if ln:
        g = next(it)[...]
        b = next(it)[...]
        mu = jnp.mean(x, axis=-1, keepdims=True)
        xc = x - mu
        var = jnp.mean(xc * xc, axis=-1, keepdims=True)
        x = xc * jax.lax.rsqrt(var + EPS) * g + b
    w_ref = next(it)
    y = jnp.dot(x, w_ref[...].astype(jnp.float32),
                preferred_element_type=jnp.float32)
    if has_bias:
        y = y + next(it)[...]
    if act == "hardswish":
        y = _hardswish(y)
    if has_res:
        y = y + next(it)[...].astype(jnp.float32)
    o_ref = next(it)
    o_ref[...] = y.astype(o_ref.dtype)


def fused_matmul(x2d, w, *, gamma=None, beta=None, bias=None, act="none",
                 residual=None, tile_m=256):
    M, K = x2d.shape
    N = w.shape[1]
    tm = min(tile_m, M)
    if M % tm != 0:            # keep correctness for non-divisible sizes
        tm = M
    ln = gamma is not None
    has_bias = bias is not None
    has_res = residual is not None

    inputs = [x2d]
    in_specs = [pl.BlockSpec((tm, K), lambda i: (i, 0))]
    if ln:
        inputs += [gamma.reshape(1, K), beta.reshape(1, K)]
        in_specs += [pl.BlockSpec((1, K), lambda i: (0, 0)),
                     pl.BlockSpec((1, K), lambda i: (0, 0))]
    inputs.append(w)
    in_specs.append(pl.BlockSpec((K, N), lambda i: (0, 0)))
    if has_bias:
        inputs.append(bias.reshape(1, N))
        in_specs.append(pl.BlockSpec((1, N), lambda i: (0, 0)))
    if has_res:
        inputs.append(residual)
        in_specs.append(pl.BlockSpec((tm, N), lambda i: (i, 0)))

    return pl.pallas_call(
        functools.partial(_fused_mm_kernel, ln=ln, has_bias=has_bias,
                          act=act, has_res=has_res),
        out_shape=jax.ShapeDtypeStruct((M, N), x2d.dtype),
        grid=(M // tm,),
        in_specs=in_specs,
        out_specs=pl.BlockSpec((tm, N), lambda i: (i, 0)),
        compiler_params=pltpu.CompilerParams(dimension_semantics=("parallel",)),
    )(*inputs)


# ---------------------------------------------------------------------------
# Fused LayerNorm + concatenated adaptive-avg-pool matmul:
#   out[b] = A(P,HW) @ LN(x[b])(HW,C)     one kernel step per batch
# ---------------------------------------------------------------------------
def _pool_ln_kernel(x_ref, g_ref, b_ref, a_ref, o_ref):
    x = x_ref[0].astype(jnp.float32)                 # (HW, C)
    mu = jnp.mean(x, axis=-1, keepdims=True)
    xc = x - mu
    var = jnp.mean(xc * xc, axis=-1, keepdims=True)
    xn = xc * jax.lax.rsqrt(var + EPS) * g_ref[...] + b_ref[...]
    o_ref[0] = jnp.dot(a_ref[...], xn,
                       preferred_element_type=jnp.float32).astype(o_ref.dtype)


def pool_ln_matmul(x_bnc, A, gamma, beta):
    B, HW, C = x_bnc.shape
    P = A.shape[0]
    return pl.pallas_call(
        _pool_ln_kernel,
        out_shape=jax.ShapeDtypeStruct((B, P, C), x_bnc.dtype),
        grid=(B,),
        in_specs=[pl.BlockSpec((1, HW, C), lambda b: (b, 0, 0)),
                  pl.BlockSpec((1, C), lambda b: (0, 0)),
                  pl.BlockSpec((1, C), lambda b: (0, 0)),
                  pl.BlockSpec((P, HW), lambda b: (0, 0))],
        out_specs=pl.BlockSpec((1, P, C), lambda b: (b, 0, 0)),
        compiler_params=pltpu.CompilerParams(dimension_semantics=("parallel",)),
    )(x_bnc, gamma.reshape(1, C), beta.reshape(1, C), A)


@functools.lru_cache(maxsize=None)
def make_pool_matrices(H, W, pool_ratios):
    """Concatenated PyTorch adaptive_avg_pool2d matrices + per-ratio sizes."""
    mats, sizes = [], []
    for pr in pool_ratios:
        oh, ow = round(H / pr), round(W / pr)
        A = np.zeros((oh * ow, H * W), dtype=np.float32)
        for oy in range(oh):
            y0 = (oy * H) // oh
            y1 = -((-(oy + 1) * H) // oh)
            for ox in range(ow):
                x0 = (ox * W) // ow
                x1 = -((-(ox + 1) * W) // ow)
                c = 1.0 / ((y1 - y0) * (x1 - x0))
                for y in range(y0, y1):
                    for x in range(x0, x1):
                        A[oy * ow + ox, y * W + x] = c
        mats.append(A)
        sizes.append((oh, ow))
    return jnp.asarray(np.concatenate(mats, axis=0)), tuple(sizes)


# ---------------------------------------------------------------------------
# Depthwise 3x3 conv (padding=1, stride=1, groups=C), NHWC
# optional fused residual (out = x + conv(x)) and fused Hardswish
# ---------------------------------------------------------------------------
def _dwconv_kernel(x_ref, w_ref, b_ref, o_ref, *, H, W, act, residual):
    acc = jnp.zeros((H, W, o_ref.shape[-1]), jnp.float32)
    for dy in range(3):
        for dx in range(3):
            acc = acc + x_ref[0, dy:dy + H, dx:dx + W, :] * w_ref[dy * 3 + dx]
    acc = acc + b_ref[0]
    if act == "hardswish":
        acc = _hardswish(acc)
    if residual:
        acc = acc + x_ref[0, 1:1 + H, 1:1 + W, :]
    o_ref[0] = acc.astype(o_ref.dtype)


def dwconv3x3(x_nhwc, w9, bias, act="none", residual=False):
    B, H, W, C = x_nhwc.shape
    xpad = jnp.pad(x_nhwc, ((0, 0), (1, 1), (1, 1), (0, 0)))
    return pl.pallas_call(
        functools.partial(_dwconv_kernel, H=H, W=W, act=act, residual=residual),
        out_shape=jax.ShapeDtypeStruct((B, H, W, C), x_nhwc.dtype),
        grid=(B,),
        in_specs=[pl.BlockSpec((1, H + 2, W + 2, C), lambda b: (b, 0, 0, 0)),
                  pl.BlockSpec((9, C), lambda b: (0, 0)),
                  pl.BlockSpec((1, C), lambda b: (0, 0))],
        out_specs=pl.BlockSpec((1, H, W, C), lambda b: (b, 0, 0, 0)),
        compiler_params=pltpu.CompilerParams(dimension_semantics=("parallel",)),
    )(xpad, w9, bias.reshape(1, C))


# ---------------------------------------------------------------------------
# Fused multi-head attention + output projection + residual, one step per batch
#   q: (B,N,C)  kv: (B,P_pad,2C)  out = x_res + proj(softmax(qk^T*scale) v)
# Heads handled with in-kernel column slices (no HBM transposes); padded
# pooled tokens are masked to -inf before softmax.
# ---------------------------------------------------------------------------
def _attn_proj_kernel(q_ref, kv_ref, pw_ref, pb_ref, xres_ref, o_ref, *,
                      num_heads, p_real, scale):
    N, C = q_ref.shape[1], q_ref.shape[2]
    hd = C // num_heads
    P_pad = kv_ref.shape[1]
    q = q_ref[0].astype(jnp.float32)                 # (N, C)
    kv = kv_ref[0].astype(jnp.float32)               # (P_pad, 2C)
    valid = jax.lax.broadcasted_iota(jnp.int32, (1, P_pad), 1) < p_real
    acc = pb_ref[...] + xres_ref[0].astype(jnp.float32)     # (N, C) after bcast
    for h in range(num_heads):
        qh = q[:, h * hd:(h + 1) * hd]
        kh = kv[:, h * hd:(h + 1) * hd]
        vh = kv[:, C + h * hd:C + (h + 1) * hd]
        s = jax.lax.dot_general(qh, kh, (((1,), (1,)), ((), ())),
                                preferred_element_type=jnp.float32) * scale
        s = jnp.where(valid, s, -1e30)
        m = jnp.max(s, axis=-1, keepdims=True)
        p = jnp.exp(s - m)
        p = p / jnp.sum(p, axis=-1, keepdims=True)
        oh_ = jnp.dot(p, vh, preferred_element_type=jnp.float32)      # (N, hd)
        acc = acc + jnp.dot(oh_, pw_ref[h * hd:(h + 1) * hd, :],
                            preferred_element_type=jnp.float32)
    o_ref[0] = acc.astype(o_ref.dtype)


def attention_proj_residual(q, kv, proj_w, proj_b, x_res, *, num_heads,
                            p_real, scale):
    B, N, C = q.shape
    P_pad = kv.shape[1]
    return pl.pallas_call(
        functools.partial(_attn_proj_kernel, num_heads=num_heads,
                          p_real=p_real, scale=scale),
        out_shape=jax.ShapeDtypeStruct((B, N, C), x_res.dtype),
        grid=(B,),
        in_specs=[pl.BlockSpec((1, N, C), lambda b: (b, 0, 0)),
                  pl.BlockSpec((1, P_pad, 2 * C), lambda b: (b, 0, 0)),
                  pl.BlockSpec((C, C), lambda b: (0, 0)),
                  pl.BlockSpec((1, C), lambda b: (0, 0)),
                  pl.BlockSpec((1, N, C), lambda b: (b, 0, 0))],
        out_specs=pl.BlockSpec((1, N, C), lambda b: (b, 0, 0)),
        compiler_params=pltpu.CompilerParams(dimension_semantics=("parallel",)),
    )(q, kv, proj_w, proj_b.reshape(1, C), x_res)


# ---------------------------------------------------------------------------
# Block forward (glue that composes the Pallas kernels)
# ---------------------------------------------------------------------------
@functools.partial(jax.jit, static_argnums=(1, 2, 5, 6))
def block_forward(x, H, W, params, d_conv_params, num_heads, pool_ratios):
    B, N, C = x.shape
    pa = params["attn"]
    hd = C // num_heads
    scale = hd ** (-0.5)
    x2d = x.reshape(B * N, C)

    # ---- attention branch ----
    # q projection with fused norm1 (qkv_bias=False)
    q = fused_matmul(x2d, pa["q_w"],
                     gamma=params["norm1_g"], beta=params["norm1_b"])
    q = q.reshape(B, N, C)

    # all adaptive-avg-pools as one matmul (norm1 fused inside)
    A, sizes = make_pool_matrices(H, W, pool_ratios)
    A = A.astype(x.dtype)
    P_total = A.shape[0]
    pooled = pool_ln_matmul(x, A, params["norm1_g"], params["norm1_b"])

    # per-ratio depthwise 3x3 with fused residual: pool + dwconv(pool)
    outs, off = [], 0
    for (oh, ow), (dw, db) in zip(sizes, d_conv_params):
        seg = pooled[:, off:off + oh * ow, :].reshape(B, oh, ow, C)
        seg = dwconv3x3(seg, dw, db, act="none", residual=True)
        outs.append(seg.reshape(B, oh * ow, C))
        off += oh * ow
    pools = jnp.concatenate(outs, axis=1)                       # (B, P_total, C)

    # pad pooled tokens to a lane-friendly count; pad rows masked in attention
    P_pad = ((P_total + 127) // 128) * 128
    pools = jnp.pad(pools, ((0, 0), (0, P_pad - P_total), (0, 0)))

    # attention-LN fused into kv projection (no bias)
    kv = fused_matmul(pools.reshape(B * P_pad, C), pa["kv_w"],
                      gamma=pa["norm_g"], beta=pa["norm_b"])
    kv = kv.reshape(B, P_pad, 2 * C)

    # multi-head attention + output projection + residual add (x) fused
    x = attention_proj_residual(q, kv, pa["proj_w"], pa["proj_b"], x,
                                num_heads=num_heads, p_real=P_total,
                                scale=scale)

    # ---- IRB / MLP branch ----
    pm = params["mlp"]
    hid = pm["fc1_w"].shape[1]
    x2d = x.reshape(B * N, C)
    y = fused_matmul(x2d, pm["fc1_w"],
                     gamma=params["norm2_g"], beta=params["norm2_b"],
                     bias=pm["fc1_b"], act="hardswish")
    y = y.reshape(B, H, W, hid)
    y = dwconv3x3(y, pm["dw_w"], pm["dw_b"], act="hardswish", residual=False)
    x = fused_matmul(y.reshape(B * N, hid), pm["fc2_w"], bias=pm["fc2_b"],
                     residual=x2d)
    return x.reshape(B, N, C)


# ---------------------------------------------------------------------------
# Deterministic synthetic parameter init (shapes follow the PyTorch __init__)
# ---------------------------------------------------------------------------
def init_params(key, dim, mlp_ratio, pool_ratios):
    hid = int(dim * mlp_ratio)
    n_ratio = len(pool_ratios)
    ks = jax.random.split(key, 10 + 2 * n_ratio)

    def nrm(k, shape, s=0.02):
        return s * jax.random.normal(k, shape, jnp.float32)

    params = {
        "norm1_g": jnp.ones((dim,), jnp.float32),
        "norm1_b": jnp.zeros((dim,), jnp.float32),
        "norm2_g": jnp.ones((dim,), jnp.float32),
        "norm2_b": jnp.zeros((dim,), jnp.float32),
        "attn": {
            "q_w": nrm(ks[0], (dim, dim)),           # Linear(dim,dim), no bias
            "kv_w": nrm(ks[1], (dim, 2 * dim)),      # Linear(dim,2*dim), no bias
            "proj_w": nrm(ks[2], (dim, dim)),
            "proj_b": nrm(ks[3], (dim,)),
            "norm_g": jnp.ones((dim,), jnp.float32),
            "norm_b": jnp.zeros((dim,), jnp.float32),
        },
        "mlp": {
            "fc1_w": nrm(ks[4], (dim, hid)),         # Conv2d(dim,hid,1) as matmul
            "fc1_b": nrm(ks[5], (hid,)),
            "dw_w": nrm(ks[6], (9, hid)),            # depthwise 3x3, groups=hid
            "dw_b": nrm(ks[7], (hid,)),
            "fc2_w": nrm(ks[8], (hid, dim)),         # Conv2d(hid,dim,1)
            "fc2_b": nrm(ks[9], (dim,)),
        },
    }
    # d_convs: per-pool-ratio depthwise 3x3 convs (passed into forward in P2T)
    d_convs = [(nrm(ks[10 + 2 * i], (9, dim)), nrm(ks[11 + 2 * i], (dim,)))
               for i in range(n_ratio)]
    return params, d_convs


if __name__ == "__main__":
    B, H, W = 2, 16, 16
    dim, num_heads, mlp_ratio = 32, 2, 4.0
    # NOTE: default Block pool_ratios=[12,16,20,24] all collapse to 1x1 pools at
    # H=W=16; use [2,4,8,16] for a representative pooled-token count (85).
    pool_ratios = (2, 4, 8, 16)
    N = H * W

    key = jax.random.PRNGKey(0)
    kx, kp = jax.random.split(key)
    x = jax.random.normal(kx, (B, N, dim), jnp.float32)
    params, d_conv_params = init_params(kp, dim, mlp_ratio, list(pool_ratios))

    out = block_forward(x, H, W, params, d_conv_params, num_heads, pool_ratios)
    out = jax.block_until_ready(out)

    assert out.shape == (B, N, dim), out.shape
    assert bool(jnp.all(jnp.isfinite(out)))
    print("KERNEL_OK")
</pallas_src>

<mosaic_0001>
module attributes {stable_mosaic.version = 11 : i64} {
  func.func @_pool_ln_kernel(%arg0: i32, %arg1: memref<1x256x32xf32, #tpu.memory_space<vmem>>, %arg2: memref<1x32xf32, #tpu.memory_space<vmem>>, %arg3: memref<1x32xf32, #tpu.memory_space<vmem>>, %arg4: memref<85x256xf32, #tpu.memory_space<vmem>>, %arg5: memref<1x85x32xf32, #tpu.memory_space<vmem>>) attributes {dimension_semantics = [#tpu.dimension_semantics<parallel>], iteration_bounds = array<i64: 2>, scalar_prefetch = 0 : i64, scratch_operands = 0 : i64, tpu.core_type = #tpu.core_type<tc>, window_params = [{transform_indices = @transform_0, window_bounds = array<i64: 1, 256, 32>}, {pipeline_mode = #tpu.pipeline_mode<synchronous>, transform_indices = @transform_1, window_bounds = array<i64: 1, 32>}, {pipeline_mode = #tpu.pipeline_mode<synchronous>, transform_indices = @transform_2, window_bounds = array<i64: 1, 32>}, {pipeline_mode = #tpu.pipeline_mode<synchronous>, transform_indices = @transform_3, window_bounds = array<i64: 85, 256>}, {transform_indices = @transform_4, window_bounds = array<i64: 1, 85, 32>}]} {
    %c0 = arith.constant 0 : index
    %c0_0 = arith.constant 0 : index
    %c0_1 = arith.constant 0 : index
    %0 = vector.load %arg1[%c0, %c0_0, %c0_1] : memref<1x256x32xf32, #tpu.memory_space<vmem>>, vector<1x256x32xf32>
    %1 = vector.shape_cast %0 : vector<1x256x32xf32> to vector<256x32xf32>
    %cst = arith.constant dense<0.000000e+00> : vector<256xf32>
    %2 = vector.multi_reduction <add>, %1, %cst [1] : vector<256x32xf32> to vector<256xf32>
    %3 = vector.shape_cast %2 : vector<256xf32> to vector<256x1xf32>
    %cst_2 = arith.constant 3.200000e+01 : f32
    %4 = vector.broadcast %cst_2 : f32 to vector<256x1xf32>
    %5 = arith.divf %3, %4 : vector<256x1xf32>
    %6 = vector.broadcast %5 : vector<256x1xf32> to vector<256x32xf32>
    %7 = arith.subf %1, %6 : vector<256x32xf32>
    %8 = arith.mulf %7, %7 : vector<256x32xf32>
    %cst_3 = arith.constant dense<0.000000e+00> : vector<256xf32>
    %9 = vector.multi_reduction <add>, %8, %cst_3 [1] : vector<256x32xf32> to vector<256xf32>
    %10 = vector.shape_cast %9 : vector<256xf32> to vector<256x1xf32>
    %cst_4 = arith.constant 3.200000e+01 : f32
    %11 = vector.broadcast %cst_4 : f32 to vector<256x1xf32>
    %12 = arith.divf %10, %11 : vector<256x1xf32>
    %cst_5 = arith.constant 9.99999974E-6 : f32
    %13 = vector.broadcast %cst_5 : f32 to vector<256x1xf32>
    %14 = arith.addf %12, %13 : vector<256x1xf32>
    %15 = math.rsqrt %14 : vector<256x1xf32>
    %16 = vector.broadcast %15 : vector<256x1xf32> to vector<256x32xf32>
    %17 = arith.mulf %7, %16 : vector<256x32xf32>
    %c0_6 = arith.constant 0 : index
    %c0_7 = arith.constant 0 : index
    %18 = vector.load %arg2[%c0_6, %c0_7] : memref<1x32xf32, #tpu.memory_space<vmem>>, vector<1x32xf32>
    %19 = vector.broadcast %18 : vector<1x32xf32> to vector<256x32xf32>
    %20 = arith.mulf %17, %19 : vector<256x32xf32>
    %c0_8 = arith.constant 0 : index
    %c0_9 = arith.constant 0 : index
    %21 = vector.load %arg3[%c0_8, %c0_9] : memref<1x32xf32, #tpu.memory_space<vmem>>, vector<1x32xf32>
    %22 = vector.broadcast %21 : vector<1x32xf32> to vector<256x32xf32>
    %23 = arith.addf %20, %22 : vector<256x32xf32>
    %c0_10 = arith.constant 0 : index
    %c0_11 = arith.constant 0 : index
    %24 = vector.load %arg4[%c0_10, %c0_11] : memref<85x256xf32, #tpu.memory_space<vmem>>, vector<85x256xf32>
    %cst_12 = arith.constant dense<0.000000e+00> : vector<85x32xf32>
    %25 = tpu.matmul %24, %23, %cst_12 {dimension_numbers = #tpu.dot_dimension_numbers<[1], [0], [0], [1], [0, 0, 1, 1], [], []>} : vector<85x256xf32>, vector<256x32xf32>, vector<85x32xf32> -> vector<85x32xf32>
    %c0_13 = arith.constant 0 : index
    %c0_14 = arith.constant 0 : index
    %c0_15 = arith.constant 0 : index
    %26 = vector.load %arg5[%c0_13, %c0_14, %c0_15] : memref<1x85x32xf32, #tpu.memory_space<vmem>>, vector<1x85x32xf32>
    %27 = vector.shape_cast %26 : vector<1x85x32xf32> to vector<85x32xf32>
    %28 = vector.shape_cast %25 : vector<85x32xf32> to vector<1x85x32xf32>
    tpu.vector_store %arg5[%c0_13, %c0_14, %c0_15], %28 {strides = array<i32>} : memref<1x85x32xf32, #tpu.memory_space<vmem>>, vector<1x85x32xf32>,
    return
  }
  func.func @transform_0(%arg0: i32) -> (i32, i32, i32) {
    %c0_i32 = arith.constant 0 : i32
    %c0_i32_0 = arith.constant 0 : i32
    %c0_i32_1 = arith.constant 0 : i32
    return %arg0, %c0_i32, %c0_i32_0 : i32, i32, i32
  }
  func.func @transform_1(%arg0: i32) -> (i32, i32) {
    %c0_i32 = arith.constant 0 : i32
    %c0_i32_0 = arith.constant 0 : i32
    %c0_i32_1 = arith.constant 0 : i32
    return %c0_i32, %c0_i32_0 : i32, i32
  }
  func.func @transform_2(%arg0: i32) -> (i32, i32) {
    %c0_i32 = arith.constant 0 : i32
    %c0_i32_0 = arith.constant 0 : i32
    %c0_i32_1 = arith.constant 0 : i32
    return %c0_i32, %c0_i32_0 : i32, i32
  }
  func.func @transform_3(%arg0: i32) -> (i32, i32) {
    %c0_i32 = arith.constant 0 : i32
    %c0_i32_0 = arith.constant 0 : i32
    %c0_i32_1 = arith.constant 0 : i32
    return %c0_i32, %c0_i32_0 : i32, i32
  }
  func.func @transform_4(%arg0: i32) -> (i32, i32, i32) {
    %c0_i32 = arith.constant 0 : i32
    %c0_i32_0 = arith.constant 0 : i32
    %c0_i32_1 = arith.constant 0 : i32
    return %arg0, %c0_i32, %c0_i32_0 : i32, i32, i32
  }
}

module attributes {stable_mosaic.version = 11 : i64} {
  func.func @_dwconv_kernel(%arg0: i32, %arg1: memref<1x10x10x32xf32, #tpu.memory_space<vmem>>, %arg2: memref<9x32xf32, #tpu.memory_space<vmem>>, %arg3: memref<1x32xf32, #tpu.memory_space<vmem>>, %arg4: memref<1x8x8x32xf32, #tpu.memory_space<vmem>>) attributes {dimension_semantics = [#tpu.dimension_semantics<parallel>], iteration_bounds = array<i64: 2>, scalar_prefetch = 0 : i64, scratch_operands = 0 : i64, tpu.core_type = #tpu.core_type<tc>, window_params = [{transform_indices = @transform_0, window_bounds = array<i64: 1, 10, 10, 32>}, {pipeline_mode = #tpu.pipeline_mode<synchronous>, transform_indices = @transform_1, window_bounds = array<i64: 9, 32>}, {pipeline_mode = #tpu.pipeline_mode<synchronous>, transform_indices = @transform_2, window_bounds = array<i64: 1, 32>}, {transform_indices = @transform_3, window_bounds = array<i64: 1, 8, 8, 32>}]} {
    %cst = arith.constant 0.000000e+00 : f32
    %0 = vector.broadcast %cst : f32 to vector<8x8x32xf32>
    %c0 = arith.constant 0 : index
    %c0_0 = arith.constant 0 : index
    %c0_1 = arith.constant 0 : index
    %c0_2 = arith.constant 0 : index
    %1 = vector.load %arg1[%c0, %c0_0, %c0_1, %c0_2] : memref<1x10x10x32xf32, #tpu.memory_space<vmem>>, vector<1x8x8x32xf32>
    %2 = vector.shape_cast %1 : vector<1x8x8x32xf32> to vector<8x8x32xf32>
    %c0_3 = arith.constant 0 : index
    %c0_4 = arith.constant 0 : index
    %3 = vector.load %arg2[%c0_3, %c0_4] : memref<9x32xf32, #tpu.memory_space<vmem>>, vector<1x32xf32>
    %4 = vector.shape_cast %3 : vector<1x32xf32> to vector<32xf32>
    %5 = vector.shape_cast %4 : vector<32xf32> to vector<1x1x32xf32>
    %6 = vector.broadcast %5 : vector<1x1x32xf32> to vector<8x8x32xf32>
    %7 = arith.mulf %2, %6 : vector<8x8x32xf32>
    %8 = arith.addf %0, %7 : vector<8x8x32xf32>
    %c0_5 = arith.constant 0 : index
    %c0_6 = arith.constant 0 : index
    %c1 = arith.constant 1 : index
    %c0_7 = arith.constant 0 : index
    %9 = vector.load %arg1[%c0_5, %c0_6, %c1, %c0_7] : memref<1x10x10x32xf32, #tpu.memory_space<vmem>>, vector<1x8x8x32xf32>
    %10 = vector.shape_cast %9 : vector<1x8x8x32xf32> to vector<8x8x32xf32>
    %c1_8 = arith.constant 1 : index
    %c0_9 = arith.constant 0 : index
    %11 = vector.load %arg2[%c1_8, %c0_9] : memref<9x32xf32, #tpu.memory_space<vmem>>, vector<1x32xf32>
    %12 = vector.shape_cast %11 : vector<1x32xf32> to vector<32xf32>
    %13 = vector.shape_cast %12 : vector<32xf32> to vector<1x1x32xf32>
    %14 = vector.broadcast %13 : vector<1x1x32xf32> to vector<8x8x32xf32>
    %15 = arith.mulf %10, %14 : vector<8x8x32xf32>
    %16 = arith.addf %8, %15 : vector<8x8x32xf32>
    %c0_10 = arith.constant 0 : index
    %c0_11 = arith.constant 0 : index
    %c2 = arith.constant 2 : index
    %c0_12 = arith.constant 0 : index
    %17 = vector.load %arg1[%c0_10, %c0_11, %c2, %c0_12] : memref<1x10x10x32xf32, #tpu.memory_space<vmem>>, vector<1x8x8x32xf32>
    %18 = vector.shape_cast %17 : vector<1x8x8x32xf32> to vector<8x8x32xf32>
    %c2_13 = arith.constant 2 : index
    %c0_14 = arith.constant 0 : index
    %19 = vector.load %arg2[%c2_13, %c0_14] : memref<9x32xf32, #tpu.memory_space<vmem>>, vector<1x32xf32>
    %20 = vector.shape_cast %19 : vector<1x32xf32> to vector<32xf32>
    %21 = vector.shape_cast %20 : vector<32xf32> to vector<1x1x32xf32>
    %22 = vector.broadcast %21 : vector<1x1x32xf32> to vector<8x8x32xf32>
    %23 = arith.mulf %18, %22 : vector<8x8x32xf32>
    %24 = arith.addf %16, %23 : vector<8x8x32xf32>
    %c0_15 = arith.constant 0 : index
    %c1_16 = arith.constant 1 : index
    %c0_17 = arith.constant 0 : index
    %c0_18 = arith.constant 0 : index
    %25 = vector.load %arg1[%c0_15, %c1_16, %c0_17, %c0_18] : memref<1x10x10x32xf32, #tpu.memory_space<vmem>>, vector<1x8x8x32xf32>
    %26 = vector.shape_cast %25 : vector<1x8x8x32xf32> to vector<8x8x32xf32>
    %c3 = arith.constant 3 : index
    %c0_19 = arith.constant 0 : index
    %27 = vector.load %arg2[%c3, %c0_19] : memref<9x32xf32, #tpu.memory_space<vmem>>, vector<1x32xf32>
    %28 = vector.shape_cast %27 : vector<1x32xf32> to vector<32xf32>
    %29 = vector.shape_cast %28 : vector<32xf32> to vector<1x1x32xf32>
    %30 = vector.broadcast %29 : vector<1x1x32xf32> to vector<8x8x32xf32>
    %31 = arith.mulf %26, %30 : vector<8x8x32xf32>
    %32 = arith.addf %24, %31 : vector<8x8x32xf32>
    %c0_20 = arith.constant 0 : index
    %c1_21 = arith.constant 1 : index
    %c1_22 = arith.constant 1 : index
    %c0_23 = arith.constant 0 : index
    %33 = vector.load %arg1[%c0_20, %c1_21, %c1_22, %c0_23] : memref<1x10x10x32xf32, #tpu.memory_space<vmem>>, vector<1x8x8x32xf32>
    %34 = vector.shape_cast %33 : vector<1x8x8x32xf32> to vector<8x8x32xf32>
    %c4 = arith.constant 4 : index
    %c0_24 = arith.constant 0 : index
    %35 = vector.load %arg2[%c4, %c0_24] : memref<9x32xf32, #tpu.memory_space<vmem>>, vector<1x32xf32>
    %36 = vector.shape_cast %35 : vector<1x32xf32> to vector<32xf32>
    %37 = vector.shape_cast %36 : vector<32xf32> to vector<1x1x32xf32>
    %38 = vector.broadcast %37 : vector<1x1x32xf32> to vector<8x8x32xf32>
    %39 = arith.mulf %34, %38 : vector<8x8x32xf32>
    %40 = arith.addf %32, %39 : vector<8x8x32xf32>
    %c0_25 = arith.constant 0 : index
    %c1_26 = arith.constant 1 : index
    %c2_27 = arith.constant 2 : index
    %c0_28 = arith.constant 0 : index
    %41 = vector.load %arg1[%c0_25, %c1_26, %c2_27, %c0_28] : memref<1x10x10x32xf32, #tpu.memory_space<vmem>>, vector<1x8x8x32xf32>
    %42 = vector.shape_cast %41 : vector<1x8x8x32xf32> to vector<8x8x32xf32>
    %c5 = arith.constant 5 : index
    %c0_29 = arith.constant 0 : index
    %43 = vector.load %arg2[%c5, %c0_29] : memref<9x32xf32, #tpu.memory_space<vmem>>, vector<1x32xf32>
    %44 = vector.shape_cast %43 : vector<1x32xf32> to vector<32xf32>
    %45 = vector.shape_cast %44 : vector<32xf32> to vector<1x1x32xf32>
    %46 = vector.broadcast %45 : vector<1x1x32xf32> to vector<8x8x32xf32>
    %47 = arith.mulf %42, %46 : vector<8x8x32xf32>
    %48 = arith.addf %40, %47 : vector<8x8x32xf32>
    %c0_30 = arith.constant 0 : index
    %c2_31 = arith.constant 2 : index
    %c0_32 = arith.constant 0 : index
    %c0_33 = arith.constant 0 : index
    %49 = vector.load %arg1[%c0_30, %c2_31, %c0_32, %c0_33] : memref<1x10x10x32xf32, #tpu.memory_space<vmem>>, vector<1x8x8x32xf32>
    %50 = vector.shape_cast %49 : vector<1x8x8x32xf32> to vector<8x8x32xf32>
    %c6 = arith.constant 6 : index
    %c0_34 = arith.constant 0 : index
    %51 = vector.load %arg2[%c6, %c0_34] : memref<9x32xf32, #tpu.memory_space<vmem>>, vector<1x32xf32>
    %52 = vector.shape_cast %51 : vector<1x32xf32> to vector<32xf32>
    %53 = vector.shape_cast %52 : vector<32xf32> to vector<1x1x32xf32>
    %54 = vector.broadcast %53 : vector<1x1x32xf32> to vector<8x8x32xf32>
    %55 = arith.mulf %50, %54 : vector<8x8x32xf32>
    %56 = arith.addf %48, %55 : vector<8x8x32xf32>
    %c0_35 = arith.constant 0 : index
    %c2_36 = arith.constant 2 : index
    %c1_37 = arith.constant 1 : index
    %c0_38 = arith.constant 0 : index
    %57 = vector.load %arg1[%c0_35, %c2_36, %c1_37, %c0_38] : memref<1x10x10x32xf32, #tpu.memory_space<vmem>>, vector<1x8x8x32xf32>
    %58 = vector.shape_cast %57 : vector<1x8x8x32xf32> to vector<8x8x32xf32>
    %c7 = arith.constant 7 : index
    %c0_39 = arith.constant 0 : index
    %59 = vector.load %arg2[%c7, %c0_39] : memref<9x32xf32, #tpu.memory_space<vmem>>, vector<1x32xf32>
    %60 = vector.shape_cast %59 : vector<1x32xf32> to vector<32xf32>
    %61 = vector.shape_cast %60 : vector<32xf32> to vector<1x1x32xf32>
    %62 = vector.broadcast %61 : vector<1x1x32xf32> to vector<8x8x32xf32>
    %63 = arith.mulf %58, %62 : vector<8x8x32xf32>
    %64 = arith.addf %56, %63 : vector<8x8x32xf32>
    %c0_40 = arith.constant 0 : index
    %c2_41 = arith.constant 2 : index
    %c2_42 = arith.constant 2 : index
    %c0_43 = arith.constant 0 : index
    %65 = vector.load %arg1[%c0_40, %c2_41, %c2_42, %c0_43] : memref<1x10x10x32xf32, #tpu.memory_space<vmem>>, vector<1x8x8x32xf32>
    %66 = vector.shape_cast %65 : vector<1x8x8x32xf32> to vector<8x8x32xf32>
    %c8 = arith.constant 8 : index
    %c0_44 = arith.constant 0 : index
    %67 = vector.load %arg2[%c8, %c0_44] : memref<9x32xf32, #tpu.memory_space<vmem>>, vector<1x32xf32>
    %68 = vector.shape_cast %67 : vector<1x32xf32> to vector<32xf32>
    %69 = vector.shape_cast %68 : vector<32xf32> to vector<1x1x32xf32>
    %70 = vector.broadcast %69 : vector<1x1x32xf32> to vector<8x8x32xf32>
    %71 = arith.mulf %66, %70 : vector<8x8x32xf32>
    %72 = arith.addf %64, %71 : vector<8x8x32xf32>
    %c0_45 = arith.constant 0 : index
    %c0_46 = arith.constant 0 : index
    %73 = vector.load %arg3[%c0_45, %c0_46] : memref<1x32xf32, #tpu.memory_space<vmem>>, vector<1x32xf32>
    %74 = vector.shape_cast %73 : vector<1x32xf32> to vector<32xf32>
    %75 = vector.shape_cast %74 : vector<32xf32> to vector<1x1x32xf32>
    %76 = vector.broadcast %75 : vector<1x1x32xf32> to vector<8x8x32xf32>
    %77 = arith.addf %72, %76 : vector<8x8x32xf32>
    %c0_47 = arith.constant 0 : index
    %c1_48 = arith.constant 1 : index
    %c1_49 = arith.constant 1 : index
    %c0_50 = arith.constant 0 : index
    %78 = vector.load %arg1[%c0_47, %c1_48, %c1_49, %c0_50] : memref<1x10x10x32xf32, #tpu.memory_space<vmem>>, vector<1x8x8x32xf32>
    %79 = vector.shape_cast %78 : vector<1x8x8x32xf32> to vector<8x8x32xf32>
    %80 = arith.addf %77, %79 : vector<8x8x32xf32>
    %c0_51 = arith.constant 0 : index
    %c0_52 = arith.constant 0 : index
    %c0_53 = arith.constant 0 : index
    %c0_54 = arith.constant 0 : index
    %81 = vector.load %arg4[%c0_51, %c0_52, %c0_53, %c0_54] : memref<1x8x8x32xf32, #tpu.memory_space<vmem>>, vector<1x8x8x32xf32>
    %82 = vector.shape_cast %81 : vector<1x8x8x32xf32> to vector<8x8x32xf32>
    %83 = vector.shape_cast %80 : vector<8x8x32xf32> to vector<1x8x8x32xf32>
    tpu.vector_store %arg4[%c0_51, %c0_52, %c0_53, %c0_54], %83 {strides = array<i32>} : memref<1x8x8x32xf32, #tpu.memory_space<vmem>>, vector<1x8x8x32xf32>,
    return
  }
  func.func @transform_0(%arg0: i32) -> (i32, i32, i32, i32) {
    %c0_i32 = arith.constant 0 : i32
    %c0_i32_0 = arith.constant 0 : i32
    %c0_i32_1 = arith.constant 0 : i32
    %c0_i32_2 = arith.constant 0 : i32
    return %arg0, %c0_i32, %c0_i32_0, %c0_i32_1 : i32, i32, i32, i32
  }
  func.func @transform_1(%arg0: i32) -> (i32, i32) {
    %c0_i32 = arith.constant 0 : i32
    %c0_i32_0 = arith.constant 0 : i32
    %c0_i32_1 = arith.constant 0 : i32
    return %c0_i32, %c0_i32_0 : i32, i32
  }
  func.func @transform_2(%arg0: i32) -> (i32, i32) {
    %c0_i32 = arith.constant 0 : i32
    %c0_i32_0 = arith.constant 0 : i32
    %c0_i32_1 = arith.constant 0 : i32
    return %c0_i32, %c0_i32_0 : i32, i32
  }
  func.func @transform_3(%arg0: i32) -> (i32, i32, i32, i32) {
    %c0_i32 = arith.constant 0 : i32
    %c0_i32_0 = arith.constant 0 : i32
    %c0_i32_1 = arith.constant 0 : i32
    %c0_i32_2 = arith.constant 0 : i32
    return %arg0, %c0_i32, %c0_i32_0, %c0_i32_1 : i32, i32, i32, i32
  }
}

module attributes {stable_mosaic.version = 11 : i64} {
  func.func @_dwconv_kernel(%arg0: i32, %arg1: memref<1x6x6x32xf32, #tpu.memory_space<vmem>>, %arg2: memref<9x32xf32, #tpu.memory_space<vmem>>, %arg3: memref<1x32xf32, #tpu.memory_space<vmem>>, %arg4: memref<1x4x4x32xf32, #tpu.memory_space<vmem>>) attributes {dimension_semantics = [#tpu.dimension_semantics<parallel>], iteration_bounds = array<i64: 2>, scalar_prefetch = 0 : i64, scratch_operands = 0 : i64, tpu.core_type = #tpu.core_type<tc>, window_params = [{transform_indices = @transform_0, window_bounds = array<i64: 1, 6, 6, 32>}, {pipeline_mode = #tpu.pipeline_mode<synchronous>, transform_indices = @transform_1, window_bounds = array<i64: 9, 32>}, {pipeline_mode = #tpu.pipeline_mode<synchronous>, transform_indices = @transform_2, window_bounds = array<i64: 1, 32>}, {transform_indices = @transform_3, window_bounds = array<i64: 1, 4, 4, 32>}]} {
    %cst = arith.constant 0.000000e+00 : f32
    %0 = vector.broadcast %cst : f32 to vector<4x4x32xf32>
    %c0 = arith.constant 0 : index
    %c0_0 = arith.constant 0 : index
    %c0_1 = arith.constant 0 : index
    %c0_2 = arith.constant 0 : index
    %1 = vector.load %arg1[%c0, %c0_0, %c0_1, %c0_2] : memref<1x6x6x32xf32, #tpu.memory_space<vmem>>, vector<1x4x4x32xf32>
    %2 = vector.shape_cast %1 : vector<1x4x4x32xf32> to vector<4x4x32xf32>
    %c0_3 = arith.constant 0 : index
    %c0_4 = arith.constant 0 : index
    %3 = vector.load %arg2[%c0_3, %c0_4] : memref<9x32xf32, #tpu.memory_space<vmem>>, vector<1x32xf32>
    %4 = vector.shape_cast %3 : vector<1x32xf32> to vector<32xf32>
    %5 = vector.shape_cast %4 : vector<32xf32> to vector<1x1x32xf32>
    %6 = vector.broadcast %5 : vector<1x1x32xf32> to vector<4x4x32xf32>
    %7 = arith.mulf %2, %6 : vector<4x4x32xf32>
    %8 = arith.addf %0, %7 : vector<4x4x32xf32>
    %c0_5 = arith.constant 0 : index
    %c0_6 = arith.constant 0 : index
    %c1 = arith.constant 1 : index
    %c0_7 = arith.constant 0 : index
    %9 = vector.load %arg1[%c0_5, %c0_6, %c1, %c0_7] : memref<1x6x6x32xf32, #tpu.memory_space<vmem>>, vector<1x4x4x32xf32>
    %10 = vector.shape_cast %9 : vector<1x4x4x32xf32> to vector<4x4x32xf32>
    %c1_8 = arith.constant 1 : index
    %c0_9 = arith.constant 0 : index
    %11 = vector.load %arg2[%c1_8, %c0_9] : memref<9x32xf32, #tpu.memory_space<vmem>>, vector<1x32xf32>
    %12 = vector.shape_cast %11 : vector<1x32xf32> to vector<32xf32>
    %13 = vector.shape_cast %12 : vector<32xf32> to vector<1x1x32xf32>
    %14 = vector.broadcast %13 : vector<1x1x32xf32> to vector<4x4x32xf32>
    %15 = arith.mulf %10, %14 : vector<4x4x32xf32>
    %16 = arith.addf %8, %15 : vector<4x4x32xf32>
    %c0_10 = arith.constant 0 : index
    %c0_11 = arith.constant 0 : index
    %c2 = arith.constant 2 : index
    %c0_12 = arith.constant 0 : index
    %17 = vector.load %arg1[%c0_10, %c0_11, %c2, %c0_12] : memref<1x6x6x32xf32, #tpu.memory_space<vmem>>, vector<1x4x4x32xf32>
    %18 = vector.shape_cast %17 : vector<1x4x4x32xf32> to vector<4x4x32xf32>
    %c2_13 = arith.constant 2 : index
    %c0_14 = arith.constant 0 : index
    %19 = vector.load %arg2[%c2_13, %c0_14] : memref<9x32xf32, #tpu.memory_space<vmem>>, vector<1x32xf32>
    %20 = vector.shape_cast %19 : vector<1x32xf32> to vector<32xf32>
    %21 = vector.shape_cast %20 : vector<32xf32> to vector<1x1x32xf32>
    %22 = vector.broadcast %21 : vector<1x1x32xf32> to vector<4x4x32xf32>
    %23 = arith.mulf %18, %22 : vector<4x4x32xf32>
    %24 = arith.addf %16, %23 : vector<4x4x32xf32>
    %c0_15 = arith.constant 0 : index
    %c1_16 = arith.constant 1 : index
    %c0_17 = arith.constant 0 : index
    %c0_18 = arith.constant 0 : index
    %25 = vector.load %arg1[%c0_15, %c1_16, %c0_17, %c0_18] : memref<1x6x6x32xf32, #tpu.memory_space<vmem>>, vector<1x4x4x32xf32>
    %26 = vector.shape_cast %25 : vector<1x4x4x32xf32> to vector<4x4x32xf32>
    %c3 = arith.constant 3 : index
    %c0_19 = arith.constant 0 : index
    %27 = vector.load %arg2[%c3, %c0_19] : memref<9x32xf32, #tpu.memory_space<vmem>>, vector<1x32xf32>
    %28 = vector.shape_cast %27 : vector<1x32xf32> to vector<32xf32>
    %29 = vector.shape_cast %28 : vector<32xf32> to vector<1x1x32xf32>
    %30 = vector.broadcast %29 : vector<1x1x32xf32> to vector<4x4x32xf32>
    %31 = arith.mulf %26, %30 : vector<4x4x32xf32>
    %32 = arith.addf %24, %31 : vector<4x4x32xf32>
    %c0_20 = arith.constant 0 : index
    %c1_21 = arith.constant 1 : index
    %c1_22 = arith.constant 1 : index
    %c0_23 = arith.constant 0 : index
    %33 = vector.load %arg1[%c0_20, %c1_21, %c1_22, %c0_23] : memref<1x6x6x32xf32, #tpu.memory_space<vmem>>, vector<1x4x4x32xf32>
    %34 = vector.shape_cast %33 : vector<1x4x4x32xf32> to vector<4x4x32xf32>
    %c4 = arith.constant 4 : index
    %c0_24 = arith.constant 0 : index
    %35 = vector.load %arg2[%c4, %c0_24] : memref<9x32xf32, #tpu.memory_space<vmem>>, vector<1x32xf32>
    %36 = vector.shape_cast %35 : vector<1x32xf32> to vector<32xf32>
    %37 = vector.shape_cast %36 : vector<32xf32> to vector<1x1x32xf32>
    %38 = vector.broadcast %37 : vector<1x1x32xf32> to vector<4x4x32xf32>
    %39 = arith.mulf %34, %38 : vector<4x4x32xf32>
    %40 = arith.addf %32, %39 : vector<4x4x32xf32>
    %c0_25 = arith.constant 0 : index
    %c1_26 = arith.constant 1 : index
    %c2_27 = arith.constant 2 : index
    %c0_28 = arith.constant 0 : index
    %41 = vector.load %arg1[%c0_25, %c1_26, %c2_27, %c0_28] : memref<1x6x6x32xf32, #tpu.memory_space<vmem>>, vector<1x4x4x32xf32>
    %42 = vector.shape_cast %41 : vector<1x4x4x32xf32> to vector<4x4x32xf32>
    %c5 = arith.constant 5 : index
    %c0_29 = arith.constant 0 : index
    %43 = vector.load %arg2[%c5, %c0_29] : memref<9x32xf32, #tpu.memory_space<vmem>>, vector<1x32xf32>
    %44 = vector.shape_cast %43 : vector<1x32xf32> to vector<32xf32>
    %45 = vector.shape_cast %44 : vector<32xf32> to vector<1x1x32xf32>
    %46 = vector.broadcast %45 : vector<1x1x32xf32> to vector<4x4x32xf32>
    %47 = arith.mulf %42, %46 : vector<4x4x32xf32>
    %48 = arith.addf %40, %47 : vector<4x4x32xf32>
    %c0_30 = arith.constant 0 : index
    %c2_31 = arith.constant 2 : index
    %c0_32 = arith.constant 0 : index
    %c0_33 = arith.constant 0 : index
    %49 = vector.load %arg1[%c0_30, %c2_31, %c0_32, %c0_33] : memref<1x6x6x32xf32, #tpu.memory_space<vmem>>, vector<1x4x4x32xf32>
    %50 = vector.shape_cast %49 : vector<1x4x4x32xf32> to vector<4x4x32xf32>
    %c6 = arith.constant 6 : index
    %c0_34 = arith.constant 0 : index
    %51 = vector.load %arg2[%c6, %c0_34] : memref<9x32xf32, #tpu.memory_space<vmem>>, vector<1x32xf32>
    %52 = vector.shape_cast %51 : vector<1x32xf32> to vector<32xf32>
    %53 = vector.shape_cast %52 : vector<32xf32> to vector<1x1x32xf32>
    %54 = vector.broadcast %53 : vector<1x1x32xf32> to vector<4x4x32xf32>
    %55 = arith.mulf %50, %54 : vector<4x4x32xf32>
    %56 = arith.addf %48, %55 : vector<4x4x32xf32>
    %c0_35 = arith.constant 0 : index
    %c2_36 = arith.constant 2 : index
    %c1_37 = arith.constant 1 : index
    %c0_38 = arith.constant 0 : index
    %57 = vector.load %arg1[%c0_35, %c2_36, %c1_37, %c0_38] : memref<1x6x6x32xf32, #tpu.memory_space<vmem>>, vector<1x4x4x32xf32>
    %58 = vector.shape_cast %57 : vector<1x4x4x32xf32> to vector<4x4x32xf32>
    %c7 = arith.constant 7 : index
    %c0_39 = arith.constant 0 : index
    %59 = vector.load %arg2[%c7, %c0_39] : memref<9x32xf32, #tpu.memory_space<vmem>>, vector<1x32xf32>
    %60 = vector.shape_cast %59 : vector<1x32xf32> to vector<32xf32>
    %61 = vector.shape_cast %60 : vector<32xf32> to vector<1x1x32xf32>
    %62 = vector.broadcast %61 : vector<1x1x32xf32> to vector<4x4x32xf32>
    %63 = arith.mulf %58, %62 : vector<4x4x32xf32>
    %64 = arith.addf %56, %63 : vector<4x4x32xf32>
    %c0_40 = arith.constant 0 : index
    %c2_41 = arith.constant 2 : index
    %c2_42 = arith.constant 2 : index
    %c0_43 = arith.constant 0 : index
    %65 = vector.load %arg1[%c0_40, %c2_41, %c2_42, %c0_43] : memref<1x6x6x32xf32, #tpu.memory_space<vmem>>, vector<1x4x4x32xf32>
    %66 = vector.shape_cast %65 : vector<1x4x4x32xf32> to vector<4x4x32xf32>
    %c8 = arith.constant 8 : index
    %c0_44 = arith.constant 0 : index
    %67 = vector.load %arg2[%c8, %c0_44] : memref<9x32xf32, #tpu.memory_space<vmem>>, vector<1x32xf32>
    %68 = vector.shape_cast %67 : vector<1x32xf32> to vector<32xf32>
    %69 = vector.shape_cast %68 : vector<32xf32> to vector<1x1x32xf32>
    %70 = vector.broadcast %69 : vector<1x1x32xf32> to vector<4x4x32xf32>
    %71 = arith.mulf %66, %70 : vector<4x4x32xf32>
    %72 = arith.addf %64, %71 : vector<4x4x32xf32>
    %c0_45 = arith.constant 0 : index
    %c0_46 = arith.constant 0 : index
    %73 = vector.load %arg3[%c0_45, %c0_46] : memref<1x32xf32, #tpu.memory_space<vmem>>, vector<1x32xf32>
    %74 = vector.shape_cast %73 : vector<1x32xf32> to vector<32xf32>
    %75 = vector.shape_cast %74 : vector<32xf32> to vector<1x1x32xf32>
    %76 = vector.broadcast %75 : vector<1x1x32xf32> to vector<4x4x32xf32>
    %77 = arith.addf %72, %76 : vector<4x4x32xf32>
    %c0_47 = arith.constant 0 : index
    %c1_48 = arith.constant 1 : index
    %c1_49 = arith.constant 1 : index
    %c0_50 = arith.constant 0 : index
    %78 = vector.load %arg1[%c0_47, %c1_48, %c1_49, %c0_50] : memref<1x6x6x32xf32, #tpu.memory_space<vmem>>, vector<1x4x4x32xf32>
    %79 = vector.shape_cast %78 : vector<1x4x4x32xf32> to vector<4x4x32xf32>
    %80 = arith.addf %77, %79 : vector<4x4x32xf32>
    %c0_51 = arith.constant 0 : index
    %c0_52 = arith.constant 0 : index
    %c0_53 = arith.constant 0 : index
    %c0_54 = arith.constant 0 : index
    %81 = vector.load %arg4[%c0_51, %c0_52, %c0_53, %c0_54] : memref<1x4x4x32xf32, #tpu.memory_space<vmem>>, vector<1x4x4x32xf32>
    %82 = vector.shape_cast %81 : vector<1x4x4x32xf32> to vector<4x4x32xf32>
    %83 = vector.shape_cast %80 : vector<4x4x32xf32> to vector<1x4x4x32xf32>
    tpu.vector_store %arg4[%c0_51, %c0_52, %c0_53, %c0_54], %83 {strides = array<i32>} : memref<1x4x4x32xf32, #tpu.memory_space<vmem>>, vector<1x4x4x32xf32>,
    return
  }
  func.func @transform_0(%arg0: i32) -> (i32, i32, i32, i32) {
    %c0_i32 = arith.constant 0 : i32
    %c0_i32_0 = arith.constant 0 : i32
    %c0_i32_1 = arith.constant 0 : i32
    %c0_i32_2 = arith.constant 0 : i32
    return %arg0, %c0_i32, %c0_i32_0, %c0_i32_1 : i32, i32, i32, i32
  }
  func.func @transform_1(%arg0: i32) -> (i32, i32) {
    %c0_i32 = arith.constant 0 : i32
    %c0_i32_0 = arith.constant 0 : i32
    %c0_i32_1 = arith.constant 0 : i32
    return %c0_i32, %c0_i32_0 : i32, i32
  }
  func.func @transform_2(%arg0: i32) -> (i32, i32) {
    %c0_i32 = arith.constant 0 : i32
    %c0_i32_0 = arith.constant 0 : i32
    %c0_i32_1 = arith.constant 0 : i32
    return %c0_i32, %c0_i32_0 : i32, i32
  }
  func.func @transform_3(%arg0: i32) -> (i32, i32, i32, i32) {
    %c0_i32 = arith.constant 0 : i32
    %c0_i32_0 = arith.constant 0 : i32
    %c0_i32_1 = arith.constant 0 : i32
    %c0_i32_2 = arith.constant 0 : i32
    return %arg0, %c0_i32, %c0_i32_0, %c0_i32_1 : i32, i32, i32, i32
  }
}

module attributes {stable_mosaic.version = 11 : i64} {
  func.func @_dwconv_kernel(%arg0: i32, %arg1: memref<1x4x4x32xf32, #tpu.memory_space<vmem>>, %arg2: memref<9x32xf32, #tpu.memory_space<vmem>>, %arg3: memref<1x32xf32, #tpu.memory_space<vmem>>, %arg4: memref<1x2x2x32xf32, #tpu.memory_space<vmem>>) attributes {dimension_semantics = [#tpu.dimension_semantics<parallel>], iteration_bounds = array<i64: 2>, scalar_prefetch = 0 : i64, scratch_operands = 0 : i64, tpu.core_type = #tpu.core_type<tc>, window_params = [{transform_indices = @transform_0, window_bounds = array<i64: 1, 4, 4, 32>}, {pipeline_mode = #tpu.pipeline_mode<synchronous>, transform_indices = @transform_1, window_bounds = array<i64: 9, 32>}, {pipeline_mode = #tpu.pipeline_mode<synchronous>, transform_indices = @transform_2, window_bounds = array<i64: 1, 32>}, {transform_indices = @transform_3, window_bounds = array<i64: 1, 2, 2, 32>}]} {
    %cst = arith.constant 0.000000e+00 : f32
    %0 = vector.broadcast %cst : f32 to vector<2x2x32xf32>
    %c0 = arith.constant 0 : index
    %c0_0 = arith.constant 0 : index
    %c0_1 = arith.constant 0 : index
    %c0_2 = arith.constant 0 : index
    %1 = vector.load %arg1[%c0, %c0_0, %c0_1, %c0_2] : memref<1x4x4x32xf32, #tpu.memory_space<vmem>>, vector<1x2x2x32xf32>
    %2 = vector.shape_cast %1 : vector<1x2x2x32xf32> to vector<2x2x32xf32>
    %c0_3 = arith.constant 0 : index
    %c0_4 = arith.constant 0 : index
    %3 = vector.load %arg2[%c0_3, %c0_4] : memref<9x32xf32, #tpu.memory_space<vmem>>, vector<1x32xf32>
    %4 = vector.shape_cast %3 : vector<1x32xf32> to vector<32xf32>
    %5 = vector.shape_cast %4 : vector<32xf32> to vector<1x1x32xf32>
    %6 = vector.broadcast %5 : vector<1x1x32xf32> to vector<2x2x32xf32>
    %7 = arith.mulf %2, %6 : vector<2x2x32xf32>
    %8 = arith.addf %0, %7 : vector<2x2x32xf32>
    %c0_5 = arith.constant 0 : index
    %c0_6 = arith.constant 0 : index
    %c1 = arith.constant 1 : index
    %c0_7 = arith.constant 0 : index
    %9 = vector.load %arg1[%c0_5, %c0_6, %c1, %c0_7] : memref<1x4x4x32xf32, #tpu.memory_space<vmem>>, vector<1x2x2x32xf32>
    %10 = vector.shape_cast %9 : vector<1x2x2x32xf32> to vector<2x2x32xf32>
    %c1_8 = arith.constant 1 : index
    %c0_9 = arith.constant 0 : index
    %11 = vector.load %arg2[%c1_8, %c0_9] : memref<9x32xf32, #tpu.memory_space<vmem>>, vector<1x32xf32>
    %12 = vector.shape_cast %11 : vector<1x32xf32> to vector<32xf32>
    %13 = vector.shape_cast %12 : vector<32xf32> to vector<1x1x32xf32>
    %14 = vector.broadcast %13 : vector<1x1x32xf32> to vector<2x2x32xf32>
    %15 = arith.mulf %10, %14 : vector<2x2x32xf32>
    %16 = arith.addf %8, %15 : vector<2x2x32xf32>
    %c0_10 = arith.constant 0 : index
    %c0_11 = arith.constant 0 : index
    %c2 = arith.constant 2 : index
    %c0_12 = arith.constant 0 : index
    %17 = vector.load %arg1[%c0_10, %c0_11, %c2, %c0_12] : memref<1x4x4x32xf32, #tpu.memory_space<vmem>>, vector<1x2x2x32xf32>
    %18 = vector.shape_cast %17 : vector<1x2x2x32xf32> to vector<2x2x32xf32>
    %c2_13 = arith.constant 2 : index
    %c0_14 = arith.constant 0 : index
    %19 = vector.load %arg2[%c2_13, %c0_14] : memref<9x32xf32, #tpu.memory_space<vmem>>, vector<1x32xf32>
    %20 = vector.shape_cast %19 : vector<1x32xf32> to vector<32xf32>
    %21 = vector.shape_cast %20 : vector<32xf32> to vector<1x1x32xf32>
    %22 = vector.broadcast %21 : vector<1x1x32xf32> to vector<2x2x32xf32>
    %23 = arith.mulf %18, %22 : vector<2x2x32xf32>
    %24 = arith.addf %16, %23 : vector<2x2x32xf32>
    %c0_15 = arith.constant 0 : index
    %c1_16 = arith.constant 1 : index
    %c0_17 = arith.constant 0 : index
    %c0_18 = arith.constant 0 : index
    %25 = vector.load %arg1[%c0_15, %c1_16, %c0_17, %c0_18] : memref<1x4x4x32xf32, #tpu.memory_space<vmem>>, vector<1x2x2x32xf32>
    %26 = vector.shape_cast %25 : vector<1x2x2x32xf32> to vector<2x2x32xf32>
    %c3 = arith.constant 3 : index
    %c0_19 = arith.constant 0 : index
    %27 = vector.load %arg2[%c3, %c0_19] : memref<9x32xf32, #tpu.memory_space<vmem>>, vector<1x32xf32>
    %28 = vector.shape_cast %27 : vector<1x32xf32> to vector<32xf32>
    %29 = vector.shape_cast %28 : vector<32xf32> to vector<1x1x32xf32>
    %30 = vector.broadcast %29 : vector<1x1x32xf32> to vector<2x2x32xf32>
    %31 = arith.mulf %26, %30 : vector<2x2x32xf32>
    %32 = arith.addf %24, %31 : vector<2x2x32xf32>
    %c0_20 = arith.constant 0 : index
    %c1_21 = arith.constant 1 : index
    %c1_22 = arith.constant 1 : index
    %c0_23 = arith.constant 0 : index
    %33 = vector.load %arg1[%c0_20, %c1_21, %c1_22, %c0_23] : memref<1x4x4x32xf32, #tpu.memory_space<vmem>>, vector<1x2x2x32xf32>
    %34 = vector.shape_cast %33 : vector<1x2x2x32xf32> to vector<2x2x32xf32>
    %c4 = arith.constant 4 : index
    %c0_24 = arith.constant 0 : index
    %35 = vector.load %arg2[%c4, %c0_24] : memref<9x32xf32, #tpu.memory_space<vmem>>, vector<1x32xf32>
    %36 = vector.shape_cast %35 : vector<1x32xf32> to vector<32xf32>
    %37 = vector.shape_cast %36 : vector<32xf32> to vector<1x1x32xf32>
    %38 = vector.broadcast %37 : vector<1x1x32xf32> to vector<2x2x32xf32>
    %39 = arith.mulf %34, %38 : vector<2x2x32xf32>
    %40 = arith.addf %32, %39 : vector<2x2x32xf32>
    %c0_25 = arith.constant 0 : index
    %c1_26 = arith.constant 1 : index
    %c2_27 = arith.constant 2 : index
    %c0_28 = arith.constant 0 : index
    %41 = vector.load %arg1[%c0_25, %c1_26, %c2_27, %c0_28] : memref<1x4x4x32xf32, #tpu.memory_space<vmem>>, vector<1x2x2x32xf32>
    %42 = vector.shape_cast %41 : vector<1x2x2x32xf32> to vector<2x2x32xf32>
    %c5 = arith.constant 5 : index
    %c0_29 = arith.constant 0 : index
    %43 = vector.load %arg2[%c5, %c0_29] : memref<9x32xf32, #tpu.memory_space<vmem>>, vector<1x32xf32>
    %44 = vector.shape_cast %43 : vector<1x32xf32> to vector<32xf32>
    %45 = vector.shape_cast %44 : vector<32xf32> to vector<1x1x32xf32>
    %46 = vector.broadcast %45 : vector<1x1x32xf32> to vector<2x2x32xf32>
    %47 = arith.mulf %42, %46 : vector<2x2x32xf32>
    %48 = arith.addf %40, %47 : vector<2x2x32xf32>
    %c0_30 = arith.constant 0 : index
    %c2_31 = arith.constant 2 : index
    %c0_32 = arith.constant 0 : index
    %c0_33 = arith.constant 0 : index
    %49 = vector.load %arg1[%c0_30, %c2_31, %c0_32, %c0_33] : memref<1x4x4x32xf32, #tpu.memory_space<vmem>>, vector<1x2x2x32xf32>
    %50 = vector.shape_cast %49 : vector<1x2x2x32xf32> to vector<2x2x32xf32>
    %c6 = arith.constant 6 : index
    %c0_34 = arith.constant 0 : index
    %51 = vector.load %arg2[%c6, %c0_34] : memref<9x32xf32, #tpu.memory_space<vmem>>, vector<1x32xf32>
    %52 = vector.shape_cast %51 : vector<1x32xf32> to vector<32xf32>
    %53 = vector.shape_cast %52 : vector<32xf32> to vector<1x1x32xf32>
    %54 = vector.broadcast %53 : vector<1x1x32xf32> to vector<2x2x32xf32>
    %55 = arith.mulf %50, %54 : vector<2x2x32xf32>
    %56 = arith.addf %48, %55 : vector<2x2x32xf32>
    %c0_35 = arith.constant 0 : index
    %c2_36 = arith.constant 2 : index
    %c1_37 = arith.constant 1 : index
    %c0_38 = arith.constant 0 : index
    %57 = vector.load %arg1[%c0_35, %c2_36, %c1_37, %c0_38] : memref<1x4x4x32xf32, #tpu.memory_space<vmem>>, vector<1x2x2x32xf32>
    %58 = vector.shape_cast %57 : vector<1x2x2x32xf32> to vector<2x2x32xf32>
    %c7 = arith.constant 7 : index
    %c0_39 = arith.constant 0 : index
    %59 = vector.load %arg2[%c7, %c0_39] : memref<9x32xf32, #tpu.memory_space<vmem>>, vector<1x32xf32>
    %60 = vector.shape_cast %59 : vector<1x32xf32> to vector<32xf32>
    %61 = vector.shape_cast %60 : vector<32xf32> to vector<1x1x32xf32>
    %62 = vector.broadcast %61 : vector<1x1x32xf32> to vector<2x2x32xf32>
    %63 = arith.mulf %58, %62 : vector<2x2x32xf32>
    %64 = arith.addf %56, %63 : vector<2x2x32xf32>
    %c0_40 = arith.constant 0 : index
    %c2_41 = arith.constant 2 : index
    %c2_42 = arith.constant 2 : index
    %c0_43 = arith.constant 0 : index
    %65 = vector.load %arg1[%c0_40, %c2_41, %c2_42, %c0_43] : memref<1x4x4x32xf32, #tpu.memory_space<vmem>>, vector<1x2x2x32xf32>
    %66 = vector.shape_cast %65 : vector<1x2x2x32xf32> to vector<2x2x32xf32>
    %c8 = arith.constant 8 : index
    %c0_44 = arith.constant 0 : index
    %67 = vector.load %arg2[%c8, %c0_44] : memref<9x32xf32, #tpu.memory_space<vmem>>, vector<1x32xf32>
    %68 = vector.shape_cast %67 : vector<1x32xf32> to vector<32xf32>
    %69 = vector.shape_cast %68 : vector<32xf32> to vector<1x1x32xf32>
    %70 = vector.broadcast %69 : vector<1x1x32xf32> to vector<2x2x32xf32>
    %71 = arith.mulf %66, %70 : vector<2x2x32xf32>
    %72 = arith.addf %64, %71 : vector<2x2x32xf32>
    %c0_45 = arith.constant 0 : index
    %c0_46 = arith.constant 0 : index
    %73 = vector.load %arg3[%c0_45, %c0_46] : memref<1x32xf32, #tpu.memory_space<vmem>>, vector<1x32xf32>
    %74 = vector.shape_cast %73 : vector<1x32xf32> to vector<32xf32>
    %75 = vector.shape_cast %74 : vector<32xf32> to vector<1x1x32xf32>
    %76 = vector.broadcast %75 : vector<1x1x32xf32> to vector<2x2x32xf32>
    %77 = arith.addf %72, %76 : vector<2x2x32xf32>
    %c0_47 = arith.constant 0 : index
    %c1_48 = arith.constant 1 : index
    %c1_49 = arith.constant 1 : index
    %c0_50 = arith.constant 0 : index
    %78 = vector.load %arg1[%c0_47, %c1_48, %c1_49, %c0_50] : memref<1x4x4x32xf32, #tpu.memory_space<vmem>>, vector<1x2x2x32xf32>
    %79 = vector.shape_cast %78 : vector<1x2x2x32xf32> to vector<2x2x32xf32>
    %80 = arith.addf %77, %79 : vector<2x2x32xf32>
    %c0_51 = arith.constant 0 : index
    %c0_52 = arith.constant 0 : index
    %c0_53 = arith.constant 0 : index
    %c0_54 = arith.constant 0 : index
    %81 = vector.load %arg4[%c0_51, %c0_52, %c0_53, %c0_54] : memref<1x2x2x32xf32, #tpu.memory_space<vmem>>, vector<1x2x2x32xf32>
    %82 = vector.shape_cast %81 : vector<1x2x2x32xf32> to vector<2x2x32xf32>
    %83 = vector.shape_cast %80 : vector<2x2x32xf32> to vector<1x2x2x32xf32>
    tpu.vector_store %arg4[%c0_51, %c0_52, %c0_53, %c0_54], %83 {strides = array<i32>} : memref<1x2x2x32xf32, #tpu.memory_space<vmem>>, vector<1x2x2x32xf32>,
    return
  }
  func.func @transform_0(%arg0: i32) -> (i32, i32, i32, i32) {
    %c0_i32 = arith.constant 0 : i32
    %c0_i32_0 = arith.constant 0 : i32
    %c0_i32_1 = arith.constant 0 : i32
    %c0_i32_2 = arith.constant 0 : i32
    return %arg0, %c0_i32, %c0_i32_0, %c0_i32_1 : i32, i32, i32, i32
  }
  func.func @transform_1(%arg0: i32) -> (i32, i32) {
    %c0_i32 = arith.constant 0 : i32
    %c0_i32_0 = arith.constant 0 : i32
    %c0_i32_1 = arith.constant 0 : i32
    return %c0_i32, %c0_i32_0 : i32, i32
  }
  func.func @transform_2(%arg0: i32) -> (i32, i32) {
    %c0_i32 = arith.constant 0 : i32
    %c0_i32_0 = arith.constant 0 : i32
    %c0_i32_1 = arith.constant 0 : i32
    return %c0_i32, %c0_i32_0 : i32, i32
  }
  func.func @transform_3(%arg0: i32) -> (i32, i32, i32, i32) {
    %c0_i32 = arith.constant 0 : i32
    %c0_i32_0 = arith.constant 0 : i32
    %c0_i32_1 = arith.constant 0 : i32
    %c0_i32_2 = arith.constant 0 : i32
    return %arg0, %c0_i32, %c0_i32_0, %c0_i32_1 : i32, i32, i32, i32
  }
}

module attributes {stable_mosaic.version = 11 : i64} {
  func.func @_dwconv_kernel(%arg0: i32, %arg1: memref<1x3x3x32xf32, #tpu.memory_space<vmem>>, %arg2: memref<9x32xf32, #tpu.memory_space<vmem>>, %arg3: memref<1x32xf32, #tpu.memory_space<vmem>>, %arg4: memref<1x1x1x32xf32, #tpu.memory_space<vmem>>) attributes {dimension_semantics = [#tpu.dimension_semantics<parallel>], iteration_bounds = array<i64: 2>, scalar_prefetch = 0 : i64, scratch_operands = 0 : i64, tpu.core_type = #tpu.core_type<tc>, window_params = [{transform_indices = @transform_0, window_bounds = array<i64: 1, 3, 3, 32>}, {pipeline_mode = #tpu.pipeline_mode<synchronous>, transform_indices = @transform_1, window_bounds = array<i64: 9, 32>}, {pipeline_mode = #tpu.pipeline_mode<synchronous>, transform_indices = @transform_2, window_bounds = array<i64: 1, 32>}, {transform_indices = @transform_3, window_bounds = array<i64: 1, 1, 1, 32>}]} {
    %cst = arith.constant 0.000000e+00 : f32
    %0 = vector.broadcast %cst : f32 to vector<1x1x32xf32>
    %c0 = arith.constant 0 : index
    %c0_0 = arith.constant 0 : index
    %c0_1 = arith.constant 0 : index
    %c0_2 = arith.constant 0 : index
    %1 = vector.load %arg1[%c0, %c0_0, %c0_1, %c0_2] : memref<1x3x3x32xf32, #tpu.memory_space<vmem>>, vector<1x1x1x32xf32>
    %2 = vector.shape_cast %1 : vector<1x1x1x32xf32> to vector<1x1x32xf32>
    %c0_3 = arith.constant 0 : index
    %c0_4 = arith.constant 0 : index
    %3 = vector.load %arg2[%c0_3, %c0_4] : memref<9x32xf32, #tpu.memory_space<vmem>>, vector<1x32xf32>
    %4 = vector.shape_cast %3 : vector<1x32xf32> to vector<32xf32>
    %5 = vector.shape_cast %4 : vector<32xf32> to vector<1x1x32xf32>
    %6 = arith.mulf %2, %5 : vector<1x1x32xf32>
    %7 = arith.addf %0, %6 : vector<1x1x32xf32>
    %c0_5 = arith.constant 0 : index
    %c0_6 = arith.constant 0 : index
    %c1 = arith.constant 1 : index
    %c0_7 = arith.constant 0 : index
    %8 = vector.load %arg1[%c0_5, %c0_6, %c1, %c0_7] : memref<1x3x3x32xf32, #tpu.memory_space<vmem>>, vector<1x1x1x32xf32>
    %9 = vector.shape_cast %8 : vector<1x1x1x32xf32> to vector<1x1x32xf32>
    %c1_8 = arith.constant 1 : index
    %c0_9 = arith.constant 0 : index
    %10 = vector.load %arg2[%c1_8, %c0_9] : memref<9x32xf32, #tpu.memory_space<vmem>>, vector<1x32xf32>
    %11 = vector.shape_cast %10 : vector<1x32xf32> to vector<32xf32>
    %12 = vector.shape_cast %11 : vector<32xf32> to vector<1x1x32xf32>
    %13 = arith.mulf %9, %12 : vector<1x1x32xf32>
    %14 = arith.addf %7, %13 : vector<1x1x32xf32>
    %c0_10 = arith.constant 0 : index
    %c0_11 = arith.constant 0 : index
    %c2 = arith.constant 2 : index
    %c0_12 = arith.constant 0 : index
    %15 = vector.load %arg1[%c0_10, %c0_11, %c2, %c0_12] : memref<1x3x3x32xf32, #tpu.memory_space<vmem>>, vector<1x1x1x32xf32>
    %16 = vector.shape_cast %15 : vector<1x1x1x32xf32> to vector<1x1x32xf32>
    %c2_13 = arith.constant 2 : index
    %c0_14 = arith.constant 0 : index
    %17 = vector.load %arg2[%c2_13, %c0_14] : memref<9x32xf32, #tpu.memory_space<vmem>>, vector<1x32xf32>
    %18 = vector.shape_cast %17 : vector<1x32xf32> to vector<32xf32>
    %19 = vector.shape_cast %18 : vector<32xf32> to vector<1x1x32xf32>
    %20 = arith.mulf %16, %19 : vector<1x1x32xf32>
    %21 = arith.addf %14, %20 : vector<1x1x32xf32>
    %c0_15 = arith.constant 0 : index
    %c1_16 = arith.constant 1 : index
    %c0_17 = arith.constant 0 : index
    %c0_18 = arith.constant 0 : index
    %22 = vector.load %arg1[%c0_15, %c1_16, %c0_17, %c0_18] : memref<1x3x3x32xf32, #tpu.memory_space<vmem>>, vector<1x1x1x32xf32>
    %23 = vector.shape_cast %22 : vector<1x1x1x32xf32> to vector<1x1x32xf32>
    %c3 = arith.constant 3 : index
    %c0_19 = arith.constant 0 : index
    %24 = vector.load %arg2[%c3, %c0_19] : memref<9x32xf32, #tpu.memory_space<vmem>>, vector<1x32xf32>
    %25 = vector.shape_cast %24 : vector<1x32xf32> to vector<32xf32>
    %26 = vector.shape_cast %25 : vector<32xf32> to vector<1x1x32xf32>
    %27 = arith.mulf %23, %26 : vector<1x1x32xf32>
    %28 = arith.addf %21, %27 : vector<1x1x32xf32>
    %c0_20 = arith.constant 0 : index
    %c1_21 = arith.constant 1 : index
    %c1_22 = arith.constant 1 : index
    %c0_23 = arith.constant 0 : index
    %29 = vector.load %arg1[%c0_20, %c1_21, %c1_22, %c0_23] : memref<1x3x3x32xf32, #tpu.memory_space<vmem>>, vector<1x1x1x32xf32>
    %30 = vector.shape_cast %29 : vector<1x1x1x32xf32> to vector<1x1x32xf32>
    %c4 = arith.constant 4 : index
    %c0_24 = arith.constant 0 : index
    %31 = vector.load %arg2[%c4, %c0_24] : memref<9x32xf32, #tpu.memory_space<vmem>>, vector<1x32xf32>
    %32 = vector.shape_cast %31 : vector<1x32xf32> to vector<32xf32>
    %33 = vector.shape_cast %32 : vector<32xf32> to vector<1x1x32xf32>
    %34 = arith.mulf %30, %33 : vector<1x1x32xf32>
    %35 = arith.addf %28, %34 : vector<1x1x32xf32>
    %c0_25 = arith.constant 0 : index
    %c1_26 = arith.constant 1 : index
    %c2_27 = arith.constant 2 : index
    %c0_28 = arith.constant 0 : index
    %36 = vector.load %arg1[%c0_25, %c1_26, %c2_27, %c0_28] : memref<1x3x3x32xf32, #tpu.memory_space<vmem>>, vector<1x1x1x32xf32>
    %37 = vector.shape_cast %36 : vector<1x1x1x32xf32> to vector<1x1x32xf32>
    %c5 = arith.constant 5 : index
    %c0_29 = arith.constant 0 : index
    %38 = vector.load %arg2[%c5, %c0_29] : memref<9x32xf32, #tpu.memory_space<vmem>>, vector<1x32xf32>
    %39 = vector.shape_cast %38 : vector<1x32xf32> to vector<32xf32>
    %40 = vector.shape_cast %39 : vector<32xf32> to vector<1x1x32xf32>
    %41 = arith.mulf %37, %40 : vector<1x1x32xf32>
    %42 = arith.addf %35, %41 : vector<1x1x32xf32>
    %c0_30 = arith.constant 0 : index
    %c2_31 = arith.constant 2 : index
    %c0_32 = arith.constant 0 : index
    %c0_33 = arith.constant 0 : index
    %43 = vector.load %arg1[%c0_30, %c2_31, %c0_32, %c0_33] : memref<1x3x3x32xf32, #tpu.memory_space<vmem>>, vector<1x1x1x32xf32>
    %44 = vector.shape_cast %43 : vector<1x1x1x32xf32> to vector<1x1x32xf32>
    %c6 = arith.constant 6 : index
    %c0_34 = arith.constant 0 : index
    %45 = vector.load %arg2[%c6, %c0_34] : memref<9x32xf32, #tpu.memory_space<vmem>>, vector<1x32xf32>
    %46 = vector.shape_cast %45 : vector<1x32xf32> to vector<32xf32>
    %47 = vector.shape_cast %46 : vector<32xf32> to vector<1x1x32xf32>
    %48 = arith.mulf %44, %47 : vector<1x1x32xf32>
    %49 = arith.addf %42, %48 : vector<1x1x32xf32>
    %c0_35 = arith.constant 0 : index
    %c2_36 = arith.constant 2 : index
    %c1_37 = arith.constant 1 : index
    %c0_38 = arith.constant 0 : index
    %50 = vector.load %arg1[%c0_35, %c2_36, %c1_37, %c0_38] : memref<1x3x3x32xf32, #tpu.memory_space<vmem>>, vector<1x1x1x32xf32>
    %51 = vector.shape_cast %50 : vector<1x1x1x32xf32> to vector<1x1x32xf32>
    %c7 = arith.constant 7 : index
    %c0_39 = arith.constant 0 : index
    %52 = vector.load %arg2[%c7, %c0_39] : memref<9x32xf32, #tpu.memory_space<vmem>>, vector<1x32xf32>
    %53 = vector.shape_cast %52 : vector<1x32xf32> to vector<32xf32>
    %54 = vector.shape_cast %53 : vector<32xf32> to vector<1x1x32xf32>
    %55 = arith.mulf %51, %54 : vector<1x1x32xf32>
    %56 = arith.addf %49, %55 : vector<1x1x32xf32>
    %c0_40 = arith.constant 0 : index
    %c2_41 = arith.constant 2 : index
    %c2_42 = arith.constant 2 : index
    %c0_43 = arith.constant 0 : index
    %57 = vector.load %arg1[%c0_40, %c2_41, %c2_42, %c0_43] : memref<1x3x3x32xf32, #tpu.memory_space<vmem>>, vector<1x1x1x32xf32>
    %58 = vector.shape_cast %57 : vector<1x1x1x32xf32> to vector<1x1x32xf32>
    %c8 = arith.constant 8 : index
    %c0_44 = arith.constant 0 : index
    %59 = vector.load %arg2[%c8, %c0_44] : memref<9x32xf32, #tpu.memory_space<vmem>>, vector<1x32xf32>
    %60 = vector.shape_cast %59 : vector<1x32xf32> to vector<32xf32>
    %61 = vector.shape_cast %60 : vector<32xf32> to vector<1x1x32xf32>
    %62 = arith.mulf %58, %61 : vector<1x1x32xf32>
    %63 = arith.addf %56, %62 : vector<1x1x32xf32>
    %c0_45 = arith.constant 0 : index
    %c0_46 = arith.constant 0 : index
    %64 = vector.load %arg3[%c0_45, %c0_46] : memref<1x32xf32, #tpu.memory_space<vmem>>, vector<1x32xf32>
    %65 = vector.shape_cast %64 : vector<1x32xf32> to vector<32xf32>
    %66 = vector.shape_cast %65 : vector<32xf32> to vector<1x1x32xf32>
    %67 = arith.addf %63, %66 : vector<1x1x32xf32>
    %c0_47 = arith.constant 0 : index
    %c1_48 = arith.constant 1 : index
    %c1_49 = arith.constant 1 : index
    %c0_50 = arith.constant 0 : index
    %68 = vector.load %arg1[%c0_47, %c1_48, %c1_49, %c0_50] : memref<1x3x3x32xf32, #tpu.memory_space<vmem>>, vector<1x1x1x32xf32>
    %69 = vector.shape_cast %68 : vector<1x1x1x32xf32> to vector<1x1x32xf32>
    %70 = arith.addf %67, %69 : vector<1x1x32xf32>
    %c0_51 = arith.constant 0 : index
    %c0_52 = arith.constant 0 : index
    %c0_53 = arith.constant 0 : index
    %c0_54 = arith.constant 0 : index
    %71 = vector.load %arg4[%c0_51, %c0_52, %c0_53, %c0_54] : memref<1x1x1x32xf32, #tpu.memory_space<vmem>>, vector<1x1x1x32xf32>
    %72 = vector.shape_cast %71 : vector<1x1x1x32xf32> to vector<1x1x32xf32>
    %73 = vector.shape_cast %70 : vector<1x1x32xf32> to vector<1x1x1x32xf32>
    tpu.vector_store %arg4[%c0_51, %c0_52, %c0_53, %c0_54], %73 {strides = array<i32>} : memref<1x1x1x32xf32, #tpu.memory_space<vmem>>, vector<1x1x1x32xf32>,
    return
  }
  func.func @transform_0(%arg0: i32) -> (i32, i32, i32, i32) {
    %c0_i32 = arith.constant 0 : i32
    %c0_i32_0 = arith.constant 0 : i32
    %c0_i32_1 = arith.constant 0 : i32
    %c0_i32_2 = arith.constant 0 : i32
    return %arg0, %c0_i32, %c0_i32_0, %c0_i32_1 : i32, i32, i32, i32
  }
  func.func @transform_1(%arg0: i32) -> (i32, i32) {
    %c0_i32 = arith.constant 0 : i32
    %c0_i32_0 = arith.constant 0 : i32
    %c0_i32_1 = arith.constant 0 : i32
    return %c0_i32, %c0_i32_0 : i32, i32
  }
  func.func @transform_2(%arg0: i32) -> (i32, i32) {
    %c0_i32 = arith.constant 0 : i32
    %c0_i32_0 = arith.constant 0 : i32
    %c0_i32_1 = arith.constant 0 : i32
    return %c0_i32, %c0_i32_0 : i32, i32
  }
  func.func @transform_3(%arg0: i32) -> (i32, i32, i32, i32) {
    %c0_i32 = arith.constant 0 : i32
    %c0_i32_0 = arith.constant 0 : i32
    %c0_i32_1 = arith.constant 0 : i32
    %c0_i32_2 = arith.constant 0 : i32
    return %arg0, %c0_i32, %c0_i32_0, %c0_i32_1 : i32, i32, i32, i32
  }
}

module attributes {stable_mosaic.version = 11 : i64} {
  func.func @_fused_mm_kernel(%arg0: i32, %arg1: memref<256x32xf32, #tpu.memory_space<vmem>>, %arg2: memref<1x32xf32, #tpu.memory_space<vmem>>, %arg3: memref<1x32xf32, #tpu.memory_space<vmem>>, %arg4: memref<32x64xf32, #tpu.memory_space<vmem>>, %arg5: memref<256x64xf32, #tpu.memory_space<vmem>>) attributes {dimension_semantics = [#tpu.dimension_semantics<parallel>], iteration_bounds = array<i64: 1>, scalar_prefetch = 0 : i64, scratch_operands = 0 : i64, tpu.core_type = #tpu.core_type<tc>, window_params = [{transform_indices = @transform_0, window_bounds = array<i64: 256, 32>}, {pipeline_mode = #tpu.pipeline_mode<synchronous>, transform_indices = @transform_1, window_bounds = array<i64: 1, 32>}, {pipeline_mode = #tpu.pipeline_mode<synchronous>, transform_indices = @transform_2, window_bounds = array<i64: 1, 32>}, {pipeline_mode = #tpu.pipeline_mode<synchronous>, transform_indices = @transform_3, window_bounds = array<i64: 32, 64>}, {transform_indices = @transform_4, window_bounds = array<i64: 256, 64>}]} {
    %c0 = arith.constant 0 : index
    %c0_0 = arith.constant 0 : index
    %0 = vector.load %arg1[%c0, %c0_0] : memref<256x32xf32, #tpu.memory_space<vmem>>, vector<256x32xf32>
    %c0_1 = arith.constant 0 : index
    %c0_2 = arith.constant 0 : index
    %1 = vector.load %arg2[%c0_1, %c0_2] : memref<1x32xf32, #tpu.memory_space<vmem>>, vector<1x32xf32>
    %c0_3 = arith.constant 0 : index
    %c0_4 = arith.constant 0 : index
    %2 = vector.load %arg3[%c0_3, %c0_4] : memref<1x32xf32, #tpu.memory_space<vmem>>, vector<1x32xf32>
    %cst = arith.constant dense<0.000000e+00> : vector<256xf32>
    %3 = vector.multi_reduction <add>, %0, %cst [1] : vector<256x32xf32> to vector<256xf32>
    %4 = vector.shape_cast %3 : vector<256xf32> to vector<256x1xf32>
    %cst_5 = arith.constant 3.200000e+01 : f32
    %5 = vector.broadcast %cst_5 : f32 to vector<256x1xf32>
    %6 = arith.divf %4, %5 : vector<256x1xf32>
    %7 = vector.broadcast %6 : vector<256x1xf32> to vector<256x32xf32>
    %8 = arith.subf %0, %7 : vector<256x32xf32>
    %9 = arith.mulf %8, %8 : vector<256x32xf32>
    %cst_6 = arith.constant dense<0.000000e+00> : vector<256xf32>
    %10 = vector.multi_reduction <add>, %9, %cst_6 [1] : vector<256x32xf32> to vector<256xf32>
    %11 = vector.shape_cast %10 : vector<256xf32> to vector<256x1xf32>
    %cst_7 = arith.constant 3.200000e+01 : f32
    %12 = vector.broadcast %cst_7 : f32 to vector<256x1xf32>
    %13 = arith.divf %11, %12 : vector<256x1xf32>
    %cst_8 = arith.constant 9.99999974E-6 : f32
    %14 = vector.broadcast %cst_8 : f32 to vector<256x1xf32>
    %15 = arith.addf %13, %14 : vector<256x1xf32>
    %16 = math.rsqrt %15 : vector<256x1xf32>
    %17 = vector.broadcast %16 : vector<256x1xf32> to vector<256x32xf32>
    %18 = arith.mulf %8, %17 : vector<256x32xf32>
    %19 = vector.broadcast %1 : vector<1x32xf32> to vector<256x32xf32>
    %20 = arith.mulf %18, %19 : vector<256x32xf32>
    %21 = vector.broadcast %2 : vector<1x32xf32> to vector<256x32xf32>
    %22 = arith.addf %20, %21 : vector<256x32xf32>
    %c0_9 = arith.constant 0 : index
    %c0_10 = arith.constant 0 : index
    %23 = vector.load %arg4[%c0_9, %c0_10] : memref<32x64xf32, #tpu.memory_space<vmem>>, vector<32x64xf32>
    %cst_11 = arith.constant dense<0.000000e+00> : vector<256x64xf32>
    %24 = tpu.matmul %22, %23, %cst_11 {dimension_numbers = #tpu.dot_dimension_numbers<[1], [0], [0], [1], [0, 0, 1, 1], [], []>} : vector<256x32xf32>, vector<32x64xf32>, vector<256x64xf32> -> vector<256x64xf32>
    %c0_12 = arith.constant 0 : index
    %c0_13 = arith.constant 0 : index
    %25 = vector.load %arg5[%c0_12, %c0_13] : memref<256x64xf32, #tpu.memory_space<vmem>>, vector<256x64xf32>
    tpu.vector_store %arg5[%c0_12, %c0_13], %24 {strides = array<i32>} : memref<256x64xf32, #tpu.memory_space<vmem>>, vector<256x64xf32>,
    return
  }
  func.func @transform_0(%arg0: i32) -> (i32, i32) {
    %c0_i32 = arith.constant 0 : i32
    %c0_i32_0 = arith.constant 0 : i32
    return %arg0, %c0_i32 : i32, i32
  }
  func.func @transform_1(%arg0: i32) -> (i32, i32) {
    %c0_i32 = arith.constant 0 : i32
    %c0_i32_0 = arith.constant 0 : i32
    %c0_i32_1 = arith.constant 0 : i32
    return %c0_i32, %c0_i32_0 : i32, i32
  }
  func.func @transform_2(%arg0: i32) -> (i32, i32) {
    %c0_i32 = arith.constant 0 : i32
    %c0_i32_0 = arith.constant 0 : i32
    %c0_i32_1 = arith.constant 0 : i32
    return %c0_i32, %c0_i32_0 : i32, i32
  }
  func.func @transform_3(%arg0: i32) -> (i32, i32) {
    %c0_i32 = arith.constant 0 : i32
    %c0_i32_0 = arith.constant 0 : i32
    %c0_i32_1 = arith.constant 0 : i32
    return %c0_i32, %c0_i32_0 : i32, i32
  }
  func.func @transform_4(%arg0: i32) -> (i32, i32) {
    %c0_i32 = arith.constant 0 : i32
    %c0_i32_0 = arith.constant 0 : i32
    return %arg0, %c0_i32 : i32, i32
  }
}

module attributes {stable_mosaic.version = 11 : i64} {
  func.func @_fused_mm_kernel(%arg0: i32, %arg1: memref<256x32xf32, #tpu.memory_space<vmem>>, %arg2: memref<1x32xf32, #tpu.memory_space<vmem>>, %arg3: memref<1x32xf32, #tpu.memory_space<vmem>>, %arg4: memref<32x32xf32, #tpu.memory_space<vmem>>, %arg5: memref<256x32xf32, #tpu.memory_space<vmem>>) attributes {dimension_semantics = [#tpu.dimension_semantics<parallel>], iteration_bounds = array<i64: 2>, scalar_prefetch = 0 : i64, scratch_operands = 0 : i64, tpu.core_type = #tpu.core_type<tc>, window_params = [{transform_indices = @transform_0, window_bounds = array<i64: 256, 32>}, {pipeline_mode = #tpu.pipeline_mode<synchronous>, transform_indices = @transform_1, window_bounds = array<i64: 1, 32>}, {pipeline_mode = #tpu.pipeline_mode<synchronous>, transform_indices = @transform_2, window_bounds = array<i64: 1, 32>}, {pipeline_mode = #tpu.pipeline_mode<synchronous>, transform_indices = @transform_3, window_bounds = array<i64: 32, 32>}, {transform_indices = @transform_4, window_bounds = array<i64: 256, 32>}]} {
    %c0 = arith.constant 0 : index
    %c0_0 = arith.constant 0 : index
    %0 = vector.load %arg1[%c0, %c0_0] : memref<256x32xf32, #tpu.memory_space<vmem>>, vector<256x32xf32>
    %c0_1 = arith.constant 0 : index
    %c0_2 = arith.constant 0 : index
    %1 = vector.load %arg2[%c0_1, %c0_2] : memref<1x32xf32, #tpu.memory_space<vmem>>, vector<1x32xf32>
    %c0_3 = arith.constant 0 : index
    %c0_4 = arith.constant 0 : index
    %2 = vector.load %arg3[%c0_3, %c0_4] : memref<1x32xf32, #tpu.memory_space<vmem>>, vector<1x32xf32>
    %cst = arith.constant dense<0.000000e+00> : vector<256xf32>
    %3 = vector.multi_reduction <add>, %0, %cst [1] : vector<256x32xf32> to vector<256xf32>
    %4 = vector.shape_cast %3 : vector<256xf32> to vector<256x1xf32>
    %cst_5 = arith.constant 3.200000e+01 : f32
    %5 = vector.broadcast %cst_5 : f32 to vector<256x1xf32>
    %6 = arith.divf %4, %5 : vector<256x1xf32>
    %7 = vector.broadcast %6 : vector<256x1xf32> to vector<256x32xf32>
    %8 = arith.subf %0, %7 : vector<256x32xf32>
    %9 = arith.mulf %8, %8 : vector<256x32xf32>
    %cst_6 = arith.constant dense<0.000000e+00> : vector<256xf32>
    %10 = vector.multi_reduction <add>, %9, %cst_6 [1] : vector<256x32xf32> to vector<256xf32>
    %11 = vector.shape_cast %10 : vector<256xf32> to vector<256x1xf32>
    %cst_7 = arith.constant 3.200000e+01 : f32
    %12 = vector.broadcast %cst_7 : f32 to vector<256x1xf32>
    %13 = arith.divf %11, %12 : vector<256x1xf32>
    %cst_8 = arith.constant 9.99999974E-6 : f32
    %14 = vector.broadcast %cst_8 : f32 to vector<256x1xf32>
    %15 = arith.addf %13, %14 : vector<256x1xf32>
    %16 = math.rsqrt %15 : vector<256x1xf32>
    %17 = vector.broadcast %16 : vector<256x1xf32> to vector<256x32xf32>
    %18 = arith.mulf %8, %17 : vector<256x32xf32>
    %19 = vector.broadcast %1 : vector<1x32xf32> to vector<256x32xf32>
    %20 = arith.mulf %18, %19 : vector<256x32xf32>
    %21 = vector.broadcast %2 : vector<1x32xf32> to vector<256x32xf32>
    %22 = arith.addf %20, %21 : vector<256x32xf32>
    %c0_9 = arith.constant 0 : index
    %c0_10 = arith.constant 0 : index
    %23 = vector.load %arg4[%c0_9, %c0_10] : memref<32x32xf32, #tpu.memory_space<vmem>>, vector<32x32xf32>
    %cst_11 = arith.constant dense<0.000000e+00> : vector<256x32xf32>
    %24 = tpu.matmul %22, %23, %cst_11 {dimension_numbers = #tpu.dot_dimension_numbers<[1], [0], [0], [1], [0, 0, 1, 1], [], []>} : vector<256x32xf32>, vector<32x32xf32>, vector<256x32xf32> -> vector<256x32xf32>
    %c0_12 = arith.constant 0 : index
    %c0_13 = arith.constant 0 : index
    %25 = vector.load %arg5[%c0_12, %c0_13] : memref<256x32xf32, #tpu.memory_space<vmem>>, vector<256x32xf32>
    tpu.vector_store %arg5[%c0_12, %c0_13], %24 {strides = array<i32>} : memref<256x32xf32, #tpu.memory_space<vmem>>, vector<256x32xf32>,
    return
  }
  func.func @transform_0(%arg0: i32) -> (i32, i32) {
    %c0_i32 = arith.constant 0 : i32
    %c0_i32_0 = arith.constant 0 : i32
    return %arg0, %c0_i32 : i32, i32
  }
  func.func @transform_1(%arg0: i32) -> (i32, i32) {
    %c0_i32 = arith.constant 0 : i32
    %c0_i32_0 = arith.constant 0 : i32
    %c0_i32_1 = arith.constant 0 : i32
    return %c0_i32, %c0_i32_0 : i32, i32
  }
  func.func @transform_2(%arg0: i32) -> (i32, i32) {
    %c0_i32 = arith.constant 0 : i32
    %c0_i32_0 = arith.constant 0 : i32
    %c0_i32_1 = arith.constant 0 : i32
    return %c0_i32, %c0_i32_0 : i32, i32
  }
  func.func @transform_3(%arg0: i32) -> (i32, i32) {
    %c0_i32 = arith.constant 0 : i32
    %c0_i32_0 = arith.constant 0 : i32
    %c0_i32_1 = arith.constant 0 : i32
    return %c0_i32, %c0_i32_0 : i32, i32
  }
  func.func @transform_4(%arg0: i32) -> (i32, i32) {
    %c0_i32 = arith.constant 0 : i32
    %c0_i32_0 = arith.constant 0 : i32
    return %arg0, %c0_i32 : i32, i32
  }
}

module attributes {stable_mosaic.version = 11 : i64} {
  func.func @_attn_proj_kernel(%arg0: i32, %arg1: memref<1x256x32xf32, #tpu.memory_space<vmem>>, %arg2: memref<1x128x64xf32, #tpu.memory_space<vmem>>, %arg3: memref<32x32xf32, #tpu.memory_space<vmem>>, %arg4: memref<1x32xf32, #tpu.memory_space<vmem>>, %arg5: memref<1x256x32xf32, #tpu.memory_space<vmem>>, %arg6: memref<1x256x32xf32, #tpu.memory_space<vmem>>) attributes {dimension_semantics = [#tpu.dimension_semantics<parallel>], iteration_bounds = array<i64: 2>, scalar_prefetch = 0 : i64, scratch_operands = 0 : i64, tpu.core_type = #tpu.core_type<tc>, window_params = [{transform_indices = @transform_0, window_bounds = array<i64: 1, 256, 32>}, {transform_indices = @transform_1, window_bounds = array<i64: 1, 128, 64>}, {pipeline_mode = #tpu.pipeline_mode<synchronous>, transform_indices = @transform_2, window_bounds = array<i64: 32, 32>}, {pipeline_mode = #tpu.pipeline_mode<synchronous>, transform_indices = @transform_3, window_bounds = array<i64: 1, 32>}, {transform_indices = @transform_4, window_bounds = array<i64: 1, 256, 32>}, {transform_indices = @transform_5, window_bounds = array<i64: 1, 256, 32>}]} {
    %c0 = arith.constant 0 : index
    %c0_0 = arith.constant 0 : index
    %c0_1 = arith.constant 0 : index
    %0 = vector.load %arg1[%c0, %c0_0, %c0_1] : memref<1x256x32xf32, #tpu.memory_space<vmem>>, vector<1x256x32xf32>
    %1 = vector.shape_cast %0 : vector<1x256x32xf32> to vector<256x32xf32>
    %c0_2 = arith.constant 0 : index
    %c0_3 = arith.constant 0 : index
    %c0_4 = arith.constant 0 : index
    %2 = vector.load %arg2[%c0_2, %c0_3, %c0_4] : memref<1x128x64xf32, #tpu.memory_space<vmem>>, vector<1x128x64xf32>
    %3 = vector.shape_cast %2 : vector<1x128x64xf32> to vector<128x64xf32>
    %4 = tpu.iota {dimensions = array<i32: 1>} : vector<1x128xi32>
    %c85_i32 = arith.constant 85 : i32
    %5 = vector.broadcast %c85_i32 : i32 to vector<1x128xi32>
    %6 = arith.cmpi slt, %4, %5 : vector<1x128xi32>
    %c0_5 = arith.constant 0 : index
    %c0_6 = arith.constant 0 : index
    %7 = vector.load %arg4[%c0_5, %c0_6] : memref<1x32xf32, #tpu.memory_space<vmem>>, vector<1x32xf32>
    %c0_7 = arith.constant 0 : index
    %c0_8 = arith.constant 0 : index
    %c0_9 = arith.constant 0 : index
    %8 = vector.load %arg5[%c0_7, %c0_8, %c0_9] : memref<1x256x32xf32, #tpu.memory_space<vmem>>, vector<1x256x32xf32>
    %9 = vector.shape_cast %8 : vector<1x256x32xf32> to vector<256x32xf32>
    %10 = vector.broadcast %7 : vector<1x32xf32> to vector<256x32xf32>
    %11 = arith.addf %10, %9 : vector<256x32xf32>
    %12 = vector.extract_strided_slice %1 {offsets = [0, 0], sizes = [256, 16], strides = [1, 1]} : vector<256x32xf32> to vector<256x16xf32>
    %13 = vector.extract_strided_slice %3 {offsets = [0, 0], sizes = [128, 16], strides = [1, 1]} : vector<128x64xf32> to vector<128x16xf32>
    %14 = vector.extract_strided_slice %3 {offsets = [0, 32], sizes = [128, 16], strides = [1, 1]} : vector<128x64xf32> to vector<128x16xf32>
    %cst = arith.constant dense<0.000000e+00> : vector<256x128xf32>
    %15 = tpu.matmul %12, %13, %cst {dimension_numbers = #tpu.dot_dimension_numbers<[1], [1], [0], [0], [0, 0, 1, 0], [], []>} : vector<256x16xf32>, vector<128x16xf32>, vector<256x128xf32> -> vector<256x128xf32>
    %cst_10 = arith.constant 2.500000e-01 : f32
    %16 = vector.broadcast %cst_10 : f32 to vector<256x128xf32>
    %17 = arith.mulf %15, %16 : vector<256x128xf32>
    %cst_11 = arith.constant -1.000000e+30 : f32
    %18 = vector.shape_cast %6 : vector<1x128xi1> to vector<1x128xi1>
    %19 = vector.broadcast %18 : vector<1x128xi1> to vector<256x128xi1>
    %20 = vector.broadcast %cst_11 : f32 to vector<256x128xf32>
    %21 = arith.select %19, %17, %20 : vector<256x128xi1>, vector<256x128xf32>
    %cst_12 = arith.constant dense<0xFF800000> : vector<256xf32>
    %22 = vector.multi_reduction <maximumf>, %21, %cst_12 [1] : vector<256x128xf32> to vector<256xf32>
    %23 = vector.shape_cast %22 : vector<256xf32> to vector<256x1xf32>
    %24 = vector.broadcast %23 : vector<256x1xf32> to vector<256x128xf32>
    %25 = arith.subf %21, %24 : vector<256x128xf32>
    %26 = math.exp %25 : vector<256x128xf32>
    %cst_13 = arith.constant dense<0.000000e+00> : vector<256xf32>
    %27 = vector.multi_reduction <add>, %26, %cst_13 [1] : vector<256x128xf32> to vector<256xf32>
    %28 = vector.shape_cast %27 : vector<256xf32> to vector<256x1xf32>
    %29 = vector.broadcast %28 : vector<256x1xf32> to vector<256x128xf32>
    %30 = arith.divf %26, %29 : vector<256x128xf32>
    %cst_14 = arith.constant dense<0.000000e+00> : vector<256x16xf32>
    %31 = tpu.matmul %30, %14, %cst_14 {dimension_numbers = #tpu.dot_dimension_numbers<[1], [0], [0], [1], [0, 0, 1, 1], [], []>} : vector<256x128xf32>, vector<128x16xf32>, vector<256x16xf32> -> vector<256x16xf32>
    %c0_15 = arith.constant 0 : index
    %c0_16 = arith.constant 0 : index
    %32 = vector.load %arg3[%c0_15, %c0_16] : memref<32x32xf32, #tpu.memory_space<vmem>>, vector<16x32xf32>
    %cst_17 = arith.constant dense<0.000000e+00> : vector<256x32xf32>
    %33 = tpu.matmul %31, %32, %cst_17 {dimension_numbers = #tpu.dot_dimension_numbers<[1], [0], [0], [1], [0, 0, 1, 1], [], []>} : vector<256x16xf32>, vector<16x32xf32>, vector<256x32xf32> -> vector<256x32xf32>
    %34 = arith.addf %11, %33 : vector<256x32xf32>
    %35 = vector.extract_strided_slice %1 {offsets = [0, 16], sizes = [256, 16], strides = [1, 1]} : vector<256x32xf32> to vector<256x16xf32>
    %36 = vector.extract_strided_slice %3 {offsets = [0, 16], sizes = [128, 16], strides = [1, 1]} : vector<128x64xf32> to vector<128x16xf32>
    %37 = vector.extract_strided_slice %3 {offsets = [0, 48], sizes = [128, 16], strides = [1, 1]} : vector<128x64xf32> to vector<128x16xf32>
    %cst_18 = arith.constant dense<0.000000e+00> : vector<256x128xf32>
    %38 = tpu.matmul %35, %36, %cst_18 {dimension_numbers = #tpu.dot_dimension_numbers<[1], [1], [0], [0], [0, 0, 1, 0], [], []>} : vector<256x16xf32>, vector<128x16xf32>, vector<256x128xf32> -> vector<256x128xf32>
    %cst_19 = arith.constant 2.500000e-01 : f32
    %39 = vector.broadcast %cst_19 : f32 to vector<256x128xf32>
    %40 = arith.mulf %38, %39 : vector<256x128xf32>
    %cst_20 = arith.constant -1.000000e+30 : f32
    %41 = vector.shape_cast %6 : vector<1x128xi1> to vector<1x128xi1>
    %42 = vector.broadcast %41 : vector<1x128xi1> to vector<256x128xi1>
    %43 = vector.broadcast %cst_20 : f32 to vector<256x128xf32>
    %44 = arith.select %42, %40, %43 : vector<256x128xi1>, vector<256x128xf32>
    %cst_21 = arith.constant dense<0xFF800000> : vector<256xf32>
    %45 = vector.multi_reduction <maximumf>, %44, %cst_21 [1] : vector<256x128xf32> to vector<256xf32>
    %46 = vector.shape_cast %45 : vector<256xf32> to vector<256x1xf32>
    %47 = vector.broadcast %46 : vector<256x1xf32> to vector<256x128xf32>
    %48 = arith.subf %44, %47 : vector<256x128xf32>
    %49 = math.exp %48 : vector<256x128xf32>
    %cst_22 = arith.constant dense<0.000000e+00> : vector<256xf32>
    %50 = vector.multi_reduction <add>, %49, %cst_22 [1] : vector<256x128xf32> to vector<256xf32>
    %51 = vector.shape_cast %50 : vector<256xf32> to vector<256x1xf32>
    %52 = vector.broadcast %51 : vector<256x1xf32> to vector<256x128xf32>
    %53 = arith.divf %49, %52 : vector<256x128xf32>
    %cst_23 = arith.constant dense<0.000000e+00> : vector<256x16xf32>
    %54 = tpu.matmul %53, %37, %cst_23 {dimension_numbers = #tpu.dot_dimension_numbers<[1], [0], [0], [1], [0, 0, 1, 1], [], []>} : vector<256x128xf32>, vector<128x16xf32>, vector<256x16xf32> -> vector<256x16xf32>
    %c16 = arith.constant 16 : index
    %c0_24 = arith.constant 0 : index
    %55 = vector.load %arg3[%c16, %c0_24] : memref<32x32xf32, #tpu.memory_space<vmem>>, vector<16x32xf32>
    %cst_25 = arith.constant dense<0.000000e+00> : vector<256x32xf32>
    %56 = tpu.matmul %54, %55, %cst_25 {dimension_numbers = #tpu.dot_dimension_numbers<[1], [0], [0], [1], [0, 0, 1, 1], [], []>} : vector<256x16xf32>, vector<16x32xf32>, vector<256x32xf32> -> vector<256x32xf32>
    %57 = arith.addf %34, %56 : vector<256x32xf32>
    %c0_26 = arith.constant 0 : index
    %c0_27 = arith.constant 0 : index
    %c0_28 = arith.constant 0 : index
    %58 = vector.load %arg6[%c0_26, %c0_27, %c0_28] : memref<1x256x32xf32, #tpu.memory_space<vmem>>, vector<1x256x32xf32>
    %59 = vector.shape_cast %58 : vector<1x256x32xf32> to vector<256x32xf32>
    %60 = vector.shape_cast %57 : vector<256x32xf32> to vector<1x256x32xf32>
    tpu.vector_store %arg6[%c0_26, %c0_27, %c0_28], %60 {strides = array<i32>} : memref<1x256x32xf32, #tpu.memory_space<vmem>>, vector<1x256x32xf32>,
    return
  }
  func.func @transform_0(%arg0: i32) -> (i32, i32, i32) {
    %c0_i32 = arith.constant 0 : i32
    %c0_i32_0 = arith.constant 0 : i32
    %c0_i32_1 = arith.constant 0 : i32
    return %arg0, %c0_i32, %c0_i32_0 : i32, i32, i32
  }
  func.func @transform_1(%arg0: i32) -> (i32, i32, i32) {
    %c0_i32 = arith.constant 0 : i32
    %c0_i32_0 = arith.constant 0 : i32
    %c0_i32_1 = arith.constant 0 : i32
    return %arg0, %c0_i32, %c0_i32_0 : i32, i32, i32
  }
  func.func @transform_2(%arg0: i32) -> (i32, i32) {
    %c0_i32 = arith.constant 0 : i32
    %c0_i32_0 = arith.constant 0 : i32
    %c0_i32_1 = arith.constant 0 : i32
    return %c0_i32, %c0_i32_0 : i32, i32
  }
  func.func @transform_3(%arg0: i32) -> (i32, i32) {
    %c0_i32 = arith.constant 0 : i32
    %c0_i32_0 = arith.constant 0 : i32
    %c0_i32_1 = arith.constant 0 : i32
    return %c0_i32, %c0_i32_0 : i32, i32
  }
  func.func @transform_4(%arg0: i32) -> (i32, i32, i32) {
    %c0_i32 = arith.constant 0 : i32
    %c0_i32_0 = arith.constant 0 : i32
    %c0_i32_1 = arith.constant 0 : i32
    return %arg0, %c0_i32, %c0_i32_0 : i32, i32, i32
  }
  func.func @transform_5(%arg0: i32) -> (i32, i32, i32) {
    %c0_i32 = arith.constant 0 : i32
    %c0_i32_0 = arith.constant 0 : i32
    %c0_i32_1 = arith.constant 0 : i32
    return %arg0, %c0_i32, %c0_i32_0 : i32, i32, i32
  }
}

module attributes {stable_mosaic.version = 11 : i64} {
  func.func @_fused_mm_kernel(%arg0: i32, %arg1: memref<256x32xf32, #tpu.memory_space<vmem>>, %arg2: memref<1x32xf32, #tpu.memory_space<vmem>>, %arg3: memref<1x32xf32, #tpu.memory_space<vmem>>, %arg4: memref<32x128xf32, #tpu.memory_space<vmem>>, %arg5: memref<1x128xf32, #tpu.memory_space<vmem>>, %arg6: memref<256x128xf32, #tpu.memory_space<vmem>>) attributes {dimension_semantics = [#tpu.dimension_semantics<parallel>], iteration_bounds = array<i64: 2>, scalar_prefetch = 0 : i64, scratch_operands = 0 : i64, tpu.core_type = #tpu.core_type<tc>, window_params = [{transform_indices = @transform_0, window_bounds = array<i64: 256, 32>}, {pipeline_mode = #tpu.pipeline_mode<synchronous>, transform_indices = @transform_1, window_bounds = array<i64: 1, 32>}, {pipeline_mode = #tpu.pipeline_mode<synchronous>, transform_indices = @transform_2, window_bounds = array<i64: 1, 32>}, {pipeline_mode = #tpu.pipeline_mode<synchronous>, transform_indices = @transform_3, window_bounds = array<i64: 32, 128>}, {pipeline_mode = #tpu.pipeline_mode<synchronous>, transform_indices = @transform_4, window_bounds = array<i64: 1, 128>}, {transform_indices = @transform_5, window_bounds = array<i64: 256, 128>}]} {
    %c0 = arith.constant 0 : index
    %c0_0 = arith.constant 0 : index
    %0 = vector.load %arg1[%c0, %c0_0] : memref<256x32xf32, #tpu.memory_space<vmem>>, vector<256x32xf32>
    %c0_1 = arith.constant 0 : index
    %c0_2 = arith.constant 0 : index
    %1 = vector.load %arg2[%c0_1, %c0_2] : memref<1x32xf32, #tpu.memory_space<vmem>>, vector<1x32xf32>
    %c0_3 = arith.constant 0 : index
    %c0_4 = arith.constant 0 : index
    %2 = vector.load %arg3[%c0_3, %c0_4] : memref<1x32xf32, #tpu.memory_space<vmem>>, vector<1x32xf32>
    %cst = arith.constant dense<0.000000e+00> : vector<256xf32>
    %3 = vector.multi_reduction <add>, %0, %cst [1] : vector<256x32xf32> to vector<256xf32>
    %4 = vector.shape_cast %3 : vector<256xf32> to vector<256x1xf32>
    %cst_5 = arith.constant 3.200000e+01 : f32
    %5 = vector.broadcast %cst_5 : f32 to vector<256x1xf32>
    %6 = arith.divf %4, %5 : vector<256x1xf32>
    %7 = vector.broadcast %6 : vector<256x1xf32> to vector<256x32xf32>
    %8 = arith.subf %0, %7 : vector<256x32xf32>
    %9 = arith.mulf %8, %8 : vector<256x32xf32>
    %cst_6 = arith.constant dense<0.000000e+00> : vector<256xf32>
    %10 = vector.multi_reduction <add>, %9, %cst_6 [1] : vector<256x32xf32> to vector<256xf32>
    %11 = vector.shape_cast %10 : vector<256xf32> to vector<256x1xf32>
    %cst_7 = arith.constant 3.200000e+01 : f32
    %12 = vector.broadcast %cst_7 : f32 to vector<256x1xf32>
    %13 = arith.divf %11, %12 : vector<256x1xf32>
    %cst_8 = arith.constant 9.99999974E-6 : f32
    %14 = vector.broadcast %cst_8 : f32 to vector<256x1xf32>
    %15 = arith.addf %13, %14 : vector<256x1xf32>
    %16 = math.rsqrt %15 : vector<256x1xf32>
    %17 = vector.broadcast %16 : vector<256x1xf32> to vector<256x32xf32>
    %18 = arith.mulf %8, %17 : vector<256x32xf32>
    %19 = vector.broadcast %1 : vector<1x32xf32> to vector<256x32xf32>
    %20 = arith.mulf %18, %19 : vector<256x32xf32>
    %21 = vector.broadcast %2 : vector<1x32xf32> to vector<256x32xf32>
    %22 = arith.addf %20, %21 : vector<256x32xf32>
    %c0_9 = arith.constant 0 : index
    %c0_10 = arith.constant 0 : index
    %23 = vector.load %arg4[%c0_9, %c0_10] : memref<32x128xf32, #tpu.memory_space<vmem>>, vector<32x128xf32>
    %cst_11 = arith.constant dense<0.000000e+00> : vector<256x128xf32>
    %24 = tpu.matmul %22, %23, %cst_11 {dimension_numbers = #tpu.dot_dimension_numbers<[1], [0], [0], [1], [0, 0, 1, 1], [], []>} : vector<256x32xf32>, vector<32x128xf32>, vector<256x128xf32> -> vector<256x128xf32>
    %c0_12 = arith.constant 0 : index
    %c0_13 = arith.constant 0 : index
    %25 = vector.load %arg5[%c0_12, %c0_13] : memref<1x128xf32, #tpu.memory_space<vmem>>, vector<1x128xf32>
    %26 = vector.broadcast %25 : vector<1x128xf32> to vector<256x128xf32>
    %27 = arith.addf %24, %26 : vector<256x128xf32>
    %cst_14 = arith.constant 3.000000e+00 : f32
    %28 = vector.broadcast %cst_14 : f32 to vector<256x128xf32>
    %29 = arith.addf %27, %28 : vector<256x128xf32>
    %cst_15 = arith.constant 0.000000e+00 : f32
    %cst_16 = arith.constant 6.000000e+00 : f32
    %30 = vector.broadcast %cst_15 : f32 to vector<256x128xf32>
    %31 = arith.maximumf %30, %29 : vector<256x128xf32>
    %32 = vector.broadcast %cst_16 : f32 to vector<256x128xf32>
    %33 = arith.minimumf %32, %31 : vector<256x128xf32>
    %34 = arith.mulf %27, %33 : vector<256x128xf32>
    %cst_17 = arith.constant 0.166666672 : f32
    %35 = vector.broadcast %cst_17 : f32 to vector<256x128xf32>
    %36 = arith.mulf %34, %35 : vector<256x128xf32>
    %c0_18 = arith.constant 0 : index
    %c0_19 = arith.constant 0 : index
    %37 = vector.load %arg6[%c0_18, %c0_19] : memref<256x128xf32, #tpu.memory_space<vmem>>, vector<256x128xf32>
    tpu.vector_store %arg6[%c0_18, %c0_19], %36 {strides = array<i32>} : memref<256x128xf32, #tpu.memory_space<vmem>>, vector<256x128xf32>,
    return
  }
  func.func @transform_0(%arg0: i32) -> (i32, i32) {
    %c0_i32 = arith.constant 0 : i32
    %c0_i32_0 = arith.constant 0 : i32
    return %arg0, %c0_i32 : i32, i32
  }
  func.func @transform_1(%arg0: i32) -> (i32, i32) {
    %c0_i32 = arith.constant 0 : i32
    %c0_i32_0 = arith.constant 0 : i32
    %c0_i32_1 = arith.constant 0 : i32
    return %c0_i32, %c0_i32_0 : i32, i32
  }
  func.func @transform_2(%arg0: i32) -> (i32, i32) {
    %c0_i32 = arith.constant 0 : i32
    %c0_i32_0 = arith.constant 0 : i32
    %c0_i32_1 = arith.constant 0 : i32
    return %c0_i32, %c0_i32_0 : i32, i32
  }
  func.func @transform_3(%arg0: i32) -> (i32, i32) {
    %c0_i32 = arith.constant 0 : i32
    %c0_i32_0 = arith.constant 0 : i32
    %c0_i32_1 = arith.constant 0 : i32
    return %c0_i32, %c0_i32_0 : i32, i32
  }
  func.func @transform_4(%arg0: i32) -> (i32, i32) {
    %c0_i32 = arith.constant 0 : i32
    %c0_i32_0 = arith.constant 0 : i32
    %c0_i32_1 = arith.constant 0 : i32
    return %c0_i32, %c0_i32_0 : i32, i32
  }
  func.func @transform_5(%arg0: i32) -> (i32, i32) {
    %c0_i32 = arith.constant 0 : i32
    %c0_i32_0 = arith.constant 0 : i32
    return %arg0, %c0_i32 : i32, i32
  }
}

module attributes {stable_mosaic.version = 11 : i64} {
  func.func @_dwconv_kernel(%arg0: i32, %arg1: memref<1x18x18x128xf32, #tpu.memory_space<vmem>>, %arg2: memref<9x128xf32, #tpu.memory_space<vmem>>, %arg3: memref<1x128xf32, #tpu.memory_space<vmem>>, %arg4: memref<1x16x16x128xf32, #tpu.memory_space<vmem>>) attributes {dimension_semantics = [#tpu.dimension_semantics<parallel>], iteration_bounds = array<i64: 2>, scalar_prefetch = 0 : i64, scratch_operands = 0 : i64, tpu.core_type = #tpu.core_type<tc>, window_params = [{transform_indices = @transform_0, window_bounds = array<i64: 1, 18, 18, 128>}, {pipeline_mode = #tpu.pipeline_mode<synchronous>, transform_indices = @transform_1, window_bounds = array<i64: 9, 128>}, {pipeline_mode = #tpu.pipeline_mode<synchronous>, transform_indices = @transform_2, window_bounds = array<i64: 1, 128>}, {transform_indices = @transform_3, window_bounds = array<i64: 1, 16, 16, 128>}]} {
    %cst = arith.constant 0.000000e+00 : f32
    %0 = vector.broadcast %cst : f32 to vector<16x16x128xf32>
    %c0 = arith.constant 0 : index
    %c0_0 = arith.constant 0 : index
    %c0_1 = arith.constant 0 : index
    %c0_2 = arith.constant 0 : index
    %1 = vector.load %arg1[%c0, %c0_0, %c0_1, %c0_2] : memref<1x18x18x128xf32, #tpu.memory_space<vmem>>, vector<1x16x16x128xf32>
    %2 = vector.shape_cast %1 : vector<1x16x16x128xf32> to vector<16x16x128xf32>
    %c0_3 = arith.constant 0 : index
    %c0_4 = arith.constant 0 : index
    %3 = vector.load %arg2[%c0_3, %c0_4] : memref<9x128xf32, #tpu.memory_space<vmem>>, vector<1x128xf32>
    %4 = vector.shape_cast %3 : vector<1x128xf32> to vector<128xf32>
    %5 = vector.shape_cast %4 : vector<128xf32> to vector<1x1x128xf32>
    %6 = vector.broadcast %5 : vector<1x1x128xf32> to vector<16x16x128xf32>
    %7 = arith.mulf %2, %6 : vector<16x16x128xf32>
    %8 = arith.addf %0, %7 : vector<16x16x128xf32>
    %c0_5 = arith.constant 0 : index
    %c0_6 = arith.constant 0 : index
    %c1 = arith.constant 1 : index
    %c0_7 = arith.constant 0 : index
    %9 = vector.load %arg1[%c0_5, %c0_6, %c1, %c0_7] : memref<1x18x18x128xf32, #tpu.memory_space<vmem>>, vector<1x16x16x128xf32>
    %10 = vector.shape_cast %9 : vector<1x16x16x128xf32> to vector<16x16x128xf32>
    %c1_8 = arith.constant 1 : index
    %c0_9 = arith.constant 0 : index
    %11 = vector.load %arg2[%c1_8, %c0_9] : memref<9x128xf32, #tpu.memory_space<vmem>>, vector<1x128xf32>
    %12 = vector.shape_cast %11 : vector<1x128xf32> to vector<128xf32>
    %13 = vector.shape_cast %12 : vector<128xf32> to vector<1x1x128xf32>
    %14 = vector.broadcast %13 : vector<1x1x128xf32> to vector<16x16x128xf32>
    %15 = arith.mulf %10, %14 : vector<16x16x128xf32>
    %16 = arith.addf %8, %15 : vector<16x16x128xf32>
    %c0_10 = arith.constant 0 : index
    %c0_11 = arith.constant 0 : index
    %c2 = arith.constant 2 : index
    %c0_12 = arith.constant 0 : index
    %17 = vector.load %arg1[%c0_10, %c0_11, %c2, %c0_12] : memref<1x18x18x128xf32, #tpu.memory_space<vmem>>, vector<1x16x16x128xf32>
    %18 = vector.shape_cast %17 : vector<1x16x16x128xf32> to vector<16x16x128xf32>
    %c2_13 = arith.constant 2 : index
    %c0_14 = arith.constant 0 : index
    %19 = vector.load %arg2[%c2_13, %c0_14] : memref<9x128xf32, #tpu.memory_space<vmem>>, vector<1x128xf32>
    %20 = vector.shape_cast %19 : vector<1x128xf32> to vector<128xf32>
    %21 = vector.shape_cast %20 : vector<128xf32> to vector<1x1x128xf32>
    %22 = vector.broadcast %21 : vector<1x1x128xf32> to vector<16x16x128xf32>
    %23 = arith.mulf %18, %22 : vector<16x16x128xf32>
    %24 = arith.addf %16, %23 : vector<16x16x128xf32>
    %c0_15 = arith.constant 0 : index
    %c1_16 = arith.constant 1 : index
    %c0_17 = arith.constant 0 : index
    %c0_18 = arith.constant 0 : index
    %25 = vector.load %arg1[%c0_15, %c1_16, %c0_17, %c0_18] : memref<1x18x18x128xf32, #tpu.memory_space<vmem>>, vector<1x16x16x128xf32>
    %26 = vector.shape_cast %25 : vector<1x16x16x128xf32> to vector<16x16x128xf32>
    %c3 = arith.constant 3 : index
    %c0_19 = arith.constant 0 : index
    %27 = vector.load %arg2[%c3, %c0_19] : memref<9x128xf32, #tpu.memory_space<vmem>>, vector<1x128xf32>
    %28 = vector.shape_cast %27 : vector<1x128xf32> to vector<128xf32>
    %29 = vector.shape_cast %28 : vector<128xf32> to vector<1x1x128xf32>
    %30 = vector.broadcast %29 : vector<1x1x128xf32> to vector<16x16x128xf32>
    %31 = arith.mulf %26, %30 : vector<16x16x128xf32>
    %32 = arith.addf %24, %31 : vector<16x16x128xf32>
    %c0_20 = arith.constant 0 : index
    %c1_21 = arith.constant 1 : index
    %c1_22 = arith.constant 1 : index
    %c0_23 = arith.constant 0 : index
    %33 = vector.load %arg1[%c0_20, %c1_21, %c1_22, %c0_23] : memref<1x18x18x128xf32, #tpu.memory_space<vmem>>, vector<1x16x16x128xf32>
    %34 = vector.shape_cast %33 : vector<1x16x16x128xf32> to vector<16x16x128xf32>
    %c4 = arith.constant 4 : index
    %c0_24 = arith.constant 0 : index
    %35 = vector.load %arg2[%c4, %c0_24] : memref<9x128xf32, #tpu.memory_space<vmem>>, vector<1x128xf32>
    %36 = vector.shape_cast %35 : vector<1x128xf32> to vector<128xf32>
    %37 = vector.shape_cast %36 : vector<128xf32> to vector<1x1x128xf32>
    %38 = vector.broadcast %37 : vector<1x1x128xf32> to vector<16x16x128xf32>
    %39 = arith.mulf %34, %38 : vector<16x16x128xf32>
    %40 = arith.addf %32, %39 : vector<16x16x128xf32>
    %c0_25 = arith.constant 0 : index
    %c1_26 = arith.constant 1 : index
    %c2_27 = arith.constant 2 : index
    %c0_28 = arith.constant 0 : index
    %41 = vector.load %arg1[%c0_25, %c1_26, %c2_27, %c0_28] : memref<1x18x18x128xf32, #tpu.memory_space<vmem>>, vector<1x16x16x128xf32>
    %42 = vector.shape_cast %41 : vector<1x16x16x128xf32> to vector<16x16x128xf32>
    %c5 = arith.constant 5 : index
    %c0_29 = arith.constant 0 : index
    %43 = vector.load %arg2[%c5, %c0_29] : memref<9x128xf32, #tpu.memory_space<vmem>>, vector<1x128xf32>
    %44 = vector.shape_cast %43 : vector<1x128xf32> to vector<128xf32>
    %45 = vector.shape_cast %44 : vector<128xf32> to vector<1x1x128xf32>
    %46 = vector.broadcast %45 : vector<1x1x128xf32> to vector<16x16x128xf32>
    %47 = arith.mulf %42, %46 : vector<16x16x128xf32>
    %48 = arith.addf %40, %47 : vector<16x16x128xf32>
    %c0_30 = arith.constant 0 : index
    %c2_31 = arith.constant 2 : index
    %c0_32 = arith.constant 0 : index
    %c0_33 = arith.constant 0 : index
    %49 = vector.load %arg1[%c0_30, %c2_31, %c0_32, %c0_33] : memref<1x18x18x128xf32, #tpu.memory_space<vmem>>, vector<1x16x16x128xf32>
    %50 = vector.shape_cast %49 : vector<1x16x16x128xf32> to vector<16x16x128xf32>
    %c6 = arith.constant 6 : index
    %c0_34 = arith.constant 0 : index
    %51 = vector.load %arg2[%c6, %c0_34] : memref<9x128xf32, #tpu.memory_space<vmem>>, vector<1x128xf32>
    %52 = vector.shape_cast %51 : vector<1x128xf32> to vector<128xf32>
    %53 = vector.shape_cast %52 : vector<128xf32> to vector<1x1x128xf32>
    %54 = vector.broadcast %53 : vector<1x1x128xf32> to vector<16x16x128xf32>
    %55 = arith.mulf %50, %54 : vector<16x16x128xf32>
    %56 = arith.addf %48, %55 : vector<16x16x128xf32>
    %c0_35 = arith.constant 0 : index
    %c2_36 = arith.constant 2 : index
    %c1_37 = arith.constant 1 : index
    %c0_38 = arith.constant 0 : index
    %57 = vector.load %arg1[%c0_35, %c2_36, %c1_37, %c0_38] : memref<1x18x18x128xf32, #tpu.memory_space<vmem>>, vector<1x16x16x128xf32>
    %58 = vector.shape_cast %57 : vector<1x16x16x128xf32> to vector<16x16x128xf32>
    %c7 = arith.constant 7 : index
    %c0_39 = arith.constant 0 : index
    %59 = vector.load %arg2[%c7, %c0_39] : memref<9x128xf32, #tpu.memory_space<vmem>>, vector<1x128xf32>
    %60 = vector.shape_cast %59 : vector<1x128xf32> to vector<128xf32>
    %61 = vector.shape_cast %60 : vector<128xf32> to vector<1x1x128xf32>
    %62 = vector.broadcast %61 : vector<1x1x128xf32> to vector<16x16x128xf32>
    %63 = arith.mulf %58, %62 : vector<16x16x128xf32>
    %64 = arith.addf %56, %63 : vector<16x16x128xf32>
    %c0_40 = arith.constant 0 : index
    %c2_41 = arith.constant 2 : index
    %c2_42 = arith.constant 2 : index
    %c0_43 = arith.constant 0 : index
    %65 = vector.load %arg1[%c0_40, %c2_41, %c2_42, %c0_43] : memref<1x18x18x128xf32, #tpu.memory_space<vmem>>, vector<1x16x16x128xf32>
    %66 = vector.shape_cast %65 : vector<1x16x16x128xf32> to vector<16x16x128xf32>
    %c8 = arith.constant 8 : index
    %c0_44 = arith.constant 0 : index
    %67 = vector.load %arg2[%c8, %c0_44] : memref<9x128xf32, #tpu.memory_space<vmem>>, vector<1x128xf32>
    %68 = vector.shape_cast %67 : vector<1x128xf32> to vector<128xf32>
    %69 = vector.shape_cast %68 : vector<128xf32> to vector<1x1x128xf32>
    %70 = vector.broadcast %69 : vector<1x1x128xf32> to vector<16x16x128xf32>
    %71 = arith.mulf %66, %70 : vector<16x16x128xf32>
    %72 = arith.addf %64, %71 : vector<16x16x128xf32>
    %c0_45 = arith.constant 0 : index
    %c0_46 = arith.constant 0 : index
    %73 = vector.load %arg3[%c0_45, %c0_46] : memref<1x128xf32, #tpu.memory_space<vmem>>, vector<1x128xf32>
    %74 = vector.shape_cast %73 : vector<1x128xf32> to vector<128xf32>
    %75 = vector.shape_cast %74 : vector<128xf32> to vector<1x1x128xf32>
    %76 = vector.broadcast %75 : vector<1x1x128xf32> to vector<16x16x128xf32>
    %77 = arith.addf %72, %76 : vector<16x16x128xf32>
    %cst_47 = arith.constant 3.000000e+00 : f32
    %78 = vector.broadcast %cst_47 : f32 to vector<16x16x128xf32>
    %79 = arith.addf %77, %78 : vector<16x16x128xf32>
    %cst_48 = arith.constant 0.000000e+00 : f32
    %cst_49 = arith.constant 6.000000e+00 : f32
    %80 = vector.broadcast %cst_48 : f32 to vector<16x16x128xf32>
    %81 = arith.maximumf %80, %79 : vector<16x16x128xf32>
    %82 = vector.broadcast %cst_49 : f32 to vector<16x16x128xf32>
    %83 = arith.minimumf %82, %81 : vector<16x16x128xf32>
    %84 = arith.mulf %77, %83 : vector<16x16x128xf32>
    %cst_50 = arith.constant 0.166666672 : f32
    %85 = vector.broadcast %cst_50 : f32 to vector<16x16x128xf32>
    %86 = arith.mulf %84, %85 : vector<16x16x128xf32>
    %c0_51 = arith.constant 0 : index
    %c0_52 = arith.constant 0 : index
    %c0_53 = arith.constant 0 : index
    %c0_54 = arith.constant 0 : index
    %87 = vector.load %arg4[%c0_51, %c0_52, %c0_53, %c0_54] : memref<1x16x16x128xf32, #tpu.memory_space<vmem>>, vector<1x16x16x128xf32>
    %88 = vector.shape_cast %87 : vector<1x16x16x128xf32> to vector<16x16x128xf32>
    %89 = vector.shape_cast %86 : vector<16x16x128xf32> to vector<1x16x16x128xf32>
    tpu.vector_store %arg4[%c0_51, %c0_52, %c0_53, %c0_54], %89 {strides = array<i32>} : memref<1x16x16x128xf32, #tpu.memory_space<vmem>>, vector<1x16x16x128xf32>,
    return
  }
  func.func @transform_0(%arg0: i32) -> (i32, i32, i32, i32) {
    %c0_i32 = arith.constant 0 : i32
    %c0_i32_0 = arith.constant 0 : i32
    %c0_i32_1 = arith.constant 0 : i32
    %c0_i32_2 = arith.constant 0 : i32
    return %arg0, %c0_i32, %c0_i32_0, %c0_i32_1 : i32, i32, i32, i32
  }
  func.func @transform_1(%arg0: i32) -> (i32, i32) {
    %c0_i32 = arith.constant 0 : i32
    %c0_i32_0 = arith.constant 0 : i32
    %c0_i32_1 = arith.constant 0 : i32
    return %c0_i32, %c0_i32_0 : i32, i32
  }
  func.func @transform_2(%arg0: i32) -> (i32, i32) {
    %c0_i32 = arith.constant 0 : i32
    %c0_i32_0 = arith.constant 0 : i32
    %c0_i32_1 = arith.constant 0 : i32
    return %c0_i32, %c0_i32_0 : i32, i32
  }
  func.func @transform_3(%arg0: i32) -> (i32, i32, i32, i32) {
    %c0_i32 = arith.constant 0 : i32
    %c0_i32_0 = arith.constant 0 : i32
    %c0_i32_1 = arith.constant 0 : i32
    %c0_i32_2 = arith.constant 0 : i32
    return %arg0, %c0_i32, %c0_i32_0, %c0_i32_1 : i32, i32, i32, i32
  }
}

module attributes {stable_mosaic.version = 11 : i64} {
  func.func @_fused_mm_kernel(%arg0: i32, %arg1: memref<256x128xf32, #tpu.memory_space<vmem>>, %arg2: memref<128x32xf32, #tpu.memory_space<vmem>>, %arg3: memref<1x32xf32, #tpu.memory_space<vmem>>, %arg4: memref<256x32xf32, #tpu.memory_space<vmem>>, %arg5: memref<256x32xf32, #tpu.memory_space<vmem>>) attributes {dimension_semantics = [#tpu.dimension_semantics<parallel>], iteration_bounds = array<i64: 2>, scalar_prefetch = 0 : i64, scratch_operands = 0 : i64, tpu.core_type = #tpu.core_type<tc>, window_params = [{transform_indices = @transform_0, window_bounds = array<i64: 256, 128>}, {pipeline_mode = #tpu.pipeline_mode<synchronous>, transform_indices = @transform_1, window_bounds = array<i64: 128, 32>}, {pipeline_mode = #tpu.pipeline_mode<synchronous>, transform_indices = @transform_2, window_bounds = array<i64: 1, 32>}, {transform_indices = @transform_3, window_bounds = array<i64: 256, 32>}, {transform_indices = @transform_4, window_bounds = array<i64: 256, 32>}]} {
    %c0 = arith.constant 0 : index
    %c0_0 = arith.constant 0 : index
    %0 = vector.load %arg1[%c0, %c0_0] : memref<256x128xf32, #tpu.memory_space<vmem>>, vector<256x128xf32>
    %c0_1 = arith.constant 0 : index
    %c0_2 = arith.constant 0 : index
    %1 = vector.load %arg2[%c0_1, %c0_2] : memref<128x32xf32, #tpu.memory_space<vmem>>, vector<128x32xf32>
    %cst = arith.constant dense<0.000000e+00> : vector<256x32xf32>
    %2 = tpu.matmul %0, %1, %cst {dimension_numbers = #tpu.dot_dimension_numbers<[1], [0], [0], [1], [0, 0, 1, 1], [], []>} : vector<256x128xf32>, vector<128x32xf32>, vector<256x32xf32> -> vector<256x32xf32>
    %c0_3 = arith.constant 0 : index
    %c0_4 = arith.constant 0 : index
    %3 = vector.load %arg3[%c0_3, %c0_4] : memref<1x32xf32, #tpu.memory_space<vmem>>, vector<1x32xf32>
    %4 = vector.broadcast %3 : vector<1x32xf32> to vector<256x32xf32>
    %5 = arith.addf %2, %4 : vector<256x32xf32>
    %c0_5 = arith.constant 0 : index
    %c0_6 = arith.constant 0 : index
    %6 = vector.load %arg4[%c0_5, %c0_6] : memref<256x32xf32, #tpu.memory_space<vmem>>, vector<256x32xf32>
    %7 = arith.addf %5, %6 : vector<256x32xf32>
    %c0_7 = arith.constant 0 : index
    %c0_8 = arith.constant 0 : index
    %8 = vector.load %arg5[%c0_7, %c0_8] : memref<256x32xf32, #tpu.memory_space<vmem>>, vector<256x32xf32>
    tpu.vector_store %arg5[%c0_7, %c0_8], %7 {strides = array<i32>} : memref<256x32xf32, #tpu.memory_space<vmem>>, vector<256x32xf32>,
    return
  }
  func.func @transform_0(%arg0: i32) -> (i32, i32) {
    %c0_i32 = arith.constant 0 : i32
    %c0_i32_0 = arith.constant 0 : i32
    return %arg0, %c0_i32 : i32, i32
  }
  func.func @transform_1(%arg0: i32) -> (i32, i32) {
    %c0_i32 = arith.constant 0 : i32
    %c0_i32_0 = arith.constant 0 : i32
    %c0_i32_1 = arith.constant 0 : i32
    return %c0_i32, %c0_i32_0 : i32, i32
  }
  func.func @transform_2(%arg0: i32) -> (i32, i32) {
    %c0_i32 = arith.constant 0 : i32
    %c0_i32_0 = arith.constant 0 : i32
    %c0_i32_1 = arith.constant 0 : i32
    return %c0_i32, %c0_i32_0 : i32, i32
  }
  func.func @transform_3(%arg0: i32) -> (i32, i32) {
    %c0_i32 = arith.constant 0 : i32
    %c0_i32_0 = arith.constant 0 : i32
    return %arg0, %c0_i32 : i32, i32
  }
  func.func @transform_4(%arg0: i32) -> (i32, i32) {
    %c0_i32 = arith.constant 0 : i32
    %c0_i32_0 = arith.constant 0 : i32
    return %arg0, %c0_i32 : i32, i32
  }
}

</mosaic_0001>

<bundles_post_ra>
// kernel: block_forward.13
= control target key start
LH: loop header
LB: loop body
LE: loop exit
PB: predicated region body
PF: predicated region fallthrough
CT: control target
= control target key end

     0   :  { %s627_s12 = smov 0   ;;  %s866_s0 = inlined_call_operand.vmem [shape: f32[2,10,10,32], index: 0, kind: input, shape index: {}]   ;;  %s867_s1 = inlined_call_operand.vmem [shape: f32[9,32], index: 1, kind: input, shape index: {}]   ;;  %s868_s2 = inlined_call_operand.vmem [shape: f32[1,32], index: 2, kind: input, shape index: {}]   ;;  %s869_s3 = inlined_call_operand.vmem [shape: f32[2,8,8,32], index: 3, kind: output, shape index: {}]  }
   0x1 LB: > { %s521_s13 = sadd.s32 4294967295, %s605_s12   ;;  %p525_p0 = scmp.ge.s32.totalorder %s605_s12, 1  ;;  %s605_s12 = sphi %s627_s12, %s13_s12  }
   0x2   : > { %p137_p1 = scmp.lt.s32.totalorder %s605_s12, 3 }
   0x4   : > { %p138_p2 = pnand %p525_p0, %p137_p1 }
   0x5   : > { %p161_p3 = scmp.lt.s32.totalorder (!%p138_p2), %s521_s13, 1  ;;  %v640_v0 = vld [vmem:[%s867_s1] ss:$0 sm:$0xff] (!%p138_p2)  ;;  %v646_v1 = vld [vmem:[%s867_s1 + $0x1] ss:$0 sm:$0xff] (!%p138_p2)  ;;  %vm457_vm0 = vcmask (!%p138_p2), 261120  }
   0x6   : > { %141 = sbr.rel (%p138_p2) target bundleno = 70 (0x46), region = 32  ;;  %v651_v2 = vld [vmem:[%s867_s1 + $0x2] ss:$0 sm:$0xff] (!%p138_p2)  ;;  %v656_v3 = vld [vmem:[%s867_s1 + $0x3] ss:$0 sm:$0xff] (!%p138_p2) }
   0x7   : > { %v661_v4 = vld [vmem:[%s867_s1 + $0x4] ss:$0 sm:$0xff] (!%p138_p2)  ;;  %v666_v5 = vld [vmem:[%s867_s1 + $0x5] ss:$0 sm:$0xff] (!%p138_p2)  ;;  %v676_v6 = vld [vmem:[%s867_s1 + $0x6] ss:$0 sm:$0xff] (!%p138_p2) }
   0x8   : > { %v681_v7 = vld [vmem:[%s867_s1 + $0x7] ss:$0 sm:$0xff] (!%p138_p2)  ;;  %v686_v8 = vld [vmem:[%s867_s1 + $0x8] ss:$0 sm:$0xff] (!%p138_p2) }
   0xd   : > { %s871_s13 = smov (!%p161_p3, %s521_s13), 1 }
   0xe   : > { %s590_s16 = smul.u32 160, %s871_s13  ;;  %s589_s11 = sshll.u32 %s871_s13, 6 }
   0xf   : > { %s789_s15 = scalar_lea.vmem %s869_s3, %s589_s11 }
  0x10   : > { %s671_s29 = scalar_lea.vmem %s866_s0, %s590_s16 }
  0x11   : > { %v171_v9 = vld [vmem:[%s671_s29] sm:$0xff]  ;;  %v532_v15 = vld [vmem:[%s671_s29 + $0x10] sm:$0xff] }
  0x12   : > { %v200_v10 = vld [vmem:[%s671_s29 + $0x1] sm:$0xff]  ;;  %v184_v12 = vmul.f32 %v640_v0, %v171_v9  ;;  %v696_v16 = vld [vmem:[%s671_s29 + $0x11] sm:$0xff]  ;;  %v272_v18 = vmul.f32 %v656_v3, %v532_v15  ;;  %v185_v20 = vmul.f32 %v532_v15, %v640_v0 }
  0x13   : > { %v229_v11 = vld [vmem:[%s671_s29 + $0x2] sm:$0xff]  ;;  %v213_v13 = vmul.f32 %v646_v1, %v200_v10  ;;  %v550_v17 = vld [vmem:[%s671_s29 + $0x12] sm:$0xff]  ;;  %v301_v22 = vmul.f32 %v661_v4, %v696_v16  ;;  %v214_v29 = vmul.f32 %v696_v16, %v646_v1 }
  0x14   : > { %v242_v14 = vmul.f32 %v651_v2, %v229_v11  ;;  %v559_v19 = vld [vmem:[%s671_s29 + $0x20] sm:$0xff]  ;;  %v330_v23 = vmul.f32 %v666_v5, %v550_v17  ;;  %v243_v30 = vmul.f32 %v550_v17, %v651_v2  ;;  %v560_v35 = vld [vmem:[%s671_s29 + $0x30] sm:$0xff] }
  0x15   : > { %v221_v21 = vadd.f32 %v213_v13, %v184_v12  ;;  %v360_v24 = vmul.f32 %v676_v6, %v559_v19  ;;  %v707_v25 = vld [vmem:[%s671_s29 + $0x21] sm:$0xff]  ;;  %v273_v32 = vmul.f32 %v559_v19, %v656_v3  ;;  %v222_v36 = vadd.f32 %v214_v29, %v185_v20  ;;  %v725_v38 = vld [vmem:[%s671_s29 + $0x31] sm:$0xff] }
  0x16   : > { %v577_v26 = vld [vmem:[%s671_s29 + $0x22] sm:$0xff]  ;;  %v389_v27 = vmul.f32 %v681_v7, %v707_v25  ;;  %v302_v33 = vmul.f32 %v707_v25, %v661_v4  ;;  %v361_v37 = vmul.f32 %v676_v6, %v560_v35  ;;  %v578_v39 = vld [vmem:[%s671_s29 + $0x32] sm:$0xff]  ;;  %v186_v40 = vmul.f32 %v559_v19, %v640_v0 }
  0x17   : > { %v713_v28 = vmul.f32 %v686_v8, %v577_v26  ;;  %v250_v31 = vadd.f32 %v242_v14, %v221_v21  ;;  %v331_v34 = vmul.f32 %v577_v26, %v666_v5  ;;  %v215_v41 = vmul.f32 %v707_v25, %v646_v1  ;;  %v561_v50 = vld [vmem:[%s671_s29 + $0x40] sm:$0xff]  ;;  %v562_v14 = vld [vmem:[%s671_s29 + $0x50] sm:$0xff] }
  0x18   : > { %v390_v43 = vmul.f32 %v681_v7, %v725_v38  ;;  %v419_v44 = vmul.f32 %v686_v8, %v578_v39  ;;  %v244_v45 = vmul.f32 %v577_v26, %v651_v2  ;;  %v251_v46 = vadd.f32 %v243_v30, %v222_v36  ;;  %v743_v57 = vld [vmem:[%s671_s29 + $0x41] sm:$0xff]  ;;  %v580_v36 = vld [vmem:[%s671_s29 + $0x52] sm:$0xff] }
  0x19   : > { %v280_v42 = vadd.f32 %v272_v18, %v250_v31  ;;  %v223_v47 = vadd.f32 %v215_v41, %v186_v40  ;;  %v274_v48 = vmul.f32 %v560_v35, %v656_v3  ;;  %v303_v49 = vmul.f32 %v725_v38, %v661_v4  ;;  %v579_v58 = vld [vmem:[%s671_s29 + $0x42] sm:$0xff] }
  0x1a   : > { %v332_v52 = vmul.f32 %v578_v39, %v666_v5  ;;  %v362_v53 = vmul.f32 %v676_v6, %v561_v50  ;;  %v187_v54 = vmul.f32 %v560_v35, %v640_v0  ;;  %v281_v55 = vadd.f32 %v273_v32, %v251_v46  ;;  %v771_v32 = vld [vmem:[%s868_s2] ss:$0 sm:$0xff] }
  0x1b   : > { %v309_v51 = vadd.f32 %v301_v22, %v280_v42  ;;  %v252_v56 = vadd.f32 %v244_v45, %v223_v47  ;;  %v216_v59 = vmul.f32 %v725_v38, %v646_v1  ;;  %v245_v60 = vmul.f32 %v578_v39, %v651_v2 }
  0x1c   : > { %v391_v62 = vmul.f32 %v681_v7, %v743_v57  ;;  %v420_v63 = vmul.f32 %v686_v8, %v579_v58  ;;  %v275_v9 = vmul.f32 %v561_v50, %v656_v3  ;;  %v310_v10 = vadd.f32 %v302_v33, %v281_v55 }
  0x1d   : > { %v338_v61 = vadd.f32 %v330_v23, %v309_v51  ;;  %v282_v11 = vadd.f32 %v274_v48, %v252_v56  ;;  %v224_v12 = vadd.f32 %v216_v59, %v187_v54  ;;  %v304_v13 = vmul.f32 %v743_v57, %v661_v4  ;;  %v760_v23 = vld [vmem:[%s671_s29 + $0x51] sm:$0xff] }
  0x1e   : > { %v333_v17 = vmul.f32 %v579_v58, %v666_v5  ;;  %v363_v18 = vmul.f32 %v676_v6, %v562_v14  ;;  %v188_v19 = vmul.f32 %v561_v50, %v640_v0  ;;  %v339_v20 = vadd.f32 %v331_v34, %v310_v10 }
  0x1f   : > { %v368_v15 = vadd.f32 %v360_v24, %v338_v61  ;;  %v311_v21 = vadd.f32 %v303_v49, %v282_v11  ;;  %v253_v22 = vadd.f32 %v245_v60, %v224_v12  ;;  %v217_v26 = vmul.f32 %v743_v57, %v646_v1  ;;  %v563_v49 = vld [vmem:[%s671_s29 + $0x60] sm:$0xff] }
  0x20   : > { %v392_v24 = vmul.f32 %v681_v7, %v760_v23  ;;  %v246_v30 = vmul.f32 %v579_v58, %v651_v2  ;;  %v276_v31 = vmul.f32 %v562_v14, %v656_v3  ;;  %v369_v33 = vadd.f32 %v361_v37, %v339_v20  ;;  %v796_v11 = vld [vmem:[%s671_s29 + $0x61] sm:$0xff] }
  0x21   : > { %v397_v29 = vadd.f32 %v389_v27, %v368_v15  ;;  %v340_v34 = vadd.f32 %v332_v52, %v311_v21  ;;  %v283_v35 = vadd.f32 %v275_v9, %v253_v22  ;;  %v225_v39 = vadd.f32 %v217_v26, %v188_v19  ;;  %v581_v15 = vld [vmem:[%s671_s29 + $0x62] sm:$0xff]  ;;  %v564_v26 = vld [vmem:[%s671_s29 + $0x70] sm:$0xff] }
  0x22   : > { %v421_v40 = vmul.f32 %v686_v8, %v580_v36  ;;  %v305_v41 = vmul.f32 %v760_v23, %v661_v4  ;;  %v334_v42 = vmul.f32 %v580_v36, %v666_v5  ;;  %v398_v45 = vadd.f32 %v390_v43, %v369_v33 }
  0x23   : > { %v426_v27 = vadd.f32 %v713_v28, %v397_v29  ;;  %v370_v46 = vadd.f32 %v362_v53, %v340_v34  ;;  %v312_v47 = vadd.f32 %v304_v13, %v283_v35  ;;  %v254_v48 = vadd.f32 %v246_v30, %v225_v39  ;;  %v573_v35 = vld [vmem:[%s671_s29 + $0x71] sm:$0xff] }
  0x24   : > { %v364_v50 = vmul.f32 %v676_v6, %v563_v49  ;;  %v189_v51 = vmul.f32 %v562_v14, %v640_v0  ;;  %v218_v28 = vmul.f32 %v760_v23, %v646_v1  ;;  %v427_v43 = vadd.f32 %v419_v44, %v398_v45 }
  0x25   : > { %v441_v37 = vadd.f32 %v771_v32, %v426_v27  ;;  %v399_v52 = vadd.f32 %v391_v62, %v370_v46  ;;  %v341_v53 = vadd.f32 %v333_v17, %v312_v47  ;;  %v284_v54 = vadd.f32 %v276_v31, %v254_v48  ;;  %v565_v47 = vld [vmem:[%s671_s29 + $0x80] sm:$0xff] }
  0x26   : > { %v226_v56 = vadd.f32 %v218_v28, %v189_v51  ;;  %v247_v58 = vmul.f32 %v580_v36, %v651_v2  ;;  %v277_v59 = vmul.f32 %v563_v49, %v656_v3  ;;  %v442_v60 = vadd.f32 %v771_v32, %v427_v43 }
  0x27   : > { %v449_v55 = vadd.f32 %v696_v16, %v441_v37  ;;  %v428_v61 = vadd.f32 %v420_v63, %v399_v52  ;;  %v371_v9 = vadd.f32 %v363_v18, %v341_v53  ;;  %v313_v10 = vadd.f32 %v305_v41, %v284_v54  ;;  %v574_v52 = vld [vmem:[%s671_s29 + $0x81] sm:$0xff] }
  0x28   : > { %v393_v44 = vmul.f32 %v681_v7, %v796_v11  ;;  %v255_v16 = vadd.f32 %v247_v58, %v226_v56  ;;  %v306_v62 = vmul.f32 %v796_v11, %v661_v4  ;;  %v450_v12 = vadd.f32 %v707_v25, %v442_v60  ;;  %v583_v56 = vld [vmem:[%s671_s29 + $0x82] sm:$0xff] }
  0x29   : > { %458 = vst.msk [vmem:[%s789_s15] sm:$0xff] %vm457_vm0, %v449_v55  ;;  %v443_v13 = vadd.f32 %v771_v32, %v428_v61  ;;  %v400_v63 = vadd.f32 %v392_v24, %v371_v9  ;;  %v342_v14 = vadd.f32 %v334_v42, %v313_v10  ;;  %v422_v17 = vmul.f32 %v686_v8, %v581_v15  ;;  %v566_v10 = vld [vmem:[%s671_s29 + $0x90] sm:$0xff] }
  0x2a   : > { %v285_v18 = vadd.f32 %v277_v59, %v255_v16  ;;  %v335_v19 = vmul.f32 %v581_v15, %v666_v5  ;;  %v190_v20 = vmul.f32 %v563_v49, %v640_v0  ;;  %459 = vst.msk [vmem:[%s789_s15 + $0x8] sm:$0xff] %vm457_vm0, %v450_v12  ;;  %v219_v29 = vmul.f32 %v796_v11, %v646_v1  ;;  %v575_v12 = vld [vmem:[%s671_s29 + $0x91] sm:$0xff] }
  0x2b   : > { %v451_v21 = vadd.f32 %v725_v38, %v443_v13  ;;  %v429_v25 = vadd.f32 %v421_v40, %v400_v63  ;;  %v372_v22 = vadd.f32 %v364_v50, %v342_v14  ;;  %v365_v30 = vmul.f32 %v676_v6, %v564_v26  ;;  %v582_v38 = vld [vmem:[%s671_s29 + $0x72] sm:$0xff] }
  0x2c   : > { %v314_v24 = vadd.f32 %v306_v62, %v285_v18  ;;  %v248_v31 = vmul.f32 %v581_v15, %v651_v2  ;;  %v227_v36 = vadd.f32 %v219_v29, %v190_v20  ;;  %v278_v39 = vmul.f32 %v564_v26, %v656_v3  ;;  %v584_v15 = vld [vmem:[%s671_s29 + $0x92] sm:$0xff] }
  0x2d   : > { %460 = vst.msk [vmem:[%s789_s15 + $0x10] sm:$0xff] %vm457_vm0, %v451_v21  ;;  %v444_v33 = vadd.f32 %v771_v32, %v429_v25  ;;  %v401_v34 = vadd.f32 %v393_v44, %v372_v22  ;;  %v394_v40 = vmul.f32 %v681_v7, %v573_v35  ;;  %v307_v41 = vmul.f32 %v573_v35, %v661_v4 }
  0x2e   : > { %v343_v27 = vadd.f32 %v335_v19, %v314_v24  ;;  %v256_v46 = vadd.f32 %v248_v31, %v227_v36  ;;  %v191_v48 = vmul.f32 %v564_v26, %v640_v0  ;;  %v423_v37 = vmul.f32 %v686_v8, %v582_v38 }
  0x2f   : > { %v452_v42 = vadd.f32 %v743_v57, %v444_v33  ;;  %v430_v45 = vadd.f32 %v422_v17, %v401_v34  ;;  %v220_v50 = vmul.f32 %v573_v35, %v646_v1  ;;  %v249_v51 = vmul.f32 %v582_v38, %v651_v2 }
  0x30   : > { %v373_v49 = vadd.f32 %v365_v30, %v343_v27  ;;  %v286_v43 = vadd.f32 %v278_v39, %v256_v46  ;;  %v336_v57 = vmul.f32 %v582_v38, %v666_v5  ;;  %v279_v54 = vmul.f32 %v565_v47, %v656_v3 }
  0x31   : > { %461 = vst.msk [vmem:[%s789_s15 + $0x18] sm:$0xff] %vm457_vm0, %v452_v42  ;;  %v445_v28 = vadd.f32 %v771_v32, %v430_v45  ;;  %v228_v0 = vadd.f32 %v220_v50, %v191_v48  ;;  %v366_v2 = vmul.f32 %v676_v6, %v565_v47  ;;  %v308_v60 = vmul.f32 %v574_v52, %v661_v4 }
  0x32   : > { %v402_v53 = vadd.f32 %v394_v40, %v373_v49  ;;  %v315_v1 = vadd.f32 %v307_v41, %v286_v43  ;;  %v395_v9 = vmul.f32 %v681_v7, %v574_v52  ;;  %v337_v44 = vmul.f32 %v583_v56, %v666_v5 }
  0x33   : > { %v453_v55 = vadd.f32 %v760_v23, %v445_v28  ;;  %v257_v59 = vadd.f32 %v249_v51, %v228_v0  ;;  %v424_v62 = vmul.f32 %v686_v8, %v583_v56  ;;  %v367_v63 = vmul.f32 %v676_v6, %v566_v10 }
  0x34   : > { %v431_v58 = vadd.f32 %v423_v37, %v402_v53  ;;  %v344_v61 = vadd.f32 %v336_v57, %v315_v1  ;;  %v396_v18 = vmul.f32 %v681_v7, %v575_v12  ;;  %v425_v20 = vmul.f32 %v686_v8, %v584_v15 }
  0x35   : > { %462 = vst.msk [vmem:[%s789_s15 + $0x20] sm:$0xff] %vm457_vm0, %v453_v55  ;;  %v287_v23 = vadd.f32 %v279_v54, %v257_v59 }
  0x36   : > { %v446_v3 = vadd.f32 %v771_v32, %v431_v58  ;;  %v374_v16 = vadd.f32 %v366_v2, %v344_v61 }
  0x37   : > { %v316_v4 = vadd.f32 %v308_v60, %v287_v23 }
  0x38   : > { %v454_v13 = vadd.f32 %v796_v11, %v446_v3  ;;  %v403_v14 = vadd.f32 %v395_v9, %v374_v16 }
  0x39   : > { %v345_v17 = vadd.f32 %v337_v44, %v316_v4 }
  0x3a   : > { %463 = vst.msk [vmem:[%s789_s15 + $0x28] sm:$0xff] %vm457_vm0, %v454_v13  ;;  %v432_v19 = vadd.f32 %v424_v62, %v403_v14 }
  0x3b   : > { %v375_v5 = vadd.f32 %v367_v63, %v345_v17 }
  0x3c   : > { %v447_v21 = vadd.f32 %v771_v32, %v432_v19 }
  0x3d   : > { %v404_v25 = vadd.f32 %v396_v18, %v375_v5 }
  0x3e   : > { %v455_v22 = vadd.f32 %v573_v35, %v447_v21 }
  0x3f   : > { %v433_v11 = vadd.f32 %v425_v20, %v404_v25 }
  0x40   : > { %464 = vst.msk [vmem:[%s789_s15 + $0x30] sm:$0xff] %vm457_vm0, %v455_v22 }
  0x41   : > { %v448_v6 = vadd.f32 %v771_v32, %v433_v11 }
  0x43   : > { %v456_v26 = vadd.f32 %v574_v52, %v448_v6 }
  0x45   : > { %465 = vst.msk [vmem:[%s789_s15 + $0x38] sm:$0xff] %vm457_vm0, %v456_v26 }
  0x46 PF: > { %s13_s12 = sadd.s32 1, %s605_s12  }
  0x47   : > { %p10_p4 = scmp.ge.s32.totalorder %s13_s12, 4  }
  0x49   :  { %12 = sbr.rel (!%p10_p4) target bundleno = 1 (0x1), region = 64 }

// kernel: block_forward.12
= control target key start
LH: loop header
LB: loop body
LE: loop exit
PB: predicated region body
PF: predicated region fallthrough
CT: control target
= control target key end

     0   :  { %s1167_s15 = smov 0   ;;  %s1737_s0 = inlined_call_operand.vmem [shape: f32[2,256,32], index: 0, kind: input, shape index: {}]   ;;  %s1738_s1 = inlined_call_operand.vmem [shape: f32[1,32], index: 1, kind: input, shape index: {}]   ;;  %s1739_s2 = inlined_call_operand.vmem [shape: f32[1,32], index: 2, kind: input, shape index: {}]   ;;  %s1740_s3 = inlined_call_operand.vmem [shape: f32[85,256], index: 3, kind: input, shape index: {}]   ;;  %s1741_s4 = inlined_call_operand.vmem [shape: f32[2,85,32], index: 4, kind: output, shape index: {}]  }
   0x1 LB: > { %s935_s16 = sadd.s32 4294967295, %s1140_s15   ;;  %p939_p0 = scmp.ge.s32.totalorder %s1140_s15, 1  ;;  %s1140_s15 = sphi %s1167_s15, %s14_s15  }
   0x2   : > { %p162_p1 = scmp.lt.s32.totalorder %s1140_s15, 3 }
   0x4   : > { %p163_p2 = pnand %p939_p0, %p162_p1 }
   0x5   : > { %p188_p3 = scmp.lt.s32.totalorder (!%p163_p2), %s935_s16, 1  ;;  %vm230_vm0 = vcmask (!%p163_p2), 261120   ;;  %vm878_vm1 = vcmask (!%p163_p2), 258048  }
   0x6   : > { %166 = sbr.rel (%p163_p2) target bundleno = 636 (0x27c), region = 36 }
   0xd   : > { %s1743_s16 = smov (!%p188_p3, %s935_s16), 1 }
   0xe   : > { %s947_s17 = sshll.u32 %s1743_s16, 8  ;;  %s1061_s21 = smul.u32 88, %s1743_s16 }
   0xf   : > { %s1181_s20 = scalar_lea.vmem %s1737_s0, %s947_s17 }
  0x10   : > { %v1184_v0 = vld [vmem:[%s1181_s20 + $0x80] sm:$0xff]  ;;  %v1187_v1 = vld [vmem:[%s1181_s20 + $0x88] sm:$0xff]  ;;  %v1204_v8 = vld [vmem:[%s1181_s20 + $0x90] sm:$0xff]  ;;  %s1711_s24 = scalar_lea.vmem %s1741_s4, %s1061_s21 }
  0x11   : > { %v1190_v2 = vld [vmem:[%s1181_s20] sm:$0xff]  ;;  %v279_v3 = vsel %vm230_vm0, %v1184_v0, 0.0  ;;  %v1197_v5 = vld [vmem:[%s1181_s20 + $0x8] sm:$0xff]  ;;  %v282_v6 = vsel %vm230_vm0, %v1187_v1, 0.0  ;;  %v1207_v9 = vld [vmem:[%s1181_s20 + $0x98] sm:$0xff]  ;;  %v285_v10 = vsel %vm230_vm0, %v1204_v8, 0.0 }
  0x12   : > { %v231_v4 = vsel %vm230_vm0, %v1190_v2, 0.0  ;;  %280 = vadd.xlane.f32.xlu0 %v279_v3  ;;  %v234_v7 = vsel %vm230_vm0, %v1197_v5, 0.0  ;;  %v288_v11 = vsel %vm230_vm0, %v1207_v9, 0.0  ;;  %v1214_v12 = vld [vmem:[%s1181_s20 + $0x10] sm:$0xff]  ;;  %v1217_v13 = vld [vmem:[%s1181_s20 + $0x18] sm:$0xff]  ;;  %v1224_v16 = vld [vmem:[%s1181_s20 + $0xa0] sm:$0xff] }
  0x13   : > { %232 = vadd.xlane.f32.xlu1 %v231_v4  ;;  %v237_v14 = vsel %vm230_vm0, %v1214_v12, 0.0  ;;  %v240_v15 = vsel %vm230_vm0, %v1217_v13, 0.0  ;;  %v1227_v17 = vld [vmem:[%s1181_s20 + $0xa8] sm:$0xff]  ;;  %v291_v18 = vsel %vm230_vm0, %v1224_v16, 0.0  ;;  %v1234_v20 = vld [vmem:[%s1181_s20 + $0x20] sm:$0xff]  ;;  %v1244_v24 = vld [vmem:[%s1181_s20 + $0xb0] sm:$0xff] }
  0x14   : > { %v294_v19 = vsel %vm230_vm0, %v1227_v17, 0.0  ;;  %v1237_v21 = vld [vmem:[%s1181_s20 + $0x28] sm:$0xff]  ;;  %v243_v22 = vsel %vm230_vm0, %v1234_v20, 0.0  ;;  %v1247_v25 = vld [vmem:[%s1181_s20 + $0xb8] sm:$0xff]  ;;  %v297_v26 = vsel %vm230_vm0, %v1244_v24, 0.0  ;;  %v1254_v28 = vld [vmem:[%s1181_s20 + $0x30] sm:$0xff] }
  0x15   : > { %v246_v23 = vsel %vm230_vm0, %v1237_v21, 0.0  ;;  %v300_v27 = vsel %vm230_vm0, %v1247_v25, 0.0  ;;  %v1257_v29 = vld [vmem:[%s1181_s20 + $0x38] sm:$0xff]  ;;  %v249_v30 = vsel %vm230_vm0, %v1254_v28, 0.0  ;;  %v1264_v32 = vld [vmem:[%s1181_s20 + $0xc0] sm:$0xff]  ;;  %v1267_v33 = vld [vmem:[%s1181_s20 + $0xc8] sm:$0xff] }
  0x16   : > { %283 = vadd.xlane.f32.xlu0 %v282_v6  ;;  %v252_v31 = vsel %vm230_vm0, %v1257_v29, 0.0  ;;  %v303_v34 = vsel %vm230_vm0, %v1264_v32, 0.0  ;;  %v306_v35 = vsel %vm230_vm0, %v1267_v33, 0.0  ;;  %v1274_v36 = vld [vmem:[%s1181_s20 + $0x40] sm:$0xff]  ;;  %v1277_v37 = vld [vmem:[%s1181_s20 + $0x48] sm:$0xff]  ;;  %v1284_v40 = vld [vmem:[%s1181_s20 + $0xd0] sm:$0xff] }
  0x17   : > { %235 = vadd.xlane.f32.xlu1 %v234_v7  ;;  %v255_v38 = vsel %vm230_vm0, %v1274_v36, 0.0  ;;  %v258_v39 = vsel %vm230_vm0, %v1277_v37, 0.0  ;;  %v1287_v41 = vld [vmem:[%s1181_s20 + $0xd8] sm:$0xff]  ;;  %v309_v42 = vsel %vm230_vm0, %v1284_v40, 0.0  ;;  %v1294_v44 = vld [vmem:[%s1181_s20 + $0x50] sm:$0xff]  ;;  %v1304_v48 = vld [vmem:[%s1181_s20 + $0xe0] sm:$0xff] }
  0x18   : > { %v312_v43 = vsel %vm230_vm0, %v1287_v41, 0.0  ;;  %v1297_v45 = vld [vmem:[%s1181_s20 + $0x58] sm:$0xff]  ;;  %v261_v46 = vsel %vm230_vm0, %v1294_v44, 0.0  ;;  %v1307_v49 = vld [vmem:[%s1181_s20 + $0xe8] sm:$0xff]  ;;  %v315_v50 = vsel %vm230_vm0, %v1304_v48, 0.0  ;;  %v1314_v52 = vld [vmem:[%s1181_s20 + $0x60] sm:$0xff] }
  0x19   : > { %v264_v47 = vsel %vm230_vm0, %v1297_v45, 0.0  ;;  %v318_v51 = vsel %vm230_vm0, %v1307_v49, 0.0  ;;  %v1317_v53 = vld [vmem:[%s1181_s20 + $0x68] sm:$0xff]  ;;  %v267_v54 = vsel %vm230_vm0, %v1314_v52, 0.0  ;;  %v1324_v56 = vld [vmem:[%s1181_s20 + $0xf0] sm:$0xff]  ;;  %v1327_v57 = vld [vmem:[%s1181_s20 + $0xf8] sm:$0xff] }
  0x1a   : > { %286 = vadd.xlane.f32.xlu0 %v285_v10  ;;  %v270_v55 = vsel %vm230_vm0, %v1317_v53, 0.0  ;;  %v321_v58 = vsel %vm230_vm0, %v1324_v56, 0.0  ;;  %v324_v59 = vsel %vm230_vm0, %v1327_v57, 0.0  ;;  %v1334_v60 = vld [vmem:[%s1181_s20 + $0x70] sm:$0xff]  ;;  %v1337_v61 = vld [vmem:[%s1181_s20 + $0x78] sm:$0xff] }
  0x1b   : > { %289 = vadd.xlane.f32.xlu1 %v288_v11  ;;  %v273_v62 = vsel %vm230_vm0, %v1334_v60, 0.0  ;;  %v276_v63 = vsel %vm230_vm0, %v1337_v61, 0.0 }
  0x1e   : > { %238 = vadd.xlane.f32.xlu0 %v237_v14 }
  0x1f   : > { %241 = vadd.xlane.f32.xlu1 %v240_v15 }
  0x22   : > { %292 = vadd.xlane.f32.xlu0 %v291_v18 }
  0x23   : > { %295 = vadd.xlane.f32.xlu1 %v294_v19 }
  0x26   : > { %244 = vadd.xlane.f32.xlu0 %v243_v22 }
  0x27   : > { %247 = vadd.xlane.f32.xlu1 %v246_v23 }
  0x2a   : > { %298 = vadd.xlane.f32.xlu0 %v297_v26 }
  0x2b   : > { %301 = vadd.xlane.f32.xlu1 %v300_v27 }
  0x2e   : > { %250 = vadd.xlane.f32.xlu0 %v249_v30 }
  0x2f   : > { %253 = vadd.xlane.f32.xlu1 %v252_v31 }
  0x32   : > { %304 = vadd.xlane.f32.xlu0 %v303_v34 }
  0x33   : > { %307 = vadd.xlane.f32.xlu1 %v306_v35 }
  0x36   : > { %256 = vadd.xlane.f32.xlu0 %v255_v38 }
  0x37   : > { %259 = vadd.xlane.f32.xlu1 %v258_v39 }
  0x3a   : > { %310 = vadd.xlane.f32.xlu0 %v309_v42 }
  0x3b   : > { %313 = vadd.xlane.f32.xlu1 %v312_v43 }
  0x3e   : > { %262 = vadd.xlane.f32.xlu0 %v261_v46 }
  0x3f   : > { %265 = vadd.xlane.f32.xlu1 %v264_v47 }
  0x42   : > { %316 = vadd.xlane.f32.xlu0 %v315_v50 }
  0x43   : > { %319 = vadd.xlane.f32.xlu1 %v318_v51 }
  0x46   : > { %268 = vadd.xlane.f32.xlu0 %v267_v54 }
  0x47   : > { %271 = vadd.xlane.f32.xlu1 %v270_v55 }
  0x4a   : > { %322 = vadd.xlane.f32.xlu0 %v321_v58 }
  0x4b   : > { %325 = vadd.xlane.f32.xlu1 %v324_v59 }
  0x4e   : > { %274 = vadd.xlane.f32.xlu0 %v273_v62 }
  0x4f   : > { %277 = vadd.xlane.f32.xlu1 %v276_v63 }
  0x9f   : > { %v281_v3 = vpop.xlane.xlu0 %280 }
  0xa0   : > { %v233_v4 = vpop.xlane.xlu1 %232  ;;  %v344_v6 = vmul.f32 0.03125, %v281_v3 }
  0xa1   : > { %v328_v7 = vmul.f32 0.03125, %v233_v4 }
  0xa2   : > { %v1344_v10 = vsub.f32 %v1184_v0, %v344_v6 }
  0xa3   : > { %v1347_v11 = vsub.f32 %v1190_v2, %v328_v7  ;;  %v284_v14 = vpop.xlane.xlu0 %283 }
  0xa4   : > { %v236_v15 = vpop.xlane.xlu1 %235  ;;  %v345_v18 = vmul.f32 0.03125, %v284_v14  ;;  %v408_v19 = vmul.f32 %v1344_v10, %v1344_v10 }
  0xa5   : > { %v329_v22 = vmul.f32 0.03125, %v236_v15  ;;  %v392_v23 = vmul.f32 %v1347_v11, %v1347_v11 }
  0xa6   : > { %v1354_v26 = vsub.f32 %v1187_v1, %v345_v18  ;;  %v472_v27 = vsel %vm230_vm0, %v408_v19, 0.0 }
  0xa7   : > { %v1358_v0 = vsub.f32 %v1197_v5, %v329_v22  ;;  %v287_v2 = vpop.xlane.xlu0 %286  ;;  %473 = vadd.xlane.f32.xlu0 %v472_v27  ;;  %v424_v30 = vsel %vm230_vm0, %v392_v23, 0.0 }
  0xa8   : > { %v290_v31 = vpop.xlane.xlu1 %289  ;;  %v346_v34 = vmul.f32 0.03125, %v287_v2  ;;  %v409_v35 = vmul.f32 %v1354_v26, %v1354_v26 }
  0xa9   : > { %v347_v38 = vmul.f32 0.03125, %v290_v31  ;;  %v393_v39 = vmul.f32 %v1358_v0, %v1358_v0 }
  0xaa   : > { %v1366_v1 = vsub.f32 %v1204_v8, %v346_v34  ;;  %v475_v42 = vsel %vm230_vm0, %v409_v35, 0.0 }
  0xab   : > { %v1370_v5 = vsub.f32 %v1207_v9, %v347_v38  ;;  %v239_v43 = vpop.xlane.xlu0 %238  ;;  %476 = vadd.xlane.f32.xlu1 %v475_v42  ;;  %425 = vadd.xlane.f32.xlu0 %v424_v30  ;;  %v427_v46 = vsel %vm230_vm0, %v393_v39, 0.0 }
  0xac   : > { %v242_v47 = vpop.xlane.xlu1 %241  ;;  %v330_v50 = vmul.f32 0.03125, %v239_v43  ;;  %v410_v51 = vmul.f32 %v1366_v1, %v1366_v1 }
  0xad   : > { %v331_v54 = vmul.f32 0.03125, %v242_v47  ;;  %v411_v8 = vmul.f32 %v1370_v5, %v1370_v5 }
  0xae   : > { %v1378_v55 = vsub.f32 %v1214_v12, %v330_v50  ;;  %v478_v9 = vsel %vm230_vm0, %v410_v51, 0.0 }
  0xaf   : > { %v1382_v58 = vsub.f32 %v1217_v13, %v331_v54  ;;  %v293_v59 = vpop.xlane.xlu0 %292  ;;  %479 = vadd.xlane.f32.xlu0 %v478_v9  ;;  %428 = vadd.xlane.f32.xlu1 %v427_v46  ;;  %v481_v62 = vsel %vm230_vm0, %v411_v8, 0.0 }
  0xb0   : > { %v296_v63 = vpop.xlane.xlu1 %295  ;;  %v348_v3 = vmul.f32 0.03125, %v293_v59  ;;  %v394_v4 = vmul.f32 %v1378_v55, %v1378_v55 }
  0xb1   : > { %v349_v6 = vmul.f32 0.03125, %v296_v63  ;;  %v395_v12 = vmul.f32 %v1382_v58, %v1382_v58 }
  0xb2   : > { %v1390_v7 = vsub.f32 %v1224_v16, %v348_v3  ;;  %v430_v13 = vsel %vm230_vm0, %v394_v4, 0.0 }
  0xb3   : > { %v1394_v14 = vsub.f32 %v1227_v17, %v349_v6  ;;  %v245_v15 = vpop.xlane.xlu0 %244  ;;  %431 = vadd.xlane.f32.xlu0 %v430_v13  ;;  %482 = vadd.xlane.f32.xlu1 %v481_v62  ;;  %v433_v18 = vsel %vm230_vm0, %v395_v12, 0.0 }
  0xb4   : > { %v248_v19 = vpop.xlane.xlu1 %247  ;;  %v332_v22 = vmul.f32 0.03125, %v245_v15  ;;  %v412_v23 = vmul.f32 %v1390_v7, %v1390_v7 }
  0xb5   : > { %v333_v27 = vmul.f32 0.03125, %v248_v19  ;;  %v413_v16 = vmul.f32 %v1394_v14, %v1394_v14 }
  0xb6   : > { %v1402_v2 = vsub.f32 %v1234_v20, %v332_v22  ;;  %v484_v17 = vsel %vm230_vm0, %v412_v23, 0.0 }
  0xb7   : > { %v1406_v30 = vsub.f32 %v1237_v21, %v333_v27  ;;  %v299_v31 = vpop.xlane.xlu0 %298  ;;  %485 = vadd.xlane.f32.xlu0 %v484_v17  ;;  %434 = vadd.xlane.f32.xlu1 %v433_v18  ;;  %v487_v34 = vsel %vm230_vm0, %v413_v16, 0.0 }
  0xb8   : > { %v302_v35 = vpop.xlane.xlu1 %301  ;;  %v350_v38 = vmul.f32 0.03125, %v299_v31  ;;  %v396_v39 = vmul.f32 %v1402_v2, %v1402_v2 }
  0xb9   : > { %v351_v42 = vmul.f32 0.03125, %v302_v35  ;;  %v397_v20 = vmul.f32 %v1406_v30, %v1406_v30 }
  0xba   : > { %v1414_v43 = vsub.f32 %v1244_v24, %v350_v38  ;;  %v436_v21 = vsel %vm230_vm0, %v396_v39, 0.0 }
  0xbb   : > { %v1418_v46 = vsub.f32 %v1247_v25, %v351_v42  ;;  %v251_v47 = vpop.xlane.xlu0 %250  ;;  %437 = vadd.xlane.f32.xlu0 %v436_v21  ;;  %488 = vadd.xlane.f32.xlu1 %v487_v34  ;;  %v439_v50 = vsel %vm230_vm0, %v397_v20, 0.0 }
  0xbc   : > { %v254_v51 = vpop.xlane.xlu1 %253  ;;  %v334_v54 = vmul.f32 0.03125, %v251_v47  ;;  %v414_v8 = vmul.f32 %v1414_v43, %v1414_v43 }
  0xbd   : > { %v335_v9 = vmul.f32 0.03125, %v254_v51  ;;  %v415_v24 = vmul.f32 %v1418_v46, %v1418_v46 }
  0xbe   : > { %v1426_v59 = vsub.f32 %v1254_v28, %v334_v54  ;;  %v490_v25 = vsel %vm230_vm0, %v414_v8, 0.0 }
  0xbf   : > { %v1430_v62 = vsub.f32 %v1257_v29, %v335_v9  ;;  %v305_v63 = vpop.xlane.xlu0 %304  ;;  %491 = vadd.xlane.f32.xlu0 %v490_v25  ;;  %440 = vadd.xlane.f32.xlu1 %v439_v50  ;;  %v493_v3 = vsel %vm230_vm0, %v415_v24, 0.0 }
  0xc0   : > { %v308_v4 = vpop.xlane.xlu1 %307  ;;  %v352_v6 = vmul.f32 0.03125, %v305_v63  ;;  %v398_v12 = vmul.f32 %v1426_v59, %v1426_v59 }
  0xc1   : > { %v353_v13 = vmul.f32 0.03125, %v308_v4  ;;  %v399_v28 = vmul.f32 %v1430_v62, %v1430_v62 }
  0xc2   : > { %v1438_v15 = vsub.f32 %v1264_v32, %v352_v6  ;;  %v442_v29 = vsel %vm230_vm0, %v398_v12, 0.0 }
  0xc3   : > { %v1442_v18 = vsub.f32 %v1267_v33, %v353_v13  ;;  %v257_v19 = vpop.xlane.xlu0 %256  ;;  %443 = vadd.xlane.f32.xlu0 %v442_v29  ;;  %494 = vadd.xlane.f32.xlu1 %v493_v3  ;;  %v445_v22 = vsel %vm230_vm0, %v399_v28, 0.0 }
  0xc4   : > { %v260_v23 = vpop.xlane.xlu1 %259  ;;  %v336_v27 = vmul.f32 0.03125, %v257_v19  ;;  %v416_v16 = vmul.f32 %v1438_v15, %v1438_v15 }
  0xc5   : > { %v337_v17 = vmul.f32 0.03125, %v260_v23  ;;  %v417_v32 = vmul.f32 %v1442_v18, %v1442_v18 }
  0xc6   : > { %v1450_v31 = vsub.f32 %v1274_v36, %v336_v27  ;;  %v496_v33 = vsel %vm230_vm0, %v416_v16, 0.0 }
  0xc7   : > { %v1454_v34 = vsub.f32 %v1277_v37, %v337_v17  ;;  %v311_v35 = vpop.xlane.xlu0 %310  ;;  %497 = vadd.xlane.f32.xlu0 %v496_v33  ;;  %446 = vadd.xlane.f32.xlu1 %v445_v22  ;;  %v499_v38 = vsel %vm230_vm0, %v417_v32, 0.0 }
  0xc8   : > { %v314_v39 = vpop.xlane.xlu1 %313  ;;  %v354_v42 = vmul.f32 0.03125, %v311_v35  ;;  %v400_v20 = vmul.f32 %v1450_v31, %v1450_v31 }
  0xc9   : > { %v355_v21 = vmul.f32 0.03125, %v314_v39  ;;  %v401_v36 = vmul.f32 %v1454_v34, %v1454_v34 }
  0xca   : > { %v1462_v47 = vsub.f32 %v1284_v40, %v354_v42  ;;  %v448_v37 = vsel %vm230_vm0, %v400_v20, 0.0 }
  0xcb   : > { %v1466_v50 = vsub.f32 %v1287_v41, %v355_v21  ;;  %v263_v51 = vpop.xlane.xlu0 %262  ;;  %449 = vadd.xlane.f32.xlu0 %v448_v37  ;;  %500 = vadd.xlane.f32.xlu1 %v499_v38  ;;  %v451_v54 = vsel %vm230_vm0, %v401_v36, 0.0 }
  0xcc   : > { %v266_v8 = vpop.xlane.xlu1 %265  ;;  %v338_v9 = vmul.f32 0.03125, %v263_v51  ;;  %v418_v24 = vmul.f32 %v1462_v47, %v1462_v47 }
  0xcd   : > { %v339_v25 = vmul.f32 0.03125, %v266_v8  ;;  %v419_v40 = vmul.f32 %v1466_v50, %v1466_v50 }
  0xce   : > { %v1474_v63 = vsub.f32 %v1294_v44, %v338_v9  ;;  %v502_v41 = vsel %vm230_vm0, %v418_v24, 0.0 }
  0xcf   : > { %v1478_v3 = vsub.f32 %v1297_v45, %v339_v25  ;;  %v317_v4 = vpop.xlane.xlu0 %316  ;;  %503 = vadd.xlane.f32.xlu0 %v502_v41  ;;  %452 = vadd.xlane.f32.xlu1 %v451_v54  ;;  %v505_v6 = vsel %vm230_vm0, %v419_v40, 0.0 }
  0xd0   : > { %v320_v12 = vpop.xlane.xlu1 %319  ;;  %v356_v13 = vmul.f32 0.03125, %v317_v4  ;;  %v402_v28 = vmul.f32 %v1474_v63, %v1474_v63 }
  0xd1   : > { %v357_v29 = vmul.f32 0.03125, %v320_v12  ;;  %v403_v44 = vmul.f32 %v1478_v3, %v1478_v3 }
  0xd2   : > { %v1486_v19 = vsub.f32 %v1304_v48, %v356_v13  ;;  %v454_v45 = vsel %vm230_vm0, %v402_v28, 0.0 }
  0xd3   : > { %v1490_v22 = vsub.f32 %v1307_v49, %v357_v29  ;;  %v269_v23 = vpop.xlane.xlu0 %268  ;;  %455 = vadd.xlane.f32.xlu0 %v454_v45  ;;  %506 = vadd.xlane.f32.xlu1 %v505_v6  ;;  %v457_v27 = vsel %vm230_vm0, %v403_v44, 0.0  ;;  %v739_v44 = vld [vmem:[%s1740_s3 + $0x68] sm:$0xff] }
  0xd4   : > { %v272_v16 = vpop.xlane.xlu1 %271  ;;  %v340_v17 = vmul.f32 0.03125, %v269_v23  ;;  %v420_v32 = vmul.f32 %v1486_v19, %v1486_v19  ;;  %842 = vmatprep.mubr.f32.mxu1 %v739_v44 }
  0xd5   : > { %v341_v33 = vmul.f32 0.03125, %v272_v16  ;;  %v421_v48 = vmul.f32 %v1490_v22, %v1490_v22 }
  0xd6   : > { %v1498_v35 = vsub.f32 %v1314_v52, %v340_v17  ;;  %v508_v49 = vsel %vm230_vm0, %v420_v32, 0.0 }
  0xd7   : > { %v1502_v38 = vsub.f32 %v1317_v53, %v341_v33  ;;  %v323_v39 = vpop.xlane.xlu0 %322  ;;  %509 = vadd.xlane.f32.xlu0 %v508_v49  ;;  %458 = vadd.xlane.f32.xlu1 %v457_v27  ;;  %v511_v42 = vsel %vm230_vm0, %v421_v48, 0.0 }
  0xd8   : > { %v326_v20 = vpop.xlane.xlu1 %325  ;;  %v358_v21 = vmul.f32 0.03125, %v323_v39  ;;  %v404_v36 = vmul.f32 %v1498_v35, %v1498_v35 }
  0xd9   : > { %v359_v37 = vmul.f32 0.03125, %v326_v20  ;;  %v405_v52 = vmul.f32 %v1502_v38, %v1502_v38 }
  0xda   : > { %v1510_v51 = vsub.f32 %v1324_v56, %v358_v21  ;;  %v460_v53 = vsel %vm230_vm0, %v404_v36, 0.0 }
  0xdb   : > { %v1514_v54 = vsub.f32 %v1327_v57, %v359_v37  ;;  %v275_v8 = vpop.xlane.xlu0 %274  ;;  %461 = vadd.xlane.f32.xlu0 %v460_v53  ;;  %512 = vadd.xlane.f32.xlu1 %v511_v42  ;;  %v463_v9 = vsel %vm230_vm0, %v405_v52, 0.0 }
  0xdc   : > { %v278_v24 = vpop.xlane.xlu1 %277  ;;  %v342_v25 = vmul.f32 0.03125, %v275_v8  ;;  %v422_v40 = vmul.f32 %v1510_v51, %v1510_v51 }
  0xdd   : > { %v343_v41 = vmul.f32 0.03125, %v278_v24  ;;  %v423_v56 = vmul.f32 %v1514_v54, %v1514_v54 }
  0xde   : > { %v1522_v4 = vsub.f32 %v1334_v60, %v342_v25  ;;  %v514_v57 = vsel %vm230_vm0, %v422_v40, 0.0 }
  0xdf   : > { %v1526_v6 = vsub.f32 %v1337_v61, %v343_v41  ;;  %515 = vadd.xlane.f32.xlu0 %v514_v57  ;;  %464 = vadd.xlane.f32.xlu1 %v463_v9  ;;  %v517_v13 = vsel %vm230_vm0, %v423_v56, 0.0  ;;  %v727_v61 = vld [vmem:[%s1740_s3 + $0x8] sm:$0xff] }
  0xe0   : > { %v406_v12 = vmul.f32 %v1522_v4, %v1522_v4  ;;  %812 = vmatprep.mubr.f32.mxu0 %v727_v61 }
  0xe1   : > { %v407_v28 = vmul.f32 %v1526_v6, %v1526_v6 }
  0xe2   : > { %v466_v29 = vsel %vm230_vm0, %v406_v12, 0.0 }
  0xe3   : > { %467 = vadd.xlane.f32.xlu0 %v466_v29  ;;  %518 = vadd.xlane.f32.xlu1 %v517_v13  ;;  %v469_v60 = vsel %vm230_vm0, %v407_v28, 0.0  ;;  %v1545_v28 = vld [vmem:[%s1738_s1] ss:$0 sm:$0xff] }
  0xe7   : > { %470 = vadd.xlane.f32.xlu1 %v469_v60 }
 0x134   : > { %v474_v45 = vpop.xlane.xlu0 %473 }
 0x135   : > { %v536_v23 = vmul.f32 0.03125, %v474_v45 }
 0x137   : > { %v568_v27 = vadd.f32 1e-05, %v536_v23 }
 0x138   : > { %v426_v16 = vpop.xlane.xlu0 %425  ;;  %v477_v17 = vpop.xlane.xlu1 %476 }
 0x139   : > { %1070 = vrsqrt.f32 %v568_v27  ;;  %v520_v32 = vmul.f32 0.03125, %v426_v16  ;;  %v537_v33 = vmul.f32 0.03125, %v477_v17 }
 0x13b   : > { %v552_v48 = vadd.f32 1e-05, %v520_v32  ;;  %v569_v49 = vadd.f32 1e-05, %v537_v33  ;;  %v1552_v32 = vld [vmem:[%s1739_s2] ss:$0 sm:$0xff] }
 0x13c   : > { %v480_v39 = vpop.xlane.xlu0 %479  ;;  %v429_v42 = vpop.xlane.xlu1 %428 }
 0x13d   : > { %1072 = vrsqrt.f32 %v552_v48  ;;  %v538_v20 = vmul.f32 0.03125, %v480_v39  ;;  %v521_v21 = vmul.f32 0.03125, %v429_v42 }
 0x13e   : > { %1074 = vrsqrt.f32 %v569_v49 }
 0x13f   : > { %v570_v36 = vadd.f32 1e-05, %v538_v20  ;;  %v553_v37 = vadd.f32 1e-05, %v521_v21 }
 0x140   : > { %v432_v52 = vpop.xlane.xlu0 %431  ;;  %v483_v53 = vpop.xlane.xlu1 %482 }
 0x141   : > { %1076 = vrsqrt.f32 %v570_v36  ;;  %v522_v8 = vmul.f32 0.03125, %v432_v52  ;;  %v539_v9 = vmul.f32 0.03125, %v483_v53 }
 0x142   : > { %1078 = vrsqrt.f32 %v553_v37 }
 0x143   : > { %v1071_v24 = vpop.eup %1070  ;;  %v554_v25 = vadd.f32 1e-05, %v522_v8  ;;  %v571_v40 = vadd.f32 1e-05, %v539_v9 }
 0x144   : > { %v486_v41 = vpop.xlane.xlu0 %485  ;;  %v435_v56 = vpop.xlane.xlu1 %434  ;;  %v632_v57 = vmul.f32 %v1071_v24, %v1344_v10 }
 0x145   : > { %1080 = vrsqrt.f32 %v554_v25  ;;  %v540_v12 = vmul.f32 0.03125, %v486_v41  ;;  %v523_v13 = vmul.f32 0.03125, %v435_v56 }
 0x146   : > { %1082 = vrsqrt.f32 %v571_v40  ;;  %v671_v27 = vmul.f32 %v1545_v28, %v632_v57 }
 0x147   : > { %v1073_v29 = vpop.eup %1072  ;;  %v572_v60 = vadd.f32 1e-05, %v540_v12  ;;  %v555_v61 = vadd.f32 1e-05, %v523_v13 }
 0x148   : > { %v1075_v44 = vpop.eup %1074  ;;  %v438_v45 = vpop.xlane.xlu0 %437  ;;  %v616_v33 = vmul.f32 %v1073_v29, %v1347_v11  ;;  %v710_v37 = vadd.f32 %v1552_v32, %v671_v27 }
 0x149   : > { %v489_v23 = vpop.xlane.xlu1 %488  ;;  %1084 = vrsqrt.f32 %v572_v60  ;;  %v524_v16 = vmul.f32 0.03125, %v438_v45  ;;  %v633_v17 = vmul.f32 %v1075_v44, %v1354_v26 }
 0x14a   : > { %v541_v10 = vmul.f32 0.03125, %v489_v23  ;;  %1086 = vrsqrt.f32 %v555_v61  ;;  %v655_v9 = vmul.f32 %v1545_v28, %v616_v33 }
 0x14b   : > { %v1077_v48 = vpop.eup %1076  ;;  %v556_v49 = vadd.f32 1e-05, %v524_v16  ;;  %v672_v42 = vmul.f32 %v1545_v28, %v633_v17 }
 0x14c   : > { %v573_v39 = vadd.f32 1e-05, %v541_v10  ;;  %v1079_v20 = vpop.eup %1078  ;;  %v492_v21 = vpop.xlane.xlu0 %491  ;;  %v634_v26 = vmul.f32 %v1077_v48, %v1366_v1  ;;  %v694_v61 = vadd.f32 %v1552_v32, %v655_v9 }
 0x14d   : > { %v441_v36 = vpop.xlane.xlu1 %440  ;;  %1088 = vrsqrt.f32 %v556_v49  ;;  %v542_v52 = vmul.f32 0.03125, %v492_v21  ;;  %v711_v8 = vadd.f32 %v1552_v32, %v672_v42  ;;  %v617_v11 = vmul.f32 %v1079_v20, %v1358_v0 }
 0x14e   : > { %v525_v53 = vmul.f32 0.03125, %v441_v36  ;;  %1090 = vrsqrt.f32 %v573_v39  ;;  %v673_v1 = vmul.f32 %v1545_v28, %v634_v26 }
 0x14f   : > { %v1081_v24 = vpop.eup %1080  ;;  %v574_v25 = vadd.f32 1e-05, %v542_v52  ;;  %v1013_v41 = vpack.c.bf16 %v711_v8, %v710_v37  ;;  %v656_v13 = vmul.f32 %v1545_v28, %v617_v11 }
 0x150   : > { %v557_v40 = vadd.f32 1e-05, %v525_v53  ;;  %v1083_v56 = vpop.eup %1082  ;;  %v444_v57 = vpop.xlane.xlu0 %443  ;;  %v618_v45 = vmul.f32 %v1081_v24, %v1378_v55  ;;  %v712_v39 = vadd.f32 %v1552_v32, %v673_v1 }
 0x151   : > { %v495_v12 = vpop.xlane.xlu1 %494  ;;  %1092 = vrsqrt.f32 %v574_v25  ;;  %v526_v29 = vmul.f32 0.03125, %v444_v57  ;;  %1014 = vmatprep.subr.bf16.mxu0 %v1013_v41  ;;  %1045 = vmatprep.subr.bf16.mxu1 %v1013_v41  ;;  %v635_v0 = vmul.f32 %v1083_v56, %v1370_v5  ;;  %v695_v44 = vadd.f32 %v1552_v32, %v656_v13 }
 0x152   : > { %v543_v60 = vmul.f32 0.03125, %v495_v12  ;;  %1094 = vrsqrt.f32 %v557_v40  ;;  %v657_v36 = vmul.f32 %v1545_v28, %v618_v45 }
 0x153   : > { %v1085_v23 = vpop.eup %1084  ;;  %v558_v27 = vadd.f32 1e-05, %v526_v29  ;;  %v674_v10 = vmul.f32 %v1545_v28, %v635_v0  ;;  %v1015_v48 = vpack.c.bf16 %v695_v44, %v694_v61 }
 0x154   : > { %v575_v16 = vadd.f32 1e-05, %v543_v60  ;;  %v1087_v17 = vpop.eup %1086  ;;  %v498_v33 = vpop.xlane.xlu0 %497  ;;  %v636_v5 = vmul.f32 %v1085_v23, %v1390_v7  ;;  %v696_v41 = vadd.f32 %v1552_v32, %v657_v36 }
 0x155   : > { %v447_v49 = vpop.xlane.xlu1 %446  ;;  %1096 = vrsqrt.f32 %v558_v27  ;;  %v544_v42 = vmul.f32 0.03125, %v498_v33  ;;  %v713_v21 = vadd.f32 %v1552_v32, %v674_v10  ;;  %1016 = vmatpush3.bf16.msra.mxu0 %v1015_v48  ;;  %1053 = vmatpush3.bf16.msra.mxu1 %v1015_v48  ;;  %v619_v55 = vmul.f32 %v1087_v17, %v1382_v58 }
 0x156   : > { %v527_v20 = vmul.f32 0.03125, %v447_v49  ;;  %1098 = vrsqrt.f32 %v575_v16  ;;  %v675_v24 = vmul.f32 %v1545_v28, %v636_v5 }
 0x157   : > { %v1089_v37 = vpop.eup %1088  ;;  %v576_v26 = vadd.f32 1e-05, %v544_v42  ;;  %v1017_v53 = vpack.c.bf16 %v713_v21, %v712_v39  ;;  %v658_v7 = vmul.f32 %v1545_v28, %v619_v55 }
 0x158   : > { %v559_v52 = vadd.f32 1e-05, %v527_v20  ;;  %v1091_v8 = vpop.eup %1090  ;;  %v450_v11 = vpop.xlane.xlu0 %449  ;;  %v620_v57 = vmul.f32 %v1089_v37, %v1402_v2  ;;  %v714_v45 = vadd.f32 %v1552_v32, %v675_v24 }
 0x159   : > { %v501_v9 = vpop.xlane.xlu1 %500  ;;  %1100 = vrsqrt.f32 %v576_v26  ;;  %v528_v25 = vmul.f32 0.03125, %v450_v11  ;;  %1018 = vmatprep.subr.bf16.mxu0 %v1017_v53  ;;  %1046 = vmatprep.subr.bf16.mxu1 %v1017_v53  ;;  %v637_v58 = vmul.f32 %v1091_v8, %v1394_v14  ;;  %v697_v56 = vadd.f32 %v1552_v32, %v658_v7 }
 0x15a   : > { %v545_v40 = vmul.f32 0.03125, %v501_v9  ;;  %1102 = vrsqrt.f32 %v559_v52  ;;  %v659_v10 = vmul.f32 %v1545_v28, %v620_v57 }
 0x15b   : > { %v1093_v12 = vpop.eup %1092  ;;  %v560_v13 = vadd.f32 1e-05, %v528_v25  ;;  %v676_v29 = vmul.f32 %v1545_v28, %v637_v58  ;;  %v1019_v61 = vpack.c.bf16 %v697_v56, %v696_v41 }
 0x15c   : > { %v577_v1 = vadd.f32 1e-05, %v545_v40  ;;  %v1095_v60 = vpop.eup %1094  ;;  %v504_v0 = vpop.xlane.xlu0 %503  ;;  %v638_v14 = vmul.f32 %v1093_v12, %v1414_v43  ;;  %v698_v36 = vadd.f32 %v1552_v32, %v659_v10 }
 0x15d   : > { %v453_v44 = vpop.xlane.xlu1 %452  ;;  %1104 = vrsqrt.f32 %v560_v13  ;;  %v546_v23 = vmul.f32 0.03125, %v504_v0  ;;  %v715_v16 = vadd.f32 %v1552_v32, %v676_v29  ;;  %1020 = vmatpush3.bf16.msra.mxu0 %v1019_v61  ;;  %1054 = vmatpush3.bf16.msra.mxu1 %v1019_v61  ;;  %v621_v2 = vmul.f32 %v1095_v60, %v1406_v30 }
 0x15e   : > { %v529_v27 = vmul.f32 0.03125, %v453_v44  ;;  %1106 = vrsqrt.f32 %v577_v1  ;;  %v677_v20 = vmul.f32 %v1545_v28, %v638_v14 }
 0x15f   : > { %v1097_v17 = vpop.eup %1096  ;;  %v578_v33 = vadd.f32 1e-05, %v546_v23  ;;  %v1021_v49 = vpack.c.bf16 %v715_v16, %v714_v45  ;;  %v660_v43 = vmul.f32 %v1545_v28, %v621_v2 }
 0x160   : > { %v561_v48 = vadd.f32 1e-05, %v529_v27  ;;  %v1099_v39 = vpop.eup %1098  ;;  %v456_v5 = vpop.xlane.xlu0 %455  ;;  %v622_v26 = vmul.f32 %v1097_v17, %v1426_v59  ;;  %v716_v40 = vadd.f32 %v1552_v32, %v677_v20 }
 0x161   : > { %v507_v42 = vpop.xlane.xlu1 %506  ;;  %1108 = vrsqrt.f32 %v578_v33  ;;  %v530_v21 = vmul.f32 0.03125, %v456_v5  ;;  %1022 = vmatprep.subr.bf16.mxu0 %v1021_v49  ;;  %1047 = vmatprep.subr.bf16.mxu1 %v1021_v49  ;;  %v639_v30 = vmul.f32 %v1099_v39, %v1418_v46  ;;  %v699_v37 = vadd.f32 %v1552_v32, %v660_v43 }
 0x162   : > { %v547_v55 = vmul.f32 0.03125, %v507_v42  ;;  %1110 = vrsqrt.f32 %v561_v48  ;;  %v661_v57 = vmul.f32 %v1545_v28, %v622_v26 }
 0x163   : > { %v1101_v52 = vpop.eup %1100  ;;  %v562_v53 = vadd.f32 1e-05, %v530_v21  ;;  %v678_v11 = vmul.f32 %v1545_v28, %v639_v30  ;;  %v1023_v24 = vpack.c.bf16 %v699_v37, %v698_v36 }
 0x164   : > { %v579_v8 = vadd.f32 1e-05, %v547_v55  ;;  %v1103_v9 = vpop.eup %1102  ;;  %v510_v7 = vpop.xlane.xlu0 %509  ;;  %v640_v46 = vmul.f32 %v1101_v52, %v1438_v15  ;;  %v700_v23 = vadd.f32 %v1552_v32, %v661_v57 }
 0x165   : > { %v459_v25 = vpop.xlane.xlu1 %458  ;;  %1112 = vrsqrt.f32 %v562_v53  ;;  %v548_v58 = vmul.f32 0.03125, %v510_v7  ;;  %v717_v56 = vadd.f32 %v1552_v32, %v678_v11  ;;  %1024 = vmatpush3.bf16.msra.mxu0 %v1023_v24  ;;  %1055 = vmatpush3.bf16.msra.mxu1 %v1023_v24  ;;  %v623_v59 = vmul.f32 %v1103_v9, %v1430_v62 }
 0x166   : > { %v531_v41 = vmul.f32 0.03125, %v459_v25  ;;  %1114 = vrsqrt.f32 %v579_v8  ;;  %v679_v44 = vmul.f32 %v1545_v28, %v640_v46 }
 0x167   : > { %v1105_v12 = vpop.eup %1104  ;;  %v580_v13 = vadd.f32 1e-05, %v548_v58  ;;  %v1025_v29 = vpack.c.bf16 %v717_v56, %v716_v40  ;;  %v662_v15 = vmul.f32 %v1545_v28, %v623_v59 }
 0x168   : > { %v563_v1 = vadd.f32 1e-05, %v531_v41  ;;  %v1107_v60 = vpop.eup %1106  ;;  %v462_v0 = vpop.xlane.xlu0 %461  ;;  %v624_v16 = vmul.f32 %v1105_v12, %v1450_v31  ;;  %v718_v42 = vadd.f32 %v1552_v32, %v679_v44 }
 0x169   : > { %v513_v61 = vpop.xlane.xlu1 %512  ;;  %1116 = vrsqrt.f32 %v580_v13  ;;  %v532_v45 = vmul.f32 0.03125, %v462_v0  ;;  %1026 = vmatprep.subr.bf16.mxu0 %v1025_v29  ;;  %1048 = vmatprep.subr.bf16.mxu1 %v1025_v29  ;;  %v641_v62 = vmul.f32 %v1107_v60, %v1442_v18  ;;  %v701_v27 = vadd.f32 %v1552_v32, %v662_v15 }
 0x16a   : > { %v549_v14 = vmul.f32 0.03125, %v513_v61  ;;  %1118 = vrsqrt.f32 %v563_v1  ;;  %v663_v55 = vmul.f32 %v1545_v28, %v624_v16 }
 0x16b   : > { %v1109_v2 = vpop.eup %1108  ;;  %v564_v10 = vadd.f32 1e-05, %v532_v45  ;;  %v680_v33 = vmul.f32 %v1545_v28, %v641_v62  ;;  %v1027_v39 = vpack.c.bf16 %v701_v27, %v700_v23 }
 0x16c   : > { %v581_v17 = vadd.f32 1e-05, %v549_v14  ;;  %v1111_v48 = vpop.eup %1110  ;;  %v516_v49 = vpop.xlane.xlu0 %515  ;;  %v642_v18 = vmul.f32 %v1109_v2, %v1462_v47  ;;  %v702_v25 = vadd.f32 %v1552_v32, %v663_v55 }
 0x16d   : > { %v465_v5 = vpop.xlane.xlu1 %464  ;;  %1120 = vrsqrt.f32 %v564_v10  ;;  %v550_v43 = vmul.f32 0.03125, %v516_v49  ;;  %v719_v21 = vadd.f32 %v1552_v32, %v680_v33  ;;  %1028 = vmatpush3.bf16.msra.mxu0 %v1027_v39  ;;  %1056 = vmatpush3.bf16.msra.mxu1 %v1027_v39  ;;  %v625_v31 = vmul.f32 %v1111_v48, %v1454_v34 }
 0x16e   : > { %v533_v20 = vmul.f32 0.03125, %v465_v5  ;;  %1122 = vrsqrt.f32 %v581_v17  ;;  %v681_v11 = vmul.f32 %v1545_v28, %v642_v18 }
 0x16f   : > { %v1113_v30 = vpop.eup %1112  ;;  %v582_v36 = vadd.f32 1e-05, %v550_v43  ;;  %v1029_v26 = vpack.c.bf16 %v719_v21, %v718_v42  ;;  %v664_v47 = vmul.f32 %v1545_v28, %v625_v31 }
 0x170   : > { %v565_v37 = vadd.f32 1e-05, %v533_v20  ;;  %v1115_v52 = vpop.eup %1114  ;;  %v468_v53 = vpop.xlane.xlu0 %467  ;;  %v626_v9 = vmul.f32 %v1113_v30, %v1474_v63  ;;  %v720_v12 = vadd.f32 %v1552_v32, %v681_v11  ;;  %v728_v11 = vld [vmem:[%s1740_s3 + $0x10] sm:$0xff] }
 0x171   : > { %v519_v8 = vpop.xlane.xlu1 %518  ;;  %1124 = vrsqrt.f32 %v582_v36  ;;  %v534_v7 = vmul.f32 0.03125, %v468_v53  ;;  %1030 = vmatprep.subr.bf16.mxu0 %v1029_v26  ;;  %1049 = vmatprep.subr.bf16.mxu1 %v1029_v26  ;;  %v643_v24 = vmul.f32 %v1115_v52, %v1466_v50  ;;  %v703_v40 = vadd.f32 %v1552_v32, %v664_v47  ;;  %v738_v47 = vld [vmem:[%s1740_s3 + $0x60] sm:$0xff] }
 0x172   : > { %v551_v34 = vmul.f32 0.03125, %v519_v8  ;;  %1126 = vrsqrt.f32 %v565_v37  ;;  %v665_v13 = vmul.f32 %v1545_v28, %v626_v9  ;;  %v740_v9 = vld [vmem:[%s1740_s3 + $0x70] sm:$0xff] }
 0x173   : > { %v1117_v46 = vpop.eup %1116  ;;  %v566_v58 = vadd.f32 1e-05, %v534_v7  ;;  %v682_v56 = vmul.f32 %v1545_v28, %v643_v24  ;;  %v1031_v57 = vpack.c.bf16 %v703_v40, %v702_v25  ;;  %v731_v7 = vld [vmem:[%s1740_s3 + $0x28] sm:$0xff]  ;;  %v730_v24 = vld [vmem:[%s1740_s3 + $0x20] sm:$0xff]  ;;  %v733_v40 = vld [vmem:[%s1740_s3 + $0x38] sm:$0xff] }
 0x174   : > { %v583_v41 = vadd.f32 1e-05, %v551_v34  ;;  %v1119_v59 = vpop.eup %1118  ;;  %v644_v1 = vmul.f32 %v1117_v46, %v1486_v19  ;;  %v704_v19 = vadd.f32 %v1552_v32, %v665_v13  ;;  %v743_v34 = vld [vmem:[%s1740_s3 + $0x88] sm:$0xff]  ;;  %v742_v25 = vld [vmem:[%s1740_s3 + $0x80] sm:$0xff]  ;;  %v745_v46 = vld [vmem:[%s1740_s3 + $0x98] sm:$0xff] }
 0x175   : > { %v471_v63 = vpop.xlane.xlu1 %470  ;;  %1128 = vrsqrt.f32 %v566_v58  ;;  %v721_v29 = vadd.f32 %v1552_v32, %v682_v56  ;;  %v627_v60 = vmul.f32 %v1119_v59, %v1478_v3  ;;  %1032 = vmatpush3.bf16.msra.mxu0 %v1031_v57  ;;  %1057 = vmatpush3.bf16.msra.mxu1 %v1031_v57  ;;  %v732_v58 = vld [vmem:[%s1740_s3 + $0x30] sm:$0xff]  ;;  %v735_v56 = vld [vmem:[%s1740_s3 + $0x48] sm:$0xff]  ;;  %v734_v57 = vld [vmem:[%s1740_s3 + $0x40] sm:$0xff] }
 0x176   : > { %v535_v50 = vmul.f32 0.03125, %v471_v63  ;;  %1130 = vrsqrt.f32 %v583_v41  ;;  %v683_v14 = vmul.f32 %v1545_v28, %v644_v1  ;;  %v744_v41 = vld [vmem:[%s1740_s3 + $0x90] sm:$0xff]  ;;  %v747_v59 = vld [vmem:[%s1740_s3 + $0xa8] sm:$0x1f]  ;;  %v746_v63 = vld [vmem:[%s1740_s3 + $0xa0] sm:$0x1f] }
 0x177   : > { %v1121_v0 = vpop.eup %1120  ;;  %v1033_v15 = vpack.c.bf16 %v721_v29, %v720_v12  ;;  %v666_v44 = vmul.f32 %v1545_v28, %v627_v60  ;;  %v737_v12 = vld [vmem:[%s1740_s3 + $0x58] sm:$0xff]  ;;  %v736_v13 = vld [vmem:[%s1740_s3 + $0x50] sm:$0xff] }
 0x178   : > { %v567_v61 = vadd.f32 1e-05, %v535_v50  ;;  %v1123_v45 = vpop.eup %1122  ;;  %v628_v62 = vmul.f32 %v1121_v0, %v1498_v35  ;;  %v722_v17 = vadd.f32 %v1552_v32, %v683_v14 }
 0x179   : > { %1034 = vmatprep.subr.bf16.mxu0 %v1033_v15  ;;  %1050 = vmatprep.subr.bf16.mxu1 %v1033_v15  ;;  %v705_v3 = vadd.f32 %v1552_v32, %v666_v44  ;;  %v645_v23 = vmul.f32 %v1123_v45, %v1490_v22 }
 0x17a   : > { %1132 = vrsqrt.f32 %v567_v61  ;;  %v667_v33 = vmul.f32 %v1545_v28, %v628_v62 }
 0x17b   : > { %v1125_v27 = vpop.eup %1124  ;;  %v1035_v16 = vpack.c.bf16 %v705_v3, %v704_v19  ;;  %v684_v2 = vmul.f32 %v1545_v28, %v645_v23 }
 0x17c   : > { %v1127_v10 = vpop.eup %1126  ;;  %v646_v49 = vmul.f32 %v1125_v27, %v1510_v51  ;;  %v706_v18 = vadd.f32 %v1552_v32, %v667_v33 }
 0x17d   : > { %1036 = vmatpush3.bf16.msra.mxu0 %v1035_v16  ;;  %1058 = vmatpush3.bf16.msra.mxu1 %v1035_v16  ;;  %v723_v35 = vadd.f32 %v1552_v32, %v684_v2  ;;  %v629_v48 = vmul.f32 %v1127_v10, %v1502_v38 }
 0x17e   : > { %v685_v31 = vmul.f32 %v1545_v28, %v646_v49 }
 0x17f   : > { %v1129_v39 = vpop.eup %1128  ;;  %v1037_v5 = vpack.c.bf16 %v723_v35, %v722_v17  ;;  %v668_v22 = vmul.f32 %v1545_v28, %v629_v48 }
 0x180   : > { %v1131_v42 = vpop.eup %1130  ;;  %v630_v43 = vmul.f32 %v1129_v39, %v1522_v4  ;;  %v724_v4 = vadd.f32 %v1552_v32, %v685_v31 }
 0x181   : > { %1038 = vmatprep.subr.bf16.mxu0 %v1037_v5  ;;  %1051 = vmatprep.subr.bf16.mxu1 %v1037_v5  ;;  %v707_v20 = vadd.f32 %v1552_v32, %v668_v22  ;;  %v647_v21 = vmul.f32 %v1131_v42, %v1514_v54 }
 0x182   : > { %v669_v36 = vmul.f32 %v1545_v28, %v630_v43 }
 0x183   : > { %v1039_v55 = vpack.c.bf16 %v707_v20, %v706_v18  ;;  %v686_v51 = vmul.f32 %v1545_v28, %v647_v21 }
 0x184   : > { %v1133_v38 = vpop.eup %1132  ;;  %v708_v54 = vadd.f32 %v1552_v32, %v669_v36 }
 0x185   : > { %v631_v30 = vmul.f32 %v1133_v38, %v1526_v6  ;;  %1040 = vmatpush3.bf16.msra.mxu0 %v1039_v55  ;;  %1059 = vmatpush3.bf16.msra.mxu1 %v1039_v55  ;;  %v725_v37 = vadd.f32 %v1552_v32, %v686_v51  ;;  %v726_v6 = vld [vmem:[%s1740_s3] sm:$0xff] }
 0x187   : > { %v670_v26 = vmul.f32 %v1545_v28, %v631_v30  ;;  %v1041_v52 = vpack.c.bf16 %v725_v37, %v724_v4  ;;  %v729_v28 = vld [vmem:[%s1740_s3 + $0x18] sm:$0xff] }
 0x189   : > { %v709_v53 = vadd.f32 %v1552_v32, %v670_v26  ;;  %1042 = vmatprep.subr.bf16.mxu0 %v1041_v52  ;;  %1052 = vmatprep.subr.bf16.mxu1 %v1041_v52  ;;  %v741_v32 = vld [vmem:[%s1740_s3 + $0x78] sm:$0xff] }
 0x18b   : > { %v1043_v8 = vpack.c.bf16 %v709_v53, %v708_v54 }
 0x18d   : > { %1044 = vmatpush3.bf16.msra.mxu0 %v1043_v8  ;;  %1060 = vmatpush3.bf16.msra.mxu1 %v1043_v8 }
 0x190   : > { %813 = vmatmul.mubr.f32.vlgmr.msra.gmra.mrb[0].mxu0 %v726_v6  ;;  %843 = vmatmul.mubr.f32.vlgmr.msra.gmra.mrb[0].mxu1 %v738_v47 }
 0x191   : > { %817 = vmatprep.mubr.f32.mxu0 %v729_v28  ;;  %847 = vmatprep.mubr.f32.mxu1 %v741_v32 }
 0x194   : > { %818 = vmatmul.mubr.f32.gmra.mrb[2].mxu0 %v728_v11  ;;  %848 = vmatmul.mubr.f32.gmra.mrb[2].mxu1 %v740_v9 }
 0x195   : > { %822 = vmatprep.mubr.f32.mxu0 %v731_v7  ;;  %852 = vmatprep.mubr.f32.mxu1 %v743_v34 }
 0x198   : > { %823 = vmatmul.mubr.f32.gmra.mrb[4].mxu0 %v730_v24  ;;  %853 = vmatmul.mubr.f32.gmra.mrb[4].mxu1 %v742_v25 }
 0x199   : > { %827 = vmatprep.mubr.f32.mxu0 %v733_v40  ;;  %857 = vmatprep.mubr.f32.mxu1 %v745_v46 }
 0x19c   : > { %828 = vmatmul.mubr.f32.gmra.mrb[6].mxu0 %v732_v58  ;;  %858 = vmatmul.mubr.f32.gmra.mrb[6].mxu1 %v744_v41 }
 0x19d   : > { %832 = vmatprep.mubr.f32.mxu0 %v735_v56  ;;  %862 = vmatprep.mubr.f32.mxu1 %v747_v59 }
 0x1a0   : > { %833 = vmatmul.mubr.f32.gmra.mrb[8].mxu0 %v734_v57  ;;  %863 = vmatmul.mubr.f32.gmra.mrb[8].mxu1 %v746_v63 }
 0x1a1   : > { %837 = vmatprep.mubr.f32.mxu0 %v737_v12 }
 0x1a4   : > { %838 = vmatmul.mubr.f32.gmra.mrb[10].mxu0 %v736_v13 }
 0x263   : > { %v980_v1 = vpop.f32.mrb[0].mxu0  ;;  %v998_v50 = vpop.f32.mrb[0].mxu1 }
 0x264   : > { %v981_v29 = vpop.f32.mrb[1].mxu0  ;;  %v999_v60 = vpop.f32.mrb[1].mxu1 }
 0x265   : > { %v982_v0 = vadd.f32 %v981_v29, %v980_v1  ;;  %v1000_v61 = vadd.f32 %v999_v60, %v998_v50 }
 0x267   : > { %868 = vst.msk [vmem:[%s1711_s24] sm:$0xff] %vm230_vm0, %v982_v0  ;;  %v983_v15 = vpop.f32.mrb[2].mxu0  ;;  %874 = vst.msk [vmem:[%s1711_s24 + $0x30] sm:$0xff] %vm230_vm0, %v1000_v61  ;;  %v1001_v44 = vpop.f32.mrb[2].mxu1 }
 0x268   : > { %v984_v45 = vpop.f32.mrb[3].mxu0  ;;  %v1002_v14 = vpop.f32.mrb[3].mxu1 }
 0x269   : > { %v985_v62 = vadd.f32 %v984_v45, %v983_v15  ;;  %v1003_v19 = vadd.f32 %v1002_v14, %v1001_v44 }
 0x26b   : > { %869 = vst.msk [vmem:[%s1711_s24 + $0x8] sm:$0xff] %vm230_vm0, %v985_v62  ;;  %v986_v3 = vpop.f32.mrb[4].mxu0  ;;  %875 = vst.msk [vmem:[%s1711_s24 + $0x38] sm:$0xff] %vm230_vm0, %v1003_v19  ;;  %v1004_v23 = vpop.f32.mrb[4].mxu1 }
 0x26c   : > { %v987_v27 = vpop.f32.mrb[5].mxu0  ;;  %v1005_v16 = vpop.f32.mrb[5].mxu1 }
 0x26d   : > { %v988_v2 = vadd.f32 %v987_v27, %v986_v3  ;;  %v1006_v10 = vadd.f32 %v1005_v16, %v1004_v23 }
 0x26f   : > { %870 = vst.msk [vmem:[%s1711_s24 + $0x10] sm:$0xff] %vm230_vm0, %v988_v2  ;;  %v989_v17 = vpop.f32.mrb[6].mxu0  ;;  %876 = vst.msk [vmem:[%s1711_s24 + $0x40] sm:$0xff] %vm230_vm0, %v1006_v10  ;;  %v1007_v33 = vpop.f32.mrb[6].mxu1 }
 0x270   : > { %v990_v35 = vpop.f32.mrb[7].mxu0  ;;  %v1008_v48 = vpop.f32.mrb[7].mxu1 }
 0x271   : > { %v991_v49 = vadd.f32 %v990_v35, %v989_v17  ;;  %v1009_v39 = vadd.f32 %v1008_v48, %v1007_v33 }
 0x273   : > { %871 = vst.msk [vmem:[%s1711_s24 + $0x18] sm:$0xff] %vm230_vm0, %v991_v49  ;;  %v992_v5 = vpop.f32.mrb[8].mxu0  ;;  %877 = vst.msk [vmem:[%s1711_s24 + $0x48] sm:$0xff] %vm230_vm0, %v1009_v39  ;;  %v1010_v22 = vpop.f32.mrb[8].mxu1 }
 0x274   : > { %v993_v42 = vpop.f32.mrb[9].mxu0  ;;  %v1011_v18 = vpop.f32.mrb[9].mxu1 }
 0x275   : > { %v994_v43 = vadd.f32 %v993_v42, %v992_v5  ;;  %v1012_v20 = vadd.f32 %v1011_v18, %v1010_v22 }
 0x277   : > { %872 = vst.msk [vmem:[%s1711_s24 + $0x20] sm:$0xff] %vm230_vm0, %v994_v43  ;;  %v995_v21 = vpop.f32.mrb[10].mxu0 }
 0x278   : > { %879 = vst.msk [vmem:[%s1711_s24 + $0x50] sm:$0x1f] %vm878_vm1, %v1012_v20  ;;  %v996_v31 = vpop.f32.mrb[11].mxu0 }
 0x279   : > { %v997_v38 = vadd.f32 %v996_v31, %v995_v21 }
 0x27b   : > { %873 = vst.msk [vmem:[%s1711_s24 + $0x28] sm:$0xff] %vm230_vm0, %v997_v38 }
 0x27c PF: > { %s14_s15 = sadd.s32 1, %s1140_s15  }
 0x27d   : > { %p11_p4 = scmp.ge.s32.totalorder %s14_s15, 4  }
 0x27f   :  { %13 = sbr.rel (!%p11_p4) target bundleno = 1 (0x1), region = 66 }

// kernel: block_forward.14
= control target key start
LH: loop header
LB: loop body
LE: loop exit
PB: predicated region body
PF: predicated region fallthrough
CT: control target
= control target key end

     0   :  { %s483_s12 = smov 0   ;;  %s630_s0 = inlined_call_operand.vmem [shape: f32[2,6,6,32], index: 0, kind: input, shape index: {}]   ;;  %s631_s1 = inlined_call_operand.vmem [shape: f32[9,32], index: 1, kind: input, shape index: {}]   ;;  %s632_s2 = inlined_call_operand.vmem [shape: f32[1,32], index: 2, kind: input, shape index: {}]   ;;  %s633_s3 = inlined_call_operand.vmem [shape: f32[2,4,4,32], index: 3, kind: output, shape index: {}]  }
   0x1 LB: > { %s401_s13 = sadd.s32 4294967295, %s461_s12   ;;  %p405_p0 = scmp.ge.s32.totalorder %s461_s12, 1  ;;  %s461_s12 = sphi %s483_s12, %s13_s12  }
   0x2   : > { %p137_p1 = scmp.lt.s32.totalorder %s461_s12, 3 }
   0x4   : > { %p138_p2 = pnand %p405_p0, %p137_p1 }
   0x5   : > { %p161_p3 = scmp.lt.s32.totalorder (!%p138_p2), %s401_s13, 1  ;;  %v409_v0 = vld [vmem:[%s631_s1] ss:$0 sm:$0xff] (!%p138_p2)  ;;  %v410_v1 = vld [vmem:[%s631_s1 + $0x1] ss:$0 sm:$0xff] (!%p138_p2)  ;;  %vm341_vm0 = vcmask (!%p138_p2), 257024  }
   0x6   : > { %141 = sbr.rel (%p138_p2) target bundleno = 48 (0x30), region = 32  ;;  %v503_v2 = vld [vmem:[%s631_s1 + $0x2] ss:$0 sm:$0xff] (!%p138_p2)  ;;  %v513_v3 = vld [vmem:[%s631_s1 + $0x3] ss:$0 sm:$0xff] (!%p138_p2) }
   0x7   : > { %v523_v11 = vld [vmem:[%s631_s1 + $0x4] ss:$0 sm:$0xff] (!%p138_p2)  ;;  %v532_v14 = vld [vmem:[%s631_s1 + $0x5] ss:$0 sm:$0xff] (!%p138_p2)  ;;  %v541_v20 = vld [vmem:[%s631_s1 + $0x6] ss:$0 sm:$0xff] (!%p138_p2) }
   0x8   : > { %v546_v21 = vld [vmem:[%s631_s1 + $0x7] ss:$0 sm:$0xff] (!%p138_p2)  ;;  %v569_v44 = vld [vmem:[%s631_s1 + $0x8] ss:$0 sm:$0xff] (!%p138_p2) }
   0xd   : > { %s635_s13 = smov (!%p161_p3, %s401_s13), 1 }
   0xe   : > { %s446_s14 = smul.u32 48, %s635_s13  ;;  %s445_s11 = sshll.u32 %s635_s13, 4 }
   0xf   : > { %s170_s16 = scalar_lea.vmem %s633_s3, %s445_s11 }
  0x10   : > { %s508_s23 = scalar_lea.vmem %s630_s0, %s446_s14 }
  0x11   : > { %v171_v4 = vld [vmem:[%s508_s23] sm:$0xf]  ;;  %v412_v10 = vld [vmem:[%s508_s23 + $0x8] sm:$0xf]  ;;  %v413_v25 = vld [vmem:[%s508_s23 + $0x10] sm:$0xf] }
  0x12   : > { %v188_v5 = vld [vmem:[%s508_s23 + $0x1] sm:$0xf]  ;;  %v180_v7 = vmul.f32 %v409_v0, %v171_v4  ;;  %v526_v12 = vld [vmem:[%s508_s23 + $0x9] sm:$0xf]  ;;  %v232_v16 = vmul.f32 %v513_v3, %v412_v10  ;;  %v427_v28 = vld [vmem:[%s508_s23 + $0x10] sm:$0xf]  ;;  %v233_v33 = vmul.f32 %v513_v3, %v413_v25 }
  0x13   : > { %v205_v6 = vld [vmem:[%s508_s23 + $0x2] sm:$0xf]  ;;  %v197_v8 = vmul.f32 %v410_v1, %v188_v5  ;;  %v422_v13 = vld [vmem:[%s508_s23 + $0xa] sm:$0xf]  ;;  %v249_v27 = vmul.f32 %v523_v11, %v526_v12  ;;  %v432_v29 = vld [vmem:[%s508_s23 + $0x11] sm:$0xf]  ;;  %v284_v43 = vmul.f32 %v541_v20, %v427_v28 }
  0x14   : > { %v214_v9 = vmul.f32 %v503_v2, %v205_v6  ;;  %v172_v17 = vld [vmem:[%s508_s23 + $0x8] sm:$0xf]  ;;  %v555_v30 = vld [vmem:[%s508_s23 + $0x11] sm:$0xf]  ;;  %v266_v31 = vmul.f32 %v532_v14, %v422_v13  ;;  %v414_v42 = vld [vmem:[%s508_s23 + $0x18] sm:$0xf]  ;;  %v301_v50 = vmul.f32 %v546_v21, %v432_v29 }
  0x15   : > { %v201_v15 = vadd.f32 %v197_v8, %v180_v7  ;;  %v189_v18 = vld [vmem:[%s508_s23 + $0x9] sm:$0xf]  ;;  %v181_v22 = vmul.f32 %v409_v0, %v172_v17  ;;  %v173_v34 = vld [vmem:[%s508_s23 + $0x10] sm:$0xf]  ;;  %v250_v46 = vmul.f32 %v523_v11, %v555_v30  ;;  %v428_v47 = vld [vmem:[%s508_s23 + $0x18] sm:$0xf]  ;;  %v234_v52 = vmul.f32 %v513_v3, %v414_v42 }
  0x16   : > { %v206_v19 = vld [vmem:[%s508_s23 + $0xa] sm:$0xf]  ;;  %v198_v23 = vmul.f32 %v410_v1, %v189_v18  ;;  %v190_v35 = vld [vmem:[%s508_s23 + $0x11] sm:$0xf]  ;;  %v182_v39 = vmul.f32 %v409_v0, %v173_v34  ;;  %v575_v48 = vld [vmem:[%s508_s23 + $0x19] sm:$0xf]  ;;  %v285_v10 = vmul.f32 %v541_v20, %v428_v47 }
  0x17   : > { %v215_v24 = vmul.f32 %v503_v2, %v206_v19  ;;  %v218_v26 = vadd.f32 %v214_v9, %v201_v15  ;;  %v207_v36 = vld [vmem:[%s508_s23 + $0x12] sm:$0xf]  ;;  %v199_v40 = vmul.f32 %v410_v1, %v190_v35  ;;  %v174_v53 = vld [vmem:[%s508_s23 + $0x18] sm:$0xf]  ;;  %v415_v62 = vld [vmem:[%s508_s23 + $0x20] sm:$0xf]  ;;  %v251_v6 = vmul.f32 %v523_v11, %v575_v48 }
  0x18   : > { %v202_v32 = vadd.f32 %v198_v23, %v181_v22  ;;  %v423_v38 = vld [vmem:[%s508_s23 + $0x12] sm:$0xf]  ;;  %v216_v41 = vmul.f32 %v503_v2, %v207_v36  ;;  %v191_v54 = vld [vmem:[%s508_s23 + $0x19] sm:$0xf]  ;;  %v183_v60 = vmul.f32 %v409_v0, %v174_v53  ;;  %v420_v8 = vld [vmem:[%s508_s23 + $0x21] sm:$0xf]  ;;  %v235_v0 = vmul.f32 %v513_v3, %v415_v62 }
  0x19   : > { %v236_v37 = vadd.f32 %v232_v16, %v218_v26  ;;  %v203_v51 = vadd.f32 %v199_v40, %v182_v39  ;;  %v208_v55 = vld [vmem:[%s508_s23 + $0x1a] sm:$0xf]  ;;  %v437_v56 = vld [vmem:[%s508_s23 + $0x12] sm:$0xf]  ;;  %v267_v58 = vmul.f32 %v532_v14, %v423_v38  ;;  %v200_v61 = vmul.f32 %v410_v1, %v191_v54  ;;  %v429_v13 = vld [vmem:[%s508_s23 + $0x20] sm:$0xf] }
  0x1a   : > { %v219_v45 = vadd.f32 %v215_v24, %v202_v32  ;;  %v424_v59 = vld [vmem:[%s508_s23 + $0x1a] sm:$0xf]  ;;  %v217_v7 = vmul.f32 %v503_v2, %v208_v55  ;;  %v318_v16 = vmul.f32 %v569_v44, %v437_v56  ;;  %v425_v22 = vld [vmem:[%s508_s23 + $0x22] sm:$0xf]  ;;  %v252_v26 = vmul.f32 %v523_v11, %v420_v8  ;;  %v430_v29 = vld [vmem:[%s508_s23 + $0x28] sm:$0xf] }
  0x1b   : > { %v253_v49 = vadd.f32 %v249_v27, %v236_v37  ;;  %v433_v4 = vld [vmem:[%s508_s23 + $0x19] sm:$0xf]  ;;  %v220_v5 = vadd.f32 %v216_v41, %v203_v51  ;;  %v204_v15 = vadd.f32 %v200_v61, %v183_v60  ;;  %v268_v19 = vmul.f32 %v532_v14, %v424_v59  ;;  %v434_v24 = vld [vmem:[%s508_s23 + $0x21] sm:$0xf]  ;;  %v435_v39 = vld [vmem:[%s508_s23 + $0x29] sm:$0xf] }
  0x1c   : > { %v237_v57 = vadd.f32 %v233_v33, %v219_v45  ;;  %v438_v17 = vld [vmem:[%s508_s23 + $0x1a] sm:$0xf]  ;;  %v302_v23 = vmul.f32 %v546_v21, %v433_v4  ;;  %v286_v28 = vmul.f32 %v541_v20, %v429_v13  ;;  %v439_v34 = vld [vmem:[%s508_s23 + $0x22] sm:$0xf]  ;;  %v269_v36 = vmul.f32 %v532_v14, %v425_v22  ;;  %v440_v47 = vld [vmem:[%s508_s23 + $0x2a] sm:$0xf] }
  0x1d   : > { %v270_v63 = vadd.f32 %v266_v31, %v253_v49  ;;  %v238_v18 = vadd.f32 %v234_v52, %v220_v5  ;;  %v221_v25 = vadd.f32 %v217_v7, %v204_v15  ;;  %v442_v31 = vld [vmem:[%s632_s2] ss:$0 sm:$0xff]  ;;  %v319_v33 = vmul.f32 %v569_v44, %v438_v17 }
  0x1e   : > { %v254_v9 = vadd.f32 %v250_v46, %v237_v57  ;;  %v303_v38 = vmul.f32 %v546_v21, %v434_v24  ;;  %v287_v42 = vmul.f32 %v541_v20, %v430_v29  ;;  %v320_v46 = vmul.f32 %v569_v44, %v439_v34 }
  0x1f   : > { %v288_v1 = vadd.f32 %v284_v43, %v270_v63  ;;  %v255_v3 = vadd.f32 %v251_v6, %v238_v18  ;;  %v239_v35 = vadd.f32 %v235_v0, %v221_v25  ;;  %v321_v20 = vmul.f32 %v569_v44, %v440_v47 }
  0x20   : > { %v271_v2 = vadd.f32 %v267_v58, %v254_v9 }
  0x21   : > { %v305_v27 = vadd.f32 %v301_v50, %v288_v1  ;;  %v272_v11 = vadd.f32 %v268_v19, %v255_v3  ;;  %v256_v41 = vadd.f32 %v252_v26, %v239_v35  ;;  %v304_v50 = vmul.f32 %v546_v21, %v435_v39 }
  0x22   : > { %v289_v32 = vadd.f32 %v285_v10, %v271_v2 }
  0x23   : > { %v322_v37 = vadd.f32 %v318_v16, %v305_v27  ;;  %v290_v45 = vadd.f32 %v286_v28, %v272_v11  ;;  %v273_v49 = vadd.f32 %v269_v36, %v256_v41 }
  0x24   : > { %v306_v40 = vadd.f32 %v302_v23, %v289_v32 }
  0x25   : > { %v333_v43 = vadd.f32 %v442_v31, %v322_v37  ;;  %v307_v52 = vadd.f32 %v303_v38, %v290_v45  ;;  %v291_v54 = vadd.f32 %v287_v42, %v273_v49 }
  0x26   : > { %v323_v14 = vadd.f32 %v319_v33, %v306_v40 }
  0x27   : > { %v337_v51 = vadd.f32 %v526_v12, %v333_v43  ;;  %v324_v55 = vadd.f32 %v320_v46, %v307_v52  ;;  %v308_v57 = vadd.f32 %v304_v50, %v291_v54 }
  0x28   : > { %v334_v53 = vadd.f32 %v442_v31, %v323_v14 }
  0x29   : > { %342 = vst.msk [vmem:[%s170_s16] sm:$0xf] %vm341_vm0, %v337_v51  ;;  %v335_v58 = vadd.f32 %v442_v31, %v324_v55  ;;  %v325_v59 = vadd.f32 %v321_v20, %v308_v57 }
  0x2a   : > { %v338_v56 = vadd.f32 %v555_v30, %v334_v53 }
  0x2b   : > { %v339_v60 = vadd.f32 %v575_v48, %v335_v58  ;;  %v336_v21 = vadd.f32 %v442_v31, %v325_v59 }
  0x2c   : > { %343 = vst.msk [vmem:[%s170_s16 + $0x4] sm:$0xf] %vm341_vm0, %v338_v56 }
  0x2d   : > { %344 = vst.msk [vmem:[%s170_s16 + $0x8] sm:$0xf] %vm341_vm0, %v339_v60  ;;  %v340_v12 = vadd.f32 %v420_v8, %v336_v21 }
  0x2f   : > { %345 = vst.msk [vmem:[%s170_s16 + $0xc] sm:$0xf] %vm341_vm0, %v340_v12 }
  0x30 PF: > { %s13_s12 = sadd.s32 1, %s461_s12  }
  0x31   : > { %p10_p4 = scmp.ge.s32.totalorder %s13_s12, 4  }
  0x33   :  { %12 = sbr.rel (!%p10_p4) target bundleno = 1 (0x1), region = 64 }

// kernel: block_forward.15
= control target key start
LH: loop header
LB: loop body
LE: loop exit
PB: predicated region body
PF: predicated region fallthrough
CT: control target
= control target key end

     0   :  { %s412_s12 = smov 0   ;;  %s483_s0 = inlined_call_operand.vmem [shape: f32[2,4,4,32], index: 0, kind: input, shape index: {}]   ;;  %s484_s1 = inlined_call_operand.vmem [shape: f32[9,32], index: 1, kind: input, shape index: {}]   ;;  %s485_s2 = inlined_call_operand.vmem [shape: f32[1,32], index: 2, kind: input, shape index: {}]   ;;  %s486_s3 = inlined_call_operand.vmem [shape: f32[2,2,2,32], index: 3, kind: output, shape index: {}]  }
   0x1 LB: > { %s341_s13 = sadd.s32 4294967295, %s390_s12   ;;  %p345_p0 = scmp.ge.s32.totalorder %s390_s12, 1  ;;  %s390_s12 = sphi %s412_s12, %s13_s12  }
   0x2   : > { %p137_p1 = scmp.lt.s32.totalorder %s390_s12, 3 }
   0x4   : > { %p138_p2 = pnand %p345_p0, %p137_p1 }
   0x5   : > { %p161_p3 = scmp.lt.s32.totalorder (!%p138_p2), %s341_s13, 1  ;;  %v350_v0 = vld [vmem:[%s484_s1] ss:$0 sm:$0xff] (!%p138_p2)  ;;  %v351_v1 = vld [vmem:[%s484_s1 + $0x1] ss:$0 sm:$0xff] (!%p138_p2)  ;;  %vm283_vm0 = vcmask (!%p138_p2), 254976  }
   0x6   : > { %141 = sbr.rel (%p138_p2) target bundleno = 43 (0x2b), region = 32  ;;  %v352_v2 = vld [vmem:[%s484_s1 + $0x2] ss:$0 sm:$0xff] (!%p138_p2)  ;;  %v355_v3 = vld [vmem:[%s484_s1 + $0x3] ss:$0 sm:$0xff] (!%p138_p2) }
   0x7   : > { %v358_v12 = vld [vmem:[%s484_s1 + $0x4] ss:$0 sm:$0xff] (!%p138_p2)  ;;  %v361_v19 = vld [vmem:[%s484_s1 + $0x5] ss:$0 sm:$0xff] (!%p138_p2)  ;;  %v364_v28 = vld [vmem:[%s484_s1 + $0x6] ss:$0 sm:$0xff] (!%p138_p2) }
   0x8   : > { %v367_v35 = vld [vmem:[%s484_s1 + $0x7] ss:$0 sm:$0xff] (!%p138_p2)  ;;  %v370_v42 = vld [vmem:[%s484_s1 + $0x8] ss:$0 sm:$0xff] (!%p138_p2)  ;;  %v371_v56 = vld [vmem:[%s485_s2] ss:$0 sm:$0xff] (!%p138_p2) }
   0xd   : > { %s488_s13 = smov (!%p161_p3, %s341_s13), 1 }
   0xe   : > { %s374_s16 = sshll.u32 %s488_s13, 4  ;;  %s375_s11 = sshll.u32 %s488_s13, 2 }
   0xf   : > { %s435_s23 = scalar_lea.vmem %s483_s0, %s374_s16  ;;  %s170_s16 = scalar_lea.vmem %s486_s3, %s375_s11 }
  0x10   : > { %v171_v4 = vld [vmem:[%s435_s23] sm:$0x3]  ;;  %v193_v6 = vld [vmem:[%s435_s23 + $0x2] sm:$0x3]  ;;  %v353_v10 = vld [vmem:[%s435_s23 + $0x4] sm:$0x3] }
  0x11   : > { %v182_v5 = vld [vmem:[%s435_s23 + $0x1] sm:$0x3]  ;;  %v178_v7 = vmul.f32 %v350_v0, %v171_v4  ;;  %v200_v9 = vmul.f32 %v352_v2, %v193_v6  ;;  %v356_v11 = vld [vmem:[%s435_s23 + $0x5] sm:$0x3]  ;;  %v212_v14 = vmul.f32 %v355_v3, %v353_v10  ;;  %v354_v23 = vld [vmem:[%s435_s23 + $0x8] sm:$0x3] }
  0x12   : > { %v189_v8 = vmul.f32 %v351_v1, %v182_v5  ;;  %v172_v15 = vld [vmem:[%s435_s23 + $0x4] sm:$0x3]  ;;  %v194_v17 = vld [vmem:[%s435_s23 + $0x6] sm:$0x3]  ;;  %v223_v25 = vmul.f32 %v358_v12, %v356_v11  ;;  %v357_v26 = vld [vmem:[%s435_s23 + $0x9] sm:$0x3]  ;;  %v213_v30 = vmul.f32 %v355_v3, %v354_v23 }
  0x13   : > { %v183_v16 = vld [vmem:[%s435_s23 + $0x5] sm:$0x3]  ;;  %v179_v20 = vmul.f32 %v350_v0, %v172_v15  ;;  %v201_v22 = vmul.f32 %v352_v2, %v194_v17  ;;  %v362_v27 = vld [vmem:[%s435_s23 + $0x8] sm:$0x3]  ;;  %v360_v33 = vld [vmem:[%s435_s23 + $0xa] sm:$0x3]  ;;  %v224_v37 = vmul.f32 %v358_v12, %v357_v26 }
  0x14   : > { %v191_v13 = vadd.f32 %v189_v8, %v178_v7  ;;  %v359_v18 = vld [vmem:[%s435_s23 + $0x6] sm:$0x3]  ;;  %v190_v21 = vmul.f32 %v351_v1, %v183_v16  ;;  %v365_v34 = vld [vmem:[%s435_s23 + $0x9] sm:$0x3]  ;;  %v246_v39 = vmul.f32 %v364_v28, %v362_v27  ;;  %v363_v40 = vld [vmem:[%s435_s23 + $0xc] sm:$0x3]  ;;  %v235_v44 = vmul.f32 %v361_v19, %v360_v33 }
  0x15   : > { %v234_v32 = vmul.f32 %v361_v19, %v359_v18  ;;  %v368_v41 = vld [vmem:[%s435_s23 + $0xa] sm:$0x3]  ;;  %v257_v46 = vmul.f32 %v367_v35, %v365_v34  ;;  %v366_v47 = vld [vmem:[%s435_s23 + $0xd] sm:$0x3]  ;;  %v247_v49 = vmul.f32 %v364_v28, %v363_v40 }
  0x16   : > { %v202_v24 = vadd.f32 %v200_v9, %v191_v13  ;;  %v192_v29 = vadd.f32 %v190_v21, %v179_v20  ;;  %v268_v51 = vmul.f32 %v370_v42, %v368_v41  ;;  %v369_v52 = vld [vmem:[%s435_s23 + $0xe] sm:$0x3]  ;;  %v258_v54 = vmul.f32 %v367_v35, %v366_v47 }
  0x17   : > { %v269_v58 = vmul.f32 %v370_v42, %v369_v52 }
  0x18   : > { %v214_v31 = vadd.f32 %v212_v14, %v202_v24  ;;  %v203_v36 = vadd.f32 %v201_v22, %v192_v29 }
  0x1a   : > { %v225_v38 = vadd.f32 %v223_v25, %v214_v31  ;;  %v215_v43 = vadd.f32 %v213_v30, %v203_v36 }
  0x1c   : > { %v236_v45 = vadd.f32 %v234_v32, %v225_v38  ;;  %v226_v48 = vadd.f32 %v224_v37, %v215_v43 }
  0x1e   : > { %v248_v50 = vadd.f32 %v246_v39, %v236_v45  ;;  %v237_v53 = vadd.f32 %v235_v44, %v226_v48 }
  0x20   : > { %v259_v55 = vadd.f32 %v257_v46, %v248_v50  ;;  %v249_v57 = vadd.f32 %v247_v49, %v237_v53 }
  0x22   : > { %v270_v59 = vadd.f32 %v268_v51, %v259_v55  ;;  %v260_v60 = vadd.f32 %v258_v54, %v249_v57 }
  0x24   : > { %v279_v61 = vadd.f32 %v371_v56, %v270_v59  ;;  %v271_v62 = vadd.f32 %v269_v58, %v260_v60 }
  0x26   : > { %v281_v63 = vadd.f32 %v356_v11, %v279_v61  ;;  %v280_v0 = vadd.f32 %v371_v56, %v271_v62 }
  0x28   : > { %284 = vst.msk [vmem:[%s170_s16] sm:$0x3] %vm283_vm0, %v281_v63  ;;  %v282_v1 = vadd.f32 %v357_v26, %v280_v0 }
  0x2a   : > { %285 = vst.msk [vmem:[%s170_s16 + $0x2] sm:$0x3] %vm283_vm0, %v282_v1 }
  0x2b PF: > { %s13_s12 = sadd.s32 1, %s390_s12  }
  0x2c   : > { %p10_p4 = scmp.ge.s32.totalorder %s13_s12, 4  }
  0x2e   :  { %12 = sbr.rel (!%p10_p4) target bundleno = 1 (0x1), region = 64 }

// kernel: block_forward.16
= control target key start
LH: loop header
LB: loop body
LE: loop exit
PB: predicated region body
PF: predicated region fallthrough
CT: control target
= control target key end

     0   :  { %s308_s12 = smov 0   ;;  %s359_s0 = inlined_call_operand.vmem [shape: f32[2,3,3,32], index: 0, kind: input, shape index: {}]   ;;  %s360_s1 = inlined_call_operand.vmem [shape: f32[9,32], index: 1, kind: input, shape index: {}]   ;;  %s361_s2 = inlined_call_operand.vmem [shape: f32[1,32], index: 2, kind: input, shape index: {}]   ;;  %s362_s3 = inlined_call_operand.vmem [shape: f32[2,1,1,32], index: 3, kind: output, shape index: {}]  }
   0x1 LB: > { %s257_s13 = sadd.s32 4294967295, %s286_s12   ;;  %p261_p0 = scmp.ge.s32.totalorder %s286_s12, 1  ;;  %s286_s12 = sphi %s308_s12, %s13_s12  }
   0x2   : > { %p137_p1 = scmp.lt.s32.totalorder %s286_s12, 3 }
   0x4   : > { %p138_p2 = pnand %p261_p0, %p137_p1 }
   0x5   : > { %p159_p3 = scmp.lt.s32.totalorder (!%p138_p2), %s257_s13, 1  ;;  %v168_v0 = vld [vmem:[%s360_s1] sm:$0x1] (!%p138_p2)  ;;  %v172_v1 = vld [vmem:[%s360_s1 + $0x1] sm:$0x1] (!%p138_p2)  ;;  %vm208_vm0 = vcmask (!%p138_p2), 253952  }
   0x6   : > { %141 = sbr.rel (%p138_p2) target bundleno = 41 (0x29), region = 32  ;;  %v176_v2 = vld [vmem:[%s360_s1 + $0x2] sm:$0x1] (!%p138_p2)  ;;  %v181_v3 = vld [vmem:[%s360_s1 + $0x3] sm:$0x1] (!%p138_p2) }
   0x7   : > { %v185_v12 = vld [vmem:[%s360_s1 + $0x4] sm:$0x1] (!%p138_p2)  ;;  %v189_v16 = vld [vmem:[%s360_s1 + $0x5] sm:$0x1] (!%p138_p2)  ;;  %v194_v20 = vld [vmem:[%s360_s1 + $0x6] sm:$0x1] (!%p138_p2) }
   0x8   : > { %v198_v24 = vld [vmem:[%s360_s1 + $0x7] sm:$0x1] (!%p138_p2)  ;;  %v202_v28 = vld [vmem:[%s360_s1 + $0x8] sm:$0x1] (!%p138_p2)  ;;  %v205_v34 = vld [vmem:[%s361_s2] sm:$0x1] (!%p138_p2) }
   0xd   : > { %s364_s13 = smov (!%p159_p3, %s257_s13), 1 }
   0xe   : > { %s271_s14 = smul.u32 12, %s364_s13  ;;  %s166_s15 = scalar_lea.vmem %s362_s3, %s364_s13 }
  0x10   : > { %s163_s23 = scalar_lea.vmem %s359_s0, %s271_s14 }
  0x11   : > { %v167_v4 = vld [vmem:[%s163_s23] sm:$0x1]  ;;  %v171_v5 = vld [vmem:[%s163_s23 + $0x1] sm:$0x1]  ;;  %v175_v6 = vld [vmem:[%s163_s23 + $0x2] sm:$0x1] }
  0x12   : > { %v169_v7 = vmul.f32 %v168_v0, %v167_v4  ;;  %v173_v8 = vmul.f32 %v172_v1, %v171_v5  ;;  %v177_v9 = vmul.f32 %v176_v2, %v175_v6  ;;  %v263_v10 = vld [vmem:[%s163_s23 + $0x4] sm:$0x1]  ;;  %v264_v11 = vld [vmem:[%s163_s23 + $0x5] sm:$0x1]  ;;  %v265_v15 = vld [vmem:[%s163_s23 + $0x6] sm:$0x1] }
  0x13   : > { %v182_v14 = vmul.f32 %v263_v10, %v181_v3  ;;  %v186_v18 = vmul.f32 %v264_v11, %v185_v12  ;;  %v266_v19 = vld [vmem:[%s163_s23 + $0x8] sm:$0x1]  ;;  %v190_v22 = vmul.f32 %v265_v15, %v189_v16  ;;  %v267_v23 = vld [vmem:[%s163_s23 + $0x9] sm:$0x1]  ;;  %v268_v27 = vld [vmem:[%s163_s23 + $0xa] sm:$0x1] }
  0x14   : > { %v174_v13 = vadd.f32 %v173_v8, %v169_v7  ;;  %v195_v26 = vmul.f32 %v266_v19, %v194_v20  ;;  %v199_v30 = vmul.f32 %v267_v23, %v198_v24  ;;  %v203_v32 = vmul.f32 %v268_v27, %v202_v28 }
  0x16   : > { %v178_v17 = vadd.f32 %v177_v9, %v174_v13 }
  0x18   : > { %v183_v21 = vadd.f32 %v182_v14, %v178_v17 }
  0x1a   : > { %v187_v25 = vadd.f32 %v186_v18, %v183_v21 }
  0x1c   : > { %v191_v29 = vadd.f32 %v190_v22, %v187_v25 }
  0x1e   : > { %v196_v31 = vadd.f32 %v195_v26, %v191_v29 }
  0x20   : > { %v200_v33 = vadd.f32 %v199_v30, %v196_v31 }
  0x22   : > { %v204_v35 = vadd.f32 %v203_v32, %v200_v33 }
  0x24   : > { %v206_v36 = vadd.f32 %v205_v34, %v204_v35 }
  0x26   : > { %v207_v37 = vadd.f32 %v264_v11, %v206_v36 }
  0x28   : > { %209 = vst.msk [vmem:[%s166_s15] sm:$0x1] %vm208_vm0, %v207_v37 }
  0x29 PF: > { %s13_s12 = sadd.s32 1, %s286_s12  }
  0x2a   : > { %p10_p4 = scmp.ge.s32.totalorder %s13_s12, 4  }
  0x2c   :  { %12 = sbr.rel (!%p10_p4) target bundleno = 1 (0x1), region = 64 }

// kernel: block_forward.17
= control target key start
LH: loop header
LB: loop body
LE: loop exit
PB: predicated region body
PF: predicated region fallthrough
CT: control target
= control target key end

     0   :  { %vm51_vm0 = vcmask 261120   ;;  %vm870_vm1 = vcmask 523264   ;;  %s1828_s0 = inlined_call_operand.vmem [shape: f32[256,32], index: 0, kind: input, shape index: {}]   ;;  %s1829_s3 = inlined_call_operand.vmem [shape: f32[32,64], index: 3, kind: input, shape index: {}]   ;;  %s1830_s1 = inlined_call_operand.vmem [shape: f32[1,32], index: 1, kind: input, shape index: {}]   ;;  %s1831_s2 = inlined_call_operand.vmem [shape: f32[1,32], index: 2, kind: input, shape index: {}]   ;;  %s1832_s4 = inlined_call_operand.vmem [shape: f32[256,64], index: 4, kind: output, shape index: {}]  }
   0x1   :  { %v1137_v0 = vld [vmem:[%s1828_s0] sm:$0xff]  ;;  %v1142_v1 = vld [vmem:[%s1828_s0 + $0x8] sm:$0xff]  ;;  %v1165_v8 = vld [vmem:[%s1828_s0 + $0x10] sm:$0xff] }
   0x2   :  { %v1147_v2 = vld [vmem:[%s1828_s0 + $0x80] sm:$0xff]  ;;  %v52_v3 = vsel %vm51_vm0, %v1137_v0, 0.0  ;;  %v55_v4 = vsel %vm51_vm0, %v1142_v1, 0.0  ;;  %v1156_v5 = vld [vmem:[%s1828_s0 + $0x88] sm:$0xff]  ;;  %v1170_v9 = vld [vmem:[%s1828_s0 + $0x90] sm:$0xff]  ;;  %v58_v10 = vsel %vm51_vm0, %v1165_v8, 0.0 }
   0x3   :  { %53 = vadd.xlane.f32.xlu0 %v52_v3  ;;  %56 = vadd.xlane.f32.xlu1 %v55_v4  ;;  %v100_v6 = vsel %vm51_vm0, %v1147_v2, 0.0  ;;  %v103_v7 = vsel %vm51_vm0, %v1156_v5, 0.0  ;;  %v106_v11 = vsel %vm51_vm0, %v1170_v9, 0.0  ;;  %v1179_v12 = vld [vmem:[%s1828_s0 + $0x18] sm:$0xff]  ;;  %v1193_v16 = vld [vmem:[%s1828_s0 + $0x20] sm:$0xff]  ;;  %v1207_v20 = vld [vmem:[%s1828_s0 + $0x28] sm:$0xff] }
   0x4   :  { %v1184_v13 = vld [vmem:[%s1828_s0 + $0x98] sm:$0xff]  ;;  %v61_v14 = vsel %vm51_vm0, %v1179_v12, 0.0  ;;  %v1198_v17 = vld [vmem:[%s1828_s0 + $0xa0] sm:$0xff]  ;;  %v64_v18 = vsel %vm51_vm0, %v1193_v16, 0.0  ;;  %v1212_v21 = vld [vmem:[%s1828_s0 + $0xa8] sm:$0xff]  ;;  %v67_v22 = vsel %vm51_vm0, %v1207_v20, 0.0 }
   0x5   :  { %v109_v15 = vsel %vm51_vm0, %v1184_v13, 0.0  ;;  %v112_v19 = vsel %vm51_vm0, %v1198_v17, 0.0  ;;  %v115_v23 = vsel %vm51_vm0, %v1212_v21, 0.0  ;;  %v1221_v24 = vld [vmem:[%s1828_s0 + $0x30] sm:$0xff]  ;;  %v1235_v28 = vld [vmem:[%s1828_s0 + $0x38] sm:$0xff]  ;;  %v1249_v32 = vld [vmem:[%s1828_s0 + $0x40] sm:$0xff] }
   0x6   :  { %v1226_v25 = vld [vmem:[%s1828_s0 + $0xb0] sm:$0xff]  ;;  %v70_v26 = vsel %vm51_vm0, %v1221_v24, 0.0  ;;  %v1240_v29 = vld [vmem:[%s1828_s0 + $0xb8] sm:$0xff]  ;;  %v73_v30 = vsel %vm51_vm0, %v1235_v28, 0.0  ;;  %v1254_v33 = vld [vmem:[%s1828_s0 + $0xc0] sm:$0xff]  ;;  %v76_v34 = vsel %vm51_vm0, %v1249_v32, 0.0 }
   0x7   :  { %101 = vadd.xlane.f32.xlu0 %v100_v6  ;;  %104 = vadd.xlane.f32.xlu1 %v103_v7  ;;  %v118_v27 = vsel %vm51_vm0, %v1226_v25, 0.0  ;;  %v121_v31 = vsel %vm51_vm0, %v1240_v29, 0.0  ;;  %v124_v35 = vsel %vm51_vm0, %v1254_v33, 0.0  ;;  %v1263_v36 = vld [vmem:[%s1828_s0 + $0x48] sm:$0xff]  ;;  %v1277_v40 = vld [vmem:[%s1828_s0 + $0x50] sm:$0xff]  ;;  %v1291_v44 = vld [vmem:[%s1828_s0 + $0x58] sm:$0xff] }
   0x8   :  { %v1268_v37 = vld [vmem:[%s1828_s0 + $0xc8] sm:$0xff]  ;;  %v79_v38 = vsel %vm51_vm0, %v1263_v36, 0.0  ;;  %v1282_v41 = vld [vmem:[%s1828_s0 + $0xd0] sm:$0xff]  ;;  %v82_v42 = vsel %vm51_vm0, %v1277_v40, 0.0  ;;  %v1296_v45 = vld [vmem:[%s1828_s0 + $0xd8] sm:$0xff]  ;;  %v85_v46 = vsel %vm51_vm0, %v1291_v44, 0.0 }
   0x9   :  { %v127_v39 = vsel %vm51_vm0, %v1268_v37, 0.0  ;;  %v130_v43 = vsel %vm51_vm0, %v1282_v41, 0.0  ;;  %v133_v47 = vsel %vm51_vm0, %v1296_v45, 0.0  ;;  %v1305_v48 = vld [vmem:[%s1828_s0 + $0x60] sm:$0xff]  ;;  %v1319_v52 = vld [vmem:[%s1828_s0 + $0x68] sm:$0xff]  ;;  %v1333_v56 = vld [vmem:[%s1828_s0 + $0x70] sm:$0xff] }
   0xa   :  { %v1310_v49 = vld [vmem:[%s1828_s0 + $0xe0] sm:$0xff]  ;;  %v88_v50 = vsel %vm51_vm0, %v1305_v48, 0.0  ;;  %v1324_v53 = vld [vmem:[%s1828_s0 + $0xe8] sm:$0xff]  ;;  %v91_v54 = vsel %vm51_vm0, %v1319_v52, 0.0  ;;  %v1338_v57 = vld [vmem:[%s1828_s0 + $0xf0] sm:$0xff]  ;;  %v94_v58 = vsel %vm51_vm0, %v1333_v56, 0.0 }
   0xb   :  { %59 = vadd.xlane.f32.xlu0 %v58_v10  ;;  %107 = vadd.xlane.f32.xlu1 %v106_v11  ;;  %v136_v51 = vsel %vm51_vm0, %v1310_v49, 0.0  ;;  %v139_v55 = vsel %vm51_vm0, %v1324_v53, 0.0  ;;  %v142_v59 = vsel %vm51_vm0, %v1338_v57, 0.0  ;;  %v1347_v60 = vld [vmem:[%s1828_s0 + $0x78] sm:$0xff] }
   0xc   :  { %v1352_v61 = vld [vmem:[%s1828_s0 + $0xf8] sm:$0xff]  ;;  %v97_v62 = vsel %vm51_vm0, %v1347_v60, 0.0 }
   0xd   :  { %v145_v63 = vsel %vm51_vm0, %v1352_v61, 0.0 }
   0xf   :  { %62 = vadd.xlane.f32.xlu0 %v61_v14  ;;  %110 = vadd.xlane.f32.xlu1 %v109_v15 }
  0x13   :  { %65 = vadd.xlane.f32.xlu0 %v64_v18  ;;  %113 = vadd.xlane.f32.xlu1 %v112_v19 }
  0x17   :  { %68 = vadd.xlane.f32.xlu0 %v67_v22  ;;  %116 = vadd.xlane.f32.xlu1 %v115_v23 }
  0x1b   :  { %71 = vadd.xlane.f32.xlu0 %v70_v26  ;;  %119 = vadd.xlane.f32.xlu1 %v118_v27 }
  0x1f   :  { %74 = vadd.xlane.f32.xlu0 %v73_v30  ;;  %122 = vadd.xlane.f32.xlu1 %v121_v31 }
  0x23   :  { %77 = vadd.xlane.f32.xlu0 %v76_v34  ;;  %125 = vadd.xlane.f32.xlu1 %v124_v35 }
  0x27   :  { %80 = vadd.xlane.f32.xlu0 %v79_v38  ;;  %128 = vadd.xlane.f32.xlu1 %v127_v39 }
  0x2b   :  { %83 = vadd.xlane.f32.xlu0 %v82_v42  ;;  %131 = vadd.xlane.f32.xlu1 %v130_v43 }
  0x2f   :  { %86 = vadd.xlane.f32.xlu0 %v85_v46  ;;  %134 = vadd.xlane.f32.xlu1 %v133_v47 }
  0x33   :  { %89 = vadd.xlane.f32.xlu0 %v88_v50  ;;  %137 = vadd.xlane.f32.xlu1 %v136_v51 }
  0x37   :  { %92 = vadd.xlane.f32.xlu0 %v91_v54  ;;  %140 = vadd.xlane.f32.xlu1 %v139_v55 }
  0x3b   :  { %95 = vadd.xlane.f32.xlu0 %v94_v58  ;;  %143 = vadd.xlane.f32.xlu1 %v142_v59 }
  0x3f   :  { %98 = vadd.xlane.f32.xlu0 %v97_v62  ;;  %146 = vadd.xlane.f32.xlu1 %v145_v63 }
  0x90   :  { %v54_v3 = vpop.xlane.xlu0 %53  ;;  %v57_v4 = vpop.xlane.xlu1 %56 }
  0x91   :  { %v149_v6 = vmul.f32 0.03125, %v54_v3  ;;  %v150_v7 = vmul.f32 0.03125, %v57_v4 }
  0x93   :  { %v1359_v10 = vsub.f32 %v1137_v0, %v149_v6  ;;  %v1362_v11 = vsub.f32 %v1142_v1, %v150_v7 }
  0x94   :  { %v102_v14 = vpop.xlane.xlu0 %101  ;;  %v105_v15 = vpop.xlane.xlu1 %104 }
  0x95   :  { %v165_v18 = vmul.f32 0.03125, %v102_v14  ;;  %v166_v19 = vmul.f32 0.03125, %v105_v15  ;;  %v213_v22 = vmul.f32 %v1359_v10, %v1359_v10  ;;  %v214_v23 = vmul.f32 %v1362_v11, %v1362_v11 }
  0x97   :  { %v1369_v26 = vsub.f32 %v1147_v2, %v165_v18  ;;  %v1372_v27 = vsub.f32 %v1156_v5, %v166_v19  ;;  %v245_v0 = vsel %vm51_vm0, %v213_v22, 0.0  ;;  %v248_v31 = vsel %vm51_vm0, %v214_v23, 0.0 }
  0x98   :  { %246 = vadd.xlane.f32.xlu0 %v245_v0  ;;  %v60_v1 = vpop.xlane.xlu0 %59  ;;  %v108_v30 = vpop.xlane.xlu1 %107 }
  0x99   :  { %v151_v34 = vmul.f32 0.03125, %v60_v1  ;;  %v167_v35 = vmul.f32 0.03125, %v108_v30  ;;  %v229_v38 = vmul.f32 %v1369_v26, %v1369_v26  ;;  %v230_v39 = vmul.f32 %v1372_v27, %v1372_v27 }
  0x9b   :  { %v1381_v2 = vsub.f32 %v1165_v8, %v151_v34  ;;  %v1384_v5 = vsub.f32 %v1170_v9, %v167_v35  ;;  %v293_v42 = vsel %vm51_vm0, %v229_v38, 0.0  ;;  %v296_v47 = vsel %vm51_vm0, %v230_v39, 0.0 }
  0x9c   :  { %249 = vadd.xlane.f32.xlu0 %v248_v31  ;;  %294 = vadd.xlane.f32.xlu1 %v293_v42  ;;  %v63_v43 = vpop.xlane.xlu0 %62  ;;  %v111_v46 = vpop.xlane.xlu1 %110 }
  0x9d   :  { %v152_v50 = vmul.f32 0.03125, %v63_v43  ;;  %v168_v51 = vmul.f32 0.03125, %v111_v46  ;;  %v215_v54 = vmul.f32 %v1381_v2, %v1381_v2  ;;  %v231_v8 = vmul.f32 %v1384_v5, %v1384_v5 }
  0x9f   :  { %v1393_v55 = vsub.f32 %v1179_v12, %v152_v50  ;;  %v1396_v9 = vsub.f32 %v1184_v13, %v168_v51  ;;  %v251_v58 = vsel %vm51_vm0, %v215_v54, 0.0  ;;  %v299_v63 = vsel %vm51_vm0, %v231_v8, 0.0 }
  0xa0   :  { %297 = vadd.xlane.f32.xlu1 %v296_v47  ;;  %252 = vadd.xlane.f32.xlu0 %v251_v58  ;;  %v66_v59 = vpop.xlane.xlu0 %65  ;;  %v114_v62 = vpop.xlane.xlu1 %113 }
  0xa1   :  { %v153_v3 = vmul.f32 0.03125, %v66_v59  ;;  %v169_v4 = vmul.f32 0.03125, %v114_v62  ;;  %v216_v6 = vmul.f32 %v1393_v55, %v1393_v55  ;;  %v232_v12 = vmul.f32 %v1396_v9, %v1396_v9 }
  0xa3   :  { %v1405_v7 = vsub.f32 %v1193_v16, %v153_v3  ;;  %v1408_v13 = vsub.f32 %v1198_v17, %v169_v4  ;;  %v254_v14 = vsel %vm51_vm0, %v216_v6, 0.0  ;;  %v302_v19 = vsel %vm51_vm0, %v232_v12, 0.0 }
  0xa4   :  { %300 = vadd.xlane.f32.xlu1 %v299_v63  ;;  %255 = vadd.xlane.f32.xlu0 %v254_v14  ;;  %v69_v15 = vpop.xlane.xlu0 %68  ;;  %v117_v18 = vpop.xlane.xlu1 %116 }
  0xa5   :  { %v154_v22 = vmul.f32 0.03125, %v69_v15  ;;  %v170_v23 = vmul.f32 0.03125, %v117_v18  ;;  %v217_v0 = vmul.f32 %v1405_v7, %v1405_v7  ;;  %v233_v16 = vmul.f32 %v1408_v13, %v1408_v13 }
  0xa7   :  { %v1417_v1 = vsub.f32 %v1207_v20, %v154_v22  ;;  %v1420_v17 = vsub.f32 %v1212_v21, %v170_v23  ;;  %v257_v30 = vsel %vm51_vm0, %v217_v0, 0.0  ;;  %v305_v35 = vsel %vm51_vm0, %v233_v16, 0.0 }
  0xa8   :  { %303 = vadd.xlane.f32.xlu1 %v302_v19  ;;  %258 = vadd.xlane.f32.xlu0 %v257_v30  ;;  %v72_v31 = vpop.xlane.xlu0 %71  ;;  %v120_v34 = vpop.xlane.xlu1 %119 }
  0xa9   :  { %v155_v38 = vmul.f32 0.03125, %v72_v31  ;;  %v171_v39 = vmul.f32 0.03125, %v120_v34  ;;  %v218_v42 = vmul.f32 %v1417_v1, %v1417_v1  ;;  %v234_v20 = vmul.f32 %v1420_v17, %v1420_v17  ;;  %v546_v31 = vld [vmem:[%s1829_s3 + $0x8] sm:$0xff] }
  0xab   :  { %v1429_v43 = vsub.f32 %v1221_v24, %v155_v38  ;;  %v1432_v21 = vsub.f32 %v1226_v25, %v171_v39  ;;  %v260_v46 = vsel %vm51_vm0, %v218_v42, 0.0  ;;  %v308_v51 = vsel %vm51_vm0, %v234_v20, 0.0 }
  0xac   :  { %306 = vadd.xlane.f32.xlu1 %v305_v35  ;;  %261 = vadd.xlane.f32.xlu0 %v260_v46  ;;  %v75_v47 = vpop.xlane.xlu0 %74  ;;  %v123_v50 = vpop.xlane.xlu1 %122 }
  0xad   :  { %v156_v54 = vmul.f32 0.03125, %v75_v47  ;;  %v172_v8 = vmul.f32 0.03125, %v123_v50  ;;  %v219_v58 = vmul.f32 %v1429_v43, %v1429_v43  ;;  %v235_v24 = vmul.f32 %v1432_v21, %v1432_v21 }
  0xaf   :  { %v1441_v59 = vsub.f32 %v1235_v28, %v156_v54  ;;  %v1444_v25 = vsub.f32 %v1240_v29, %v172_v8  ;;  %v263_v62 = vsel %vm51_vm0, %v219_v58, 0.0  ;;  %v311_v4 = vsel %vm51_vm0, %v235_v24, 0.0  ;;  %v548_v54 = vld [vmem:[%s1829_s3 + $0x18] sm:$0xff] }
  0xb0   :  { %309 = vadd.xlane.f32.xlu1 %v308_v51  ;;  %264 = vadd.xlane.f32.xlu0 %v263_v62  ;;  %v78_v63 = vpop.xlane.xlu0 %77  ;;  %v126_v3 = vpop.xlane.xlu1 %125 }
  0xb1   :  { %v157_v6 = vmul.f32 0.03125, %v78_v63  ;;  %v173_v12 = vmul.f32 0.03125, %v126_v3  ;;  %v220_v14 = vmul.f32 %v1441_v59, %v1441_v59  ;;  %v236_v28 = vmul.f32 %v1444_v25, %v1444_v25 }
  0xb3   :  { %v1453_v15 = vsub.f32 %v1249_v32, %v157_v6  ;;  %v1456_v29 = vsub.f32 %v1254_v33, %v173_v12  ;;  %v266_v18 = vsel %vm51_vm0, %v220_v14, 0.0  ;;  %v314_v23 = vsel %vm51_vm0, %v236_v28, 0.0  ;;  %v545_v33 = vld [vmem:[%s1829_s3] sm:$0xff] }
  0xb4   :  { %312 = vadd.xlane.f32.xlu1 %v311_v4  ;;  %267 = vadd.xlane.f32.xlu0 %v266_v18  ;;  %v81_v19 = vpop.xlane.xlu0 %80  ;;  %v129_v22 = vpop.xlane.xlu1 %128  ;;  %v1033_v34 = vpack.c.bf16 %v546_v31, %v545_v33 }
  0xb5   :  { %v158_v0 = vmul.f32 0.03125, %v81_v19  ;;  %v174_v16 = vmul.f32 0.03125, %v129_v22  ;;  %v221_v30 = vmul.f32 %v1453_v15, %v1453_v15  ;;  %v237_v32 = vmul.f32 %v1456_v29, %v1456_v29 }
  0xb6   :  { %1034 = vmatprep.subr.bf16.mxu0 %v1033_v34  ;;  %1041 = vmatprep.subr.bf16.mxu1 %v1033_v34 }
  0xb7   :  { %v1471_v35 = vsub.f32 %v1263_v36, %v158_v0  ;;  %v1474_v38 = vsub.f32 %v1268_v37, %v174_v16  ;;  %v269_v39 = vsel %vm51_vm0, %v221_v30, 0.0  ;;  %v317_v46 = vsel %vm51_vm0, %v237_v32, 0.0  ;;  %v547_v37 = vld [vmem:[%s1829_s3 + $0x10] sm:$0xff]  ;;  %1036 = vmatpush3.bf16.msra.mxu0 %v1033_v34  ;;  %1043 = vmatpush3.bf16.msra.mxu1 %v1033_v34 }
  0xb8   :  { %315 = vadd.xlane.f32.xlu1 %v314_v23  ;;  %270 = vadd.xlane.f32.xlu0 %v269_v39  ;;  %v84_v42 = vpop.xlane.xlu0 %83  ;;  %v132_v20 = vpop.xlane.xlu1 %131  ;;  %v1037_v8 = vpack.c.bf16 %v548_v54, %v547_v37 }
  0xb9   :  { %v159_v47 = vmul.f32 0.03125, %v84_v42  ;;  %v175_v50 = vmul.f32 0.03125, %v132_v20  ;;  %v222_v51 = vmul.f32 %v1471_v35, %v1471_v35  ;;  %v238_v36 = vmul.f32 %v1474_v38, %v1474_v38 }
  0xba   :  { %1038 = vmatprep.subr.bf16.mxu0 %v1037_v8  ;;  %1042 = vmatprep.subr.bf16.mxu1 %v1037_v8 }
  0xbb   :  { %v1489_v58 = vsub.f32 %v1277_v40, %v159_v47  ;;  %v1492_v24 = vsub.f32 %v1282_v41, %v175_v50  ;;  %v272_v62 = vsel %vm51_vm0, %v222_v51, 0.0  ;;  %v320_v4 = vsel %vm51_vm0, %v238_v36, 0.0  ;;  %1040 = vmatpush3.bf16.msra.mxu0 %v1037_v8  ;;  %1044 = vmatpush3.bf16.msra.mxu1 %v1037_v8 }
  0xbc   :  { %318 = vadd.xlane.f32.xlu1 %v317_v46  ;;  %273 = vadd.xlane.f32.xlu0 %v272_v62  ;;  %v87_v63 = vpop.xlane.xlu0 %86  ;;  %v135_v3 = vpop.xlane.xlu1 %134 }
  0xbd   :  { %v160_v6 = vmul.f32 0.03125, %v87_v63  ;;  %v176_v12 = vmul.f32 0.03125, %v135_v3  ;;  %v223_v14 = vmul.f32 %v1489_v58, %v1489_v58  ;;  %v239_v40 = vmul.f32 %v1492_v24, %v1492_v24 }
  0xbf   :  { %v1501_v41 = vsub.f32 %v1291_v44, %v160_v6  ;;  %v1504_v28 = vsub.f32 %v1296_v45, %v176_v12  ;;  %v275_v18 = vsel %vm51_vm0, %v223_v14, 0.0  ;;  %v323_v23 = vsel %vm51_vm0, %v239_v40, 0.0 }
  0xc0   :  { %321 = vadd.xlane.f32.xlu1 %v320_v4  ;;  %276 = vadd.xlane.f32.xlu0 %v275_v18  ;;  %v90_v19 = vpop.xlane.xlu0 %89  ;;  %v138_v22 = vpop.xlane.xlu1 %137 }
  0xc1   :  { %v161_v0 = vmul.f32 0.03125, %v90_v19  ;;  %v177_v16 = vmul.f32 0.03125, %v138_v22  ;;  %v224_v30 = vmul.f32 %v1501_v41, %v1501_v41  ;;  %v240_v44 = vmul.f32 %v1504_v28, %v1504_v28 }
  0xc3   :  { %v1513_v32 = vsub.f32 %v1305_v48, %v161_v0  ;;  %v1516_v45 = vsub.f32 %v1310_v49, %v177_v16  ;;  %v278_v33 = vsel %vm51_vm0, %v224_v30, 0.0  ;;  %v326_v39 = vsel %vm51_vm0, %v240_v44, 0.0 }
  0xc4   :  { %324 = vadd.xlane.f32.xlu1 %v323_v23  ;;  %279 = vadd.xlane.f32.xlu0 %v278_v33  ;;  %v93_v31 = vpop.xlane.xlu0 %92  ;;  %v141_v34 = vpop.xlane.xlu1 %140 }
  0xc5   :  { %v162_v42 = vmul.f32 0.03125, %v93_v31  ;;  %v178_v20 = vmul.f32 0.03125, %v141_v34  ;;  %v225_v46 = vmul.f32 %v1513_v32, %v1513_v32  ;;  %v241_v48 = vmul.f32 %v1516_v45, %v1516_v45 }
  0xc7   :  { %v1525_v47 = vsub.f32 %v1319_v52, %v162_v42  ;;  %v1528_v49 = vsub.f32 %v1324_v53, %v178_v20  ;;  %v281_v50 = vsel %vm51_vm0, %v225_v46, 0.0  ;;  %v329_v37 = vsel %vm51_vm0, %v241_v48, 0.0 }
  0xc8   :  { %327 = vadd.xlane.f32.xlu1 %v326_v39  ;;  %282 = vadd.xlane.f32.xlu0 %v281_v50  ;;  %v96_v51 = vpop.xlane.xlu0 %95  ;;  %v144_v36 = vpop.xlane.xlu1 %143 }
  0xc9   :  { %v163_v54 = vmul.f32 0.03125, %v96_v51  ;;  %v179_v8 = vmul.f32 0.03125, %v144_v36  ;;  %v226_v62 = vmul.f32 %v1525_v47, %v1525_v47  ;;  %v242_v52 = vmul.f32 %v1528_v49, %v1528_v49 }
  0xcb   :  { %v1537_v63 = vsub.f32 %v1333_v56, %v163_v54  ;;  %v1540_v53 = vsub.f32 %v1338_v57, %v179_v8  ;;  %v284_v3 = vsel %vm51_vm0, %v226_v62, 0.0  ;;  %v332_v12 = vsel %vm51_vm0, %v242_v52, 0.0 }
  0xcc   :  { %330 = vadd.xlane.f32.xlu1 %v329_v37  ;;  %285 = vadd.xlane.f32.xlu0 %v284_v3  ;;  %v99_v4 = vpop.xlane.xlu0 %98  ;;  %v147_v6 = vpop.xlane.xlu1 %146 }
  0xcd   :  { %v164_v14 = vmul.f32 0.03125, %v99_v4  ;;  %v180_v40 = vmul.f32 0.03125, %v147_v6  ;;  %v227_v18 = vmul.f32 %v1537_v63, %v1537_v63  ;;  %v243_v56 = vmul.f32 %v1540_v53, %v1540_v53 }
  0xcf   :  { %v1549_v19 = vsub.f32 %v1347_v60, %v164_v14  ;;  %v1552_v57 = vsub.f32 %v1352_v61, %v180_v40  ;;  %v287_v22 = vsel %vm51_vm0, %v227_v18, 0.0  ;;  %v335_v23 = vsel %vm51_vm0, %v243_v56, 0.0  ;;  %v1565_v14 = vld [vmem:[%s1830_s1] ss:$0 sm:$0xff] }
  0xd0   :  { %333 = vadd.xlane.f32.xlu1 %v332_v12  ;;  %288 = vadd.xlane.f32.xlu0 %v287_v22 }
  0xd1   :  { %v228_v0 = vmul.f32 %v1549_v19, %v1549_v19  ;;  %v244_v16 = vmul.f32 %v1552_v57, %v1552_v57 }
  0xd3   :  { %v290_v30 = vsel %vm51_vm0, %v228_v0, 0.0  ;;  %v338_v60 = vsel %vm51_vm0, %v244_v16, 0.0  ;;  %v1571_v0 = vld [vmem:[%s1831_s2] ss:$0 sm:$0xff] }
  0xd4   :  { %336 = vadd.xlane.f32.xlu1 %v335_v23  ;;  %291 = vadd.xlane.f32.xlu0 %v290_v30 }
  0xd8   :  { %339 = vadd.xlane.f32.xlu1 %v338_v60 }
 0x125   :  { %v247_v61 = vpop.xlane.xlu0 %246 }
 0x126   :  { %v341_v44 = vmul.f32 0.03125, %v247_v61 }
 0x128   :  { %v373_v33 = vadd.f32 1e-05, %v341_v44 }
 0x129   :  { %v295_v31 = vpop.xlane.xlu1 %294  ;;  %v250_v34 = vpop.xlane.xlu0 %249 }
 0x12a   :  { %1045 = vrsqrt.f32 %v373_v33  ;;  %v357_v39 = vmul.f32 0.03125, %v295_v31  ;;  %v342_v42 = vmul.f32 0.03125, %v250_v34 }
 0x12c   :  { %v389_v20 = vadd.f32 1e-05, %v357_v39  ;;  %v374_v46 = vadd.f32 1e-05, %v342_v42 }
 0x12d   :  { %v298_v48 = vpop.xlane.xlu1 %297  ;;  %v253_v50 = vpop.xlane.xlu0 %252 }
 0x12e   :  { %1047 = vrsqrt.f32 %v389_v20  ;;  %v358_v51 = vmul.f32 0.03125, %v298_v48  ;;  %v343_v36 = vmul.f32 0.03125, %v253_v50 }
 0x12f   :  { %1049 = vrsqrt.f32 %v374_v46 }
 0x130   :  { %v390_v37 = vadd.f32 1e-05, %v358_v51  ;;  %v375_v54 = vadd.f32 1e-05, %v343_v36 }
 0x131   :  { %v301_v8 = vpop.xlane.xlu1 %300  ;;  %v256_v62 = vpop.xlane.xlu0 %255 }
 0x132   :  { %1051 = vrsqrt.f32 %v390_v37  ;;  %v359_v52 = vmul.f32 0.03125, %v301_v8  ;;  %v344_v3 = vmul.f32 0.03125, %v256_v62 }
 0x133   :  { %1053 = vrsqrt.f32 %v375_v54 }
 0x134   :  { %v1046_v4 = vpop.eup %1045  ;;  %v391_v6 = vadd.f32 1e-05, %v359_v52  ;;  %v376_v12 = vadd.f32 1e-05, %v344_v3 }
 0x135   :  { %v304_v40 = vpop.xlane.xlu1 %303  ;;  %v259_v18 = vpop.xlane.xlu0 %258  ;;  %v437_v56 = vmul.f32 %v1046_v4, %v1359_v10 }
 0x136   :  { %1055 = vrsqrt.f32 %v391_v6  ;;  %v360_v22 = vmul.f32 0.03125, %v304_v40  ;;  %v345_v23 = vmul.f32 0.03125, %v259_v18 }
 0x137   :  { %1057 = vrsqrt.f32 %v376_v12  ;;  %v475_v16 = vmul.f32 %v1565_v14, %v437_v56 }
 0x138   :  { %v1048_v30 = vpop.eup %1047  ;;  %v392_v60 = vadd.f32 1e-05, %v360_v22  ;;  %v377_v61 = vadd.f32 1e-05, %v345_v23 }
 0x139   :  { %v1050_v44 = vpop.eup %1049  ;;  %v307_v33 = vpop.xlane.xlu1 %306  ;;  %v513_v34 = vadd.f32 %v1571_v0, %v475_v16  ;;  %v453_v10 = vmul.f32 %v1048_v30, %v1369_v26 }
 0x13a   :  { %v262_v31 = vpop.xlane.xlu0 %261  ;;  %1059 = vrsqrt.f32 %v392_v60  ;;  %v361_v39 = vmul.f32 0.03125, %v307_v33  ;;  %v438_v20 = vmul.f32 %v1050_v44, %v1362_v11 }
 0x13b   :  { %v346_v42 = vmul.f32 0.03125, %v262_v31  ;;  %1061 = vrsqrt.f32 %v377_v61  ;;  %985 = vmatprep.mubr.msk.f32.mxu0 %vm51_vm0, %v513_v34  ;;  %v491_v46 = vmul.f32 %v1565_v14, %v453_v10 }
 0x13c   :  { %v1052_v48 = vpop.eup %1051  ;;  %v393_v50 = vadd.f32 1e-05, %v361_v39  ;;  %v476_v36 = vmul.f32 %v1565_v14, %v438_v20 }
 0x13d   :  { %v378_v51 = vadd.f32 1e-05, %v346_v42  ;;  %v1054_v37 = vpop.eup %1053  ;;  %v310_v54 = vpop.xlane.xlu1 %309  ;;  %v529_v26 = vadd.f32 %v1571_v0, %v491_v46  ;;  %v454_v62 = vmul.f32 %v1052_v48, %v1372_v27 }
 0x13e   :  { %v265_v8 = vpop.xlane.xlu0 %264  ;;  %1063 = vrsqrt.f32 %v393_v50  ;;  %v362_v52 = vmul.f32 0.03125, %v310_v54  ;;  %v514_v3 = vadd.f32 %v1571_v0, %v476_v36  ;;  %v439_v4 = vmul.f32 %v1054_v37, %v1381_v2 }
 0x13f   :  { %v347_v11 = vmul.f32 0.03125, %v265_v8  ;;  %1065 = vrsqrt.f32 %v378_v51  ;;  %1009 = vmatprep.mubr.msk.f32.mxu1 %vm51_vm0, %v529_v26  ;;  %v492_v6 = vmul.f32 %v1565_v14, %v454_v62 }
 0x140   :  { %v1056_v12 = vpop.eup %1055  ;;  %v394_v40 = vadd.f32 1e-05, %v362_v52  ;;  %986 = vmatmul.mubr.msk.f32.vlgmr.msra.gmra.mrb[0].mxu0 %vm51_vm0, %v514_v3  ;;  %v477_v23 = vmul.f32 %v1565_v14, %v439_v4 }
 0x141   :  { %v379_v18 = vadd.f32 1e-05, %v347_v11  ;;  %v1058_v56 = vpop.eup %1057  ;;  %v313_v22 = vpop.xlane.xlu1 %312  ;;  %v530_v16 = vadd.f32 %v1571_v0, %v492_v6  ;;  %v455_v30 = vmul.f32 %v1056_v12, %v1384_v5 }
 0x142   :  { %v268_v27 = vpop.xlane.xlu0 %267  ;;  %1067 = vrsqrt.f32 %v394_v40  ;;  %v363_v60 = vmul.f32 0.03125, %v313_v22  ;;  %v440_v2 = vmul.f32 %v1058_v56, %v1393_v55  ;;  %v515_v44 = vadd.f32 %v1571_v0, %v477_v23 }
 0x143   :  { %v348_v61 = vmul.f32 0.03125, %v268_v27  ;;  %1069 = vrsqrt.f32 %v379_v18  ;;  %1010 = vmatmul.mubr.msk.f32.vlgmr.msra.gmra.mrb[0].mxu1 %vm51_vm0, %v530_v16  ;;  %v493_v33 = vmul.f32 %v1565_v14, %v455_v30 }
 0x144   :  { %v1060_v31 = vpop.eup %1059  ;;  %v395_v34 = vadd.f32 1e-05, %v363_v60  ;;  %v478_v39 = vmul.f32 %v1565_v14, %v440_v2  ;;  %988 = vmatprep.mubr.msk.f32.mxu0 %vm51_vm0, %v515_v44 }
 0x145   :  { %v380_v10 = vadd.f32 1e-05, %v348_v61  ;;  %v1062_v42 = vpop.eup %1061  ;;  %v316_v5 = vpop.xlane.xlu1 %315  ;;  %v531_v46 = vadd.f32 %v1571_v0, %v493_v33  ;;  %v456_v55 = vmul.f32 %v1060_v31, %v1396_v9 }
 0x146   :  { %v271_v20 = vpop.xlane.xlu0 %270  ;;  %1071 = vrsqrt.f32 %v395_v34  ;;  %v364_v48 = vmul.f32 0.03125, %v316_v5  ;;  %v516_v51 = vadd.f32 %v1571_v0, %v478_v39  ;;  %v441_v36 = vmul.f32 %v1062_v42, %v1405_v7 }
 0x147   :  { %v349_v50 = vmul.f32 0.03125, %v271_v20  ;;  %1073 = vrsqrt.f32 %v380_v10  ;;  %1012 = vmatprep.mubr.msk.f32.mxu1 %vm51_vm0, %v531_v46  ;;  %v494_v37 = vmul.f32 %v1565_v14, %v456_v55 }
 0x148   :  { %v1064_v54 = vpop.eup %1063  ;;  %v396_v8 = vadd.f32 1e-05, %v364_v48  ;;  %989 = vmatmul.mubr.msk.f32.gmra.mrb[2].mxu0 %vm51_vm0, %v516_v51  ;;  %v479_v11 = vmul.f32 %v1565_v14, %v441_v36 }
 0x149   :  { %v381_v26 = vadd.f32 1e-05, %v349_v50  ;;  %v1066_v62 = vpop.eup %1065  ;;  %v319_v52 = vpop.xlane.xlu1 %318  ;;  %v532_v3 = vadd.f32 %v1571_v0, %v494_v37  ;;  %v457_v4 = vmul.f32 %v1064_v54, %v1408_v13 }
 0x14a   :  { %v274_v9 = vpop.xlane.xlu0 %273  ;;  %1075 = vrsqrt.f32 %v396_v8  ;;  %v365_v6 = vmul.f32 0.03125, %v319_v52  ;;  %v442_v7 = vmul.f32 %v1066_v62, %v1417_v1  ;;  %v517_v40 = vadd.f32 %v1571_v0, %v479_v11 }
 0x14b   :  { %v350_v12 = vmul.f32 0.03125, %v274_v9  ;;  %1077 = vrsqrt.f32 %v381_v26  ;;  %1013 = vmatmul.mubr.msk.f32.gmra.mrb[2].mxu1 %vm51_vm0, %v532_v3  ;;  %v495_v18 = vmul.f32 %v1565_v14, %v457_v4 }
 0x14c   :  { %v1068_v56 = vpop.eup %1067  ;;  %v397_v22 = vadd.f32 1e-05, %v365_v6  ;;  %v480_v23 = vmul.f32 %v1565_v14, %v442_v7  ;;  %991 = vmatprep.mubr.msk.f32.mxu0 %vm51_vm0, %v517_v40 }
 0x14d   :  { %v382_v27 = vadd.f32 1e-05, %v350_v12  ;;  %v1070_v16 = vpop.eup %1069  ;;  %v322_v13 = vpop.xlane.xlu1 %321  ;;  %v533_v60 = vadd.f32 %v1571_v0, %v495_v18  ;;  %v458_v1 = vmul.f32 %v1068_v56, %v1420_v17 }
 0x14e   :  { %v277_v30 = vpop.xlane.xlu0 %276  ;;  %1079 = vrsqrt.f32 %v397_v22  ;;  %v366_v61 = vmul.f32 0.03125, %v322_v13  ;;  %v518_v44 = vadd.f32 %v1571_v0, %v480_v23  ;;  %v443_v33 = vmul.f32 %v1070_v16, %v1429_v43 }
 0x14f   :  { %v351_v2 = vmul.f32 0.03125, %v277_v30  ;;  %1081 = vrsqrt.f32 %v382_v27  ;;  %1015 = vmatprep.mubr.msk.f32.mxu1 %vm51_vm0, %v533_v60  ;;  %v496_v31 = vmul.f32 %v1565_v14, %v458_v1 }
 0x150   :  { %v1072_v34 = vpop.eup %1071  ;;  %v398_v10 = vadd.f32 1e-05, %v366_v61  ;;  %992 = vmatmul.mubr.msk.f32.gmra.mrb[4].mxu0 %vm51_vm0, %v518_v44  ;;  %v481_v20 = vmul.f32 %v1565_v14, %v443_v33 }
 0x151   :  { %v383_v39 = vadd.f32 1e-05, %v351_v2  ;;  %v1074_v42 = vpop.eup %1073  ;;  %v325_v5 = vpop.xlane.xlu1 %324  ;;  %v534_v46 = vadd.f32 %v1571_v0, %v496_v31  ;;  %v459_v55 = vmul.f32 %v1072_v34, %v1432_v21 }
 0x152   :  { %v280_v17 = vpop.xlane.xlu0 %279  ;;  %1083 = vrsqrt.f32 %v398_v10  ;;  %v367_v48 = vmul.f32 0.03125, %v325_v5  ;;  %v444_v43 = vmul.f32 %v1074_v42, %v1441_v59  ;;  %v519_v51 = vadd.f32 %v1571_v0, %v481_v20 }
 0x153   :  { %v352_v50 = vmul.f32 0.03125, %v280_v17  ;;  %1085 = vrsqrt.f32 %v383_v39  ;;  %1016 = vmatmul.mubr.msk.f32.gmra.mrb[4].mxu1 %vm51_vm0, %v534_v46  ;;  %v497_v36 = vmul.f32 %v1565_v14, %v459_v55 }
 0x154   :  { %v1076_v37 = vpop.eup %1075  ;;  %v399_v54 = vadd.f32 1e-05, %v367_v48  ;;  %v482_v26 = vmul.f32 %v1565_v14, %v444_v43  ;;  %994 = vmatprep.mubr.msk.f32.mxu0 %vm51_vm0, %v519_v51 }
 0x155   :  { %v384_v8 = vadd.f32 1e-05, %v352_v50  ;;  %v1078_v62 = vpop.eup %1077  ;;  %v328_v21 = vpop.xlane.xlu1 %327  ;;  %v535_v9 = vadd.f32 %v1571_v0, %v497_v36  ;;  %v460_v59 = vmul.f32 %v1076_v37, %v1444_v25 }
 0x156   :  { %v283_v52 = vpop.xlane.xlu0 %282  ;;  %1087 = vrsqrt.f32 %v399_v54  ;;  %v368_v11 = vmul.f32 0.03125, %v328_v21  ;;  %v520_v4 = vadd.f32 %v1571_v0, %v482_v26  ;;  %v445_v6 = vmul.f32 %v1078_v62, %v1453_v15 }
 0x157   :  { %v353_v3 = vmul.f32 0.03125, %v283_v52  ;;  %1089 = vrsqrt.f32 %v384_v8  ;;  %1018 = vmatprep.mubr.msk.f32.mxu1 %vm51_vm0, %v535_v9  ;;  %v498_v12 = vmul.f32 %v1565_v14, %v460_v59 }
 0x158   :  { %v1080_v7 = vpop.eup %1079  ;;  %v400_v40 = vadd.f32 1e-05, %v368_v11  ;;  %995 = vmatmul.mubr.msk.f32.gmra.mrb[6].mxu0 %vm51_vm0, %v520_v4  ;;  %v483_v27 = vmul.f32 %v1565_v14, %v445_v6 }
 0x159   :  { %v385_v18 = vadd.f32 1e-05, %v353_v3  ;;  %v1082_v56 = vpop.eup %1081  ;;  %v331_v22 = vpop.xlane.xlu1 %330  ;;  %v536_v23 = vadd.f32 %v1571_v0, %v498_v12  ;;  %v461_v16 = vmul.f32 %v1080_v7, %v1456_v29 }
 0x15a   :  { %v286_v25 = vpop.xlane.xlu0 %285  ;;  %1091 = vrsqrt.f32 %v400_v40  ;;  %v369_v13 = vmul.f32 0.03125, %v331_v22  ;;  %v446_v15 = vmul.f32 %v1082_v56, %v1471_v35  ;;  %v521_v60 = vadd.f32 %v1571_v0, %v483_v27 }
 0x15b   :  { %v354_v30 = vmul.f32 0.03125, %v286_v25  ;;  %1093 = vrsqrt.f32 %v385_v18  ;;  %1019 = vmatmul.mubr.msk.f32.gmra.mrb[6].mxu1 %vm51_vm0, %v536_v23  ;;  %v499_v1 = vmul.f32 %v1565_v14, %v461_v16 }
 0x15c   :  { %v1084_v61 = vpop.eup %1083  ;;  %v401_v2 = vadd.f32 1e-05, %v369_v13  ;;  %v484_v33 = vmul.f32 %v1565_v14, %v446_v15  ;;  %997 = vmatprep.mubr.msk.f32.mxu0 %vm51_vm0, %v521_v60 }
 0x15d   :  { %v386_v44 = vadd.f32 1e-05, %v354_v30  ;;  %v1086_v31 = vpop.eup %1085  ;;  %v334_v29 = vpop.xlane.xlu1 %333  ;;  %v537_v10 = vadd.f32 %v1571_v0, %v499_v1  ;;  %v462_v35 = vmul.f32 %v1084_v61, %v1474_v38 }
 0x15e   :  { %v289_v34 = vpop.xlane.xlu0 %288  ;;  %1095 = vrsqrt.f32 %v401_v2  ;;  %v370_v39 = vmul.f32 0.03125, %v334_v29  ;;  %v522_v5 = vadd.f32 %v1571_v0, %v484_v33  ;;  %v447_v17 = vmul.f32 %v1086_v31, %v1489_v58 }
 0x15f   :  { %v355_v42 = vmul.f32 0.03125, %v289_v34  ;;  %1097 = vrsqrt.f32 %v386_v44  ;;  %1021 = vmatprep.mubr.msk.f32.mxu1 %vm51_vm0, %v537_v10  ;;  %v500_v20 = vmul.f32 %v1565_v14, %v462_v35 }
 0x160   :  { %v1088_v46 = vpop.eup %1087  ;;  %v402_v55 = vadd.f32 1e-05, %v370_v39  ;;  %998 = vmatmul.mubr.msk.f32.gmra.mrb[8].mxu0 %vm51_vm0, %v522_v5  ;;  %v485_v51 = vmul.f32 %v1565_v14, %v447_v17 }
 0x161   :  { %v387_v48 = vadd.f32 1e-05, %v355_v42  ;;  %v1090_v50 = vpop.eup %1089  ;;  %v337_v43 = vpop.xlane.xlu1 %336  ;;  %v538_v36 = vadd.f32 %v1571_v0, %v500_v20  ;;  %v463_v37 = vmul.f32 %v1088_v46, %v1492_v24 }
 0x162   :  { %v292_v38 = vpop.xlane.xlu0 %291  ;;  %1099 = vrsqrt.f32 %v402_v55  ;;  %v371_v54 = vmul.f32 0.03125, %v337_v43  ;;  %v448_v58 = vmul.f32 %v1090_v50, %v1501_v41  ;;  %v523_v26 = vadd.f32 %v1571_v0, %v485_v51 }
 0x163   :  { %v356_v8 = vmul.f32 0.03125, %v292_v38  ;;  %1101 = vrsqrt.f32 %v387_v48  ;;  %1022 = vmatmul.mubr.msk.f32.gmra.mrb[8].mxu1 %vm51_vm0, %v538_v36  ;;  %v501_v62 = vmul.f32 %v1565_v14, %v463_v37 }
 0x164   :  { %v1092_v21 = vpop.eup %1091  ;;  %v403_v52 = vadd.f32 1e-05, %v371_v54  ;;  %v486_v59 = vmul.f32 %v1565_v14, %v448_v58  ;;  %1000 = vmatprep.mubr.msk.f32.mxu0 %vm51_vm0, %v523_v26 }
 0x165   :  { %v388_v9 = vadd.f32 1e-05, %v356_v8  ;;  %v1094_v11 = vpop.eup %1093  ;;  %v340_v24 = vpop.xlane.xlu1 %339  ;;  %v539_v3 = vadd.f32 %v1571_v0, %v501_v62  ;;  %v464_v41 = vmul.f32 %v1092_v21, %v1504_v28 }
 0x166   :  { %1103 = vrsqrt.f32 %v403_v52  ;;  %v372_v4 = vmul.f32 0.03125, %v340_v24  ;;  %v524_v6 = vadd.f32 %v1571_v0, %v486_v59  ;;  %v449_v12 = vmul.f32 %v1094_v11, %v1513_v32 }
 0x167   :  { %1105 = vrsqrt.f32 %v388_v9  ;;  %1024 = vmatprep.mubr.msk.f32.mxu1 %vm51_vm0, %v539_v3  ;;  %v502_v7 = vmul.f32 %v1565_v14, %v464_v41 }
 0x168   :  { %v1096_v40 = vpop.eup %1095  ;;  %v404_v18 = vadd.f32 1e-05, %v372_v4  ;;  %1001 = vmatmul.mubr.msk.f32.gmra.mrb[10].mxu0 %vm51_vm0, %v524_v6  ;;  %v487_v56 = vmul.f32 %v1565_v14, %v449_v12 }
 0x169   :  { %v1098_v22 = vpop.eup %1097  ;;  %v540_v28 = vadd.f32 %v1571_v0, %v502_v7  ;;  %v465_v25 = vmul.f32 %v1096_v40, %v1516_v45 }
 0x16a   :  { %1107 = vrsqrt.f32 %v404_v18  ;;  %v525_v27 = vadd.f32 %v1571_v0, %v487_v56  ;;  %v450_v32 = vmul.f32 %v1098_v22, %v1525_v47 }
 0x16b   :  { %1025 = vmatmul.mubr.msk.f32.gmra.mrb[10].mxu1 %vm51_vm0, %v540_v28  ;;  %v503_v23 = vmul.f32 %v1565_v14, %v465_v25 }
 0x16c   :  { %v1100_v16 = vpop.eup %1099  ;;  %1003 = vmatprep.mubr.msk.f32.mxu0 %vm51_vm0, %v525_v27  ;;  %v488_v13 = vmul.f32 %v1565_v14, %v450_v32 }
 0x16d   :  { %v1102_v30 = vpop.eup %1101  ;;  %v541_v15 = vadd.f32 %v1571_v0, %v503_v23  ;;  %v466_v60 = vmul.f32 %v1100_v16, %v1528_v49 }
 0x16e   :  { %v526_v45 = vadd.f32 %v1571_v0, %v488_v13  ;;  %v451_v1 = vmul.f32 %v1102_v30, %v1537_v63 }
 0x16f   :  { %1027 = vmatprep.mubr.msk.f32.mxu1 %vm51_vm0, %v541_v15  ;;  %v504_v47 = vmul.f32 %v1565_v14, %v466_v60 }
 0x170   :  { %v1104_v61 = vpop.eup %1103  ;;  %1004 = vmatmul.mubr.msk.f32.gmra.mrb[12].mxu0 %vm51_vm0, %v526_v45  ;;  %v489_v2 = vmul.f32 %v1565_v14, %v451_v1 }
 0x171   :  { %v1106_v44 = vpop.eup %1105  ;;  %v542_v33 = vadd.f32 %v1571_v0, %v504_v47  ;;  %v467_v31 = vmul.f32 %v1104_v61, %v1540_v53 }
 0x172   :  { %v527_v49 = vadd.f32 %v1571_v0, %v489_v2  ;;  %v452_v29 = vmul.f32 %v1106_v44, %v1549_v19 }
 0x173   :  { %1028 = vmatmul.mubr.msk.f32.gmra.mrb[12].mxu1 %vm51_vm0, %v542_v33  ;;  %v505_v63 = vmul.f32 %v1565_v14, %v467_v31 }
 0x174   :  { %v1108_v34 = vpop.eup %1107  ;;  %1006 = vmatprep.mubr.msk.f32.mxu0 %vm51_vm0, %v527_v49  ;;  %v490_v10 = vmul.f32 %v1565_v14, %v452_v29 }
 0x175   :  { %v543_v35 = vadd.f32 %v1571_v0, %v505_v63  ;;  %v468_v39 = vmul.f32 %v1108_v34, %v1552_v57 }
 0x176   :  { %v528_v42 = vadd.f32 %v1571_v0, %v490_v10 }
 0x177   :  { %1030 = vmatprep.mubr.msk.f32.mxu1 %vm51_vm0, %v543_v35  ;;  %v506_v53 = vmul.f32 %v1565_v14, %v468_v39 }
 0x178   :  { %1007 = vmatmul.mubr.msk.f32.gmra.mrb[14].mxu0 %vm51_vm0, %v528_v42 }
 0x179   :  { %v544_v19 = vadd.f32 %v1571_v0, %v506_v53 }
 0x17b   :  { %1031 = vmatmul.mubr.msk.f32.gmra.mrb[14].mxu1 %vm51_vm0, %v544_v19 }
 0x213   :  { %v987_v5 = vpop.f32.mrb[0].mxu0 }
 0x214   :  { %872 = vst.msk [vmem:[%s1832_s4 + $0x8] sm:$0xff] %vm870_vm1, %v987_v5  ;;  %v711_v57 = vpop.f32.mrb[1].mxu0 }
 0x215   :  { %871 = vst.msk [vmem:[%s1832_s4] sm:$0xff] %vm870_vm1, %v711_v57 }
 0x216   :  { %v1011_v14 = vpop.f32.mrb[0].mxu1 }
 0x217   :  { %888 = vst.msk [vmem:[%s1832_s4 + $0x88] sm:$0xff] %vm870_vm1, %v1011_v14  ;;  %v791_v0 = vpop.f32.mrb[1].mxu1 }
 0x218   :  { %887 = vst.msk [vmem:[%s1832_s4 + $0x80] sm:$0xff] %vm870_vm1, %v791_v0 }
 0x21b   :  { %v990_v17 = vpop.f32.mrb[2].mxu0 }
 0x21c   :  { %874 = vst.msk [vmem:[%s1832_s4 + $0x18] sm:$0xff] %vm870_vm1, %v990_v17  ;;  %v721_v20 = vpop.f32.mrb[3].mxu0 }
 0x21d   :  { %873 = vst.msk [vmem:[%s1832_s4 + $0x10] sm:$0xff] %vm870_vm1, %v721_v20 }
 0x21e   :  { %v1014_v46 = vpop.f32.mrb[2].mxu1 }
 0x21f   :  { %890 = vst.msk [vmem:[%s1832_s4 + $0x98] sm:$0xff] %vm870_vm1, %v1014_v46  ;;  %v801_v55 = vpop.f32.mrb[3].mxu1 }
 0x220   :  { %889 = vst.msk [vmem:[%s1832_s4 + $0x90] sm:$0xff] %vm870_vm1, %v801_v55 }
 0x223   :  { %v993_v48 = vpop.f32.mrb[4].mxu0 }
 0x224   :  { %876 = vst.msk [vmem:[%s1832_s4 + $0x28] sm:$0xff] %vm870_vm1, %v993_v48  ;;  %v731_v50 = vpop.f32.mrb[5].mxu0 }
 0x225   :  { %875 = vst.msk [vmem:[%s1832_s4 + $0x20] sm:$0xff] %vm870_vm1, %v731_v50 }
 0x226   :  { %v1017_v43 = vpop.f32.mrb[4].mxu1 }
 0x227   :  { %892 = vst.msk [vmem:[%s1832_s4 + $0xa8] sm:$0xff] %vm870_vm1, %v1017_v43  ;;  %v811_v38 = vpop.f32.mrb[5].mxu1 }
 0x228   :  { %891 = vst.msk [vmem:[%s1832_s4 + $0xa0] sm:$0xff] %vm870_vm1, %v811_v38 }
 0x22b   :  { %v996_v51 = vpop.f32.mrb[6].mxu0 }
 0x22c   :  { %878 = vst.msk [vmem:[%s1832_s4 + $0x38] sm:$0xff] %vm870_vm1, %v996_v51  ;;  %v741_v36 = vpop.f32.mrb[7].mxu0 }
 0x22d   :  { %877 = vst.msk [vmem:[%s1832_s4 + $0x30] sm:$0xff] %vm870_vm1, %v741_v36 }
 0x22e   :  { %v1020_v37 = vpop.f32.mrb[6].mxu1 }
 0x22f   :  { %894 = vst.msk [vmem:[%s1832_s4 + $0xb8] sm:$0xff] %vm870_vm1, %v1020_v37  ;;  %v821_v54 = vpop.f32.mrb[7].mxu1 }
 0x230   :  { %893 = vst.msk [vmem:[%s1832_s4 + $0xb0] sm:$0xff] %vm870_vm1, %v821_v54 }
 0x233   :  { %v999_v8 = vpop.f32.mrb[8].mxu0 }
 0x234   :  { %880 = vst.msk [vmem:[%s1832_s4 + $0x48] sm:$0xff] %vm870_vm1, %v999_v8  ;;  %v751_v58 = vpop.f32.mrb[9].mxu0 }
 0x235   :  { %879 = vst.msk [vmem:[%s1832_s4 + $0x40] sm:$0xff] %vm870_vm1, %v751_v58 }
 0x236   :  { %v1023_v26 = vpop.f32.mrb[8].mxu1 }
 0x237   :  { %896 = vst.msk [vmem:[%s1832_s4 + $0xc8] sm:$0xff] %vm870_vm1, %v1023_v26  ;;  %v831_v62 = vpop.f32.mrb[9].mxu1 }
 0x238   :  { %895 = vst.msk [vmem:[%s1832_s4 + $0xc0] sm:$0xff] %vm870_vm1, %v831_v62 }
 0x23b   :  { %v1002_v21 = vpop.f32.mrb[10].mxu0 }
 0x23c   :  { %882 = vst.msk [vmem:[%s1832_s4 + $0x58] sm:$0xff] %vm870_vm1, %v1002_v21  ;;  %v761_v52 = vpop.f32.mrb[11].mxu0 }
 0x23d   :  { %881 = vst.msk [vmem:[%s1832_s4 + $0x50] sm:$0xff] %vm870_vm1, %v761_v52 }
 0x23e   :  { %v1026_v9 = vpop.f32.mrb[10].mxu1 }
 0x23f   :  { %898 = vst.msk [vmem:[%s1832_s4 + $0xd8] sm:$0xff] %vm870_vm1, %v1026_v9  ;;  %v841_v59 = vpop.f32.mrb[11].mxu1 }
 0x240   :  { %897 = vst.msk [vmem:[%s1832_s4 + $0xd0] sm:$0xff] %vm870_vm1, %v841_v59 }
 0x243   :  { %v1005_v11 = vpop.f32.mrb[12].mxu0 }
 0x244   :  { %884 = vst.msk [vmem:[%s1832_s4 + $0x68] sm:$0xff] %vm870_vm1, %v1005_v11  ;;  %v771_v24 = vpop.f32.mrb[13].mxu0 }
 0x245   :  { %883 = vst.msk [vmem:[%s1832_s4 + $0x60] sm:$0xff] %vm870_vm1, %v771_v24 }
 0x246   :  { %v1029_v3 = vpop.f32.mrb[12].mxu1 }
 0x247   :  { %900 = vst.msk [vmem:[%s1832_s4 + $0xe8] sm:$0xff] %vm870_vm1, %v1029_v3  ;;  %v851_v41 = vpop.f32.mrb[13].mxu1 }
 0x248   :  { %899 = vst.msk [vmem:[%s1832_s4 + $0xe0] sm:$0xff] %vm870_vm1, %v851_v41 }
 0x24b   :  { %v1008_v4 = vpop.f32.mrb[14].mxu0 }
 0x24c   :  { %886 = vst.msk [vmem:[%s1832_s4 + $0x78] sm:$0xff] %vm870_vm1, %v1008_v4  ;;  %v781_v6 = vpop.f32.mrb[15].mxu0 }
 0x24d   :  { %885 = vst.msk [vmem:[%s1832_s4 + $0x70] sm:$0xff] %vm870_vm1, %v781_v6 }
 0x24e   :  { %v1032_v12 = vpop.f32.mrb[14].mxu1 }
 0x24f   :  { %902 = vst.msk [vmem:[%s1832_s4 + $0xf8] sm:$0xff] %vm870_vm1, %v1032_v12  ;;  %v861_v7 = vpop.f32.mrb[15].mxu1 }
 0x250   :  { %901 = vst.msk [vmem:[%s1832_s4 + $0xf0] sm:$0xff] %vm870_vm1, %v861_v7 }

// kernel: block_forward.11
= control target key start
LH: loop header
LB: loop body
LE: loop exit
PB: predicated region body
PF: predicated region fallthrough
CT: control target
= control target key end

     0   :  { %s1396_s15 = smov 0   ;;  %s1990_s0 = inlined_call_operand.vmem [shape: f32[512,32], index: 0, kind: input, shape index: {}]   ;;  %s1991_s1 = inlined_call_operand.vmem [shape: f32[1,32], index: 1, kind: input, shape index: {}]   ;;  %s1992_s2 = inlined_call_operand.vmem [shape: f32[1,32], index: 2, kind: input, shape index: {}]   ;;  %s1993_s3 = inlined_call_operand.vmem [shape: f32[32,32], index: 3, kind: input, shape index: {}]   ;;  %s1994_s4 = inlined_call_operand.vmem [shape: f32[512,32], index: 4, kind: output, shape index: {}]  }
   0x1 LB: > { %s1142_s16 = sadd.s32 4294967295, %s1369_s15   ;;  %p1146_p0 = scmp.ge.s32.totalorder %s1369_s15, 1  ;;  %s1369_s15 = sphi %s1396_s15, %s14_s15  }
   0x2   : > { %p163_p1 = scmp.lt.s32.totalorder %s1369_s15, 3 }
   0x4   : > { %p164_p2 = pnand %p1146_p0, %p163_p1 }
   0x5   : > { %s1147_s17 = sshll.u32 (!%p164_p2), %s1142_s16, 5  ;;  %vm235_vm0 = vcmask (!%p164_p2), 261120  }
   0x6   : > { %167 = sbr.rel (%p164_p2) target bundleno = 608 (0x260), region = 36  ;;  %p190_p3 = scmp.lt.s32.totalorder (!%p164_p2), %s1147_s17, 63 }
   0xd   : > { %s1996_s17 = smov (!%p190_p3, %s1147_s17), 63 }
   0xe   : > { %s1148_s18 = sshll.u32 %s1996_s17, 3 }
   0xf   : > { %s1412_s21 = scalar_lea.vmem %s1990_s0, %s1148_s18  ;;  %s1921_s10 = scalar_lea.vmem %s1994_s4, %s1148_s18 }
  0x10   : > { %v1415_v0 = vld [vmem:[%s1412_s21] sm:$0xff]  ;;  %v1418_v1 = vld [vmem:[%s1412_s21 + $0x8] sm:$0xff]  ;;  %v1435_v8 = vld [vmem:[%s1412_s21 + $0x10] sm:$0xff] }
  0x11   : > { %v1421_v2 = vld [vmem:[%s1412_s21 + $0x80] sm:$0xff]  ;;  %v236_v3 = vsel %vm235_vm0, %v1415_v0, 0.0  ;;  %v239_v4 = vsel %vm235_vm0, %v1418_v1, 0.0  ;;  %v1428_v5 = vld [vmem:[%s1412_s21 + $0x88] sm:$0xff]  ;;  %v1438_v9 = vld [vmem:[%s1412_s21 + $0x90] sm:$0xff]  ;;  %v242_v10 = vsel %vm235_vm0, %v1435_v8, 0.0 }
  0x12   : > { %237 = vadd.xlane.f32.xlu0 %v236_v3  ;;  %240 = vadd.xlane.f32.xlu1 %v239_v4  ;;  %v284_v6 = vsel %vm235_vm0, %v1421_v2, 0.0  ;;  %v287_v7 = vsel %vm235_vm0, %v1428_v5, 0.0  ;;  %v290_v11 = vsel %vm235_vm0, %v1438_v9, 0.0  ;;  %v1445_v12 = vld [vmem:[%s1412_s21 + $0x18] sm:$0xff]  ;;  %v1455_v16 = vld [vmem:[%s1412_s21 + $0x20] sm:$0xff]  ;;  %v1465_v20 = vld [vmem:[%s1412_s21 + $0x28] sm:$0xff] }
  0x13   : > { %v1448_v13 = vld [vmem:[%s1412_s21 + $0x98] sm:$0xff]  ;;  %v245_v14 = vsel %vm235_vm0, %v1445_v12, 0.0  ;;  %v1458_v17 = vld [vmem:[%s1412_s21 + $0xa0] sm:$0xff]  ;;  %v248_v18 = vsel %vm235_vm0, %v1455_v16, 0.0  ;;  %v1468_v21 = vld [vmem:[%s1412_s21 + $0xa8] sm:$0xff]  ;;  %v251_v22 = vsel %vm235_vm0, %v1465_v20, 0.0 }
  0x14   : > { %v293_v15 = vsel %vm235_vm0, %v1448_v13, 0.0  ;;  %v296_v19 = vsel %vm235_vm0, %v1458_v17, 0.0  ;;  %v299_v23 = vsel %vm235_vm0, %v1468_v21, 0.0  ;;  %v1475_v24 = vld [vmem:[%s1412_s21 + $0x30] sm:$0xff]  ;;  %v1485_v28 = vld [vmem:[%s1412_s21 + $0x38] sm:$0xff]  ;;  %v1495_v32 = vld [vmem:[%s1412_s21 + $0x40] sm:$0xff] }
  0x15   : > { %v1478_v25 = vld [vmem:[%s1412_s21 + $0xb0] sm:$0xff]  ;;  %v254_v26 = vsel %vm235_vm0, %v1475_v24, 0.0  ;;  %v1488_v29 = vld [vmem:[%s1412_s21 + $0xb8] sm:$0xff]  ;;  %v257_v30 = vsel %vm235_vm0, %v1485_v28, 0.0  ;;  %v1498_v33 = vld [vmem:[%s1412_s21 + $0xc0] sm:$0xff]  ;;  %v260_v34 = vsel %vm235_vm0, %v1495_v32, 0.0 }
  0x16   : > { %285 = vadd.xlane.f32.xlu0 %v284_v6  ;;  %288 = vadd.xlane.f32.xlu1 %v287_v7  ;;  %v302_v27 = vsel %vm235_vm0, %v1478_v25, 0.0  ;;  %v305_v31 = vsel %vm235_vm0, %v1488_v29, 0.0  ;;  %v308_v35 = vsel %vm235_vm0, %v1498_v33, 0.0  ;;  %v1505_v36 = vld [vmem:[%s1412_s21 + $0x48] sm:$0xff]  ;;  %v1515_v40 = vld [vmem:[%s1412_s21 + $0x50] sm:$0xff]  ;;  %v1525_v44 = vld [vmem:[%s1412_s21 + $0x58] sm:$0xff] }
  0x17   : > { %v1508_v37 = vld [vmem:[%s1412_s21 + $0xc8] sm:$0xff]  ;;  %v263_v38 = vsel %vm235_vm0, %v1505_v36, 0.0  ;;  %v1518_v41 = vld [vmem:[%s1412_s21 + $0xd0] sm:$0xff]  ;;  %v266_v42 = vsel %vm235_vm0, %v1515_v40, 0.0  ;;  %v1528_v45 = vld [vmem:[%s1412_s21 + $0xd8] sm:$0xff]  ;;  %v269_v46 = vsel %vm235_vm0, %v1525_v44, 0.0 }
  0x18   : > { %v311_v39 = vsel %vm235_vm0, %v1508_v37, 0.0  ;;  %v314_v43 = vsel %vm235_vm0, %v1518_v41, 0.0  ;;  %v317_v47 = vsel %vm235_vm0, %v1528_v45, 0.0  ;;  %v1535_v48 = vld [vmem:[%s1412_s21 + $0x60] sm:$0xff]  ;;  %v1545_v52 = vld [vmem:[%s1412_s21 + $0x68] sm:$0xff]  ;;  %v1555_v56 = vld [vmem:[%s1412_s21 + $0x70] sm:$0xff] }
  0x19   : > { %v1538_v49 = vld [vmem:[%s1412_s21 + $0xe0] sm:$0xff]  ;;  %v272_v50 = vsel %vm235_vm0, %v1535_v48, 0.0  ;;  %v1548_v53 = vld [vmem:[%s1412_s21 + $0xe8] sm:$0xff]  ;;  %v275_v54 = vsel %vm235_vm0, %v1545_v52, 0.0  ;;  %v1558_v57 = vld [vmem:[%s1412_s21 + $0xf0] sm:$0xff]  ;;  %v278_v58 = vsel %vm235_vm0, %v1555_v56, 0.0 }
  0x1a   : > { %243 = vadd.xlane.f32.xlu0 %v242_v10  ;;  %291 = vadd.xlane.f32.xlu1 %v290_v11  ;;  %v320_v51 = vsel %vm235_vm0, %v1538_v49, 0.0  ;;  %v323_v55 = vsel %vm235_vm0, %v1548_v53, 0.0  ;;  %v326_v59 = vsel %vm235_vm0, %v1558_v57, 0.0  ;;  %v1565_v60 = vld [vmem:[%s1412_s21 + $0x78] sm:$0xff] }
  0x1b   : > { %v1568_v61 = vld [vmem:[%s1412_s21 + $0xf8] sm:$0xff]  ;;  %v281_v62 = vsel %vm235_vm0, %v1565_v60, 0.0 }
  0x1c   : > { %v329_v63 = vsel %vm235_vm0, %v1568_v61, 0.0 }
  0x1e   : > { %246 = vadd.xlane.f32.xlu0 %v245_v14  ;;  %294 = vadd.xlane.f32.xlu1 %v293_v15 }
  0x22   : > { %249 = vadd.xlane.f32.xlu0 %v248_v18  ;;  %297 = vadd.xlane.f32.xlu1 %v296_v19 }
  0x26   : > { %252 = vadd.xlane.f32.xlu0 %v251_v22  ;;  %300 = vadd.xlane.f32.xlu1 %v299_v23 }
  0x2a   : > { %255 = vadd.xlane.f32.xlu0 %v254_v26  ;;  %303 = vadd.xlane.f32.xlu1 %v302_v27 }
  0x2e   : > { %258 = vadd.xlane.f32.xlu0 %v257_v30  ;;  %306 = vadd.xlane.f32.xlu1 %v305_v31 }
  0x32   : > { %261 = vadd.xlane.f32.xlu0 %v260_v34  ;;  %309 = vadd.xlane.f32.xlu1 %v308_v35 }
  0x36   : > { %264 = vadd.xlane.f32.xlu0 %v263_v38  ;;  %312 = vadd.xlane.f32.xlu1 %v311_v39 }
  0x3a   : > { %267 = vadd.xlane.f32.xlu0 %v266_v42  ;;  %315 = vadd.xlane.f32.xlu1 %v314_v43 }
  0x3e   : > { %270 = vadd.xlane.f32.xlu0 %v269_v46  ;;  %318 = vadd.xlane.f32.xlu1 %v317_v47 }
  0x42   : > { %273 = vadd.xlane.f32.xlu0 %v272_v50  ;;  %321 = vadd.xlane.f32.xlu1 %v320_v51 }
  0x46   : > { %276 = vadd.xlane.f32.xlu0 %v275_v54  ;;  %324 = vadd.xlane.f32.xlu1 %v323_v55 }
  0x4a   : > { %279 = vadd.xlane.f32.xlu0 %v278_v58  ;;  %327 = vadd.xlane.f32.xlu1 %v326_v59 }
  0x4e   : > { %282 = vadd.xlane.f32.xlu0 %v281_v62  ;;  %330 = vadd.xlane.f32.xlu1 %v329_v63 }
  0x9f   : > { %v238_v3 = vpop.xlane.xlu0 %237  ;;  %v241_v4 = vpop.xlane.xlu1 %240 }
  0xa0   : > { %v333_v6 = vmul.f32 0.03125, %v238_v3  ;;  %v334_v7 = vmul.f32 0.03125, %v241_v4 }
  0xa2   : > { %v1575_v10 = vsub.f32 %v1415_v0, %v333_v6  ;;  %v1578_v11 = vsub.f32 %v1418_v1, %v334_v7 }
  0xa3   : > { %v286_v14 = vpop.xlane.xlu0 %285  ;;  %v289_v15 = vpop.xlane.xlu1 %288 }
  0xa4   : > { %v349_v18 = vmul.f32 0.03125, %v286_v14  ;;  %v350_v19 = vmul.f32 0.03125, %v289_v15  ;;  %v397_v22 = vmul.f32 %v1575_v10, %v1575_v10  ;;  %v398_v23 = vmul.f32 %v1578_v11, %v1578_v11 }
  0xa6   : > { %v1585_v26 = vsub.f32 %v1421_v2, %v349_v18  ;;  %v1588_v27 = vsub.f32 %v1428_v5, %v350_v19  ;;  %v429_v0 = vsel %vm235_vm0, %v397_v22, 0.0  ;;  %v432_v31 = vsel %vm235_vm0, %v398_v23, 0.0 }
  0xa7   : > { %430 = vadd.xlane.f32.xlu0 %v429_v0  ;;  %v244_v1 = vpop.xlane.xlu0 %243  ;;  %v292_v30 = vpop.xlane.xlu1 %291 }
  0xa8   : > { %v335_v34 = vmul.f32 0.03125, %v244_v1  ;;  %v351_v35 = vmul.f32 0.03125, %v292_v30  ;;  %v413_v38 = vmul.f32 %v1585_v26, %v1585_v26  ;;  %v414_v39 = vmul.f32 %v1588_v27, %v1588_v27 }
  0xaa   : > { %v1597_v2 = vsub.f32 %v1435_v8, %v335_v34  ;;  %v1600_v5 = vsub.f32 %v1438_v9, %v351_v35  ;;  %v477_v42 = vsel %vm235_vm0, %v413_v38, 0.0  ;;  %v480_v47 = vsel %vm235_vm0, %v414_v39, 0.0 }
  0xab   : > { %433 = vadd.xlane.f32.xlu0 %v432_v31  ;;  %478 = vadd.xlane.f32.xlu1 %v477_v42  ;;  %v247_v43 = vpop.xlane.xlu0 %246  ;;  %v295_v46 = vpop.xlane.xlu1 %294 }
  0xac   : > { %v336_v50 = vmul.f32 0.03125, %v247_v43  ;;  %v352_v51 = vmul.f32 0.03125, %v295_v46  ;;  %v399_v54 = vmul.f32 %v1597_v2, %v1597_v2  ;;  %v415_v8 = vmul.f32 %v1600_v5, %v1600_v5 }
  0xae   : > { %v1609_v55 = vsub.f32 %v1445_v12, %v336_v50  ;;  %v1612_v9 = vsub.f32 %v1448_v13, %v352_v51  ;;  %v435_v58 = vsel %vm235_vm0, %v399_v54, 0.0  ;;  %v483_v63 = vsel %vm235_vm0, %v415_v8, 0.0 }
  0xaf   : > { %481 = vadd.xlane.f32.xlu1 %v480_v47  ;;  %436 = vadd.xlane.f32.xlu0 %v435_v58  ;;  %v250_v59 = vpop.xlane.xlu0 %249  ;;  %v298_v62 = vpop.xlane.xlu1 %297 }
  0xb0   : > { %v337_v3 = vmul.f32 0.03125, %v250_v59  ;;  %v353_v4 = vmul.f32 0.03125, %v298_v62  ;;  %v400_v6 = vmul.f32 %v1609_v55, %v1609_v55  ;;  %v416_v12 = vmul.f32 %v1612_v9, %v1612_v9 }
  0xb2   : > { %v1621_v7 = vsub.f32 %v1455_v16, %v337_v3  ;;  %v1624_v13 = vsub.f32 %v1458_v17, %v353_v4  ;;  %v438_v14 = vsel %vm235_vm0, %v400_v6, 0.0  ;;  %v486_v19 = vsel %vm235_vm0, %v416_v12, 0.0 }
  0xb3   : > { %484 = vadd.xlane.f32.xlu1 %v483_v63  ;;  %439 = vadd.xlane.f32.xlu0 %v438_v14  ;;  %v253_v15 = vpop.xlane.xlu0 %252  ;;  %v301_v18 = vpop.xlane.xlu1 %300 }
  0xb4   : > { %v338_v22 = vmul.f32 0.03125, %v253_v15  ;;  %v354_v23 = vmul.f32 0.03125, %v301_v18  ;;  %v401_v0 = vmul.f32 %v1621_v7, %v1621_v7  ;;  %v417_v16 = vmul.f32 %v1624_v13, %v1624_v13 }
  0xb6   : > { %v1633_v1 = vsub.f32 %v1465_v20, %v338_v22  ;;  %v1636_v17 = vsub.f32 %v1468_v21, %v354_v23  ;;  %v441_v30 = vsel %vm235_vm0, %v401_v0, 0.0  ;;  %v489_v35 = vsel %vm235_vm0, %v417_v16, 0.0 }
  0xb7   : > { %487 = vadd.xlane.f32.xlu1 %v486_v19  ;;  %442 = vadd.xlane.f32.xlu0 %v441_v30  ;;  %v256_v31 = vpop.xlane.xlu0 %255  ;;  %v304_v34 = vpop.xlane.xlu1 %303 }
  0xb8   : > { %v339_v38 = vmul.f32 0.03125, %v256_v31  ;;  %v355_v39 = vmul.f32 0.03125, %v304_v34  ;;  %v402_v42 = vmul.f32 %v1633_v1, %v1633_v1  ;;  %v418_v20 = vmul.f32 %v1636_v17, %v1636_v17  ;;  %v730_v31 = vld [vmem:[%s1993_s3 + $0x8] sm:$0xff] }
  0xba   : > { %v1645_v43 = vsub.f32 %v1475_v24, %v339_v38  ;;  %v1648_v21 = vsub.f32 %v1478_v25, %v355_v39  ;;  %v444_v46 = vsel %vm235_vm0, %v402_v42, 0.0  ;;  %v492_v51 = vsel %vm235_vm0, %v418_v20, 0.0 }
  0xbb   : > { %490 = vadd.xlane.f32.xlu1 %v489_v35  ;;  %445 = vadd.xlane.f32.xlu0 %v444_v46  ;;  %v259_v47 = vpop.xlane.xlu0 %258  ;;  %v307_v50 = vpop.xlane.xlu1 %306 }
  0xbc   : > { %v340_v54 = vmul.f32 0.03125, %v259_v47  ;;  %v356_v8 = vmul.f32 0.03125, %v307_v50  ;;  %v403_v58 = vmul.f32 %v1645_v43, %v1645_v43  ;;  %v419_v24 = vmul.f32 %v1648_v21, %v1648_v21 }
  0xbe   : > { %v1657_v59 = vsub.f32 %v1485_v28, %v340_v54  ;;  %v1660_v25 = vsub.f32 %v1488_v29, %v356_v8  ;;  %v447_v62 = vsel %vm235_vm0, %v403_v58, 0.0  ;;  %v495_v4 = vsel %vm235_vm0, %v419_v24, 0.0  ;;  %v732_v54 = vld [vmem:[%s1993_s3 + $0x18] sm:$0xff] }
  0xbf   : > { %493 = vadd.xlane.f32.xlu1 %v492_v51  ;;  %448 = vadd.xlane.f32.xlu0 %v447_v62  ;;  %v262_v63 = vpop.xlane.xlu0 %261  ;;  %v310_v3 = vpop.xlane.xlu1 %309 }
  0xc0   : > { %v341_v6 = vmul.f32 0.03125, %v262_v63  ;;  %v357_v12 = vmul.f32 0.03125, %v310_v3  ;;  %v404_v14 = vmul.f32 %v1657_v59, %v1657_v59  ;;  %v420_v28 = vmul.f32 %v1660_v25, %v1660_v25 }
  0xc2   : > { %v1669_v15 = vsub.f32 %v1495_v32, %v341_v6  ;;  %v1672_v29 = vsub.f32 %v1498_v33, %v357_v12  ;;  %v450_v18 = vsel %vm235_vm0, %v404_v14, 0.0  ;;  %v498_v23 = vsel %vm235_vm0, %v420_v28, 0.0  ;;  %v729_v33 = vld [vmem:[%s1993_s3] sm:$0xff] }
  0xc3   : > { %496 = vadd.xlane.f32.xlu1 %v495_v4  ;;  %451 = vadd.xlane.f32.xlu0 %v450_v18  ;;  %v265_v19 = vpop.xlane.xlu0 %264  ;;  %v313_v22 = vpop.xlane.xlu1 %312  ;;  %v1279_v34 = vpack.c.bf16 %v730_v31, %v729_v33 }
  0xc4   : > { %v342_v0 = vmul.f32 0.03125, %v265_v19  ;;  %v358_v16 = vmul.f32 0.03125, %v313_v22  ;;  %v405_v30 = vmul.f32 %v1669_v15, %v1669_v15  ;;  %v421_v32 = vmul.f32 %v1672_v29, %v1672_v29 }
  0xc5   : > { %1280 = vmatprep.subr.bf16.mxu0 %v1279_v34  ;;  %1287 = vmatprep.subr.bf16.mxu1 %v1279_v34 }
  0xc6   : > { %v1687_v35 = vsub.f32 %v1505_v36, %v342_v0  ;;  %v1690_v38 = vsub.f32 %v1508_v37, %v358_v16  ;;  %v453_v39 = vsel %vm235_vm0, %v405_v30, 0.0  ;;  %v501_v46 = vsel %vm235_vm0, %v421_v32, 0.0  ;;  %v731_v37 = vld [vmem:[%s1993_s3 + $0x10] sm:$0xff]  ;;  %1282 = vmatpush3.bf16.msra.mxu0 %v1279_v34  ;;  %1289 = vmatpush3.bf16.msra.mxu1 %v1279_v34 }
  0xc7   : > { %499 = vadd.xlane.f32.xlu1 %v498_v23  ;;  %454 = vadd.xlane.f32.xlu0 %v453_v39  ;;  %v268_v42 = vpop.xlane.xlu0 %267  ;;  %v316_v20 = vpop.xlane.xlu1 %315  ;;  %v1283_v8 = vpack.c.bf16 %v732_v54, %v731_v37 }
  0xc8   : > { %v343_v47 = vmul.f32 0.03125, %v268_v42  ;;  %v359_v50 = vmul.f32 0.03125, %v316_v20  ;;  %v406_v51 = vmul.f32 %v1687_v35, %v1687_v35  ;;  %v422_v36 = vmul.f32 %v1690_v38, %v1690_v38 }
  0xc9   : > { %1284 = vmatprep.subr.bf16.mxu0 %v1283_v8  ;;  %1288 = vmatprep.subr.bf16.mxu1 %v1283_v8 }
  0xca   : > { %v1705_v58 = vsub.f32 %v1515_v40, %v343_v47  ;;  %v1708_v24 = vsub.f32 %v1518_v41, %v359_v50  ;;  %v456_v62 = vsel %vm235_vm0, %v406_v51, 0.0  ;;  %v504_v4 = vsel %vm235_vm0, %v422_v36, 0.0  ;;  %1286 = vmatpush3.bf16.msra.mxu0 %v1283_v8  ;;  %1290 = vmatpush3.bf16.msra.mxu1 %v1283_v8 }
  0xcb   : > { %502 = vadd.xlane.f32.xlu1 %v501_v46  ;;  %457 = vadd.xlane.f32.xlu0 %v456_v62  ;;  %v271_v63 = vpop.xlane.xlu0 %270  ;;  %v319_v3 = vpop.xlane.xlu1 %318 }
  0xcc   : > { %v344_v6 = vmul.f32 0.03125, %v271_v63  ;;  %v360_v12 = vmul.f32 0.03125, %v319_v3  ;;  %v407_v14 = vmul.f32 %v1705_v58, %v1705_v58  ;;  %v423_v40 = vmul.f32 %v1708_v24, %v1708_v24 }
  0xce   : > { %v1717_v41 = vsub.f32 %v1525_v44, %v344_v6  ;;  %v1720_v28 = vsub.f32 %v1528_v45, %v360_v12  ;;  %v459_v18 = vsel %vm235_vm0, %v407_v14, 0.0  ;;  %v507_v23 = vsel %vm235_vm0, %v423_v40, 0.0 }
  0xcf   : > { %505 = vadd.xlane.f32.xlu1 %v504_v4  ;;  %460 = vadd.xlane.f32.xlu0 %v459_v18  ;;  %v274_v19 = vpop.xlane.xlu0 %273  ;;  %v322_v22 = vpop.xlane.xlu1 %321 }
  0xd0   : > { %v345_v0 = vmul.f32 0.03125, %v274_v19  ;;  %v361_v16 = vmul.f32 0.03125, %v322_v22  ;;  %v408_v30 = vmul.f32 %v1717_v41, %v1717_v41  ;;  %v424_v44 = vmul.f32 %v1720_v28, %v1720_v28 }
  0xd2   : > { %v1729_v32 = vsub.f32 %v1535_v48, %v345_v0  ;;  %v1732_v45 = vsub.f32 %v1538_v49, %v361_v16  ;;  %v462_v33 = vsel %vm235_vm0, %v408_v30, 0.0  ;;  %v510_v39 = vsel %vm235_vm0, %v424_v44, 0.0 }
  0xd3   : > { %508 = vadd.xlane.f32.xlu1 %v507_v23  ;;  %463 = vadd.xlane.f32.xlu0 %v462_v33  ;;  %v277_v31 = vpop.xlane.xlu0 %276  ;;  %v325_v34 = vpop.xlane.xlu1 %324 }
  0xd4   : > { %v346_v42 = vmul.f32 0.03125, %v277_v31  ;;  %v362_v20 = vmul.f32 0.03125, %v325_v34  ;;  %v409_v46 = vmul.f32 %v1729_v32, %v1729_v32  ;;  %v425_v48 = vmul.f32 %v1732_v45, %v1732_v45 }
  0xd6   : > { %v1741_v47 = vsub.f32 %v1545_v52, %v346_v42  ;;  %v1744_v49 = vsub.f32 %v1548_v53, %v362_v20  ;;  %v465_v50 = vsel %vm235_vm0, %v409_v46, 0.0  ;;  %v513_v37 = vsel %vm235_vm0, %v425_v48, 0.0 }
  0xd7   : > { %511 = vadd.xlane.f32.xlu1 %v510_v39  ;;  %466 = vadd.xlane.f32.xlu0 %v465_v50  ;;  %v280_v51 = vpop.xlane.xlu0 %279  ;;  %v328_v36 = vpop.xlane.xlu1 %327 }
  0xd8   : > { %v347_v54 = vmul.f32 0.03125, %v280_v51  ;;  %v363_v8 = vmul.f32 0.03125, %v328_v36  ;;  %v410_v62 = vmul.f32 %v1741_v47, %v1741_v47  ;;  %v426_v52 = vmul.f32 %v1744_v49, %v1744_v49 }
  0xda   : > { %v1753_v63 = vsub.f32 %v1555_v56, %v347_v54  ;;  %v1756_v53 = vsub.f32 %v1558_v57, %v363_v8  ;;  %v468_v3 = vsel %vm235_vm0, %v410_v62, 0.0  ;;  %v516_v12 = vsel %vm235_vm0, %v426_v52, 0.0 }
  0xdb   : > { %514 = vadd.xlane.f32.xlu1 %v513_v37  ;;  %469 = vadd.xlane.f32.xlu0 %v468_v3  ;;  %v283_v4 = vpop.xlane.xlu0 %282  ;;  %v331_v6 = vpop.xlane.xlu1 %330 }
  0xdc   : > { %v348_v14 = vmul.f32 0.03125, %v283_v4  ;;  %v364_v40 = vmul.f32 0.03125, %v331_v6  ;;  %v411_v18 = vmul.f32 %v1753_v63, %v1753_v63  ;;  %v427_v56 = vmul.f32 %v1756_v53, %v1756_v53 }
  0xde   : > { %v1765_v19 = vsub.f32 %v1565_v60, %v348_v14  ;;  %v1768_v57 = vsub.f32 %v1568_v61, %v364_v40  ;;  %v471_v22 = vsel %vm235_vm0, %v411_v18, 0.0  ;;  %v519_v23 = vsel %vm235_vm0, %v427_v56, 0.0  ;;  %v1781_v14 = vld [vmem:[%s1991_s1] ss:$0 sm:$0xff] }
  0xdf   : > { %517 = vadd.xlane.f32.xlu1 %v516_v12  ;;  %472 = vadd.xlane.f32.xlu0 %v471_v22 }
  0xe0   : > { %v412_v0 = vmul.f32 %v1765_v19, %v1765_v19  ;;  %v428_v16 = vmul.f32 %v1768_v57, %v1768_v57 }
  0xe2   : > { %v474_v30 = vsel %vm235_vm0, %v412_v0, 0.0  ;;  %v522_v60 = vsel %vm235_vm0, %v428_v16, 0.0  ;;  %v1787_v0 = vld [vmem:[%s1992_s2] ss:$0 sm:$0xff] }
  0xe3   : > { %520 = vadd.xlane.f32.xlu1 %v519_v23  ;;  %475 = vadd.xlane.f32.xlu0 %v474_v30 }
  0xe7   : > { %523 = vadd.xlane.f32.xlu1 %v522_v60 }
 0x134   : > { %v431_v61 = vpop.xlane.xlu0 %430 }
 0x135   : > { %v525_v44 = vmul.f32 0.03125, %v431_v61 }
 0x137   : > { %v557_v33 = vadd.f32 1e-05, %v525_v44 }
 0x138   : > { %v479_v31 = vpop.xlane.xlu1 %478  ;;  %v434_v34 = vpop.xlane.xlu0 %433 }
 0x139   : > { %1299 = vrsqrt.f32 %v557_v33  ;;  %v541_v39 = vmul.f32 0.03125, %v479_v31  ;;  %v526_v42 = vmul.f32 0.03125, %v434_v34 }
 0x13b   : > { %v573_v20 = vadd.f32 1e-05, %v541_v39  ;;  %v558_v46 = vadd.f32 1e-05, %v526_v42 }
 0x13c   : > { %v482_v48 = vpop.xlane.xlu1 %481  ;;  %v437_v50 = vpop.xlane.xlu0 %436 }
 0x13d   : > { %1301 = vrsqrt.f32 %v573_v20  ;;  %v542_v51 = vmul.f32 0.03125, %v482_v48  ;;  %v527_v36 = vmul.f32 0.03125, %v437_v50 }
 0x13e   : > { %1303 = vrsqrt.f32 %v558_v46 }
 0x13f   : > { %v574_v37 = vadd.f32 1e-05, %v542_v51  ;;  %v559_v54 = vadd.f32 1e-05, %v527_v36 }
 0x140   : > { %v485_v8 = vpop.xlane.xlu1 %484  ;;  %v440_v62 = vpop.xlane.xlu0 %439 }
 0x141   : > { %1305 = vrsqrt.f32 %v574_v37  ;;  %v543_v52 = vmul.f32 0.03125, %v485_v8  ;;  %v528_v3 = vmul.f32 0.03125, %v440_v62 }
 0x142   : > { %1307 = vrsqrt.f32 %v559_v54 }
 0x143   : > { %v1300_v4 = vpop.eup %1299  ;;  %v575_v6 = vadd.f32 1e-05, %v543_v52  ;;  %v560_v12 = vadd.f32 1e-05, %v528_v3 }
 0x144   : > { %v488_v40 = vpop.xlane.xlu1 %487  ;;  %v443_v18 = vpop.xlane.xlu0 %442  ;;  %v621_v56 = vmul.f32 %v1300_v4, %v1575_v10 }
 0x145   : > { %1309 = vrsqrt.f32 %v575_v6  ;;  %v544_v22 = vmul.f32 0.03125, %v488_v40  ;;  %v529_v23 = vmul.f32 0.03125, %v443_v18 }
 0x146   : > { %1311 = vrsqrt.f32 %v560_v12  ;;  %v659_v16 = vmul.f32 %v1781_v14, %v621_v56 }
 0x147   : > { %v1302_v30 = vpop.eup %1301  ;;  %v576_v60 = vadd.f32 1e-05, %v544_v22  ;;  %v561_v61 = vadd.f32 1e-05, %v529_v23 }
 0x148   : > { %v1304_v44 = vpop.eup %1303  ;;  %v491_v33 = vpop.xlane.xlu1 %490  ;;  %v697_v34 = vadd.f32 %v1787_v0, %v659_v16  ;;  %v637_v10 = vmul.f32 %v1302_v30, %v1585_v26 }
 0x149   : > { %v446_v31 = vpop.xlane.xlu0 %445  ;;  %1313 = vrsqrt.f32 %v576_v60  ;;  %v545_v39 = vmul.f32 0.03125, %v491_v33  ;;  %v622_v20 = vmul.f32 %v1304_v44, %v1578_v11 }
 0x14a   : > { %v530_v42 = vmul.f32 0.03125, %v446_v31  ;;  %1315 = vrsqrt.f32 %v561_v61  ;;  %1231 = vmatprep.mubr.msk.f32.mxu0 %vm235_vm0, %v697_v34  ;;  %v675_v46 = vmul.f32 %v1781_v14, %v637_v10 }
 0x14b   : > { %v1306_v48 = vpop.eup %1305  ;;  %v577_v50 = vadd.f32 1e-05, %v545_v39  ;;  %v660_v36 = vmul.f32 %v1781_v14, %v622_v20 }
 0x14c   : > { %v562_v51 = vadd.f32 1e-05, %v530_v42  ;;  %v1308_v37 = vpop.eup %1307  ;;  %v494_v54 = vpop.xlane.xlu1 %493  ;;  %v713_v26 = vadd.f32 %v1787_v0, %v675_v46  ;;  %v638_v62 = vmul.f32 %v1306_v48, %v1588_v27 }
 0x14d   : > { %v449_v8 = vpop.xlane.xlu0 %448  ;;  %1317 = vrsqrt.f32 %v577_v50  ;;  %v546_v52 = vmul.f32 0.03125, %v494_v54  ;;  %v698_v3 = vadd.f32 %v1787_v0, %v660_v36  ;;  %v623_v4 = vmul.f32 %v1308_v37, %v1597_v2 }
 0x14e   : > { %v531_v11 = vmul.f32 0.03125, %v449_v8  ;;  %1319 = vrsqrt.f32 %v562_v51  ;;  %1255 = vmatprep.mubr.msk.f32.mxu1 %vm235_vm0, %v713_v26  ;;  %v676_v6 = vmul.f32 %v1781_v14, %v638_v62 }
 0x14f   : > { %v1310_v12 = vpop.eup %1309  ;;  %v578_v40 = vadd.f32 1e-05, %v546_v52  ;;  %1232 = vmatmul.mubr.msk.f32.vlgmr.msra.gmra.mrb[0].mxu0 %vm235_vm0, %v698_v3  ;;  %v661_v23 = vmul.f32 %v1781_v14, %v623_v4 }
 0x150   : > { %v563_v18 = vadd.f32 1e-05, %v531_v11  ;;  %v1312_v56 = vpop.eup %1311  ;;  %v497_v22 = vpop.xlane.xlu1 %496  ;;  %v714_v16 = vadd.f32 %v1787_v0, %v676_v6  ;;  %v639_v30 = vmul.f32 %v1310_v12, %v1600_v5 }
 0x151   : > { %v452_v27 = vpop.xlane.xlu0 %451  ;;  %1321 = vrsqrt.f32 %v578_v40  ;;  %v547_v60 = vmul.f32 0.03125, %v497_v22  ;;  %v624_v2 = vmul.f32 %v1312_v56, %v1609_v55  ;;  %v699_v44 = vadd.f32 %v1787_v0, %v661_v23 }
 0x152   : > { %v532_v61 = vmul.f32 0.03125, %v452_v27  ;;  %1323 = vrsqrt.f32 %v563_v18  ;;  %1256 = vmatmul.mubr.msk.f32.vlgmr.msra.gmra.mrb[0].mxu1 %vm235_vm0, %v714_v16  ;;  %v677_v33 = vmul.f32 %v1781_v14, %v639_v30 }
 0x153   : > { %v1314_v31 = vpop.eup %1313  ;;  %v579_v34 = vadd.f32 1e-05, %v547_v60  ;;  %v662_v39 = vmul.f32 %v1781_v14, %v624_v2  ;;  %1234 = vmatprep.mubr.msk.f32.mxu0 %vm235_vm0, %v699_v44 }
 0x154   : > { %v564_v10 = vadd.f32 1e-05, %v532_v61  ;;  %v1316_v42 = vpop.eup %1315  ;;  %v500_v5 = vpop.xlane.xlu1 %499  ;;  %v715_v46 = vadd.f32 %v1787_v0, %v677_v33  ;;  %v640_v55 = vmul.f32 %v1314_v31, %v1612_v9 }
 0x155   : > { %v455_v20 = vpop.xlane.xlu0 %454  ;;  %1325 = vrsqrt.f32 %v579_v34  ;;  %v548_v48 = vmul.f32 0.03125, %v500_v5  ;;  %v700_v51 = vadd.f32 %v1787_v0, %v662_v39  ;;  %v625_v36 = vmul.f32 %v1316_v42, %v1621_v7 }
 0x156   : > { %v533_v50 = vmul.f32 0.03125, %v455_v20  ;;  %1327 = vrsqrt.f32 %v564_v10  ;;  %1258 = vmatprep.mubr.msk.f32.mxu1 %vm235_vm0, %v715_v46  ;;  %v678_v37 = vmul.f32 %v1781_v14, %v640_v55 }
 0x157   : > { %v1318_v54 = vpop.eup %1317  ;;  %v580_v8 = vadd.f32 1e-05, %v548_v48  ;;  %1235 = vmatmul.mubr.msk.f32.gmra.mrb[2].mxu0 %vm235_vm0, %v700_v51  ;;  %v663_v11 = vmul.f32 %v1781_v14, %v625_v36 }
 0x158   : > { %v565_v26 = vadd.f32 1e-05, %v533_v50  ;;  %v1320_v62 = vpop.eup %1319  ;;  %v503_v52 = vpop.xlane.xlu1 %502  ;;  %v716_v3 = vadd.f32 %v1787_v0, %v678_v37  ;;  %v641_v4 = vmul.f32 %v1318_v54, %v1624_v13 }
 0x159   : > { %v458_v9 = vpop.xlane.xlu0 %457  ;;  %1329 = vrsqrt.f32 %v580_v8  ;;  %v549_v6 = vmul.f32 0.03125, %v503_v52  ;;  %v626_v7 = vmul.f32 %v1320_v62, %v1633_v1  ;;  %v701_v40 = vadd.f32 %v1787_v0, %v663_v11 }
 0x15a   : > { %v534_v12 = vmul.f32 0.03125, %v458_v9  ;;  %1331 = vrsqrt.f32 %v565_v26  ;;  %1259 = vmatmul.mubr.msk.f32.gmra.mrb[2].mxu1 %vm235_vm0, %v716_v3  ;;  %v679_v18 = vmul.f32 %v1781_v14, %v641_v4 }
 0x15b   : > { %v1322_v56 = vpop.eup %1321  ;;  %v581_v22 = vadd.f32 1e-05, %v549_v6  ;;  %v664_v23 = vmul.f32 %v1781_v14, %v626_v7  ;;  %1237 = vmatprep.mubr.msk.f32.mxu0 %vm235_vm0, %v701_v40 }
 0x15c   : > { %v566_v27 = vadd.f32 1e-05, %v534_v12  ;;  %v1324_v16 = vpop.eup %1323  ;;  %v506_v13 = vpop.xlane.xlu1 %505  ;;  %v717_v60 = vadd.f32 %v1787_v0, %v679_v18  ;;  %v642_v1 = vmul.f32 %v1322_v56, %v1636_v17 }
 0x15d   : > { %v461_v30 = vpop.xlane.xlu0 %460  ;;  %1333 = vrsqrt.f32 %v581_v22  ;;  %v550_v61 = vmul.f32 0.03125, %v506_v13  ;;  %v702_v44 = vadd.f32 %v1787_v0, %v664_v23  ;;  %v627_v33 = vmul.f32 %v1324_v16, %v1645_v43 }
 0x15e   : > { %v535_v2 = vmul.f32 0.03125, %v461_v30  ;;  %1335 = vrsqrt.f32 %v566_v27  ;;  %1261 = vmatprep.mubr.msk.f32.mxu1 %vm235_vm0, %v717_v60  ;;  %v680_v31 = vmul.f32 %v1781_v14, %v642_v1 }
 0x15f   : > { %v1326_v34 = vpop.eup %1325  ;;  %v582_v10 = vadd.f32 1e-05, %v550_v61  ;;  %1238 = vmatmul.mubr.msk.f32.gmra.mrb[4].mxu0 %vm235_vm0, %v702_v44  ;;  %v665_v20 = vmul.f32 %v1781_v14, %v627_v33 }
 0x160   : > { %v567_v39 = vadd.f32 1e-05, %v535_v2  ;;  %v1328_v42 = vpop.eup %1327  ;;  %v509_v5 = vpop.xlane.xlu1 %508  ;;  %v718_v46 = vadd.f32 %v1787_v0, %v680_v31  ;;  %v643_v55 = vmul.f32 %v1326_v34, %v1648_v21 }
 0x161   : > { %v464_v17 = vpop.xlane.xlu0 %463  ;;  %1337 = vrsqrt.f32 %v582_v10  ;;  %v551_v48 = vmul.f32 0.03125, %v509_v5  ;;  %v628_v43 = vmul.f32 %v1328_v42, %v1657_v59  ;;  %v703_v51 = vadd.f32 %v1787_v0, %v665_v20 }
 0x162   : > { %v536_v50 = vmul.f32 0.03125, %v464_v17  ;;  %1339 = vrsqrt.f32 %v567_v39  ;;  %1262 = vmatmul.mubr.msk.f32.gmra.mrb[4].mxu1 %vm235_vm0, %v718_v46  ;;  %v681_v36 = vmul.f32 %v1781_v14, %v643_v55 }
 0x163   : > { %v1330_v37 = vpop.eup %1329  ;;  %v583_v54 = vadd.f32 1e-05, %v551_v48  ;;  %v666_v26 = vmul.f32 %v1781_v14, %v628_v43  ;;  %1240 = vmatprep.mubr.msk.f32.mxu0 %vm235_vm0, %v703_v51 }
 0x164   : > { %v568_v8 = vadd.f32 1e-05, %v536_v50  ;;  %v1332_v62 = vpop.eup %1331  ;;  %v512_v21 = vpop.xlane.xlu1 %511  ;;  %v719_v9 = vadd.f32 %v1787_v0, %v681_v36  ;;  %v644_v59 = vmul.f32 %v1330_v37, %v1660_v25 }
 0x165   : > { %v467_v52 = vpop.xlane.xlu0 %466  ;;  %1341 = vrsqrt.f32 %v583_v54  ;;  %v552_v11 = vmul.f32 0.03125, %v512_v21  ;;  %v704_v4 = vadd.f32 %v1787_v0, %v666_v26  ;;  %v629_v6 = vmul.f32 %v1332_v62, %v1669_v15 }
 0x166   : > { %v537_v3 = vmul.f32 0.03125, %v467_v52  ;;  %1343 = vrsqrt.f32 %v568_v8  ;;  %1264 = vmatprep.mubr.msk.f32.mxu1 %vm235_vm0, %v719_v9  ;;  %v682_v12 = vmul.f32 %v1781_v14, %v644_v59 }
 0x167   : > { %v1334_v7 = vpop.eup %1333  ;;  %v584_v40 = vadd.f32 1e-05, %v552_v11  ;;  %1241 = vmatmul.mubr.msk.f32.gmra.mrb[6].mxu0 %vm235_vm0, %v704_v4  ;;  %v667_v27 = vmul.f32 %v1781_v14, %v629_v6 }
 0x168   : > { %v569_v18 = vadd.f32 1e-05, %v537_v3  ;;  %v1336_v56 = vpop.eup %1335  ;;  %v515_v22 = vpop.xlane.xlu1 %514  ;;  %v720_v23 = vadd.f32 %v1787_v0, %v682_v12  ;;  %v645_v16 = vmul.f32 %v1334_v7, %v1672_v29 }
 0x169   : > { %v470_v25 = vpop.xlane.xlu0 %469  ;;  %1345 = vrsqrt.f32 %v584_v40  ;;  %v553_v13 = vmul.f32 0.03125, %v515_v22  ;;  %v630_v15 = vmul.f32 %v1336_v56, %v1687_v35  ;;  %v705_v60 = vadd.f32 %v1787_v0, %v667_v27 }
 0x16a   : > { %v538_v30 = vmul.f32 0.03125, %v470_v25  ;;  %1347 = vrsqrt.f32 %v569_v18  ;;  %1265 = vmatmul.mubr.msk.f32.gmra.mrb[6].mxu1 %vm235_vm0, %v720_v23  ;;  %v683_v1 = vmul.f32 %v1781_v14, %v645_v16 }
 0x16b   : > { %v1338_v61 = vpop.eup %1337  ;;  %v585_v2 = vadd.f32 1e-05, %v553_v13  ;;  %v668_v33 = vmul.f32 %v1781_v14, %v630_v15  ;;  %1243 = vmatprep.mubr.msk.f32.mxu0 %vm235_vm0, %v705_v60 }
 0x16c   : > { %v570_v44 = vadd.f32 1e-05, %v538_v30  ;;  %v1340_v31 = vpop.eup %1339  ;;  %v518_v29 = vpop.xlane.xlu1 %517  ;;  %v721_v10 = vadd.f32 %v1787_v0, %v683_v1  ;;  %v646_v35 = vmul.f32 %v1338_v61, %v1690_v38 }
 0x16d   : > { %v473_v34 = vpop.xlane.xlu0 %472  ;;  %1349 = vrsqrt.f32 %v585_v2  ;;  %v554_v39 = vmul.f32 0.03125, %v518_v29  ;;  %v706_v5 = vadd.f32 %v1787_v0, %v668_v33  ;;  %v631_v17 = vmul.f32 %v1340_v31, %v1705_v58 }
 0x16e   : > { %v539_v42 = vmul.f32 0.03125, %v473_v34  ;;  %1351 = vrsqrt.f32 %v570_v44  ;;  %1267 = vmatprep.mubr.msk.f32.mxu1 %vm235_vm0, %v721_v10  ;;  %v684_v20 = vmul.f32 %v1781_v14, %v646_v35 }
 0x16f   : > { %v1342_v46 = vpop.eup %1341  ;;  %v586_v55 = vadd.f32 1e-05, %v554_v39  ;;  %1244 = vmatmul.mubr.msk.f32.gmra.mrb[8].mxu0 %vm235_vm0, %v706_v5  ;;  %v669_v51 = vmul.f32 %v1781_v14, %v631_v17 }
 0x170   : > { %v571_v48 = vadd.f32 1e-05, %v539_v42  ;;  %v1344_v50 = vpop.eup %1343  ;;  %v521_v43 = vpop.xlane.xlu1 %520  ;;  %v722_v36 = vadd.f32 %v1787_v0, %v684_v20  ;;  %v647_v37 = vmul.f32 %v1342_v46, %v1708_v24 }
 0x171   : > { %v476_v38 = vpop.xlane.xlu0 %475  ;;  %1353 = vrsqrt.f32 %v586_v55  ;;  %v555_v54 = vmul.f32 0.03125, %v521_v43  ;;  %v632_v58 = vmul.f32 %v1344_v50, %v1717_v41  ;;  %v707_v26 = vadd.f32 %v1787_v0, %v669_v51 }
 0x172   : > { %v540_v8 = vmul.f32 0.03125, %v476_v38  ;;  %1355 = vrsqrt.f32 %v571_v48  ;;  %1268 = vmatmul.mubr.msk.f32.gmra.mrb[8].mxu1 %vm235_vm0, %v722_v36  ;;  %v685_v62 = vmul.f32 %v1781_v14, %v647_v37 }
 0x173   : > { %v1346_v21 = vpop.eup %1345  ;;  %v587_v52 = vadd.f32 1e-05, %v555_v54  ;;  %v670_v59 = vmul.f32 %v1781_v14, %v632_v58  ;;  %1246 = vmatprep.mubr.msk.f32.mxu0 %vm235_vm0, %v707_v26 }
 0x174   : > { %v572_v9 = vadd.f32 1e-05, %v540_v8  ;;  %v1348_v11 = vpop.eup %1347  ;;  %v524_v24 = vpop.xlane.xlu1 %523  ;;  %v723_v3 = vadd.f32 %v1787_v0, %v685_v62  ;;  %v648_v41 = vmul.f32 %v1346_v21, %v1720_v28 }
 0x175   : > { %1357 = vrsqrt.f32 %v587_v52  ;;  %v556_v4 = vmul.f32 0.03125, %v524_v24  ;;  %v708_v6 = vadd.f32 %v1787_v0, %v670_v59  ;;  %v633_v12 = vmul.f32 %v1348_v11, %v1729_v32 }
 0x176   : > { %1359 = vrsqrt.f32 %v572_v9  ;;  %1270 = vmatprep.mubr.msk.f32.mxu1 %vm235_vm0, %v723_v3  ;;  %v686_v7 = vmul.f32 %v1781_v14, %v648_v41 }
 0x177   : > { %v1350_v40 = vpop.eup %1349  ;;  %v588_v18 = vadd.f32 1e-05, %v556_v4  ;;  %1247 = vmatmul.mubr.msk.f32.gmra.mrb[10].mxu0 %vm235_vm0, %v708_v6  ;;  %v671_v56 = vmul.f32 %v1781_v14, %v633_v12 }
 0x178   : > { %v1352_v22 = vpop.eup %1351  ;;  %v724_v28 = vadd.f32 %v1787_v0, %v686_v7  ;;  %v649_v25 = vmul.f32 %v1350_v40, %v1732_v45 }
 0x179   : > { %1361 = vrsqrt.f32 %v588_v18  ;;  %v709_v27 = vadd.f32 %v1787_v0, %v671_v56  ;;  %v634_v32 = vmul.f32 %v1352_v22, %v1741_v47 }
 0x17a   : > { %1271 = vmatmul.mubr.msk.f32.gmra.mrb[10].mxu1 %vm235_vm0, %v724_v28  ;;  %v687_v23 = vmul.f32 %v1781_v14, %v649_v25 }
 0x17b   : > { %v1354_v16 = vpop.eup %1353  ;;  %1249 = vmatprep.mubr.msk.f32.mxu0 %vm235_vm0, %v709_v27  ;;  %v672_v13 = vmul.f32 %v1781_v14, %v634_v32 }
 0x17c   : > { %v1356_v30 = vpop.eup %1355  ;;  %v725_v15 = vadd.f32 %v1787_v0, %v687_v23  ;;  %v650_v60 = vmul.f32 %v1354_v16, %v1744_v49 }
 0x17d   : > { %v710_v45 = vadd.f32 %v1787_v0, %v672_v13  ;;  %v635_v1 = vmul.f32 %v1356_v30, %v1753_v63 }
 0x17e   : > { %1273 = vmatprep.mubr.msk.f32.mxu1 %vm235_vm0, %v725_v15  ;;  %v688_v47 = vmul.f32 %v1781_v14, %v650_v60 }
 0x17f   : > { %v1358_v61 = vpop.eup %1357  ;;  %1250 = vmatmul.mubr.msk.f32.gmra.mrb[12].mxu0 %vm235_vm0, %v710_v45  ;;  %v673_v2 = vmul.f32 %v1781_v14, %v635_v1 }
 0x180   : > { %v1360_v44 = vpop.eup %1359  ;;  %v726_v33 = vadd.f32 %v1787_v0, %v688_v47  ;;  %v651_v31 = vmul.f32 %v1358_v61, %v1756_v53 }
 0x181   : > { %v711_v49 = vadd.f32 %v1787_v0, %v673_v2  ;;  %v636_v29 = vmul.f32 %v1360_v44, %v1765_v19 }
 0x182   : > { %1274 = vmatmul.mubr.msk.f32.gmra.mrb[12].mxu1 %vm235_vm0, %v726_v33  ;;  %v689_v63 = vmul.f32 %v1781_v14, %v651_v31 }
 0x183   : > { %v1362_v34 = vpop.eup %1361  ;;  %1252 = vmatprep.mubr.msk.f32.mxu0 %vm235_vm0, %v711_v49  ;;  %v674_v10 = vmul.f32 %v1781_v14, %v636_v29 }
 0x184   : > { %v727_v35 = vadd.f32 %v1787_v0, %v689_v63  ;;  %v652_v39 = vmul.f32 %v1362_v34, %v1768_v57 }
 0x185   : > { %v712_v53 = vadd.f32 %v1787_v0, %v674_v10 }
 0x186   : > { %1276 = vmatprep.mubr.msk.f32.mxu1 %vm235_vm0, %v727_v35  ;;  %v690_v42 = vmul.f32 %v1781_v14, %v652_v39 }
 0x187   : > { %1253 = vmatmul.mubr.msk.f32.gmra.mrb[14].mxu0 %vm235_vm0, %v712_v53 }
 0x188   : > { %v728_v19 = vadd.f32 %v1787_v0, %v690_v42 }
 0x18a   : > { %1277 = vmatmul.mubr.msk.f32.gmra.mrb[14].mxu1 %vm235_vm0, %v728_v19 }
 0x222   : > { %v1233_v57 = vpop.f32.mrb[0].mxu0 }
 0x223   : > { %1055 = vst.msk [vmem:[%s1921_s10 + $0x8] sm:$0xff] %vm235_vm0, %v1233_v57  ;;  %v895_v14 = vpop.f32.mrb[1].mxu0 }
 0x224   : > { %1054 = vst.msk [vmem:[%s1921_s10] sm:$0xff] %vm235_vm0, %v895_v14 }
 0x225   : > { %v1257_v0 = vpop.f32.mrb[0].mxu1 }
 0x226   : > { %1071 = vst.msk [vmem:[%s1921_s10 + $0x88] sm:$0xff] %vm235_vm0, %v1257_v0  ;;  %v975_v5 = vpop.f32.mrb[1].mxu1 }
 0x227   : > { %1070 = vst.msk [vmem:[%s1921_s10 + $0x80] sm:$0xff] %vm235_vm0, %v975_v5 }
 0x22a   : > { %v1236_v17 = vpop.f32.mrb[2].mxu0 }
 0x22b   : > { %1057 = vst.msk [vmem:[%s1921_s10 + $0x18] sm:$0xff] %vm235_vm0, %v1236_v17  ;;  %v905_v20 = vpop.f32.mrb[3].mxu0 }
 0x22c   : > { %1056 = vst.msk [vmem:[%s1921_s10 + $0x10] sm:$0xff] %vm235_vm0, %v905_v20 }
 0x22d   : > { %v1260_v46 = vpop.f32.mrb[2].mxu1 }
 0x22e   : > { %1073 = vst.msk [vmem:[%s1921_s10 + $0x98] sm:$0xff] %vm235_vm0, %v1260_v46  ;;  %v985_v55 = vpop.f32.mrb[3].mxu1 }
 0x22f   : > { %1072 = vst.msk [vmem:[%s1921_s10 + $0x90] sm:$0xff] %vm235_vm0, %v985_v55 }
 0x232   : > { %v1239_v48 = vpop.f32.mrb[4].mxu0 }
 0x233   : > { %1059 = vst.msk [vmem:[%s1921_s10 + $0x28] sm:$0xff] %vm235_vm0, %v1239_v48  ;;  %v915_v50 = vpop.f32.mrb[5].mxu0 }
 0x234   : > { %1058 = vst.msk [vmem:[%s1921_s10 + $0x20] sm:$0xff] %vm235_vm0, %v915_v50 }
 0x235   : > { %v1263_v43 = vpop.f32.mrb[4].mxu1 }
 0x236   : > { %1075 = vst.msk [vmem:[%s1921_s10 + $0xa8] sm:$0xff] %vm235_vm0, %v1263_v43  ;;  %v995_v38 = vpop.f32.mrb[5].mxu1 }
 0x237   : > { %1074 = vst.msk [vmem:[%s1921_s10 + $0xa0] sm:$0xff] %vm235_vm0, %v995_v38 }
 0x23a   : > { %v1242_v51 = vpop.f32.mrb[6].mxu0 }
 0x23b   : > { %1061 = vst.msk [vmem:[%s1921_s10 + $0x38] sm:$0xff] %vm235_vm0, %v1242_v51  ;;  %v925_v36 = vpop.f32.mrb[7].mxu0 }
 0x23c   : > { %1060 = vst.msk [vmem:[%s1921_s10 + $0x30] sm:$0xff] %vm235_vm0, %v925_v36 }
 0x23d   : > { %v1266_v37 = vpop.f32.mrb[6].mxu1 }
 0x23e   : > { %1077 = vst.msk [vmem:[%s1921_s10 + $0xb8] sm:$0xff] %vm235_vm0, %v1266_v37  ;;  %v1005_v54 = vpop.f32.mrb[7].mxu1 }
 0x23f   : > { %1076 = vst.msk [vmem:[%s1921_s10 + $0xb0] sm:$0xff] %vm235_vm0, %v1005_v54 }
 0x242   : > { %v1245_v8 = vpop.f32.mrb[8].mxu0 }
 0x243   : > { %1063 = vst.msk [vmem:[%s1921_s10 + $0x48] sm:$0xff] %vm235_vm0, %v1245_v8  ;;  %v935_v58 = vpop.f32.mrb[9].mxu0 }
 0x244   : > { %1062 = vst.msk [vmem:[%s1921_s10 + $0x40] sm:$0xff] %vm235_vm0, %v935_v58 }
 0x245   : > { %v1269_v26 = vpop.f32.mrb[8].mxu1 }
 0x246   : > { %1079 = vst.msk [vmem:[%s1921_s10 + $0xc8] sm:$0xff] %vm235_vm0, %v1269_v26  ;;  %v1015_v62 = vpop.f32.mrb[9].mxu1 }
 0x247   : > { %1078 = vst.msk [vmem:[%s1921_s10 + $0xc0] sm:$0xff] %vm235_vm0, %v1015_v62 }
 0x24a   : > { %v1248_v21 = vpop.f32.mrb[10].mxu0 }
 0x24b   : > { %1065 = vst.msk [vmem:[%s1921_s10 + $0x58] sm:$0xff] %vm235_vm0, %v1248_v21  ;;  %v945_v52 = vpop.f32.mrb[11].mxu0 }
 0x24c   : > { %1064 = vst.msk [vmem:[%s1921_s10 + $0x50] sm:$0xff] %vm235_vm0, %v945_v52 }
 0x24d   : > { %v1272_v9 = vpop.f32.mrb[10].mxu1 }
 0x24e   : > { %1081 = vst.msk [vmem:[%s1921_s10 + $0xd8] sm:$0xff] %vm235_vm0, %v1272_v9  ;;  %v1025_v59 = vpop.f32.mrb[11].mxu1 }
 0x24f   : > { %1080 = vst.msk [vmem:[%s1921_s10 + $0xd0] sm:$0xff] %vm235_vm0, %v1025_v59 }
 0x252   : > { %v1251_v11 = vpop.f32.mrb[12].mxu0 }
 0x253   : > { %1067 = vst.msk [vmem:[%s1921_s10 + $0x68] sm:$0xff] %vm235_vm0, %v1251_v11  ;;  %v955_v24 = vpop.f32.mrb[13].mxu0 }
 0x254   : > { %1066 = vst.msk [vmem:[%s1921_s10 + $0x60] sm:$0xff] %vm235_vm0, %v955_v24 }
 0x255   : > { %v1275_v3 = vpop.f32.mrb[12].mxu1 }
 0x256   : > { %1083 = vst.msk [vmem:[%s1921_s10 + $0xe8] sm:$0xff] %vm235_vm0, %v1275_v3  ;;  %v1035_v41 = vpop.f32.mrb[13].mxu1 }
 0x257   : > { %1082 = vst.msk [vmem:[%s1921_s10 + $0xe0] sm:$0xff] %vm235_vm0, %v1035_v41 }
 0x25a   : > { %v1254_v4 = vpop.f32.mrb[14].mxu0 }
 0x25b   : > { %1069 = vst.msk [vmem:[%s1921_s10 + $0x78] sm:$0xff] %vm235_vm0, %v1254_v4  ;;  %v965_v6 = vpop.f32.mrb[15].mxu0 }
 0x25c   : > { %1068 = vst.msk [vmem:[%s1921_s10 + $0x70] sm:$0xff] %vm235_vm0, %v965_v6 }
 0x25d   : > { %v1278_v12 = vpop.f32.mrb[14].mxu1 }
 0x25e   : > { %1085 = vst.msk [vmem:[%s1921_s10 + $0xf8] sm:$0xff] %vm235_vm0, %v1278_v12  ;;  %v1045_v7 = vpop.f32.mrb[15].mxu1 }
 0x25f   : > { %1084 = vst.msk [vmem:[%s1921_s10 + $0xf0] sm:$0xff] %vm235_vm0, %v1045_v7 }
 0x260 PF: > { %s14_s15 = sadd.s32 1, %s1369_s15  }
 0x261   : > { %p11_p4 = scmp.ge.s32.totalorder %s14_s15, 4  }
 0x263   :  { %13 = sbr.rel (!%p11_p4) target bundleno = 1 (0x1), region = 66 }

// kernel: block_forward.19
= control target key start
LH: loop header
LB: loop body
LE: loop exit
PB: predicated region body
PF: predicated region fallthrough
CT: control target
= control target key end

     0   :  { %s1596_s18 = smov 0   ;;  %s2195_s0 = inlined_call_operand.vmem [shape: f32[512,32], index: 0, kind: input, shape index: {}]   ;;  %s2196_s1 = inlined_call_operand.vmem [shape: f32[1,32], index: 1, kind: input, shape index: {}]   ;;  %s2197_s2 = inlined_call_operand.vmem [shape: f32[1,32], index: 2, kind: input, shape index: {}]   ;;  %s2198_s3 = inlined_call_operand.vmem [shape: f32[32,128], index: 3, kind: input, shape index: {}]   ;;  %s2199_s4 = inlined_call_operand.vmem [shape: f32[1,128], index: 4, kind: input, shape index: {}]   ;;  %s2200_s5 = inlined_call_operand.vmem [shape: f32[512,128], index: 5, kind: output, shape index: {}]  }
   0x1 LB: > { %s1336_s19 = sadd.s32 4294967295, %s1564_s18   ;;  %p1340_p0 = scmp.ge.s32.totalorder %s1564_s18, 1  ;;  %s1564_s18 = sphi %s1596_s18, %s15_s18  }
   0x2   : > { %p188_p1 = scmp.lt.s32.totalorder %s1564_s18, 3 }
   0x4   : > { %p189_p2 = pnand %p1340_p0, %p188_p1 }
   0x5   : > { %s1341_s20 = sshll.u32 (!%p189_p2), %s1336_s19, 5  ;;  %vm262_vm0 = vcmask (!%p189_p2), 261120  }
   0x6   : > { %192 = sbr.rel (%p189_p2) target bundleno = 620 (0x26c), region = 40  ;;  %p217_p3 = scmp.lt.s32.totalorder (!%p189_p2), %s1341_s20, 63 }
   0xd   : > { %s2202_s20 = smov (!%p217_p3, %s1341_s20), 63 }
   0xe   : > { %s1342_s21 = sshll.u32 %s2202_s20, 3 }
   0xf   : > { %s1612_s24 = scalar_lea.vmem %s2195_s0, %s1342_s21  ;;  %s2131_s16 = scalar_lea.vmem %s2200_s5, %s1342_s21 }
  0x10   : > { %v1615_v0 = vld [vmem:[%s1612_s24] sm:$0xff]  ;;  %v1618_v1 = vld [vmem:[%s1612_s24 + $0x8] sm:$0xff]  ;;  %v1635_v8 = vld [vmem:[%s1612_s24 + $0x10] sm:$0xff] }
  0x11   : > { %v1621_v2 = vld [vmem:[%s1612_s24 + $0x80] sm:$0xff]  ;;  %v263_v3 = vsel %vm262_vm0, %v1615_v0, 0.0  ;;  %v266_v4 = vsel %vm262_vm0, %v1618_v1, 0.0  ;;  %v1628_v5 = vld [vmem:[%s1612_s24 + $0x88] sm:$0xff]  ;;  %v1638_v9 = vld [vmem:[%s1612_s24 + $0x90] sm:$0xff]  ;;  %v269_v10 = vsel %vm262_vm0, %v1635_v8, 0.0 }
  0x12   : > { %264 = vadd.xlane.f32.xlu0 %v263_v3  ;;  %267 = vadd.xlane.f32.xlu1 %v266_v4  ;;  %v311_v6 = vsel %vm262_vm0, %v1621_v2, 0.0  ;;  %v314_v7 = vsel %vm262_vm0, %v1628_v5, 0.0  ;;  %v317_v11 = vsel %vm262_vm0, %v1638_v9, 0.0  ;;  %v1645_v12 = vld [vmem:[%s1612_s24 + $0x18] sm:$0xff]  ;;  %v1655_v16 = vld [vmem:[%s1612_s24 + $0x20] sm:$0xff]  ;;  %v1665_v20 = vld [vmem:[%s1612_s24 + $0x28] sm:$0xff] }
  0x13   : > { %v1648_v13 = vld [vmem:[%s1612_s24 + $0x98] sm:$0xff]  ;;  %v272_v14 = vsel %vm262_vm0, %v1645_v12, 0.0  ;;  %v1658_v17 = vld [vmem:[%s1612_s24 + $0xa0] sm:$0xff]  ;;  %v275_v18 = vsel %vm262_vm0, %v1655_v16, 0.0  ;;  %v1668_v21 = vld [vmem:[%s1612_s24 + $0xa8] sm:$0xff]  ;;  %v278_v22 = vsel %vm262_vm0, %v1665_v20, 0.0 }
  0x14   : > { %v320_v15 = vsel %vm262_vm0, %v1648_v13, 0.0  ;;  %v323_v19 = vsel %vm262_vm0, %v1658_v17, 0.0  ;;  %v326_v23 = vsel %vm262_vm0, %v1668_v21, 0.0  ;;  %v1675_v24 = vld [vmem:[%s1612_s24 + $0x30] sm:$0xff]  ;;  %v1685_v28 = vld [vmem:[%s1612_s24 + $0x38] sm:$0xff]  ;;  %v1695_v32 = vld [vmem:[%s1612_s24 + $0x40] sm:$0xff] }
  0x15   : > { %v1678_v25 = vld [vmem:[%s1612_s24 + $0xb0] sm:$0xff]  ;;  %v281_v26 = vsel %vm262_vm0, %v1675_v24, 0.0  ;;  %v1688_v29 = vld [vmem:[%s1612_s24 + $0xb8] sm:$0xff]  ;;  %v284_v30 = vsel %vm262_vm0, %v1685_v28, 0.0  ;;  %v1698_v33 = vld [vmem:[%s1612_s24 + $0xc0] sm:$0xff]  ;;  %v287_v34 = vsel %vm262_vm0, %v1695_v32, 0.0 }
  0x16   : > { %312 = vadd.xlane.f32.xlu0 %v311_v6  ;;  %315 = vadd.xlane.f32.xlu1 %v314_v7  ;;  %v329_v27 = vsel %vm262_vm0, %v1678_v25, 0.0  ;;  %v332_v31 = vsel %vm262_vm0, %v1688_v29, 0.0  ;;  %v335_v35 = vsel %vm262_vm0, %v1698_v33, 0.0  ;;  %v1705_v36 = vld [vmem:[%s1612_s24 + $0x48] sm:$0xff]  ;;  %v1715_v40 = vld [vmem:[%s1612_s24 + $0x50] sm:$0xff]  ;;  %v1725_v44 = vld [vmem:[%s1612_s24 + $0x58] sm:$0xff] }
  0x17   : > { %v1708_v37 = vld [vmem:[%s1612_s24 + $0xc8] sm:$0xff]  ;;  %v290_v38 = vsel %vm262_vm0, %v1705_v36, 0.0  ;;  %v1718_v41 = vld [vmem:[%s1612_s24 + $0xd0] sm:$0xff]  ;;  %v293_v42 = vsel %vm262_vm0, %v1715_v40, 0.0  ;;  %v1728_v45 = vld [vmem:[%s1612_s24 + $0xd8] sm:$0xff]  ;;  %v296_v46 = vsel %vm262_vm0, %v1725_v44, 0.0 }
  0x18   : > { %v338_v39 = vsel %vm262_vm0, %v1708_v37, 0.0  ;;  %v341_v43 = vsel %vm262_vm0, %v1718_v41, 0.0  ;;  %v344_v47 = vsel %vm262_vm0, %v1728_v45, 0.0  ;;  %v1735_v48 = vld [vmem:[%s1612_s24 + $0x60] sm:$0xff]  ;;  %v1745_v52 = vld [vmem:[%s1612_s24 + $0x68] sm:$0xff]  ;;  %v1755_v56 = vld [vmem:[%s1612_s24 + $0x70] sm:$0xff] }
  0x19   : > { %v1738_v49 = vld [vmem:[%s1612_s24 + $0xe0] sm:$0xff]  ;;  %v299_v50 = vsel %vm262_vm0, %v1735_v48, 0.0  ;;  %v1748_v53 = vld [vmem:[%s1612_s24 + $0xe8] sm:$0xff]  ;;  %v302_v54 = vsel %vm262_vm0, %v1745_v52, 0.0  ;;  %v1758_v57 = vld [vmem:[%s1612_s24 + $0xf0] sm:$0xff]  ;;  %v305_v58 = vsel %vm262_vm0, %v1755_v56, 0.0 }
  0x1a   : > { %270 = vadd.xlane.f32.xlu0 %v269_v10  ;;  %318 = vadd.xlane.f32.xlu1 %v317_v11  ;;  %v347_v51 = vsel %vm262_vm0, %v1738_v49, 0.0  ;;  %v350_v55 = vsel %vm262_vm0, %v1748_v53, 0.0  ;;  %v353_v59 = vsel %vm262_vm0, %v1758_v57, 0.0  ;;  %v1765_v60 = vld [vmem:[%s1612_s24 + $0x78] sm:$0xff] }
  0x1b   : > { %v1768_v61 = vld [vmem:[%s1612_s24 + $0xf8] sm:$0xff]  ;;  %v308_v62 = vsel %vm262_vm0, %v1765_v60, 0.0 }
  0x1c   : > { %v356_v63 = vsel %vm262_vm0, %v1768_v61, 0.0 }
  0x1e   : > { %273 = vadd.xlane.f32.xlu0 %v272_v14  ;;  %321 = vadd.xlane.f32.xlu1 %v320_v15 }
  0x22   : > { %276 = vadd.xlane.f32.xlu0 %v275_v18  ;;  %324 = vadd.xlane.f32.xlu1 %v323_v19 }
  0x26   : > { %279 = vadd.xlane.f32.xlu0 %v278_v22  ;;  %327 = vadd.xlane.f32.xlu1 %v326_v23 }
  0x2a   : > { %282 = vadd.xlane.f32.xlu0 %v281_v26  ;;  %330 = vadd.xlane.f32.xlu1 %v329_v27 }
  0x2e   : > { %285 = vadd.xlane.f32.xlu0 %v284_v30  ;;  %333 = vadd.xlane.f32.xlu1 %v332_v31 }
  0x32   : > { %288 = vadd.xlane.f32.xlu0 %v287_v34  ;;  %336 = vadd.xlane.f32.xlu1 %v335_v35 }
  0x36   : > { %291 = vadd.xlane.f32.xlu0 %v290_v38  ;;  %339 = vadd.xlane.f32.xlu1 %v338_v39 }
  0x3a   : > { %294 = vadd.xlane.f32.xlu0 %v293_v42  ;;  %342 = vadd.xlane.f32.xlu1 %v341_v43 }
  0x3e   : > { %297 = vadd.xlane.f32.xlu0 %v296_v46  ;;  %345 = vadd.xlane.f32.xlu1 %v344_v47 }
  0x42   : > { %300 = vadd.xlane.f32.xlu0 %v299_v50  ;;  %348 = vadd.xlane.f32.xlu1 %v347_v51 }
  0x46   : > { %303 = vadd.xlane.f32.xlu0 %v302_v54  ;;  %351 = vadd.xlane.f32.xlu1 %v350_v55 }
  0x4a   : > { %306 = vadd.xlane.f32.xlu0 %v305_v58  ;;  %354 = vadd.xlane.f32.xlu1 %v353_v59 }
  0x4e   : > { %309 = vadd.xlane.f32.xlu0 %v308_v62  ;;  %357 = vadd.xlane.f32.xlu1 %v356_v63 }
  0x9f   : > { %v265_v3 = vpop.xlane.xlu0 %264  ;;  %v268_v4 = vpop.xlane.xlu1 %267 }
  0xa0   : > { %v360_v6 = vmul.f32 0.03125, %v265_v3  ;;  %v361_v7 = vmul.f32 0.03125, %v268_v4 }
  0xa2   : > { %v1775_v10 = vsub.f32 %v1615_v0, %v360_v6  ;;  %v1778_v11 = vsub.f32 %v1618_v1, %v361_v7 }
  0xa3   : > { %v313_v14 = vpop.xlane.xlu0 %312  ;;  %v316_v15 = vpop.xlane.xlu1 %315 }
  0xa4   : > { %v376_v18 = vmul.f32 0.03125, %v313_v14  ;;  %v377_v19 = vmul.f32 0.03125, %v316_v15  ;;  %v424_v22 = vmul.f32 %v1775_v10, %v1775_v10  ;;  %v425_v23 = vmul.f32 %v1778_v11, %v1778_v11 }
  0xa6   : > { %v1785_v26 = vsub.f32 %v1621_v2, %v376_v18  ;;  %v1788_v27 = vsub.f32 %v1628_v5, %v377_v19  ;;  %v456_v0 = vsel %vm262_vm0, %v424_v22, 0.0  ;;  %v459_v31 = vsel %vm262_vm0, %v425_v23, 0.0 }
  0xa7   : > { %457 = vadd.xlane.f32.xlu0 %v456_v0  ;;  %v271_v1 = vpop.xlane.xlu0 %270  ;;  %v319_v30 = vpop.xlane.xlu1 %318 }
  0xa8   : > { %v362_v34 = vmul.f32 0.03125, %v271_v1  ;;  %v378_v35 = vmul.f32 0.03125, %v319_v30  ;;  %v440_v38 = vmul.f32 %v1785_v26, %v1785_v26  ;;  %v441_v39 = vmul.f32 %v1788_v27, %v1788_v27 }
  0xaa   : > { %v1797_v2 = vsub.f32 %v1635_v8, %v362_v34  ;;  %v1800_v5 = vsub.f32 %v1638_v9, %v378_v35  ;;  %v504_v42 = vsel %vm262_vm0, %v440_v38, 0.0  ;;  %v507_v47 = vsel %vm262_vm0, %v441_v39, 0.0 }
  0xab   : > { %460 = vadd.xlane.f32.xlu0 %v459_v31  ;;  %505 = vadd.xlane.f32.xlu1 %v504_v42  ;;  %v274_v43 = vpop.xlane.xlu0 %273  ;;  %v322_v46 = vpop.xlane.xlu1 %321 }
  0xac   : > { %v363_v50 = vmul.f32 0.03125, %v274_v43  ;;  %v379_v51 = vmul.f32 0.03125, %v322_v46  ;;  %v426_v54 = vmul.f32 %v1797_v2, %v1797_v2  ;;  %v442_v8 = vmul.f32 %v1800_v5, %v1800_v5 }
  0xae   : > { %v1809_v55 = vsub.f32 %v1645_v12, %v363_v50  ;;  %v1812_v9 = vsub.f32 %v1648_v13, %v379_v51  ;;  %v462_v58 = vsel %vm262_vm0, %v426_v54, 0.0  ;;  %v510_v63 = vsel %vm262_vm0, %v442_v8, 0.0 }
  0xaf   : > { %508 = vadd.xlane.f32.xlu1 %v507_v47  ;;  %463 = vadd.xlane.f32.xlu0 %v462_v58  ;;  %v277_v59 = vpop.xlane.xlu0 %276  ;;  %v325_v62 = vpop.xlane.xlu1 %324 }
  0xb0   : > { %v364_v3 = vmul.f32 0.03125, %v277_v59  ;;  %v380_v4 = vmul.f32 0.03125, %v325_v62  ;;  %v427_v6 = vmul.f32 %v1809_v55, %v1809_v55  ;;  %v443_v12 = vmul.f32 %v1812_v9, %v1812_v9 }
  0xb2   : > { %v1821_v7 = vsub.f32 %v1655_v16, %v364_v3  ;;  %v1824_v13 = vsub.f32 %v1658_v17, %v380_v4  ;;  %v465_v14 = vsel %vm262_vm0, %v427_v6, 0.0  ;;  %v513_v19 = vsel %vm262_vm0, %v443_v12, 0.0 }
  0xb3   : > { %511 = vadd.xlane.f32.xlu1 %v510_v63  ;;  %466 = vadd.xlane.f32.xlu0 %v465_v14  ;;  %v280_v15 = vpop.xlane.xlu0 %279  ;;  %v328_v18 = vpop.xlane.xlu1 %327 }
  0xb4   : > { %v365_v22 = vmul.f32 0.03125, %v280_v15  ;;  %v381_v23 = vmul.f32 0.03125, %v328_v18  ;;  %v428_v0 = vmul.f32 %v1821_v7, %v1821_v7  ;;  %v444_v16 = vmul.f32 %v1824_v13, %v1824_v13 }
  0xb6   : > { %v1833_v1 = vsub.f32 %v1665_v20, %v365_v22  ;;  %v1836_v17 = vsub.f32 %v1668_v21, %v381_v23  ;;  %v468_v30 = vsel %vm262_vm0, %v428_v0, 0.0  ;;  %v516_v35 = vsel %vm262_vm0, %v444_v16, 0.0 }
  0xb7   : > { %514 = vadd.xlane.f32.xlu1 %v513_v19  ;;  %469 = vadd.xlane.f32.xlu0 %v468_v30  ;;  %v283_v31 = vpop.xlane.xlu0 %282  ;;  %v331_v34 = vpop.xlane.xlu1 %330 }
  0xb8   : > { %v366_v38 = vmul.f32 0.03125, %v283_v31  ;;  %v382_v39 = vmul.f32 0.03125, %v331_v34  ;;  %v429_v42 = vmul.f32 %v1833_v1, %v1833_v1  ;;  %v445_v20 = vmul.f32 %v1836_v17, %v1836_v17  ;;  %v757_v31 = vld [vmem:[%s2198_s3 + $0x8] sm:$0xff] }
  0xba   : > { %v1845_v43 = vsub.f32 %v1675_v24, %v366_v38  ;;  %v1848_v21 = vsub.f32 %v1678_v25, %v382_v39  ;;  %v471_v46 = vsel %vm262_vm0, %v429_v42, 0.0  ;;  %v519_v51 = vsel %vm262_vm0, %v445_v20, 0.0 }
  0xbb   : > { %517 = vadd.xlane.f32.xlu1 %v516_v35  ;;  %472 = vadd.xlane.f32.xlu0 %v471_v46  ;;  %v286_v47 = vpop.xlane.xlu0 %285  ;;  %v334_v50 = vpop.xlane.xlu1 %333 }
  0xbc   : > { %v367_v54 = vmul.f32 0.03125, %v286_v47  ;;  %v383_v8 = vmul.f32 0.03125, %v334_v50  ;;  %v430_v58 = vmul.f32 %v1845_v43, %v1845_v43  ;;  %v446_v24 = vmul.f32 %v1848_v21, %v1848_v21 }
  0xbe   : > { %v1857_v59 = vsub.f32 %v1685_v28, %v367_v54  ;;  %v1860_v25 = vsub.f32 %v1688_v29, %v383_v8  ;;  %v474_v62 = vsel %vm262_vm0, %v430_v58, 0.0  ;;  %v522_v4 = vsel %vm262_vm0, %v446_v24, 0.0  ;;  %v759_v54 = vld [vmem:[%s2198_s3 + $0x18] sm:$0xff] }
  0xbf   : > { %520 = vadd.xlane.f32.xlu1 %v519_v51  ;;  %475 = vadd.xlane.f32.xlu0 %v474_v62  ;;  %v289_v63 = vpop.xlane.xlu0 %288  ;;  %v337_v3 = vpop.xlane.xlu1 %336 }
  0xc0   : > { %v368_v6 = vmul.f32 0.03125, %v289_v63  ;;  %v384_v12 = vmul.f32 0.03125, %v337_v3  ;;  %v431_v14 = vmul.f32 %v1857_v59, %v1857_v59  ;;  %v447_v28 = vmul.f32 %v1860_v25, %v1860_v25 }
  0xc2   : > { %v1869_v15 = vsub.f32 %v1695_v32, %v368_v6  ;;  %v1872_v29 = vsub.f32 %v1698_v33, %v384_v12  ;;  %v477_v18 = vsel %vm262_vm0, %v431_v14, 0.0  ;;  %v525_v23 = vsel %vm262_vm0, %v447_v28, 0.0  ;;  %v756_v33 = vld [vmem:[%s2198_s3] sm:$0xff] }
  0xc3   : > { %523 = vadd.xlane.f32.xlu1 %v522_v4  ;;  %478 = vadd.xlane.f32.xlu0 %v477_v18  ;;  %v292_v19 = vpop.xlane.xlu0 %291  ;;  %v340_v22 = vpop.xlane.xlu1 %339  ;;  %v1474_v34 = vpack.c.bf16 %v757_v31, %v756_v33 }
  0xc4   : > { %v369_v0 = vmul.f32 0.03125, %v292_v19  ;;  %v385_v16 = vmul.f32 0.03125, %v340_v22  ;;  %v432_v30 = vmul.f32 %v1869_v15, %v1869_v15  ;;  %v448_v32 = vmul.f32 %v1872_v29, %v1872_v29 }
  0xc5   : > { %1475 = vmatprep.subr.bf16.mxu0 %v1474_v34  ;;  %1482 = vmatprep.subr.bf16.mxu1 %v1474_v34 }
  0xc6   : > { %v1887_v35 = vsub.f32 %v1705_v36, %v369_v0  ;;  %v1890_v38 = vsub.f32 %v1708_v37, %v385_v16  ;;  %v480_v39 = vsel %vm262_vm0, %v432_v30, 0.0  ;;  %v528_v46 = vsel %vm262_vm0, %v448_v32, 0.0  ;;  %v758_v37 = vld [vmem:[%s2198_s3 + $0x10] sm:$0xff]  ;;  %1477 = vmatpush3.bf16.msra.mxu0 %v1474_v34  ;;  %1484 = vmatpush3.bf16.msra.mxu1 %v1474_v34 }
  0xc7   : > { %526 = vadd.xlane.f32.xlu1 %v525_v23  ;;  %481 = vadd.xlane.f32.xlu0 %v480_v39  ;;  %v295_v42 = vpop.xlane.xlu0 %294  ;;  %v343_v20 = vpop.xlane.xlu1 %342  ;;  %v1478_v8 = vpack.c.bf16 %v759_v54, %v758_v37 }
  0xc8   : > { %v370_v47 = vmul.f32 0.03125, %v295_v42  ;;  %v386_v50 = vmul.f32 0.03125, %v343_v20  ;;  %v433_v51 = vmul.f32 %v1887_v35, %v1887_v35  ;;  %v449_v36 = vmul.f32 %v1890_v38, %v1890_v38 }
  0xc9   : > { %1479 = vmatprep.subr.bf16.mxu0 %v1478_v8  ;;  %1483 = vmatprep.subr.bf16.mxu1 %v1478_v8 }
  0xca   : > { %v1905_v58 = vsub.f32 %v1715_v40, %v370_v47  ;;  %v1908_v24 = vsub.f32 %v1718_v41, %v386_v50  ;;  %v483_v62 = vsel %vm262_vm0, %v433_v51, 0.0  ;;  %v531_v4 = vsel %vm262_vm0, %v449_v36, 0.0  ;;  %1481 = vmatpush3.bf16.msra.mxu0 %v1478_v8  ;;  %1485 = vmatpush3.bf16.msra.mxu1 %v1478_v8 }
  0xcb   : > { %529 = vadd.xlane.f32.xlu1 %v528_v46  ;;  %484 = vadd.xlane.f32.xlu0 %v483_v62  ;;  %v298_v63 = vpop.xlane.xlu0 %297  ;;  %v346_v3 = vpop.xlane.xlu1 %345 }
  0xcc   : > { %v371_v6 = vmul.f32 0.03125, %v298_v63  ;;  %v387_v12 = vmul.f32 0.03125, %v346_v3  ;;  %v434_v14 = vmul.f32 %v1905_v58, %v1905_v58  ;;  %v450_v40 = vmul.f32 %v1908_v24, %v1908_v24 }
  0xce   : > { %v1917_v41 = vsub.f32 %v1725_v44, %v371_v6  ;;  %v1920_v28 = vsub.f32 %v1728_v45, %v387_v12  ;;  %v486_v18 = vsel %vm262_vm0, %v434_v14, 0.0  ;;  %v534_v23 = vsel %vm262_vm0, %v450_v40, 0.0 }
  0xcf   : > { %532 = vadd.xlane.f32.xlu1 %v531_v4  ;;  %487 = vadd.xlane.f32.xlu0 %v486_v18  ;;  %v301_v19 = vpop.xlane.xlu0 %300  ;;  %v349_v22 = vpop.xlane.xlu1 %348 }
  0xd0   : > { %v372_v0 = vmul.f32 0.03125, %v301_v19  ;;  %v388_v16 = vmul.f32 0.03125, %v349_v22  ;;  %v435_v30 = vmul.f32 %v1917_v41, %v1917_v41  ;;  %v451_v44 = vmul.f32 %v1920_v28, %v1920_v28 }
  0xd2   : > { %v1929_v32 = vsub.f32 %v1735_v48, %v372_v0  ;;  %v1932_v45 = vsub.f32 %v1738_v49, %v388_v16  ;;  %v489_v33 = vsel %vm262_vm0, %v435_v30, 0.0  ;;  %v537_v39 = vsel %vm262_vm0, %v451_v44, 0.0 }
  0xd3   : > { %535 = vadd.xlane.f32.xlu1 %v534_v23  ;;  %490 = vadd.xlane.f32.xlu0 %v489_v33  ;;  %v304_v31 = vpop.xlane.xlu0 %303  ;;  %v352_v34 = vpop.xlane.xlu1 %351 }
  0xd4   : > { %v373_v42 = vmul.f32 0.03125, %v304_v31  ;;  %v389_v20 = vmul.f32 0.03125, %v352_v34  ;;  %v436_v46 = vmul.f32 %v1929_v32, %v1929_v32  ;;  %v452_v48 = vmul.f32 %v1932_v45, %v1932_v45 }
  0xd6   : > { %v1941_v47 = vsub.f32 %v1745_v52, %v373_v42  ;;  %v1944_v49 = vsub.f32 %v1748_v53, %v389_v20  ;;  %v492_v50 = vsel %vm262_vm0, %v436_v46, 0.0  ;;  %v540_v37 = vsel %vm262_vm0, %v452_v48, 0.0 }
  0xd7   : > { %538 = vadd.xlane.f32.xlu1 %v537_v39  ;;  %493 = vadd.xlane.f32.xlu0 %v492_v50  ;;  %v307_v51 = vpop.xlane.xlu0 %306  ;;  %v355_v36 = vpop.xlane.xlu1 %354 }
  0xd8   : > { %v374_v54 = vmul.f32 0.03125, %v307_v51  ;;  %v390_v8 = vmul.f32 0.03125, %v355_v36  ;;  %v437_v62 = vmul.f32 %v1941_v47, %v1941_v47  ;;  %v453_v52 = vmul.f32 %v1944_v49, %v1944_v49 }
  0xda   : > { %v1953_v63 = vsub.f32 %v1755_v56, %v374_v54  ;;  %v1956_v53 = vsub.f32 %v1758_v57, %v390_v8  ;;  %v495_v3 = vsel %vm262_vm0, %v437_v62, 0.0  ;;  %v543_v12 = vsel %vm262_vm0, %v453_v52, 0.0 }
  0xdb   : > { %541 = vadd.xlane.f32.xlu1 %v540_v37  ;;  %496 = vadd.xlane.f32.xlu0 %v495_v3  ;;  %v310_v4 = vpop.xlane.xlu0 %309  ;;  %v358_v6 = vpop.xlane.xlu1 %357 }
  0xdc   : > { %v375_v14 = vmul.f32 0.03125, %v310_v4  ;;  %v391_v40 = vmul.f32 0.03125, %v358_v6  ;;  %v438_v18 = vmul.f32 %v1953_v63, %v1953_v63  ;;  %v454_v56 = vmul.f32 %v1956_v53, %v1956_v53 }
  0xde   : > { %v1965_v19 = vsub.f32 %v1765_v60, %v375_v14  ;;  %v1968_v57 = vsub.f32 %v1768_v61, %v391_v40  ;;  %v498_v22 = vsel %vm262_vm0, %v438_v18, 0.0  ;;  %v546_v23 = vsel %vm262_vm0, %v454_v56, 0.0  ;;  %v1981_v14 = vld [vmem:[%s2196_s1] ss:$0 sm:$0xff] }
  0xdf   : > { %544 = vadd.xlane.f32.xlu1 %v543_v12  ;;  %499 = vadd.xlane.f32.xlu0 %v498_v22 }
  0xe0   : > { %v439_v0 = vmul.f32 %v1965_v19, %v1965_v19  ;;  %v455_v16 = vmul.f32 %v1968_v57, %v1968_v57 }
  0xe2   : > { %v501_v30 = vsel %vm262_vm0, %v439_v0, 0.0  ;;  %v549_v60 = vsel %vm262_vm0, %v455_v16, 0.0  ;;  %v1987_v0 = vld [vmem:[%s2197_s2] ss:$0 sm:$0xff] }
  0xe3   : > { %547 = vadd.xlane.f32.xlu1 %v546_v23  ;;  %502 = vadd.xlane.f32.xlu0 %v501_v30 }
  0xe7   : > { %550 = vadd.xlane.f32.xlu1 %v549_v60 }
 0x134   : > { %v458_v61 = vpop.xlane.xlu0 %457 }
 0x135   : > { %v552_v44 = vmul.f32 0.03125, %v458_v61 }
 0x137   : > { %v584_v33 = vadd.f32 1e-05, %v552_v44 }
 0x138   : > { %v506_v31 = vpop.xlane.xlu1 %505  ;;  %v461_v34 = vpop.xlane.xlu0 %460 }
 0x139   : > { %1494 = vrsqrt.f32 %v584_v33  ;;  %v568_v39 = vmul.f32 0.03125, %v506_v31  ;;  %v553_v42 = vmul.f32 0.03125, %v461_v34 }
 0x13b   : > { %v600_v20 = vadd.f32 1e-05, %v568_v39  ;;  %v585_v46 = vadd.f32 1e-05, %v553_v42 }
 0x13c   : > { %v509_v48 = vpop.xlane.xlu1 %508  ;;  %v464_v50 = vpop.xlane.xlu0 %463 }
 0x13d   : > { %1496 = vrsqrt.f32 %v600_v20  ;;  %v569_v51 = vmul.f32 0.03125, %v509_v48  ;;  %v554_v36 = vmul.f32 0.03125, %v464_v50 }
 0x13e   : > { %1498 = vrsqrt.f32 %v585_v46 }
 0x13f   : > { %v601_v37 = vadd.f32 1e-05, %v569_v51  ;;  %v586_v54 = vadd.f32 1e-05, %v554_v36 }
 0x140   : > { %v512_v8 = vpop.xlane.xlu1 %511  ;;  %v467_v62 = vpop.xlane.xlu0 %466 }
 0x141   : > { %1500 = vrsqrt.f32 %v601_v37  ;;  %v570_v52 = vmul.f32 0.03125, %v512_v8  ;;  %v555_v3 = vmul.f32 0.03125, %v467_v62 }
 0x142   : > { %1502 = vrsqrt.f32 %v586_v54 }
 0x143   : > { %v1495_v4 = vpop.eup %1494  ;;  %v602_v6 = vadd.f32 1e-05, %v570_v52  ;;  %v587_v12 = vadd.f32 1e-05, %v555_v3 }
 0x144   : > { %v515_v40 = vpop.xlane.xlu1 %514  ;;  %v470_v18 = vpop.xlane.xlu0 %469  ;;  %v648_v56 = vmul.f32 %v1495_v4, %v1775_v10 }
 0x145   : > { %1504 = vrsqrt.f32 %v602_v6  ;;  %v571_v22 = vmul.f32 0.03125, %v515_v40  ;;  %v556_v23 = vmul.f32 0.03125, %v470_v18 }
 0x146   : > { %1506 = vrsqrt.f32 %v587_v12  ;;  %v686_v16 = vmul.f32 %v1981_v14, %v648_v56 }
 0x147   : > { %v1497_v30 = vpop.eup %1496  ;;  %v603_v60 = vadd.f32 1e-05, %v571_v22  ;;  %v588_v61 = vadd.f32 1e-05, %v556_v23 }
 0x148   : > { %v1499_v44 = vpop.eup %1498  ;;  %v518_v33 = vpop.xlane.xlu1 %517  ;;  %v724_v34 = vadd.f32 %v1987_v0, %v686_v16  ;;  %v664_v10 = vmul.f32 %v1497_v30, %v1785_v26 }
 0x149   : > { %v473_v31 = vpop.xlane.xlu0 %472  ;;  %1508 = vrsqrt.f32 %v603_v60  ;;  %v572_v39 = vmul.f32 0.03125, %v518_v33  ;;  %v649_v20 = vmul.f32 %v1499_v44, %v1778_v11 }
 0x14a   : > { %v557_v42 = vmul.f32 0.03125, %v473_v31  ;;  %1510 = vrsqrt.f32 %v588_v61  ;;  %1426 = vmatprep.mubr.msk.f32.mxu0 %vm262_vm0, %v724_v34  ;;  %v702_v46 = vmul.f32 %v1981_v14, %v664_v10 }
 0x14b   : > { %v1501_v48 = vpop.eup %1500  ;;  %v604_v50 = vadd.f32 1e-05, %v572_v39  ;;  %v687_v36 = vmul.f32 %v1981_v14, %v649_v20 }
 0x14c   : > { %v589_v51 = vadd.f32 1e-05, %v557_v42  ;;  %v1503_v37 = vpop.eup %1502  ;;  %v521_v54 = vpop.xlane.xlu1 %520  ;;  %v740_v26 = vadd.f32 %v1987_v0, %v702_v46  ;;  %v665_v62 = vmul.f32 %v1501_v48, %v1788_v27 }
 0x14d   : > { %v476_v8 = vpop.xlane.xlu0 %475  ;;  %1512 = vrsqrt.f32 %v604_v50  ;;  %v573_v52 = vmul.f32 0.03125, %v521_v54  ;;  %v725_v3 = vadd.f32 %v1987_v0, %v687_v36  ;;  %v650_v4 = vmul.f32 %v1503_v37, %v1797_v2 }
 0x14e   : > { %v558_v11 = vmul.f32 0.03125, %v476_v8  ;;  %1514 = vrsqrt.f32 %v589_v51  ;;  %1450 = vmatprep.mubr.msk.f32.mxu1 %vm262_vm0, %v740_v26  ;;  %v703_v6 = vmul.f32 %v1981_v14, %v665_v62 }
 0x14f   : > { %v1505_v12 = vpop.eup %1504  ;;  %v605_v40 = vadd.f32 1e-05, %v573_v52  ;;  %1427 = vmatmul.mubr.msk.f32.vlgmr.msra.gmra.mrb[0].mxu0 %vm262_vm0, %v725_v3  ;;  %v688_v23 = vmul.f32 %v1981_v14, %v650_v4 }
 0x150   : > { %v590_v18 = vadd.f32 1e-05, %v558_v11  ;;  %v1507_v56 = vpop.eup %1506  ;;  %v524_v22 = vpop.xlane.xlu1 %523  ;;  %v741_v16 = vadd.f32 %v1987_v0, %v703_v6  ;;  %v666_v30 = vmul.f32 %v1505_v12, %v1800_v5 }
 0x151   : > { %v479_v27 = vpop.xlane.xlu0 %478  ;;  %1516 = vrsqrt.f32 %v605_v40  ;;  %v574_v60 = vmul.f32 0.03125, %v524_v22  ;;  %v651_v2 = vmul.f32 %v1507_v56, %v1809_v55  ;;  %v726_v44 = vadd.f32 %v1987_v0, %v688_v23 }
 0x152   : > { %v559_v61 = vmul.f32 0.03125, %v479_v27  ;;  %1518 = vrsqrt.f32 %v590_v18  ;;  %1451 = vmatmul.mubr.msk.f32.vlgmr.msra.gmra.mrb[0].mxu1 %vm262_vm0, %v741_v16  ;;  %v704_v33 = vmul.f32 %v1981_v14, %v666_v30 }
 0x153   : > { %v1509_v31 = vpop.eup %1508  ;;  %v606_v34 = vadd.f32 1e-05, %v574_v60  ;;  %v689_v39 = vmul.f32 %v1981_v14, %v651_v2  ;;  %1429 = vmatprep.mubr.msk.f32.mxu0 %vm262_vm0, %v726_v44 }
 0x154   : > { %v591_v10 = vadd.f32 1e-05, %v559_v61  ;;  %v1511_v42 = vpop.eup %1510  ;;  %v527_v5 = vpop.xlane.xlu1 %526  ;;  %v742_v46 = vadd.f32 %v1987_v0, %v704_v33  ;;  %v667_v55 = vmul.f32 %v1509_v31, %v1812_v9 }
 0x155   : > { %v482_v20 = vpop.xlane.xlu0 %481  ;;  %1520 = vrsqrt.f32 %v606_v34  ;;  %v575_v48 = vmul.f32 0.03125, %v527_v5  ;;  %v727_v51 = vadd.f32 %v1987_v0, %v689_v39  ;;  %v652_v36 = vmul.f32 %v1511_v42, %v1821_v7 }
 0x156   : > { %v560_v50 = vmul.f32 0.03125, %v482_v20  ;;  %1522 = vrsqrt.f32 %v591_v10  ;;  %1453 = vmatprep.mubr.msk.f32.mxu1 %vm262_vm0, %v742_v46  ;;  %v705_v37 = vmul.f32 %v1981_v14, %v667_v55 }
 0x157   : > { %v1513_v54 = vpop.eup %1512  ;;  %v607_v8 = vadd.f32 1e-05, %v575_v48  ;;  %1430 = vmatmul.mubr.msk.f32.gmra.mrb[2].mxu0 %vm262_vm0, %v727_v51  ;;  %v690_v11 = vmul.f32 %v1981_v14, %v652_v36 }
 0x158   : > { %v592_v26 = vadd.f32 1e-05, %v560_v50  ;;  %v1515_v62 = vpop.eup %1514  ;;  %v530_v52 = vpop.xlane.xlu1 %529  ;;  %v743_v3 = vadd.f32 %v1987_v0, %v705_v37  ;;  %v668_v4 = vmul.f32 %v1513_v54, %v1824_v13 }
 0x159   : > { %v485_v9 = vpop.xlane.xlu0 %484  ;;  %1524 = vrsqrt.f32 %v607_v8  ;;  %v576_v6 = vmul.f32 0.03125, %v530_v52  ;;  %v653_v7 = vmul.f32 %v1515_v62, %v1833_v1  ;;  %v728_v40 = vadd.f32 %v1987_v0, %v690_v11 }
 0x15a   : > { %v561_v12 = vmul.f32 0.03125, %v485_v9  ;;  %1526 = vrsqrt.f32 %v592_v26  ;;  %1454 = vmatmul.mubr.msk.f32.gmra.mrb[2].mxu1 %vm262_vm0, %v743_v3  ;;  %v706_v18 = vmul.f32 %v1981_v14, %v668_v4 }
 0x15b   : > { %v1517_v56 = vpop.eup %1516  ;;  %v608_v22 = vadd.f32 1e-05, %v576_v6  ;;  %v691_v23 = vmul.f32 %v1981_v14, %v653_v7  ;;  %1432 = vmatprep.mubr.msk.f32.mxu0 %vm262_vm0, %v728_v40 }
 0x15c   : > { %v593_v27 = vadd.f32 1e-05, %v561_v12  ;;  %v1519_v16 = vpop.eup %1518  ;;  %v533_v13 = vpop.xlane.xlu1 %532  ;;  %v744_v60 = vadd.f32 %v1987_v0, %v706_v18  ;;  %v669_v1 = vmul.f32 %v1517_v56, %v1836_v17 }
 0x15d   : > { %v488_v30 = vpop.xlane.xlu0 %487  ;;  %1528 = vrsqrt.f32 %v608_v22  ;;  %v577_v61 = vmul.f32 0.03125, %v533_v13  ;;  %v729_v44 = vadd.f32 %v1987_v0, %v691_v23  ;;  %v654_v33 = vmul.f32 %v1519_v16, %v1845_v43 }
 0x15e   : > { %v562_v2 = vmul.f32 0.03125, %v488_v30  ;;  %1530 = vrsqrt.f32 %v593_v27  ;;  %1456 = vmatprep.mubr.msk.f32.mxu1 %vm262_vm0, %v744_v60  ;;  %v707_v31 = vmul.f32 %v1981_v14, %v669_v1 }
 0x15f   : > { %v1521_v34 = vpop.eup %1520  ;;  %v609_v10 = vadd.f32 1e-05, %v577_v61  ;;  %1433 = vmatmul.mubr.msk.f32.gmra.mrb[4].mxu0 %vm262_vm0, %v729_v44  ;;  %v692_v20 = vmul.f32 %v1981_v14, %v654_v33 }
 0x160   : > { %v594_v39 = vadd.f32 1e-05, %v562_v2  ;;  %v1523_v42 = vpop.eup %1522  ;;  %v536_v5 = vpop.xlane.xlu1 %535  ;;  %v745_v46 = vadd.f32 %v1987_v0, %v707_v31  ;;  %v670_v55 = vmul.f32 %v1521_v34, %v1848_v21 }
 0x161   : > { %v491_v17 = vpop.xlane.xlu0 %490  ;;  %1532 = vrsqrt.f32 %v609_v10  ;;  %v578_v48 = vmul.f32 0.03125, %v536_v5  ;;  %v655_v43 = vmul.f32 %v1523_v42, %v1857_v59  ;;  %v730_v51 = vadd.f32 %v1987_v0, %v692_v20 }
 0x162   : > { %v563_v50 = vmul.f32 0.03125, %v491_v17  ;;  %1534 = vrsqrt.f32 %v594_v39  ;;  %1457 = vmatmul.mubr.msk.f32.gmra.mrb[4].mxu1 %vm262_vm0, %v745_v46  ;;  %v708_v36 = vmul.f32 %v1981_v14, %v670_v55 }
 0x163   : > { %v1525_v37 = vpop.eup %1524  ;;  %v610_v54 = vadd.f32 1e-05, %v578_v48  ;;  %v693_v26 = vmul.f32 %v1981_v14, %v655_v43  ;;  %1435 = vmatprep.mubr.msk.f32.mxu0 %vm262_vm0, %v730_v51 }
 0x164   : > { %v595_v8 = vadd.f32 1e-05, %v563_v50  ;;  %v1527_v62 = vpop.eup %1526  ;;  %v539_v21 = vpop.xlane.xlu1 %538  ;;  %v746_v9 = vadd.f32 %v1987_v0, %v708_v36  ;;  %v671_v59 = vmul.f32 %v1525_v37, %v1860_v25 }
 0x165   : > { %v494_v52 = vpop.xlane.xlu0 %493  ;;  %1536 = vrsqrt.f32 %v610_v54  ;;  %v579_v11 = vmul.f32 0.03125, %v539_v21  ;;  %v731_v4 = vadd.f32 %v1987_v0, %v693_v26  ;;  %v656_v6 = vmul.f32 %v1527_v62, %v1869_v15 }
 0x166   : > { %v564_v3 = vmul.f32 0.03125, %v494_v52  ;;  %1538 = vrsqrt.f32 %v595_v8  ;;  %1459 = vmatprep.mubr.msk.f32.mxu1 %vm262_vm0, %v746_v9  ;;  %v709_v12 = vmul.f32 %v1981_v14, %v671_v59 }
 0x167   : > { %v1529_v7 = vpop.eup %1528  ;;  %v611_v40 = vadd.f32 1e-05, %v579_v11  ;;  %1436 = vmatmul.mubr.msk.f32.gmra.mrb[6].mxu0 %vm262_vm0, %v731_v4  ;;  %v694_v27 = vmul.f32 %v1981_v14, %v656_v6 }
 0x168   : > { %v596_v18 = vadd.f32 1e-05, %v564_v3  ;;  %v1531_v56 = vpop.eup %1530  ;;  %v542_v22 = vpop.xlane.xlu1 %541  ;;  %v747_v23 = vadd.f32 %v1987_v0, %v709_v12  ;;  %v672_v16 = vmul.f32 %v1529_v7, %v1872_v29 }
 0x169   : > { %v497_v25 = vpop.xlane.xlu0 %496  ;;  %1540 = vrsqrt.f32 %v611_v40  ;;  %v580_v13 = vmul.f32 0.03125, %v542_v22  ;;  %v657_v15 = vmul.f32 %v1531_v56, %v1887_v35  ;;  %v732_v60 = vadd.f32 %v1987_v0, %v694_v27 }
 0x16a   : > { %v565_v30 = vmul.f32 0.03125, %v497_v25  ;;  %1542 = vrsqrt.f32 %v596_v18  ;;  %1460 = vmatmul.mubr.msk.f32.gmra.mrb[6].mxu1 %vm262_vm0, %v747_v23  ;;  %v710_v1 = vmul.f32 %v1981_v14, %v672_v16 }
 0x16b   : > { %v1533_v61 = vpop.eup %1532  ;;  %v612_v2 = vadd.f32 1e-05, %v580_v13  ;;  %v695_v33 = vmul.f32 %v1981_v14, %v657_v15  ;;  %1438 = vmatprep.mubr.msk.f32.mxu0 %vm262_vm0, %v732_v60 }
 0x16c   : > { %v597_v44 = vadd.f32 1e-05, %v565_v30  ;;  %v1535_v31 = vpop.eup %1534  ;;  %v545_v29 = vpop.xlane.xlu1 %544  ;;  %v748_v10 = vadd.f32 %v1987_v0, %v710_v1  ;;  %v673_v35 = vmul.f32 %v1533_v61, %v1890_v38 }
 0x16d   : > { %v500_v34 = vpop.xlane.xlu0 %499  ;;  %1544 = vrsqrt.f32 %v612_v2  ;;  %v581_v39 = vmul.f32 0.03125, %v545_v29  ;;  %v733_v5 = vadd.f32 %v1987_v0, %v695_v33  ;;  %v658_v17 = vmul.f32 %v1535_v31, %v1905_v58 }
 0x16e   : > { %v566_v42 = vmul.f32 0.03125, %v500_v34  ;;  %1546 = vrsqrt.f32 %v597_v44  ;;  %1462 = vmatprep.mubr.msk.f32.mxu1 %vm262_vm0, %v748_v10  ;;  %v711_v20 = vmul.f32 %v1981_v14, %v673_v35 }
 0x16f   : > { %v1537_v46 = vpop.eup %1536  ;;  %v613_v55 = vadd.f32 1e-05, %v581_v39  ;;  %1439 = vmatmul.mubr.msk.f32.gmra.mrb[8].mxu0 %vm262_vm0, %v733_v5  ;;  %v696_v51 = vmul.f32 %v1981_v14, %v658_v17  ;;  %v2119_v5 = vld [vmem:[%s2199_s4] ss:$0 sm:$0xff] }
 0x170   : > { %v598_v48 = vadd.f32 1e-05, %v566_v42  ;;  %v1539_v50 = vpop.eup %1538  ;;  %v548_v43 = vpop.xlane.xlu1 %547  ;;  %v749_v36 = vadd.f32 %v1987_v0, %v711_v20  ;;  %v674_v37 = vmul.f32 %v1537_v46, %v1908_v24 }
 0x171   : > { %v503_v38 = vpop.xlane.xlu0 %502  ;;  %1548 = vrsqrt.f32 %v613_v55  ;;  %v582_v54 = vmul.f32 0.03125, %v548_v43  ;;  %v659_v58 = vmul.f32 %v1539_v50, %v1917_v41  ;;  %v734_v26 = vadd.f32 %v1987_v0, %v696_v51 }
 0x172   : > { %v567_v8 = vmul.f32 0.03125, %v503_v38  ;;  %1550 = vrsqrt.f32 %v598_v48  ;;  %1463 = vmatmul.mubr.msk.f32.gmra.mrb[8].mxu1 %vm262_vm0, %v749_v36  ;;  %v712_v62 = vmul.f32 %v1981_v14, %v674_v37 }
 0x173   : > { %v1541_v21 = vpop.eup %1540  ;;  %v614_v52 = vadd.f32 1e-05, %v582_v54  ;;  %v697_v59 = vmul.f32 %v1981_v14, %v659_v58  ;;  %1441 = vmatprep.mubr.msk.f32.mxu0 %vm262_vm0, %v734_v26 }
 0x174   : > { %v599_v9 = vadd.f32 1e-05, %v567_v8  ;;  %v1543_v11 = vpop.eup %1542  ;;  %v551_v24 = vpop.xlane.xlu1 %550  ;;  %v750_v3 = vadd.f32 %v1987_v0, %v712_v62  ;;  %v675_v41 = vmul.f32 %v1541_v21, %v1920_v28 }
 0x175   : > { %1552 = vrsqrt.f32 %v614_v52  ;;  %v583_v4 = vmul.f32 0.03125, %v551_v24  ;;  %v735_v6 = vadd.f32 %v1987_v0, %v697_v59  ;;  %v660_v12 = vmul.f32 %v1543_v11, %v1929_v32 }
 0x176   : > { %1554 = vrsqrt.f32 %v599_v9  ;;  %1465 = vmatprep.mubr.msk.f32.mxu1 %vm262_vm0, %v750_v3  ;;  %v713_v7 = vmul.f32 %v1981_v14, %v675_v41 }
 0x177   : > { %v1545_v40 = vpop.eup %1544  ;;  %v615_v18 = vadd.f32 1e-05, %v583_v4  ;;  %1442 = vmatmul.mubr.msk.f32.gmra.mrb[10].mxu0 %vm262_vm0, %v735_v6  ;;  %v698_v56 = vmul.f32 %v1981_v14, %v660_v12 }
 0x178   : > { %v1547_v22 = vpop.eup %1546  ;;  %v751_v28 = vadd.f32 %v1987_v0, %v713_v7  ;;  %v676_v25 = vmul.f32 %v1545_v40, %v1932_v45 }
 0x179   : > { %1556 = vrsqrt.f32 %v615_v18  ;;  %v736_v27 = vadd.f32 %v1987_v0, %v698_v56  ;;  %v661_v32 = vmul.f32 %v1547_v22, %v1941_v47 }
 0x17a   : > { %1466 = vmatmul.mubr.msk.f32.gmra.mrb[10].mxu1 %vm262_vm0, %v751_v28  ;;  %v714_v23 = vmul.f32 %v1981_v14, %v676_v25 }
 0x17b   : > { %v1549_v16 = vpop.eup %1548  ;;  %1444 = vmatprep.mubr.msk.f32.mxu0 %vm262_vm0, %v736_v27  ;;  %v699_v13 = vmul.f32 %v1981_v14, %v661_v32 }
 0x17c   : > { %v1551_v30 = vpop.eup %1550  ;;  %v752_v15 = vadd.f32 %v1987_v0, %v714_v23  ;;  %v677_v60 = vmul.f32 %v1549_v16, %v1944_v49 }
 0x17d   : > { %v737_v45 = vadd.f32 %v1987_v0, %v699_v13  ;;  %v662_v1 = vmul.f32 %v1551_v30, %v1953_v63 }
 0x17e   : > { %1468 = vmatprep.mubr.msk.f32.mxu1 %vm262_vm0, %v752_v15  ;;  %v715_v47 = vmul.f32 %v1981_v14, %v677_v60 }
 0x17f   : > { %v1553_v61 = vpop.eup %1552  ;;  %1445 = vmatmul.mubr.msk.f32.gmra.mrb[12].mxu0 %vm262_vm0, %v737_v45  ;;  %v700_v2 = vmul.f32 %v1981_v14, %v662_v1 }
 0x180   : > { %v1555_v44 = vpop.eup %1554  ;;  %v753_v33 = vadd.f32 %v1987_v0, %v715_v47  ;;  %v678_v31 = vmul.f32 %v1553_v61, %v1956_v53 }
 0x181   : > { %v738_v49 = vadd.f32 %v1987_v0, %v700_v2  ;;  %v663_v29 = vmul.f32 %v1555_v44, %v1965_v19 }
 0x182   : > { %1469 = vmatmul.mubr.msk.f32.gmra.mrb[12].mxu1 %vm262_vm0, %v753_v33  ;;  %v716_v63 = vmul.f32 %v1981_v14, %v678_v31 }
 0x183   : > { %v1557_v34 = vpop.eup %1556  ;;  %1447 = vmatprep.mubr.msk.f32.mxu0 %vm262_vm0, %v738_v49  ;;  %v701_v10 = vmul.f32 %v1981_v14, %v663_v29 }
 0x184   : > { %v754_v35 = vadd.f32 %v1987_v0, %v716_v63  ;;  %v679_v39 = vmul.f32 %v1557_v34, %v1968_v57 }
 0x185   : > { %v739_v42 = vadd.f32 %v1987_v0, %v701_v10 }
 0x186   : > { %1471 = vmatprep.mubr.msk.f32.mxu1 %vm262_vm0, %v754_v35  ;;  %v717_v53 = vmul.f32 %v1981_v14, %v679_v39 }
 0x187   : > { %1448 = vmatmul.mubr.msk.f32.gmra.mrb[14].mxu0 %vm262_vm0, %v739_v42 }
 0x188   : > { %v755_v19 = vadd.f32 %v1987_v0, %v717_v53 }
 0x18a   : > { %1472 = vmatmul.mubr.msk.f32.gmra.mrb[14].mxu1 %vm262_vm0, %v755_v19 }
 0x222   : > { %v1428_v17 = vpop.f32.mrb[0].mxu0 }
 0x223   : > { %v935_v57 = vadd.f32 %v1428_v17, %v2119_v5  ;;  %v929_v20 = vpop.f32.mrb[1].mxu0 }
 0x224   : > { %v930_v46 = vadd.f32 %v2119_v5, %v929_v20 }
 0x225   : > { %v1089_v55 = vadd.f32 3.0, %v935_v57  ;;  %v1452_v48 = vpop.f32.mrb[0].mxu1 }
 0x226   : > { %v1088_v14 = vadd.f32 3.0, %v930_v46  ;;  %v1015_v50 = vadd.f32 %v1452_v48, %v2119_v5  ;;  %v1009_v0 = vpop.f32.mrb[1].mxu1 }
 0x227   : > { %v1121_v43 = vmax.f32 %v1089_v55, 0.0  ;;  %v1010_v38 = vadd.f32 %v2119_v5, %v1009_v0 }
 0x228   : > { %v1120_v51 = vmax.f32 %v1088_v14, 0.0  ;;  %v1105_v36 = vadd.f32 3.0, %v1015_v50 }
 0x229   : > { %v1153_v37 = vmin.f32 %v1121_v43, 6.0  ;;  %v1104_v54 = vadd.f32 3.0, %v1010_v38 }
 0x22a   : > { %v1152_v8 = vmin.f32 %v1120_v51, 6.0  ;;  %v1137_v58 = vmax.f32 %v1105_v36, 0.0  ;;  %v1431_v26 = vpop.f32.mrb[2].mxu0 }
 0x22b   : > { %v1185_v62 = vmul.f32 %v1153_v37, %v935_v57  ;;  %v1136_v21 = vmax.f32 %v1104_v54, 0.0  ;;  %v945_v52 = vadd.f32 %v1431_v26, %v2119_v5  ;;  %v939_v9 = vpop.f32.mrb[3].mxu0 }
 0x22c   : > { %v1184_v59 = vmul.f32 %v1152_v8, %v930_v46  ;;  %v1169_v11 = vmin.f32 %v1137_v58, 6.0  ;;  %v940_v24 = vadd.f32 %v2119_v5, %v939_v9 }
 0x22d   : > { %v1217_v3 = vmul.f32 0.16666667, %v1185_v62  ;;  %v1168_v41 = vmin.f32 %v1136_v21, 6.0  ;;  %v1091_v4 = vadd.f32 3.0, %v945_v52  ;;  %v1455_v6 = vpop.f32.mrb[2].mxu1 }
 0x22e   : > { %v1216_v12 = vmul.f32 0.16666667, %v1184_v59  ;;  %v1201_v7 = vmul.f32 %v1169_v11, %v1015_v50  ;;  %v1090_v40 = vadd.f32 3.0, %v940_v24  ;;  %v1025_v18 = vadd.f32 %v1455_v6, %v2119_v5  ;;  %v1019_v56 = vpop.f32.mrb[3].mxu1 }
 0x22f   : > { %1249 = vst [vmem:[%s2131_s16 + $0x8] sm:$0xff] %v1217_v3  ;;  %v1200_v22 = vmul.f32 %v1168_v41, %v1010_v38  ;;  %v1123_v28 = vmax.f32 %v1091_v4, 0.0  ;;  %v1020_v25 = vadd.f32 %v2119_v5, %v1019_v56 }
 0x230   : > { %1248 = vst [vmem:[%s2131_s16] sm:$0xff] %v1216_v12  ;;  %v1233_v27 = vmul.f32 0.16666667, %v1201_v7  ;;  %v1122_v32 = vmax.f32 %v1090_v40, 0.0  ;;  %v1107_v23 = vadd.f32 3.0, %v1025_v18 }
 0x231   : > { %v1232_v16 = vmul.f32 0.16666667, %v1200_v22  ;;  %v1155_v13 = vmin.f32 %v1123_v28, 6.0  ;;  %v1106_v30 = vadd.f32 3.0, %v1020_v25 }
 0x232   : > { %1265 = vst [vmem:[%s2131_s16 + $0x88] sm:$0xff] %v1233_v27  ;;  %v1154_v15 = vmin.f32 %v1122_v32, 6.0  ;;  %v1139_v60 = vmax.f32 %v1107_v23, 0.0  ;;  %v1434_v45 = vpop.f32.mrb[4].mxu0 }
 0x233   : > { %1264 = vst [vmem:[%s2131_s16 + $0x80] sm:$0xff] %v1232_v16  ;;  %v1187_v1 = vmul.f32 %v1155_v13, %v945_v52  ;;  %v1138_v47 = vmax.f32 %v1106_v30, 0.0  ;;  %v955_v61 = vadd.f32 %v1434_v45, %v2119_v5  ;;  %v949_v2 = vpop.f32.mrb[5].mxu0 }
 0x234   : > { %v1186_v44 = vmul.f32 %v1154_v15, %v940_v24  ;;  %v1171_v33 = vmin.f32 %v1139_v60, 6.0  ;;  %v950_v31 = vadd.f32 %v2119_v5, %v949_v2 }
 0x235   : > { %v1219_v49 = vmul.f32 0.16666667, %v1187_v1  ;;  %v1170_v29 = vmin.f32 %v1138_v47, 6.0  ;;  %v1093_v63 = vadd.f32 3.0, %v955_v61  ;;  %v1458_v34 = vpop.f32.mrb[4].mxu1 }
 0x236   : > { %v1218_v10 = vmul.f32 0.16666667, %v1186_v44  ;;  %v1203_v35 = vmul.f32 %v1171_v33, %v1025_v18  ;;  %v1092_v39 = vadd.f32 3.0, %v950_v31  ;;  %v1035_v42 = vadd.f32 %v1458_v34, %v2119_v5  ;;  %v1029_v53 = vpop.f32.mrb[5].mxu1 }
 0x237   : > { %1251 = vst [vmem:[%s2131_s16 + $0x18] sm:$0xff] %v1219_v49  ;;  %v1202_v19 = vmul.f32 %v1170_v29, %v1020_v25  ;;  %v1125_v17 = vmax.f32 %v1093_v63, 0.0  ;;  %v1030_v57 = vadd.f32 %v2119_v5, %v1029_v53 }
 0x238   : > { %1250 = vst [vmem:[%s2131_s16 + $0x10] sm:$0xff] %v1218_v10  ;;  %v1235_v20 = vmul.f32 0.16666667, %v1203_v35  ;;  %v1124_v46 = vmax.f32 %v1092_v39, 0.0  ;;  %v1109_v55 = vadd.f32 3.0, %v1035_v42 }
 0x239   : > { %v1234_v48 = vmul.f32 0.16666667, %v1202_v19  ;;  %v1157_v14 = vmin.f32 %v1125_v17, 6.0  ;;  %v1108_v50 = vadd.f32 3.0, %v1030_v57 }
 0x23a   : > { %1267 = vst [vmem:[%s2131_s16 + $0x98] sm:$0xff] %v1235_v20  ;;  %v1156_v0 = vmin.f32 %v1124_v46, 6.0  ;;  %v1141_v43 = vmax.f32 %v1109_v55, 0.0  ;;  %v1437_v38 = vpop.f32.mrb[6].mxu0 }
 0x23b   : > { %1266 = vst [vmem:[%s2131_s16 + $0x90] sm:$0xff] %v1234_v48  ;;  %v1189_v51 = vmul.f32 %v1157_v14, %v955_v61  ;;  %v1140_v36 = vmax.f32 %v1108_v50, 0.0  ;;  %v965_v37 = vadd.f32 %v1437_v38, %v2119_v5  ;;  %v959_v54 = vpop.f32.mrb[7].mxu0 }
 0x23c   : > { %v1188_v8 = vmul.f32 %v1156_v0, %v950_v31  ;;  %v1173_v58 = vmin.f32 %v1141_v43, 6.0  ;;  %v960_v26 = vadd.f32 %v2119_v5, %v959_v54 }
 0x23d   : > { %v1221_v62 = vmul.f32 0.16666667, %v1189_v51  ;;  %v1172_v21 = vmin.f32 %v1140_v36, 6.0  ;;  %v1095_v52 = vadd.f32 3.0, %v965_v37  ;;  %v1461_v9 = vpop.f32.mrb[6].mxu1 }
 0x23e   : > { %v1220_v59 = vmul.f32 0.16666667, %v1188_v8  ;;  %v1205_v11 = vmul.f32 %v1173_v58, %v1035_v42  ;;  %v1094_v24 = vadd.f32 3.0, %v960_v26  ;;  %v1045_v3 = vadd.f32 %v1461_v9, %v2119_v5  ;;  %v1039_v41 = vpop.f32.mrb[7].mxu1 }
 0x23f   : > { %1253 = vst [vmem:[%s2131_s16 + $0x28] sm:$0xff] %v1221_v62  ;;  %v1204_v4 = vmul.f32 %v1172_v21, %v1030_v57  ;;  %v1127_v6 = vmax.f32 %v1095_v52, 0.0  ;;  %v1040_v12 = vadd.f32 %v2119_v5, %v1039_v41 }
 0x240   : > { %1252 = vst [vmem:[%s2131_s16 + $0x20] sm:$0xff] %v1220_v59  ;;  %v1237_v7 = vmul.f32 0.16666667, %v1205_v11  ;;  %v1126_v40 = vmax.f32 %v1094_v24, 0.0  ;;  %v1111_v18 = vadd.f32 3.0, %v1045_v3 }
 0x241   : > { %v1236_v56 = vmul.f32 0.16666667, %v1204_v4  ;;  %v1159_v22 = vmin.f32 %v1127_v6, 6.0  ;;  %v1110_v28 = vadd.f32 3.0, %v1040_v12 }
 0x242   : > { %1269 = vst [vmem:[%s2131_s16 + $0xa8] sm:$0xff] %v1237_v7  ;;  %v1158_v25 = vmin.f32 %v1126_v40, 6.0  ;;  %v1143_v27 = vmax.f32 %v1111_v18, 0.0  ;;  %v1440_v32 = vpop.f32.mrb[8].mxu0 }
 0x243   : > { %1268 = vst [vmem:[%s2131_s16 + $0xa0] sm:$0xff] %v1236_v56  ;;  %v1191_v23 = vmul.f32 %v1159_v22, %v965_v37  ;;  %v1142_v16 = vmax.f32 %v1110_v28, 0.0  ;;  %v975_v13 = vadd.f32 %v1440_v32, %v2119_v5  ;;  %v969_v30 = vpop.f32.mrb[9].mxu0 }
 0x244   : > { %v1190_v15 = vmul.f32 %v1158_v25, %v960_v26  ;;  %v1175_v60 = vmin.f32 %v1143_v27, 6.0  ;;  %v970_v45 = vadd.f32 %v2119_v5, %v969_v30 }
 0x245   : > { %v1223_v1 = vmul.f32 0.16666667, %v1191_v23  ;;  %v1174_v47 = vmin.f32 %v1142_v16, 6.0  ;;  %v1097_v61 = vadd.f32 3.0, %v975_v13  ;;  %v1464_v2 = vpop.f32.mrb[8].mxu1 }
 0x246   : > { %v1222_v44 = vmul.f32 0.16666667, %v1190_v15  ;;  %v1207_v33 = vmul.f32 %v1175_v60, %v1045_v3  ;;  %v1096_v31 = vadd.f32 3.0, %v970_v45  ;;  %v1055_v49 = vadd.f32 %v1464_v2, %v2119_v5  ;;  %v1049_v29 = vpop.f32.mrb[9].mxu1 }
 0x247   : > { %1255 = vst [vmem:[%s2131_s16 + $0x38] sm:$0xff] %v1223_v1  ;;  %v1206_v63 = vmul.f32 %v1174_v47, %v1040_v12  ;;  %v1129_v34 = vmax.f32 %v1097_v61, 0.0  ;;  %v1050_v10 = vadd.f32 %v2119_v5, %v1049_v29 }
 0x248   : > { %1254 = vst [vmem:[%s2131_s16 + $0x30] sm:$0xff] %v1222_v44  ;;  %v1239_v35 = vmul.f32 0.16666667, %v1207_v33  ;;  %v1128_v39 = vmax.f32 %v1096_v31, 0.0  ;;  %v1113_v42 = vadd.f32 3.0, %v1055_v49 }
 0x249   : > { %v1238_v53 = vmul.f32 0.16666667, %v1206_v63  ;;  %v1161_v19 = vmin.f32 %v1129_v34, 6.0  ;;  %v1112_v17 = vadd.f32 3.0, %v1050_v10 }
 0x24a   : > { %1271 = vst [vmem:[%s2131_s16 + $0xb8] sm:$0xff] %v1239_v35  ;;  %v1160_v57 = vmin.f32 %v1128_v39, 6.0  ;;  %v1145_v20 = vmax.f32 %v1113_v42, 0.0  ;;  %v1443_v46 = vpop.f32.mrb[10].mxu0 }
 0x24b   : > { %1270 = vst [vmem:[%s2131_s16 + $0xb0] sm:$0xff] %v1238_v53  ;;  %v1193_v55 = vmul.f32 %v1161_v19, %v975_v13  ;;  %v1144_v48 = vmax.f32 %v1112_v17, 0.0  ;;  %v985_v14 = vadd.f32 %v1443_v46, %v2119_v5  ;;  %v979_v50 = vpop.f32.mrb[11].mxu0 }
 0x24c   : > { %v1192_v0 = vmul.f32 %v1160_v57, %v970_v45  ;;  %v1177_v43 = vmin.f32 %v1145_v20, 6.0  ;;  %v980_v38 = vadd.f32 %v2119_v5, %v979_v50 }
 0x24d   : > { %v1225_v51 = vmul.f32 0.16666667, %v1193_v55  ;;  %v1176_v36 = vmin.f32 %v1144_v48, 6.0  ;;  %v1099_v37 = vadd.f32 3.0, %v985_v14  ;;  %v1467_v54 = vpop.f32.mrb[10].mxu1 }
 0x24e   : > { %v1224_v8 = vmul.f32 0.16666667, %v1192_v0  ;;  %v1209_v58 = vmul.f32 %v1177_v43, %v1055_v49  ;;  %v1098_v26 = vadd.f32 3.0, %v980_v38  ;;  %v1065_v62 = vadd.f32 %v1467_v54, %v2119_v5  ;;  %v1059_v21 = vpop.f32.mrb[11].mxu1 }
 0x24f   : > { %1257 = vst [vmem:[%s2131_s16 + $0x48] sm:$0xff] %v1225_v51  ;;  %v1208_v52 = vmul.f32 %v1176_v36, %v1050_v10  ;;  %v1131_v9 = vmax.f32 %v1099_v37, 0.0  ;;  %v1060_v59 = vadd.f32 %v2119_v5, %v1059_v21 }
 0x250   : > { %1256 = vst [vmem:[%s2131_s16 + $0x40] sm:$0xff] %v1224_v8  ;;  %v1241_v11 = vmul.f32 0.16666667, %v1209_v58  ;;  %v1130_v24 = vmax.f32 %v1098_v26, 0.0  ;;  %v1115_v3 = vadd.f32 3.0, %v1065_v62 }
 0x251   : > { %v1240_v41 = vmul.f32 0.16666667, %v1208_v52  ;;  %v1163_v4 = vmin.f32 %v1131_v9, 6.0  ;;  %v1114_v6 = vadd.f32 3.0, %v1060_v59 }
 0x252   : > { %1273 = vst [vmem:[%s2131_s16 + $0xc8] sm:$0xff] %v1241_v11  ;;  %v1162_v12 = vmin.f32 %v1130_v24, 6.0  ;;  %v1147_v7 = vmax.f32 %v1115_v3, 0.0  ;;  %v1446_v40 = vpop.f32.mrb[12].mxu0 }
 0x253   : > { %1272 = vst [vmem:[%s2131_s16 + $0xc0] sm:$0xff] %v1240_v41  ;;  %v1195_v18 = vmul.f32 %v1163_v4, %v985_v14  ;;  %v1146_v56 = vmax.f32 %v1114_v6, 0.0  ;;  %v995_v22 = vadd.f32 %v1446_v40, %v2119_v5  ;;  %v989_v28 = vpop.f32.mrb[13].mxu0 }
 0x254   : > { %v1194_v25 = vmul.f32 %v1162_v12, %v980_v38  ;;  %v1179_v27 = vmin.f32 %v1147_v7, 6.0  ;;  %v990_v32 = vadd.f32 %v2119_v5, %v989_v28 }
 0x255   : > { %v1227_v23 = vmul.f32 0.16666667, %v1195_v18  ;;  %v1178_v16 = vmin.f32 %v1146_v56, 6.0  ;;  %v1101_v13 = vadd.f32 3.0, %v995_v22  ;;  %v1470_v30 = vpop.f32.mrb[12].mxu1 }
 0x256   : > { %v1226_v15 = vmul.f32 0.16666667, %v1194_v25  ;;  %v1211_v60 = vmul.f32 %v1179_v27, %v1065_v62  ;;  %v1100_v45 = vadd.f32 3.0, %v990_v32  ;;  %v1075_v1 = vadd.f32 %v1470_v30, %v2119_v5  ;;  %v1069_v47 = vpop.f32.mrb[13].mxu1 }
 0x257   : > { %1259 = vst [vmem:[%s2131_s16 + $0x58] sm:$0xff] %v1227_v23  ;;  %v1210_v61 = vmul.f32 %v1178_v16, %v1060_v59  ;;  %v1133_v2 = vmax.f32 %v1101_v13, 0.0  ;;  %v1070_v44 = vadd.f32 %v2119_v5, %v1069_v47 }
 0x258   : > { %1258 = vst [vmem:[%s2131_s16 + $0x50] sm:$0xff] %v1226_v15  ;;  %v1243_v33 = vmul.f32 0.16666667, %v1211_v60  ;;  %v1132_v31 = vmax.f32 %v1100_v45, 0.0  ;;  %v1117_v49 = vadd.f32 3.0, %v1075_v1 }
 0x259   : > { %v1242_v29 = vmul.f32 0.16666667, %v1210_v61  ;;  %v1165_v63 = vmin.f32 %v1133_v2, 6.0  ;;  %v1116_v34 = vadd.f32 3.0, %v1070_v44 }
 0x25a   : > { %1275 = vst [vmem:[%s2131_s16 + $0xd8] sm:$0xff] %v1243_v33  ;;  %v1164_v10 = vmin.f32 %v1132_v31, 6.0  ;;  %v1149_v35 = vmax.f32 %v1117_v49, 0.0  ;;  %v1449_v39 = vpop.f32.mrb[14].mxu0 }
 0x25b   : > { %1274 = vst [vmem:[%s2131_s16 + $0xd0] sm:$0xff] %v1242_v29  ;;  %v1197_v42 = vmul.f32 %v1165_v63, %v995_v22  ;;  %v1148_v53 = vmax.f32 %v1116_v34, 0.0  ;;  %v1005_v19 = vadd.f32 %v1449_v39, %v2119_v5  ;;  %v999_v17 = vpop.f32.mrb[15].mxu0 }
 0x25c   : > { %v1196_v57 = vmul.f32 %v1164_v10, %v990_v32  ;;  %v1181_v20 = vmin.f32 %v1149_v35, 6.0  ;;  %v1000_v46 = vadd.f32 %v2119_v5, %v999_v17 }
 0x25d   : > { %v1229_v55 = vmul.f32 0.16666667, %v1197_v42  ;;  %v1180_v48 = vmin.f32 %v1148_v53, 6.0  ;;  %v1103_v14 = vadd.f32 3.0, %v1005_v19  ;;  %v1473_v50 = vpop.f32.mrb[14].mxu1 }
 0x25e   : > { %v1228_v0 = vmul.f32 0.16666667, %v1196_v57  ;;  %v1213_v43 = vmul.f32 %v1181_v20, %v1075_v1  ;;  %v1102_v38 = vadd.f32 3.0, %v1000_v46  ;;  %v1085_v51 = vadd.f32 %v1473_v50, %v2119_v5  ;;  %v1079_v36 = vpop.f32.mrb[15].mxu1 }
 0x25f   : > { %1261 = vst [vmem:[%s2131_s16 + $0x68] sm:$0xff] %v1229_v55  ;;  %v1212_v37 = vmul.f32 %v1180_v48, %v1070_v44  ;;  %v1135_v54 = vmax.f32 %v1103_v14, 0.0  ;;  %v1080_v8 = vadd.f32 %v2119_v5, %v1079_v36 }
 0x260   : > { %1260 = vst [vmem:[%s2131_s16 + $0x60] sm:$0xff] %v1228_v0  ;;  %v1245_v58 = vmul.f32 0.16666667, %v1213_v43  ;;  %v1134_v26 = vmax.f32 %v1102_v38, 0.0  ;;  %v1119_v62 = vadd.f32 3.0, %v1085_v51 }
 0x261   : > { %v1244_v21 = vmul.f32 0.16666667, %v1212_v37  ;;  %v1167_v52 = vmin.f32 %v1135_v54, 6.0  ;;  %v1118_v9 = vadd.f32 3.0, %v1080_v8 }
 0x262   : > { %1277 = vst [vmem:[%s2131_s16 + $0xe8] sm:$0xff] %v1245_v58  ;;  %v1166_v59 = vmin.f32 %v1134_v26, 6.0  ;;  %v1151_v11 = vmax.f32 %v1119_v62, 0.0 }
 0x263   : > { %1276 = vst [vmem:[%s2131_s16 + $0xe0] sm:$0xff] %v1244_v21  ;;  %v1199_v24 = vmul.f32 %v1167_v52, %v1005_v19  ;;  %v1150_v3 = vmax.f32 %v1118_v9, 0.0 }
 0x264   : > { %v1198_v41 = vmul.f32 %v1166_v59, %v1000_v46  ;;  %v1183_v4 = vmin.f32 %v1151_v11, 6.0 }
 0x265   : > { %v1231_v5 = vmul.f32 0.16666667, %v1199_v24  ;;  %v1182_v6 = vmin.f32 %v1150_v3, 6.0 }
 0x266   : > { %v1230_v12 = vmul.f32 0.16666667, %v1198_v41  ;;  %v1215_v7 = vmul.f32 %v1183_v4, %v1085_v51 }
 0x267   : > { %1263 = vst [vmem:[%s2131_s16 + $0x78] sm:$0xff] %v1231_v5  ;;  %v1214_v40 = vmul.f32 %v1182_v6, %v1080_v8 }
 0x268   : > { %1262 = vst [vmem:[%s2131_s16 + $0x70] sm:$0xff] %v1230_v12  ;;  %v1247_v18 = vmul.f32 0.16666667, %v1215_v7 }
 0x269   : > { %v1246_v56 = vmul.f32 0.16666667, %v1214_v40 }
 0x26a   : > { %1279 = vst [vmem:[%s2131_s16 + $0xf8] sm:$0xff] %v1247_v18 }
 0x26b   : > { %1278 = vst [vmem:[%s2131_s16 + $0xf0] sm:$0xff] %v1246_v56 }
 0x26c PF: > { %s15_s18 = sadd.s32 1, %s1564_s18  }
 0x26d   : > { %p12_p4 = scmp.ge.s32.totalorder %s15_s18, 4  }
 0x26f   :  { %14 = sbr.rel (!%p12_p4) target bundleno = 1 (0x1), region = 70 }

// kernel: block_forward.18
= control target key start
LH: loop header
LB: loop body
LE: loop exit
PB: predicated region body
PF: predicated region fallthrough
CT: control target
= control target key end

     0   :  { %s4804_s18 = smov 0   ;;  %s6257_s0 = inlined_call_operand.vmem [shape: f32[2,256,32], index: 0, kind: input, shape index: {}]   ;;  %s6258_s1 = inlined_call_operand.vmem [shape: f32[2,128,64], index: 1, kind: input, shape index: {}]   ;;  %s6259_s2 = inlined_call_operand.vmem [shape: f32[32,32], index: 2, kind: input, shape index: {}]   ;;  %s6260_s3 = inlined_call_operand.vmem [shape: f32[1,32], index: 3, kind: input, shape index: {}]   ;;  %s6261_s4 = inlined_call_operand.vmem [shape: f32[2,256,32], index: 4, kind: input, shape index: {}]   ;;  %s6262_s5 = inlined_call_operand.vmem [shape: f32[2,256,32], index: 5, kind: output, shape index: {}]  }
   0x1 LB: > { %s3248_s19 = sadd.s32 4294967295, %s4769_s18   ;;  %p3252_p0 = scmp.ge.s32.totalorder %s4769_s18, 1  ;;  %s4769_s18 = sphi %s4804_s18, %s15_s18  }
   0x2   : > { %p207_p1 = scmp.lt.s32.totalorder %s4769_s18, 3 }
   0x4   : > { %p208_p2 = pnand %p3252_p0, %p207_p1 }
   0x6   : > { %211 = sbr.rel (%p208_p2) target bundleno = 1553 (0x611), region = 40 }
   0xd   : > { %p245_p3 = scmp.lt.s32.totalorder %s3248_s19, 1  ;;  %vm387_vm0 = vcmask 130048   ;;  %s4771_s28 = smov 112   ;;  %vm3136_vm3 = vcmask 261120  }
   0xe   : > { %vm4821_vm1 = vmpackc.low %vm387_vm0, %vm387_vm0  ;;  %s4772_s29 = smov 96   ;;  %s4773_s30 = smov 80  }
   0xf   : > { %s6374_s19 = smov (!%p245_p3, %s3248_s19), 1 }
  0x10   : > { %s3425_s20 = sshll.u32 %s6374_s19, 7  ;;  %s4812_s21 = sshll.u32 %s6374_s19, 8 }
  0x11   : > { %s4817_s24 = scalar_lea.vmem %s6258_s1, %s3425_s20  ;;  %s4837_s27 = scalar_lea.vmem %s6257_s0, %s4812_s21 }
  0x12   : > { %v297_v1 = vld [vmem:[%s4817_s24] sm:$0xff]  ;;  %v298_v2 = vld [vmem:[%s4817_s24 + $0x8] sm:$0xff]  ;;  %v299_v3 = vld [vmem:[%s4817_s24 + $0x10] sm:$0xff]  ;;  %s6113_s16 = scalar_lea.vmem %s6261_s4, %s4812_s21  ;;  %s6130_s23 = scalar_lea.vmem %s6262_s5, %s4812_s21 }
  0x13   : > { %v4112_v4 = vpack.c.bf16 %v298_v2, %v297_v1  ;;  %v300_v5 = vld [vmem:[%s4817_s24 + $0x18] sm:$0xff]  ;;  %v301_v6 = vld [vmem:[%s4817_s24 + $0x20] sm:$0xff]  ;;  %v302_v7 = vld [vmem:[%s4817_s24 + $0x28] sm:$0xff]  ;;  %v4831_v8 = vpack.i.bf16 %v298_v2, %v297_v1 }
  0x14   : > { %v4118_v9 = vpack.c.bf16 %v300_v5, %v299_v3  ;;  %v4839_v10 = vpack.i.bf16 %v302_v7, %v301_v6  ;;  %v303_v11 = vld [vmem:[%s4817_s24 + $0x30] sm:$0xff]  ;;  %v304_v12 = vld [vmem:[%s4817_s24 + $0x38] sm:$0xff]  ;;  %v4847_v13 = vpack.i.bf16 %v300_v5, %v299_v3  ;;  %v265_v15 = vld [vmem:[%s4837_s27] sm:$0xff]  ;;  %v4124_v22 = vpack.c.bf16 %v302_v7, %v301_v6 }
  0x15   : > { %4114 = vmatprep.subr.msk.bf16.mxu0 %vm4821_vm1, %v4112_v4  ;;  %4372 = vrot.lane.b32.xlu0 %v4831_v8, %s4771_s28  ;;  %v4853_v14 = vpack.i.bf16 %v304_v12, %v303_v11  ;;  %v305_v16 = vld [vmem:[%s4817_s24 + $0x40] sm:$0xff]  ;;  %v306_v17 = vld [vmem:[%s4817_s24 + $0x48] sm:$0xff]  ;;  %v307_v18 = vld [vmem:[%s4817_s24 + $0x50] sm:$0xff]  ;;  %v4130_v29 = vpack.c.bf16 %v304_v12, %v303_v11 }
  0x16   : > { %4117 = vmatpush3.bf16.xpose.msk.msra.mxu0 %vm4821_vm1, %v4112_v4  ;;  %4382 = vrot.lane.b32.xlu1 %v4839_v10, %s4771_s28  ;;  %v308_v19 = vld [vmem:[%s4817_s24 + $0x58] sm:$0xff]  ;;  %v4865_v20 = vpack.i.bf16 %v306_v17, %v305_v16  ;;  %v309_v23 = vld [vmem:[%s4817_s24 + $0x60] sm:$0xff]  ;;  %v310_v24 = vld [vmem:[%s4817_s24 + $0x68] sm:$0xff]  ;;  %v4136_v33 = vpack.c.bf16 %v306_v17, %v305_v16 }
  0x17   : > { %4120 = vmatprep.subr.msk.bf16.mxu0 %vm4821_vm1, %v4118_v9  ;;  %3720 = vmatprep.mubr.msk.f32.mxu0 %vm387_vm0, %v265_v15  ;;  %v4869_v21 = vpack.i.bf16 %v308_v19, %v307_v18  ;;  %v311_v25 = vld [vmem:[%s4817_s24 + $0x70] sm:$0xff]  ;;  %v312_v26 = vld [vmem:[%s4817_s24 + $0x78] sm:$0xff]  ;;  %v4877_v27 = vpack.i.bf16 %v310_v24, %v309_v23  ;;  %v4892_v30 = vld [vmem:[%s4837_s27 + $0x8] sm:$0xff]  ;;  %v4142_v38 = vpack.c.bf16 %v308_v19, %v307_v18 }
  0x18   : > { %v4883_v28 = vpack.i.bf16 %v312_v26, %v311_v25  ;;  %v267_v31 = vld [vmem:[%s4837_s27 + $0x10] sm:$0xff]  ;;  %v4903_v32 = vld [vmem:[%s4837_s27 + $0x18] sm:$0xff]  ;;  %v269_v34 = vld [vmem:[%s4837_s27 + $0x20] sm:$0xff]  ;;  %v4148_v43 = vpack.c.bf16 %v310_v24, %v309_v23  ;;  %v4154_v48 = vpack.c.bf16 %v312_v26, %v311_v25 }
  0x19   : > { %4377 = vrot.lane.b32.xlu0 %v4847_v13, %s4771_s28  ;;  %v4910_v35 = vld [vmem:[%s4837_s27 + $0x28] sm:$0xff]  ;;  %v271_v36 = vld [vmem:[%s4837_s27 + $0x30] sm:$0xff]  ;;  %v4921_v37 = vld [vmem:[%s4837_s27 + $0x38] sm:$0xff] }
  0x1a   : > { %4387 = vrot.lane.b32.xlu1 %v4853_v14, %s4771_s28  ;;  %v273_v39 = vld [vmem:[%s4837_s27 + $0x40] sm:$0xff]  ;;  %v4928_v40 = vld [vmem:[%s4837_s27 + $0x48] sm:$0xff]  ;;  %v275_v41 = vld [vmem:[%s4837_s27 + $0x50] sm:$0xff] }
  0x1b   : > { %v276_v42 = vld [vmem:[%s4837_s27 + $0x58] sm:$0xff]  ;;  %v277_v44 = vld [vmem:[%s4837_s27 + $0x60] sm:$0xff]  ;;  %v278_v45 = vld [vmem:[%s4837_s27 + $0x68] sm:$0xff] }
  0x1c   : > { %v279_v46 = vld [vmem:[%s4837_s27 + $0x70] sm:$0xff]  ;;  %v280_v47 = vld [vmem:[%s4837_s27 + $0x78] sm:$0xff]  ;;  %v281_v49 = vld [vmem:[%s4837_s27 + $0x80] sm:$0xff] }
  0x1d   : > { %4392 = vrot.lane.b32.xlu0 %v4865_v20, %s4771_s28  ;;  %v282_v50 = vld [vmem:[%s4837_s27 + $0x88] sm:$0xff]  ;;  %v283_v51 = vld [vmem:[%s4837_s27 + $0x90] sm:$0xff]  ;;  %v284_v52 = vld [vmem:[%s4837_s27 + $0x98] sm:$0xff] }
  0x1e   : > { %4123 = vmatpush3.bf16.xpose.msk.msra.mxu0 %vm4821_vm1, %v4118_v9  ;;  %4397 = vrot.lane.b32.xlu1 %v4869_v21, %s4771_s28  ;;  %v285_v53 = vld [vmem:[%s4837_s27 + $0xa0] sm:$0xff]  ;;  %v286_v54 = vld [vmem:[%s4837_s27 + $0xa8] sm:$0xff]  ;;  %v287_v55 = vld [vmem:[%s4837_s27 + $0xb0] sm:$0xff] }
  0x1f   : > { %4126 = vmatprep.subr.msk.bf16.mxu0 %vm4821_vm1, %v4124_v22  ;;  %v289_v56 = vld [vmem:[%s4837_s27 + $0xc0] sm:$0xff]  ;;  %v288_v57 = vld [vmem:[%s4837_s27 + $0xb8] sm:$0xff]  ;;  %v290_v59 = vld [vmem:[%s4837_s27 + $0xc8] sm:$0xff] }
  0x20   : > { %v292_v58 = vld [vmem:[%s4837_s27 + $0xd8] sm:$0xff]  ;;  %v295_v60 = vld [vmem:[%s4837_s27 + $0xf0] sm:$0xff]  ;;  %v293_v62 = vld [vmem:[%s4837_s27 + $0xe0] sm:$0xff] }
  0x21   : > { %4402 = vrot.lane.b32.xlu0 %v4877_v27, %s4771_s28  ;;  %v291_v61 = vld [vmem:[%s4837_s27 + $0xd0] sm:$0xff]  ;;  %v294_v63 = vld [vmem:[%s4837_s27 + $0xe8] sm:$0xff]  ;;  %v296_v1 = vld [vmem:[%s4837_s27 + $0xf8] sm:$0xff] }
  0x22   : > { %4407 = vrot.lane.b32.xlu1 %v4883_v28, %s4771_s28 }
  0x25   : > { %1739 = vrot.lane.b32.xlu0 %v265_v15, %s4771_s28 }
  0x26   : > { %4129 = vmatpush3.bf16.xpose.msk.msra.mxu0 %vm4821_vm1, %v4124_v22  ;;  %1741 = vrot.lane.b32.xlu1 %v4892_v30, %s4771_s28 }
  0x27   : > { %4132 = vmatprep.subr.msk.bf16.mxu0 %vm4821_vm1, %v4130_v29 }
  0x29   : > { %1743 = vrot.lane.b32.xlu0 %v267_v31, %s4771_s28 }
  0x2a   : > { %1745 = vrot.lane.b32.xlu1 %v4903_v32, %s4771_s28 }
  0x2d   : > { %1747 = vrot.lane.b32.xlu0 %v269_v34, %s4771_s28 }
  0x2e   : > { %4135 = vmatpush3.bf16.xpose.msk.msra.mxu0 %vm4821_vm1, %v4130_v29  ;;  %1749 = vrot.lane.b32.xlu1 %v4910_v35, %s4771_s28 }
  0x2f   : > { %4138 = vmatprep.subr.msk.bf16.mxu0 %vm4821_vm1, %v4136_v33 }
  0x31   : > { %1751 = vrot.lane.b32.xlu0 %v271_v36, %s4771_s28 }
  0x32   : > { %1753 = vrot.lane.b32.xlu1 %v4921_v37, %s4771_s28 }
  0x35   : > { %1755 = vrot.lane.b32.xlu0 %v273_v39, %s4771_s28 }
  0x36   : > { %4141 = vmatpush3.bf16.xpose.msk.msra.mxu0 %vm4821_vm1, %v4136_v33  ;;  %1757 = vrot.lane.b32.xlu1 %v4928_v40, %s4771_s28 }
  0x37   : > { %4144 = vmatprep.subr.msk.bf16.mxu0 %vm4821_vm1, %v4142_v38 }
  0x39   : > { %1759 = vrot.lane.b32.xlu0 %v275_v41, %s4771_s28 }
  0x3a   : > { %1761 = vrot.lane.b32.xlu1 %v276_v42, %s4771_s28 }
  0x3d   : > { %1763 = vrot.lane.b32.xlu0 %v277_v44, %s4771_s28 }
  0x3e   : > { %4147 = vmatpush3.bf16.xpose.msk.msra.mxu0 %vm4821_vm1, %v4142_v38  ;;  %1765 = vrot.lane.b32.xlu1 %v278_v45, %s4771_s28 }
  0x3f   : > { %4150 = vmatprep.subr.msk.bf16.mxu0 %vm4821_vm1, %v4148_v43 }
  0x41   : > { %1767 = vrot.lane.b32.xlu0 %v279_v46, %s4771_s28 }
  0x42   : > { %1769 = vrot.lane.b32.xlu1 %v280_v47, %s4771_s28 }
  0x45   : > { %1771 = vrot.lane.b32.xlu0 %v281_v49, %s4771_s28 }
  0x46   : > { %4153 = vmatpush3.bf16.xpose.msk.msra.mxu0 %vm4821_vm1, %v4148_v43  ;;  %1773 = vrot.lane.b32.xlu1 %v282_v50, %s4771_s28 }
  0x47   : > { %4156 = vmatprep.subr.msk.bf16.mxu0 %vm4821_vm1, %v4154_v48 }
  0x49   : > { %1775 = vrot.lane.b32.xlu0 %v283_v51, %s4771_s28 }
  0x4a   : > { %1777 = vrot.lane.b32.xlu1 %v284_v52, %s4771_s28 }
  0x4d   : > { %1779 = vrot.lane.b32.xlu0 %v285_v53, %s4771_s28 }
  0x4e   : > { %4159 = vmatpush3.bf16.xpose.msk.msra.mxu0 %vm4821_vm1, %v4154_v48  ;;  %1781 = vrot.lane.b32.xlu1 %v286_v54, %s4771_s28 }
  0x51   : > { %1783 = vrot.lane.b32.xlu0 %v287_v55, %s4771_s28 }
  0x52   : > { %1787 = vrot.lane.b32.xlu1 %v289_v56, %s4771_s28 }
  0x55   : > { %3721 = vmatmul.mubr.msk.f32.vlgmr.msra.gmra.mrb[0].mxu0 %vm387_vm0, %v4892_v30  ;;  %1785 = vrot.lane.b32.xlu0 %v288_v57, %s4771_s28 }
  0x56   : > { %3723 = vmatprep.mubr.msk.f32.mxu0 %vm387_vm0, %v267_v31  ;;  %1793 = vrot.lane.b32.xlu1 %v292_v58, %s4771_s28 }
  0x59   : > { %3724 = vmatmul.mubr.msk.f32.gmra.mrb[2].mxu0 %vm387_vm0, %v4903_v32  ;;  %1789 = vrot.lane.b32.xlu0 %v290_v59, %s4771_s28 }
  0x5a   : > { %3726 = vmatprep.mubr.msk.f32.mxu0 %vm387_vm0, %v269_v34  ;;  %1799 = vrot.lane.b32.xlu1 %v295_v60, %s4771_s28 }
  0x5d   : > { %3727 = vmatmul.mubr.msk.f32.gmra.mrb[4].mxu0 %vm387_vm0, %v4910_v35  ;;  %1791 = vrot.lane.b32.xlu0 %v291_v61, %s4771_s28 }
  0x5e   : > { %3729 = vmatprep.mubr.msk.f32.mxu0 %vm387_vm0, %v271_v36  ;;  %4412 = vrot.lane.b32.xlu1 %v4831_v8, %s4772_s29 }
  0x61   : > { %3730 = vmatmul.mubr.msk.f32.gmra.mrb[6].mxu0 %vm387_vm0, %v4921_v37  ;;  %1795 = vrot.lane.b32.xlu0 %v293_v62, %s4771_s28 }
  0x62   : > { %3732 = vmatprep.mubr.msk.f32.mxu0 %vm387_vm0, %v273_v39  ;;  %4422 = vrot.lane.b32.xlu1 %v4839_v10, %s4772_s29 }
  0x65   : > { %3733 = vmatmul.mubr.msk.f32.gmra.mrb[8].mxu0 %vm387_vm0, %v4928_v40  ;;  %1797 = vrot.lane.b32.xlu0 %v294_v63, %s4771_s28 }
  0x66   : > { %3735 = vmatprep.mubr.msk.f32.mxu0 %vm387_vm0, %v275_v41 }
  0x69   : > { %3736 = vmatmul.mubr.msk.f32.gmra.mrb[10].mxu0 %vm387_vm0, %v276_v42  ;;  %1801 = vrot.lane.b32.xlu0 %v296_v1, %s4771_s28 }
  0x6a   : > { %3738 = vmatprep.mubr.msk.f32.mxu0 %vm387_vm0, %v277_v44 }
  0x6d   : > { %3739 = vmatmul.mubr.msk.f32.gmra.mrb[12].mxu0 %vm387_vm0, %v278_v45  ;;  %4417 = vrot.lane.b32.xlu0 %v4847_v13, %s4772_s29 }
  0x6e   : > { %3741 = vmatprep.mubr.msk.f32.mxu0 %vm387_vm0, %v279_v46 }
  0x71   : > { %3742 = vmatmul.mubr.msk.f32.gmra.mrb[14].mxu0 %vm387_vm0, %v280_v47 }
  0x72   : > { %3744 = vmatprep.mubr.msk.f32.mxu0 %vm387_vm0, %v281_v49 }
  0x75   : > { %3745 = vmatmul.mubr.msk.f32.gmra.mrb[16].mxu0 %vm387_vm0, %v282_v50 }
  0x76   : > { %3747 = vmatprep.mubr.msk.f32.mxu0 %vm387_vm0, %v283_v51 }
  0x79   : > { %3748 = vmatmul.mubr.msk.f32.gmra.mrb[18].mxu0 %vm387_vm0, %v284_v52 }
  0x7a   : > { %3750 = vmatprep.mubr.msk.f32.mxu0 %vm387_vm0, %v285_v53 }
  0x7d   : > { %3751 = vmatmul.mubr.msk.f32.gmra.mrb[20].mxu0 %vm387_vm0, %v286_v54 }
  0x7e   : > { %3753 = vmatprep.mubr.msk.f32.mxu0 %vm387_vm0, %v287_v55 }
  0x81   : > { %3754 = vmatmul.mubr.msk.f32.gmra.mrb[22].mxu0 %vm387_vm0, %v288_v57 }
  0x82   : > { %3756 = vmatprep.mubr.msk.f32.mxu0 %vm387_vm0, %v289_v56 }
  0x85   : > { %3757 = vmatmul.mubr.msk.f32.gmra.mrb[24].mxu0 %vm387_vm0, %v290_v59 }
  0x86   : > { %3759 = vmatprep.mubr.msk.f32.mxu0 %vm387_vm0, %v291_v61 }
  0x87   : > { %v4373_v2 = vpop.permute.xlu0 %4372 }
  0x88   : > { %v4375_v3 = vunpack.i.h.bf16 %v4373_v2  ;;  %v4374_v4 = vunpack.i.l.bf16 %v4373_v2  ;;  %v4383_v9 = vpop.permute.xlu1 %4382 }
  0x89   : > { %3760 = vmatmul.mubr.msk.f32.gmra.mrb[26].mxu0 %vm387_vm0, %v292_v58  ;;  %v4385_v11 = vunpack.i.h.bf16 %v4383_v9  ;;  %v4384_v12 = vunpack.i.l.bf16 %v4383_v9 }
  0x8a   : > { %3762 = vmatprep.mubr.msk.f32.mxu0 %vm387_vm0, %v293_v62  ;;  %v4196_v5 = vpack.c.bf16 %v4375_v3, %v4374_v4 }
  0x8b   : > { %v4378_v6 = vpop.permute.xlu0 %4377  ;;  %v4208_v13 = vpack.c.bf16 %v4385_v11, %v4384_v12 }
  0x8c   : > { %4198 = vmatprep.subr.msk.bf16.mxu0 %vm4821_vm1, %v4196_v5  ;;  %v4380_v7 = vunpack.i.h.bf16 %v4378_v6  ;;  %v4379_v8 = vunpack.i.l.bf16 %v4378_v6  ;;  %v4388_v15 = vpop.permute.xlu1 %4387 }
  0x8d   : > { %3763 = vmatmul.mubr.msk.f32.gmra.mrb[28].mxu0 %vm387_vm0, %v294_v63  ;;  %v4390_v16 = vunpack.i.h.bf16 %v4388_v15  ;;  %v4389_v17 = vunpack.i.l.bf16 %v4388_v15 }
  0x8e   : > { %3765 = vmatprep.mubr.msk.f32.mxu0 %vm387_vm0, %v295_v60  ;;  %4201 = vmatpush3.bf16.xpose.msk.msra.mxu0 %vm4821_vm1, %v4196_v5  ;;  %v4202_v10 = vpack.c.bf16 %v4380_v7, %v4379_v8 }
  0x8f   : > { %v4214_v18 = vpack.c.bf16 %v4390_v16, %v4389_v17  ;;  %v4393_v19 = vpop.permute.xlu0 %4392 }
  0x90   : > { %4204 = vmatprep.subr.msk.bf16.mxu0 %vm4821_vm1, %v4202_v10  ;;  %v4395_v22 = vunpack.i.h.bf16 %v4393_v19  ;;  %v4394_v23 = vunpack.i.l.bf16 %v4393_v19  ;;  %v4398_v25 = vpop.permute.xlu1 %4397 }
  0x91   : > { %3766 = vmatmul.mubr.msk.f32.gmra.mrb[30].mxu0 %vm387_vm0, %v296_v1  ;;  %v4400_v26 = vunpack.i.h.bf16 %v4398_v25  ;;  %v4399_v29 = vunpack.i.l.bf16 %v4398_v25 }
  0x92   : > { %v4220_v24 = vpack.c.bf16 %v4395_v22, %v4394_v23  ;;  %v313_v22 = vlaneseq }
  0x93   : > { %v4403_v30 = vpop.permute.xlu0 %4402  ;;  %v4226_v31 = vpack.c.bf16 %v4400_v26, %v4399_v29 }
  0x94   : > { %v4405_v33 = vunpack.i.h.bf16 %v4403_v30  ;;  %v4404_v34 = vunpack.i.l.bf16 %v4403_v30  ;;  %v4408_v37 = vpop.permute.xlu1 %4407  ;;  %v5097_v23 = vand.u32 127, %v313_v22 }
  0x95   : > { %v4410_v39 = vunpack.i.h.bf16 %v4408_v37  ;;  %v4409_v40 = vunpack.i.l.bf16 %v4408_v37 }
  0x96   : > { %4207 = vmatpush3.bf16.xpose.msk.msra.mxu0 %vm4821_vm1, %v4202_v10  ;;  %v4232_v36 = vpack.c.bf16 %v4405_v33, %v4404_v34  ;;  %vm315_vm2 = vcmp.lt.s32.totalorder %v5097_v23, 85 }
  0x97   : > { %4210 = vmatprep.subr.msk.bf16.mxu0 %vm4821_vm1, %v4208_v13  ;;  %v1740_v32 = vpop.permute.xlu0 %1739  ;;  %v4238_v43 = vpack.c.bf16 %v4410_v39, %v4409_v40 }
  0x98   : > { %3932 = vmatprep.mubr.msk.f32.mxu0 %vm387_vm0, %v1740_v32  ;;  %v1742_v41 = vpop.permute.xlu1 %1741 }
  0x9b   : > { %v1744_v35 = vpop.permute.xlu0 %1743 }
  0x9c   : > { %v1746_v44 = vpop.permute.xlu1 %1745 }
  0x9e   : > { %4213 = vmatpush3.bf16.xpose.msk.msra.mxu0 %vm4821_vm1, %v4208_v13 }
  0x9f   : > { %4216 = vmatprep.subr.msk.bf16.mxu0 %vm4821_vm1, %v4214_v18  ;;  %v1748_v38 = vpop.permute.xlu0 %1747 }
  0xa0   : > { %v1750_v46 = vpop.permute.xlu1 %1749 }
  0xa3   : > { %v1752_v42 = vpop.permute.xlu0 %1751 }
  0xa4   : > { %v1754_v48 = vpop.permute.xlu1 %1753 }
  0xa6   : > { %4219 = vmatpush3.bf16.xpose.msk.msra.mxu0 %vm4821_vm1, %v4214_v18 }
  0xa7   : > { %4222 = vmatprep.subr.msk.bf16.mxu0 %vm4821_vm1, %v4220_v24  ;;  %v1756_v45 = vpop.permute.xlu0 %1755 }
  0xa8   : > { %v1758_v50 = vpop.permute.xlu1 %1757 }
  0xab   : > { %v1760_v47 = vpop.permute.xlu0 %1759 }
  0xac   : > { %v1762_v52 = vpop.permute.xlu1 %1761 }
  0xae   : > { %4225 = vmatpush3.bf16.xpose.msk.msra.mxu0 %vm4821_vm1, %v4220_v24 }
  0xaf   : > { %4228 = vmatprep.subr.msk.bf16.mxu0 %vm4821_vm1, %v4226_v31  ;;  %v1764_v49 = vpop.permute.xlu0 %1763 }
  0xb0   : > { %v1766_v54 = vpop.permute.xlu1 %1765 }
  0xb3   : > { %v1768_v51 = vpop.permute.xlu0 %1767 }
  0xb4   : > { %v1770_v0 = vpop.permute.xlu1 %1769 }
  0xb6   : > { %4231 = vmatpush3.bf16.xpose.msk.msra.mxu0 %vm4821_vm1, %v4226_v31 }
  0xb7   : > { %4234 = vmatprep.subr.msk.bf16.mxu0 %vm4821_vm1, %v4232_v36  ;;  %v1772_v53 = vpop.permute.xlu0 %1771 }
  0xb8   : > { %v1774_v57 = vpop.permute.xlu1 %1773 }
  0xbb   : > { %v1776_v55 = vpop.permute.xlu0 %1775 }
  0xbc   : > { %v1778_v59 = vpop.permute.xlu1 %1777 }
  0xbe   : > { %4237 = vmatpush3.bf16.xpose.msk.msra.mxu0 %vm4821_vm1, %v4232_v36 }
  0xbf   : > { %4240 = vmatprep.subr.msk.bf16.mxu0 %vm4821_vm1, %v4238_v43  ;;  %v1780_v56 = vpop.permute.xlu0 %1779 }
  0xc0   : > { %v1782_v61 = vpop.permute.xlu1 %1781 }
  0xc3   : > { %v1784_v58 = vpop.permute.xlu0 %1783 }
  0xc4   : > { %v1788_v63 = vpop.permute.xlu1 %1787 }
  0xc6   : > { %4243 = vmatpush3.bf16.xpose.msk.msra.mxu0 %vm4821_vm1, %v4238_v43 }
  0xc7   : > { %v1786_v60 = vpop.permute.xlu0 %1785 }
  0xc8   : > { %v1794_v2 = vpop.permute.xlu1 %1793 }
  0xcb   : > { %v1790_v62 = vpop.permute.xlu0 %1789 }
  0xcc   : > { %v1800_v4 = vpop.permute.xlu1 %1799 }
  0xcd   : > { %3933 = vmatmul.mubr.msk.f32.vlgmr.msra.gmra.mrb[32].mxu0 %vm387_vm0, %v1742_v41 }
  0xce   : > { %3935 = vmatprep.mubr.msk.f32.mxu0 %vm387_vm0, %v1744_v35 }
  0xcf   : > { %v1792_v1 = vpop.permute.xlu0 %1791 }
  0xd0   : > { %v4413_v6 = vpop.permute.xlu1 %4412 }
  0xd1   : > { %3936 = vmatmul.mubr.msk.f32.gmra.mrb[34].mxu0 %vm387_vm0, %v1746_v44  ;;  %v4415_v8 = vunpack.i.h.bf16 %v4413_v6  ;;  %v4414_v9 = vunpack.i.l.bf16 %v4413_v6 }
  0xd2   : > { %3938 = vmatprep.mubr.msk.f32.mxu0 %vm387_vm0, %v1748_v38 }
  0xd3   : > { %v1796_v3 = vpop.permute.xlu0 %1795  ;;  %v4160_v10 = vpack.c.bf16 %v4415_v8, %v4414_v9 }
  0xd4   : > { %v4423_v12 = vpop.permute.xlu1 %4422 }
  0xd5   : > { %3939 = vmatmul.mubr.msk.f32.gmra.mrb[36].mxu0 %vm387_vm0, %v1750_v46  ;;  %4161 = vmatprep.subr.bf16.mxu1 %v4160_v10  ;;  %v4425_v16 = vunpack.i.h.bf16 %v4423_v12  ;;  %v4424_v17 = vunpack.i.l.bf16 %v4423_v12 }
  0xd6   : > { %3941 = vmatprep.mubr.msk.f32.mxu0 %vm387_vm0, %v1752_v42  ;;  %4163 = vmatpush3.bf16.msra.mxu1 %v4160_v10 }
  0xd7   : > { %v1798_v5 = vpop.permute.xlu0 %1797  ;;  %v4168_v19 = vpack.c.bf16 %v4425_v16, %v4424_v17 }
  0xd9   : > { %3942 = vmatmul.mubr.msk.f32.gmra.mrb[38].mxu0 %vm387_vm0, %v1754_v48 }
  0xda   : > { %3944 = vmatprep.mubr.msk.f32.mxu0 %vm387_vm0, %v1756_v45 }
  0xdb   : > { %v1802_v7 = vpop.permute.xlu0 %1801 }
  0xdd   : > { %3945 = vmatmul.mubr.msk.f32.gmra.mrb[40].mxu0 %vm387_vm0, %v1758_v50 }
  0xde   : > { %3947 = vmatprep.mubr.msk.f32.mxu0 %vm387_vm0, %v1760_v47 }
  0xdf   : > { %v4418_v11 = vpop.permute.xlu0 %4417 }
  0xe0   : > { %v4420_v13 = vunpack.i.h.bf16 %v4418_v11  ;;  %v4419_v15 = vunpack.i.l.bf16 %v4418_v11 }
  0xe1   : > { %3948 = vmatmul.mubr.msk.f32.gmra.mrb[42].mxu0 %vm387_vm0, %v1762_v52 }
  0xe2   : > { %3950 = vmatprep.mubr.msk.f32.mxu0 %vm387_vm0, %v1764_v49  ;;  %v4164_v18 = vpack.c.bf16 %v4420_v13, %v4419_v15 }
  0xe4   : > { %4165 = vmatprep.subr.bf16.mxu1 %v4164_v18 }
  0xe5   : > { %3951 = vmatmul.mubr.msk.f32.gmra.mrb[44].mxu0 %vm387_vm0, %v1766_v54  ;;  %4167 = vmatpush3.bf16.msra.mxu1 %v4164_v18 }
  0xe6   : > { %3953 = vmatprep.mubr.msk.f32.mxu0 %vm387_vm0, %v1768_v51  ;;  %4169 = vmatprep.subr.bf16.mxu1 %v4168_v19 }
  0xe9   : > { %3954 = vmatmul.mubr.msk.f32.gmra.mrb[46].mxu0 %vm387_vm0, %v1770_v0  ;;  %4171 = vmatpush3.bf16.msra.mxu1 %v4168_v19 }
  0xea   : > { %3956 = vmatprep.mubr.msk.f32.mxu0 %vm387_vm0, %v1772_v53 }
  0xed   : > { %3957 = vmatmul.mubr.msk.f32.gmra.mrb[48].mxu0 %vm387_vm0, %v1774_v57 }
  0xee   : > { %3959 = vmatprep.mubr.msk.f32.mxu0 %vm387_vm0, %v1776_v55 }
  0xf1   : > { %3960 = vmatmul.mubr.msk.f32.gmra.mrb[50].mxu0 %vm387_vm0, %v1778_v59 }
  0xf2   : > { %3962 = vmatprep.mubr.msk.f32.mxu0 %vm387_vm0, %v1780_v56 }
  0xf5   : > { %3963 = vmatmul.mubr.msk.f32.gmra.mrb[52].mxu0 %vm387_vm0, %v1782_v61 }
  0xf6   : > { %3965 = vmatprep.mubr.msk.f32.mxu0 %vm387_vm0, %v1784_v58 }
  0xf9   : > { %3966 = vmatmul.mubr.msk.f32.gmra.mrb[54].mxu0 %vm387_vm0, %v1786_v60 }
  0xfa   : > { %3968 = vmatprep.mubr.msk.f32.mxu0 %vm387_vm0, %v1788_v63 }
  0xfd   : > { %3969 = vmatmul.mubr.msk.f32.gmra.mrb[56].mxu0 %vm387_vm0, %v1790_v62 }
  0xfe   : > { %3971 = vmatprep.mubr.msk.f32.mxu0 %vm387_vm0, %v1792_v1 }
 0x101   : > { %3972 = vmatmul.mubr.msk.f32.gmra.mrb[58].mxu0 %vm387_vm0, %v1794_v2 }
 0x102   : > { %3974 = vmatprep.mubr.msk.f32.mxu0 %vm387_vm0, %v1796_v3 }
 0x105   : > { %3975 = vmatmul.mubr.msk.f32.gmra.mrb[60].mxu0 %vm387_vm0, %v1798_v5 }
 0x106   : > { %3977 = vmatprep.mubr.msk.f32.mxu0 %vm387_vm0, %v1800_v4 }
 0x109   : > { %3978 = vmatmul.mubr.msk.f32.gmra.mrb[62].mxu0 %vm387_vm0, %v1802_v7 }
 0x128   : > { %v3722_v24 = vpop.f32.mrb[0].mxu0 }
 0x129   : > { %v758_v25 = vmul.f32 0.25, %v3722_v24  ;;  %v598_v26 = vpop.f32.mrb[1].mxu0 }
 0x12a   : > { %v757_v29 = vmul.f32 0.25, %v598_v26 }
 0x12b   : > { %v5102_v30 = vsel %vm315_vm2, %v758_v25, -1e+30 }
 0x12c   : > { %825 = vmax.xlane.f32.xlu0 %v5102_v30  ;;  %v3725_v31 = vpop.f32.mrb[2].mxu0  ;;  %v5107_v32 = vsel %vm315_vm2, %v757_v29, -1e+30 }
 0x12d   : > { %v760_v33 = vmul.f32 0.25, %v3725_v31  ;;  %823 = vmax.xlane.f32.xlu1 %v5107_v32  ;;  %v608_v34 = vpop.f32.mrb[3].mxu0 }
 0x12e   : > { %v759_v35 = vmul.f32 0.25, %v608_v34 }
 0x12f   : > { %v5112_v36 = vsel %vm315_vm2, %v760_v33, -1e+30 }
 0x130   : > { %v3728_v37 = vpop.f32.mrb[4].mxu0  ;;  %v5116_v38 = vsel %vm315_vm2, %v759_v35, -1e+30 }
 0x131   : > { %v762_v39 = vmul.f32 0.25, %v3728_v37  ;;  %829 = vmax.xlane.f32.xlu1 %v5112_v36  ;;  %827 = vmax.xlane.f32.xlu0 %v5116_v38  ;;  %v618_v40 = vpop.f32.mrb[5].mxu0 }
 0x132   : > { %v761_v42 = vmul.f32 0.25, %v618_v40 }
 0x133   : > { %v5122_v41 = vsel %vm315_vm2, %v762_v39, -1e+30 }
 0x134   : > { %v3731_v43 = vpop.f32.mrb[6].mxu0  ;;  %v5127_v48 = vsel %vm315_vm2, %v761_v42, -1e+30 }
 0x135   : > { %833 = vmax.xlane.f32.xlu0 %v5122_v41  ;;  %v628_v44 = vpop.f32.mrb[7].mxu0  ;;  %v764_v45 = vmul.f32 0.25, %v3731_v43 }
 0x136   : > { %v763_v46 = vmul.f32 0.25, %v628_v44 }
 0x137   : > { %v5137_v53 = vsel %vm315_vm2, %v764_v45, -1e+30 }
 0x138   : > { %v3734_v47 = vpop.f32.mrb[8].mxu0  ;;  %v5131_v49 = vsel %vm315_vm2, %v763_v46, -1e+30 }
 0x139   : > { %831 = vmax.xlane.f32.xlu0 %v5127_v48  ;;  %835 = vmax.xlane.f32.xlu1 %v5131_v49  ;;  %v638_v50 = vpop.f32.mrb[9].mxu0  ;;  %v766_v51 = vmul.f32 0.25, %v3734_v47 }
 0x13a   : > { %v765_v52 = vmul.f32 0.25, %v638_v50 }
 0x13b   : > { %v5147_v57 = vsel %vm315_vm2, %v766_v51, -1e+30 }
 0x13c   : > { %v5141_v54 = vsel %vm315_vm2, %v765_v52, -1e+30  ;;  %v3737_v55 = vpop.f32.mrb[10].mxu0 }
 0x13d   : > { %837 = vmax.xlane.f32.xlu0 %v5137_v53  ;;  %839 = vmax.xlane.f32.xlu1 %v5141_v54  ;;  %v768_v0 = vmul.f32 0.25, %v3737_v55  ;;  %v648_v56 = vpop.f32.mrb[11].mxu0 }
 0x13e   : > { %v767_v58 = vmul.f32 0.25, %v648_v56 }
 0x13f   : > { %v5151_v59 = vsel %vm315_vm2, %v768_v0, -1e+30 }
 0x140   : > { %v3740_v60 = vpop.f32.mrb[12].mxu0  ;;  %v5157_v63 = vsel %vm315_vm2, %v767_v58, -1e+30 }
 0x141   : > { %841 = vmax.xlane.f32.xlu0 %v5147_v57  ;;  %845 = vmax.xlane.f32.xlu1 %v5151_v59  ;;  %v658_v61 = vpop.f32.mrb[13].mxu0  ;;  %v770_v62 = vmul.f32 0.25, %v3740_v60 }
 0x142   : > { %v769_v4 = vmul.f32 0.25, %v658_v61 }
 0x143   : > { %v5162_v5 = vsel %vm315_vm2, %v770_v62, -1e+30 }
 0x144   : > { %v3743_v1 = vpop.f32.mrb[14].mxu0  ;;  %v5172_v11 = vsel %vm315_vm2, %v769_v4, -1e+30 }
 0x145   : > { %v772_v2 = vmul.f32 0.25, %v3743_v1  ;;  %843 = vmax.xlane.f32.xlu1 %v5157_v63  ;;  %v668_v3 = vpop.f32.mrb[15].mxu0 }
 0x146   : > { %v771_v10 = vmul.f32 0.25, %v668_v3 }
 0x147   : > { %v5166_v6 = vsel %vm315_vm2, %v772_v2, -1e+30 }
 0x148   : > { %853 = vmax.xlane.f32.xlu0 %v5166_v6  ;;  %v3746_v7 = vpop.f32.mrb[16].mxu0  ;;  %v5182_v18 = vsel %vm315_vm2, %v771_v10, -1e+30 }
 0x149   : > { %v774_v8 = vmul.f32 0.25, %v3746_v7  ;;  %849 = vmax.xlane.f32.xlu1 %v5162_v5  ;;  %v678_v9 = vpop.f32.mrb[17].mxu0 }
 0x14a   : > { %v773_v17 = vmul.f32 0.25, %v678_v9 }
 0x14b   : > { %v5176_v12 = vsel %vm315_vm2, %v774_v8, -1e+30 }
 0x14c   : > { %857 = vmax.xlane.f32.xlu0 %v5176_v12  ;;  %v3749_v13 = vpop.f32.mrb[18].mxu0  ;;  %v5192_v29 = vsel %vm315_vm2, %v773_v17, -1e+30 }
 0x14d   : > { %v776_v15 = vmul.f32 0.25, %v3749_v13  ;;  %847 = vmax.xlane.f32.xlu1 %v5172_v11  ;;  %v688_v16 = vpop.f32.mrb[19].mxu0 }
 0x14e   : > { %v775_v26 = vmul.f32 0.25, %v688_v16 }
 0x14f   : > { %v5186_v19 = vsel %vm315_vm2, %v776_v15, -1e+30 }
 0x150   : > { %861 = vmax.xlane.f32.xlu0 %v5186_v19  ;;  %v3752_v22 = vpop.f32.mrb[20].mxu0  ;;  %v5202_v39 = vsel %vm315_vm2, %v775_v26, -1e+30 }
 0x151   : > { %v778_v24 = vmul.f32 0.25, %v3752_v22  ;;  %851 = vmax.xlane.f32.xlu1 %v5182_v18  ;;  %v698_v25 = vpop.f32.mrb[21].mxu0 }
 0x152   : > { %v777_v37 = vmul.f32 0.25, %v698_v25 }
 0x153   : > { %v5196_v31 = vsel %vm315_vm2, %v778_v24, -1e+30 }
 0x154   : > { %865 = vmax.xlane.f32.xlu0 %v5196_v31  ;;  %v3755_v33 = vpop.f32.mrb[22].mxu0  ;;  %v5212_v46 = vsel %vm315_vm2, %v777_v37, -1e+30 }
 0x155   : > { %v780_v34 = vmul.f32 0.25, %v3755_v33  ;;  %855 = vmax.xlane.f32.xlu1 %v5192_v29  ;;  %v708_v35 = vpop.f32.mrb[23].mxu0 }
 0x156   : > { %v779_v45 = vmul.f32 0.25, %v708_v35 }
 0x157   : > { %v5206_v40 = vsel %vm315_vm2, %v780_v34, -1e+30 }
 0x158   : > { %869 = vmax.xlane.f32.xlu0 %v5206_v40  ;;  %v3758_v42 = vpop.f32.mrb[24].mxu0  ;;  %v5222_v0 = vsel %vm315_vm2, %v779_v45, -1e+30 }
 0x159   : > { %v782_v43 = vmul.f32 0.25, %v3758_v42  ;;  %859 = vmax.xlane.f32.xlu1 %v5202_v39  ;;  %v718_v44 = vpop.f32.mrb[25].mxu0 }
 0x15a   : > { %v781_v55 = vmul.f32 0.25, %v718_v44 }
 0x15b   : > { %v5216_v47 = vsel %vm315_vm2, %v782_v43, -1e+30 }
 0x15c   : > { %873 = vmax.xlane.f32.xlu0 %v5216_v47  ;;  %v3761_v50 = vpop.f32.mrb[26].mxu0  ;;  %v5232_v1 = vsel %vm315_vm2, %v781_v55, -1e+30 }
 0x15d   : > { %v784_v51 = vmul.f32 0.25, %v3761_v50  ;;  %863 = vmax.xlane.f32.xlu1 %v5212_v46  ;;  %v728_v52 = vpop.f32.mrb[27].mxu0 }
 0x15e   : > { %v783_v62 = vmul.f32 0.25, %v728_v52 }
 0x15f   : > { %v5226_v56 = vsel %vm315_vm2, %v784_v51, -1e+30 }
 0x160   : > { %877 = vmax.xlane.f32.xlu0 %v5226_v56  ;;  %v3764_v58 = vpop.f32.mrb[28].mxu0  ;;  %v5242_v9 = vsel %vm315_vm2, %v783_v62, -1e+30 }
 0x161   : > { %v786_v60 = vmul.f32 0.25, %v3764_v58  ;;  %867 = vmax.xlane.f32.xlu1 %v5222_v0  ;;  %v738_v61 = vpop.f32.mrb[29].mxu0 }
 0x162   : > { %v785_v8 = vmul.f32 0.25, %v738_v61 }
 0x163   : > { %v5236_v2 = vsel %vm315_vm2, %v786_v60, -1e+30 }
 0x164   : > { %881 = vmax.xlane.f32.xlu0 %v5236_v2  ;;  %v3767_v3 = vpop.f32.mrb[30].mxu0  ;;  %v5252_v13 = vsel %vm315_vm2, %v785_v8, -1e+30 }
 0x165   : > { %v788_v4 = vmul.f32 0.25, %v3767_v3  ;;  %871 = vmax.xlane.f32.xlu1 %v5232_v1  ;;  %v748_v7 = vpop.f32.mrb[31].mxu0 }
 0x166   : > { %v787_v15 = vmul.f32 0.25, %v748_v7 }
 0x167   : > { %v5246_v10 = vsel %vm315_vm2, %v788_v4, -1e+30 }
 0x168   : > { %885 = vmax.xlane.f32.xlu0 %v5246_v10  ;;  %v5257_v16 = vsel %vm315_vm2, %v787_v15, -1e+30 }
 0x169   : > { %875 = vmax.xlane.f32.xlu1 %v5242_v9 }
 0x16d   : > { %879 = vmax.xlane.f32.xlu1 %v5252_v13 }
 0x171   : > { %883 = vmax.xlane.f32.xlu1 %v5257_v16 }
 0x17e   : > { %4427 = vrot.lane.b32.xlu0 %v4853_v14, %s4772_s29 }
 0x182   : > { %4432 = vrot.lane.b32.xlu1 %v4865_v20, %s4772_s29 }
 0x186   : > { %4437 = vrot.lane.b32.xlu1 %v4869_v21, %s4772_s29 }
 0x1a0   : > { %v5266_v17 = vpop.f32.mrb[32].mxu0 }
 0x1a1   : > { %v5268_v22 = vpop.f32.mrb[33].mxu0 }
 0x1a2   : > { %6283 = vst [vmem:[#allocation2_spill] sm:$0xff] %v5268_v22 }
 0x1a4   : > { %v5270_v24 = vpop.f32.mrb[34].mxu0 }
 0x1a5   : > { %v5272_v25 = vpop.f32.mrb[35].mxu0 }
 0x1a6   : > { %6284 = vst [vmem:[#allocation3_spill] sm:$0xff] %v5272_v25 }
 0x1a8   : > { %v5274_v26 = vpop.f32.mrb[36].mxu0 }
 0x1a9   : > { %v5276_v33 = vpop.f32.mrb[37].mxu0 }
 0x1aa   : > { %6285 = vst [vmem:[#allocation4_spill] sm:$0xff] %v5276_v33 }
 0x1ac   : > { %v5278_v34 = vpop.f32.mrb[38].mxu0 }
 0x1ad   : > { %v5280_v14 = vpop.f32.mrb[39].mxu0 }
 0x1ae   : > { %6286 = vst [vmem:[#allocation5_spill] sm:$0xff] %v5280_v14 }
 0x1b0   : > { %v5282_v20 = vpop.f32.mrb[40].mxu0 }
 0x1b1   : > { %v5284_v35 = vpop.f32.mrb[41].mxu0 }
 0x1b2   : > { %6287 = vst [vmem:[#allocation6_spill] sm:$0xff] %v5284_v35 }
 0x1b4   : > { %v5286_v21 = vpop.f32.mrb[42].mxu0 }
 0x1b5   : > { %6288 = vst [vmem:[#allocation7_spill] sm:$0xff] %v5286_v21  ;;  %v5288_v37 = vpop.f32.mrb[43].mxu0 }
 0x1b6   : > { %6289 = vst [vmem:[#allocation8_spill] sm:$0xff] %v5288_v37 }
 0x1b8   : > { %v5290_v42 = vpop.f32.mrb[44].mxu0 }
 0x1b9   : > { %6290 = vst [vmem:[#allocation9_spill] sm:$0xff] %v5290_v42  ;;  %v826_v43 = vpop.xlane.xlu0 %825  ;;  %v5292_v44 = vpop.f32.mrb[45].mxu0 }
 0x1ba   : > { %6291 = vst [vmem:[#allocation10_spill] sm:$0xff] %v5292_v44  ;;  %v888_v45 = vsub.f32 %v5102_v30, %v826_v43  ;;  %v824_v50 = vpop.xlane.xlu1 %823 }
 0x1bb   : > { %v887_v51 = vsub.f32 %v5107_v32, %v824_v50 }
 0x1bc   : > { %v921_v52 = vmul.f32 1.442695, %v888_v45  ;;  %v5296_v55 = vpop.f32.mrb[46].mxu0 }
 0x1bd   : > { %6292 = vst [vmem:[#allocation11_spill] sm:$0xff] %v5296_v55  ;;  %v919_v58 = vmul.f32 1.442695, %v887_v51  ;;  %v5298_v60 = vpop.f32.mrb[47].mxu0 }
 0x1be   : > { %6293 = vst [vmem:[#allocation12_spill] sm:$0xff] %v5298_v60  ;;  %4491 = vpow2.f32 %v921_v52  ;;  %v830_v61 = vpop.xlane.xlu1 %829  ;;  %v828_v62 = vpop.xlane.xlu0 %827 }
 0x1bf   : > { %4493 = vpow2.f32 %v919_v58  ;;  %v890_v3 = vsub.f32 %v5112_v36, %v830_v61  ;;  %v889_v4 = vsub.f32 %v5116_v38, %v828_v62 }
 0x1c0   : > { %v5302_v7 = vpop.f32.mrb[48].mxu0 }
 0x1c1   : > { %6294 = vst [vmem:[#allocation13_spill] sm:$0xff] %v5302_v7  ;;  %v925_v30 = vmul.f32 1.442695, %v890_v3  ;;  %v5304_v8 = vpop.f32.mrb[49].mxu0  ;;  %v923_v15 = vmul.f32 1.442695, %v889_v4 }
 0x1c2   : > { %6295 = vst [vmem:[#allocation14_spill] sm:$0xff] %v5304_v8  ;;  %v834_v32 = vpop.xlane.xlu0 %833 }
 0x1c3   : > { %4495 = vpow2.f32 %v925_v30  ;;  %v892_v43 = vsub.f32 %v5122_v41, %v834_v32 }
 0x1c4   : > { %v5307_v45 = vpop.f32.mrb[50].mxu0  ;;  %4497 = vpow2.f32 %v923_v15 }
 0x1c5   : > { %6296 = vst [vmem:[#allocation15_spill] sm:$0xff] %v5307_v45  ;;  %v5309_v50 = vpop.f32.mrb[51].mxu0  ;;  %v929_v51 = vmul.f32 1.442695, %v892_v43 }
 0x1c6   : > { %6297 = vst [vmem:[#allocation16_spill] sm:$0xff] %v5309_v50  ;;  %v832_v52 = vpop.xlane.xlu0 %831  ;;  %v836_v58 = vpop.xlane.xlu1 %835 }
 0x1c7   : > { %v891_v36 = vsub.f32 %v5127_v48, %v832_v52  ;;  %4499 = vpow2.f32 %v929_v51  ;;  %v893_v4 = vsub.f32 %v5131_v49, %v836_v58 }
 0x1c8   : > { %v5312_v38 = vpop.eup %4491  ;;  %v5314_v61 = vpop.f32.mrb[52].mxu0 }
 0x1c9   : > { %6298 = vst [vmem:[#allocation17_spill] sm:$0xff] %v5312_v38  ;;  %6299 = vst [vmem:[#allocation18_spill] sm:$0xff] %v5314_v61  ;;  %v5316_v62 = vpop.eup %4493  ;;  %v927_v3 = vmul.f32 1.442695, %v891_v36  ;;  %985 = vadd.xlane.f32.xlu0 %v5312_v38  ;;  %v5319_v41 = vpop.f32.mrb[53].mxu0 }
 0x1ca   : > { %6300 = vst [vmem:[#allocation19_spill] sm:$0xff] %v5316_v62  ;;  %6301 = vst [vmem:[#allocation20_spill] sm:$0xff] %v5319_v41  ;;  %v838_v30 = vpop.xlane.xlu0 %837  ;;  %v5322_v32 = vpop.xlane.xlu1 %839  ;;  %983 = vadd.xlane.f32.xlu1 %v5316_v62  ;;  %v931_v38 = vmul.f32 1.442695, %v893_v4 }
 0x1cb   : > { %4501 = vpow2.f32 %v927_v3  ;;  %v894_v48 = vsub.f32 %v5137_v53, %v838_v30 }
 0x1cc   : > { %v5326_v15 = vpop.f32.mrb[54].mxu0 }
 0x1cd   : > { %6302 = vst [vmem:[#allocation21_spill] sm:$0xff] %v5326_v15  ;;  %v5328_v43 = vpop.eup %4495  ;;  %v933_v52 = vmul.f32 1.442695, %v894_v48  ;;  %v5330_v36 = vpop.f32.mrb[55].mxu0 }
 0x1ce   : > { %6303 = vst [vmem:[#allocation22_spill] sm:$0xff] %v5328_v43  ;;  %6304 = vst [vmem:[#allocation23_spill] sm:$0xff] %v5330_v36  ;;  %v842_v41 = vpop.xlane.xlu0 %841  ;;  %v846_v51 = vpop.xlane.xlu1 %845  ;;  %989 = vadd.xlane.f32.xlu0 %v5328_v43 }
 0x1cf   : > { %4503 = vpow2.f32 %v933_v52  ;;  %v896_v49 = vsub.f32 %v5147_v57, %v842_v41  ;;  %v898_v58 = vsub.f32 %v5151_v59, %v846_v51  ;;  %v5337_v53 = vpop.eup %4497 }
 0x1d0   : > { %v5335_v3 = vpop.f32.mrb[56].mxu0  ;;  %6306 = vst [vmem:[#allocation25_spill] sm:$0xff] %v5337_v53  ;;  %4505 = vpow2.f32 %v931_v38 }
 0x1d1   : > { %6305 = vst [vmem:[#allocation24_spill] sm:$0xff] %v5335_v3  ;;  %v937_v30 = vmul.f32 1.442695, %v896_v49  ;;  %v5339_v50 = vpop.f32.mrb[57].mxu0  ;;  %v941_v4 = vmul.f32 1.442695, %v898_v58  ;;  %v5342_v36 = vpop.eup %4499 }
 0x1d2   : > { %6307 = vst [vmem:[#allocation26_spill] sm:$0xff] %v5339_v50  ;;  %v844_v48 = vpop.xlane.xlu1 %843  ;;  %987 = vadd.xlane.f32.xlu0 %v5337_v53  ;;  %6308 = vst [vmem:[#allocation27_spill] sm:$0xff] %v5342_v36 }
 0x1d3   : > { %4507 = vpow2.f32 %v937_v30 }
 0x1d4   : > { %v5344_v52 = vpop.f32.mrb[58].mxu0  ;;  %4509 = vpow2.f32 %v941_v4 }
 0x1d5   : > { %6309 = vst [vmem:[#allocation28_spill] sm:$0xff] %v5344_v52  ;;  %v5346_v57 = vpop.eup %4501  ;;  %v5348_v59 = vpop.xlane.xlu0 %853 }
 0x1d6   : > { %6310 = vst [vmem:[#allocation29_spill] sm:$0xff] %v5346_v57  ;;  %v5350_v41 = vpop.f32.mrb[59].mxu0  ;;  %v850_v51 = vpop.xlane.xlu1 %849  ;;  %993 = vadd.xlane.f32.xlu0 %v5342_v36  ;;  %991 = vadd.xlane.f32.xlu1 %v5346_v57 }
 0x1d7   : > { %6311 = vst [vmem:[#allocation30_spill] sm:$0xff] %v5350_v41  ;;  %v900_v7 = vsub.f32 %v5162_v5, %v850_v51 }
 0x1d8   : > { %v5354_v38 = vpop.f32.mrb[60].mxu0 }
 0x1d9   : > { %6312 = vst [vmem:[#allocation31_spill] sm:$0xff] %v5354_v38  ;;  %v5356_v49 = vpop.eup %4503  ;;  %v5358_v58 = vpop.xlane.xlu0 %857 }
 0x1da   : > { %6313 = vst [vmem:[#allocation32_spill] sm:$0xff] %v5356_v49  ;;  %v5360_v30 = vpop.f32.mrb[61].mxu0  ;;  %v848_v43 = vpop.xlane.xlu1 %847  ;;  %997 = vadd.xlane.f32.xlu0 %v5356_v49 }
 0x1db   : > { %6314 = vst [vmem:[#allocation33_spill] sm:$0xff] %v5360_v30  ;;  %v5363_v50 = vpop.eup %4505 }
 0x1dc   : > { %6315 = vst [vmem:[#allocation34_spill] sm:$0xff] %v5363_v50  ;;  %v5365_v41 = vpop.f32.mrb[62].mxu0 }
 0x1dd   : > { %6316 = vst [vmem:[#allocation35_spill] sm:$0xff] %v5365_v41  ;;  %v5367_v53 = vpop.eup %4507  ;;  %v5369_v36 = vpop.xlane.xlu0 %861 }
 0x1de   : > { %6317 = vst [vmem:[#allocation36_spill] sm:$0xff] %v5367_v53  ;;  %v5371_v4 = vpop.f32.mrb[63].mxu0  ;;  %v852_v57 = vpop.xlane.xlu1 %851  ;;  %995 = vadd.xlane.f32.xlu0 %v5363_v50  ;;  %1001 = vadd.xlane.f32.xlu1 %v5367_v53 }
 0x1df   : > { %6318 = vst [vmem:[#allocation37_spill] sm:$0xff] %v5371_v4  ;;  %v5375_v8 = vpop.eup %4509 }
 0x1e0   : > { %6319 = vst [vmem:[#allocation38_spill] sm:$0xff] %v5375_v8 }
 0x1e1   : > { %v5377_v30 = vpop.xlane.xlu0 %865 }
 0x1e2   : > { %v5379_v49 = vpop.xlane.xlu1 %855  ;;  %1005 = vadd.xlane.f32.xlu1 %v5375_v8 }
 0x1e5   : > { %v870_v60 = vpop.xlane.xlu0 %869 }
 0x1e6   : > { %v5382_v41 = vpop.xlane.xlu1 %859 }
 0x1e9   : > { %v874_v44 = vpop.xlane.xlu0 %873 }
 0x1ea   : > { %v5384_v62 = vpop.xlane.xlu1 %863 }
 0x1ed   : > { %v878_v4 = vpop.xlane.xlu0 %877 }
 0x1ee   : > { %v5386_v38 = vpop.xlane.xlu1 %867 }
 0x1f1   : > { %v5388_v50 = vpop.xlane.xlu0 %881 }
 0x1f2   : > { %v5390_v53 = vpop.xlane.xlu1 %871 }
 0x1f3   : > { %4447 = vrot.lane.b32.xlu1 %v4883_v28, %s4772_s29  ;;  %v895_v28 = vsub.f32 %v5141_v54, %v5322_v32  ;;  %v910_v54 = vsub.f32 %v5206_v40, %v870_v60  ;;  %v914_v40 = vsub.f32 %v5226_v56, %v878_v4  ;;  %v904_v56 = vsub.f32 %v5176_v12, %v5358_v58 }
 0x1f4   : > { %4442 = vrot.lane.b32.xlu0 %v4877_v27, %s4772_s29  ;;  %v897_v27 = vsub.f32 %v5157_v63, %v844_v48  ;;  %v905_v12 = vsub.f32 %v5202_v39, %v5382_v41  ;;  %v907_v41 = vsub.f32 %v5212_v46, %v5384_v62  ;;  %v909_v62 = vsub.f32 %v5222_v0, %v5386_v38 }
 0x1f5   : > { %v5396_v8 = vpop.xlane.xlu0 %885  ;;  %v935_v22 = vmul.f32 1.442695, %v895_v28  ;;  %v965_v5 = vmul.f32 1.442695, %v910_v54  ;;  %v2161_v0 = vmul.f32 0.25, %v5274_v26 }
 0x1f6   : > { %v5398_v37 = vpop.xlane.xlu1 %875  ;;  %v939_v21 = vmul.f32 1.442695, %v897_v27 }
 0x1f7   : > { %4511 = vpow2.f32 %v935_v22  ;;  %v913_v54 = vsub.f32 %v5242_v9, %v5398_v37  ;;  %v5500_v26 = vsel %vm315_vm2, %v2161_v0, -1e+30  ;;  %v2165_v9 = vmul.f32 0.25, %v5282_v20 }
 0x1f8   : > { %4513 = vpow2.f32 %v939_v21 }
 0x1f9   : > { %v4428_v52 = vpop.permute.xlu0 %4427  ;;  %v5522_v20 = vsel %vm315_vm2, %v2165_v9, -1e+30  ;;  %v6333_v9 = vld [vmem:[#allocation24_spill] sm:$0xff] }
 0x1fa   : > { %v5400_v35 = vpop.xlane.xlu1 %879  ;;  %v4430_v3 = vunpack.i.h.bf16 %v4428_v52  ;;  %v4429_v14 = vunpack.i.l.bf16 %v4428_v52 }
 0x1fc   : > { %v4172_v15 = vpack.c.bf16 %v4430_v3, %v4429_v14  ;;  %v899_v14 = vsub.f32 %v5172_v11, %v848_v43  ;;  %v902_v11 = vsub.f32 %v5166_v6, %v5348_v59  ;;  %v916_v6 = vsub.f32 %v5236_v2, %v5388_v50 }
 0x1fd   : > { %v953_v50 = vmul.f32 1.442695, %v904_v56  ;;  %v6323_v56 = vld [vmem:[#allocation13_spill] sm:$0xff] }
 0x1fe   : > { %v5402_v33 = vpop.xlane.xlu1 %883  ;;  %4173 = vmatprep.subr.bf16.mxu1 %v4172_v15  ;;  %v943_v63 = vmul.f32 1.442695, %v899_v14  ;;  %v949_v21 = vmul.f32 1.442695, %v902_v11  ;;  %v2157_v14 = vmul.f32 0.25, %v5266_v17 }
 0x1ff   : > { %4175 = vmatpush3.bf16.msra.mxu1 %v4172_v15  ;;  %v945_v15 = vmul.f32 1.442695, %v900_v7  ;;  %v963_v17 = vmul.f32 1.442695, %v909_v62  ;;  %v6329_v62 = vld [vmem:[#allocation4_spill] sm:$0xff] }
 0x201   : > { %4515 = vpow2.f32 %v945_v15 }
 0x202   : > { %v4433_v61 = vpop.permute.xlu1 %4432  ;;  %4517 = vpow2.f32 %v943_v63  ;;  %v915_v63 = vsub.f32 %v5252_v13, %v5400_v35  ;;  %v6320_v13 = vld [vmem:[#allocation7_spill] sm:$0xff] }
 0x203   : > { %v4435_v25 = vunpack.i.h.bf16 %v4433_v61  ;;  %v4434_v45 = vunpack.i.l.bf16 %v4433_v61  ;;  %v901_v61 = vsub.f32 %v5182_v18, %v852_v57  ;;  %4519 = vpow2.f32 %v965_v5 }
 0x204   : > { %v903_v18 = vsub.f32 %v5192_v29, %v5379_v49  ;;  %v977_v29 = vmul.f32 1.442695, %v916_v6  ;;  %v975_v37 = vmul.f32 1.442695, %v915_v63  ;;  %v917_v5 = vsub.f32 %v5257_v16, %v5402_v33 }
 0x205   : > { %v4176_v55 = vpack.c.bf16 %v4435_v25, %v4434_v45  ;;  %v912_v25 = vsub.f32 %v5216_v47, %v874_v44  ;;  %v947_v22 = vmul.f32 1.442695, %v901_v61  ;;  %v973_v47 = vmul.f32 1.442695, %v914_v40 }
 0x206   : > { %v4438_v42 = vpop.permute.xlu1 %4437  ;;  %v951_v7 = vmul.f32 1.442695, %v903_v18  ;;  %v918_v45 = vsub.f32 %v5246_v10, %v5396_v8  ;;  %v906_v10 = vsub.f32 %v5186_v19, %v5369_v36  ;;  %v955_v8 = vmul.f32 1.442695, %v905_v12 }
 0x207   : > { %v4440_v3 = vunpack.i.h.bf16 %v4438_v42  ;;  %v4439_v52 = vunpack.i.l.bf16 %v4438_v42  ;;  %4177 = vmatprep.subr.bf16.mxu1 %v4176_v55  ;;  %v969_v42 = vmul.f32 1.442695, %v912_v25  ;;  %4521 = vpow2.f32 %v947_v22 }
 0x208   : > { %4179 = vmatpush3.bf16.msra.mxu1 %v4176_v55  ;;  %v5415_v55 = vpop.eup %4511  ;;  %v981_v48 = vmul.f32 1.442695, %v918_v45  ;;  %v957_v39 = vmul.f32 1.442695, %v906_v10  ;;  %v908_v19 = vsub.f32 %v5196_v31, %v5377_v30  ;;  %v959_v36 = vmul.f32 1.442695, %v907_v41 }
 0x209   : > { %v4180_v32 = vpack.c.bf16 %v4440_v3, %v4439_v52  ;;  %4523 = vpow2.f32 %v969_v42  ;;  %v5422_v44 = vpop.eup %4513  ;;  %v2159_v31 = vmul.f32 0.25, %v5270_v24  ;;  %v5478_v30 = vsel %vm315_vm2, %v2157_v14, -1e+30  ;;  %v6321_v42 = vld [vmem:[#allocation9_spill] sm:$0xff] }
 0x20a   : > { %4525 = vpow2.f32 %v949_v21  ;;  %v961_v46 = vmul.f32 1.442695, %v908_v19  ;;  %v911_v52 = vsub.f32 %v5232_v1, %v5390_v53  ;;  %v2163_v1 = vmul.f32 0.25, %v5278_v34  ;;  %v6322_v21 = vld [vmem:[#allocation11_spill] sm:$0xff]  ;;  %v6327_v19 = vld [vmem:[#allocation18_spill] sm:$0xff] }
 0x20b   : > { %4181 = vmatprep.subr.bf16.mxu1 %v4180_v32  ;;  %v5424_v60 = vpop.eup %4515  ;;  %4527 = vpow2.f32 %v973_v47  ;;  %v5489_v24 = vsel %vm315_vm2, %v2159_v31, -1e+30  ;;  %v971_v53 = vmul.f32 1.442695, %v913_v54  ;;  %v2167_v35 = vmul.f32 0.25, %v6320_v13 }
 0x20c   : > { %4183 = vmatpush3.bf16.msra.mxu1 %v4180_v32  ;;  %v5432_v43 = vpop.eup %4517  ;;  %4529 = vpow2.f32 %v951_v7  ;;  %v967_v38 = vmul.f32 1.442695, %v911_v52  ;;  %v5511_v34 = vsel %vm315_vm2, %v2163_v1, -1e+30  ;;  %v979_v11 = vmul.f32 1.442695, %v917_v5 }
 0x20d   : > { %v5434_v2 = vpop.eup %4519  ;;  %4531 = vpow2.f32 %v977_v29  ;;  %v2169_v40 = vmul.f32 0.25, %v6321_v42  ;;  %v5531_v16 = vsel %vm315_vm2, %v2167_v35, -1e+30  ;;  %v2171_v18 = vmul.f32 0.25, %v6322_v21 }
 0x20e   : > { %4533 = vpow2.f32 %v953_v50  ;;  %v2173_v7 = vmul.f32 0.25, %v6323_v56  ;;  %v6324_v50 = vld [vmem:[#allocation2_spill] sm:$0xff]  ;;  %v2160_v31 = vmul.f32 0.25, %v6329_v62  ;;  %v6341_v62 = vld [vmem:[#allocation19_spill] sm:$0xff] }
 0x20f   : > { %4535 = vpow2.f32 %v981_v48  ;;  %v5540_v47 = vsel %vm315_vm2, %v2169_v40, -1e+30  ;;  %v5549_v29 = vsel %vm315_vm2, %v2171_v18, -1e+30  ;;  %v2156_v12 = vmul.f32 0.25, %v6324_v50  ;;  %v6325_v48 = vld [vmem:[#allocation15_spill] sm:$0xff] }
 0x210   : > { %4537 = vpow2.f32 %v955_v8  ;;  %v2175_v10 = vmul.f32 0.25, %v6325_v48  ;;  %v5559_v8 = vsel %vm315_vm2, %v2173_v7, -1e+30  ;;  %v5595_v13 = vsel %vm315_vm2, %v2160_v31, -1e+30  ;;  %v6336_v40 = vld [vmem:[#allocation28_spill] sm:$0xff] }
 0x211   : > { %v5440_v57 = vpop.eup %4521  ;;  %4539 = vpow2.f32 %v957_v39  ;;  %v6326_v39 = vld [vmem:[#allocation3_spill] sm:$0xff]  ;;  %v2183_v21 = vmul.f32 0.25, %v6336_v40 }
 0x212   : > { %4541 = vpow2.f32 %v959_v36  ;;  %v2158_v41 = vmul.f32 0.25, %v6326_v39  ;;  %v2177_v36 = vmul.f32 0.25, %v6327_v19  ;;  %v5567_v14 = vsel %vm315_vm2, %v2175_v10, -1e+30  ;;  %v6339_v10 = vld [vmem:[#allocation31_spill] sm:$0xff] }
 0x213   : > { %999 = vadd.xlane.f32.xlu0 %v5415_v55  ;;  %v5442_v59 = vpop.eup %4523  ;;  %4543 = vpow2.f32 %v961_v46  ;;  %6328 = vst [vmem:[#allocation7_spill] sm:$0xff] %v5567_v14  ;;  %v5571_v46 = vsel %vm315_vm2, %v2156_v12, -1e+30  ;;  %v6338_v12 = vld [vmem:[#allocation8_spill] sm:$0xff]  ;;  %v2185_v39 = vmul.f32 0.25, %v6339_v10  ;;  %v6347_v10 = vld [vmem:[#allocation14_spill] sm:$0xff] }
 0x214   : > { %v5448_v51 = vpop.eup %4525  ;;  %4545 = vpow2.f32 %v963_v17  ;;  %v6330_v17 = vld [vmem:[#allocation21_spill] sm:$0xff]  ;;  %v5583_v54 = vsel %vm315_vm2, %v2158_v41, -1e+30  ;;  %v2166_v48 = vmul.f32 0.25, %v6338_v12  ;;  %v5615_v41 = vsel %vm315_vm2, %v2183_v21, -1e+30 }
 0x215   : > { %v5450_v49 = vpop.eup %4527  ;;  %4547 = vpow2.f32 %v967_v38  ;;  %v2179_v52 = vmul.f32 0.25, %v6330_v17  ;;  %v5579_v38 = vsel %vm315_vm2, %v2177_v36, -1e+30  ;;  %6340 = vst [vmem:[#allocation2_spill] sm:$0xff] %v5615_v41  ;;  %v6342_v17 = vld [vmem:[#allocation10_spill] sm:$0xff] }
 0x216   : > { %v5456_v58 = vpop.eup %4529  ;;  %4549 = vpow2.f32 %v971_v53  ;;  %6331 = vst [vmem:[#allocation9_spill] sm:$0xff] %v5579_v38  ;;  %v6332_v53 = vld [vmem:[#allocation5_spill] sm:$0xff] }
 0x217   : > { %1003 = vadd.xlane.f32.xlu0 %v5422_v44  ;;  %1009 = vadd.xlane.f32.xlu1 %v5424_v60  ;;  %v5458_v4 = vpop.eup %4531  ;;  %4551 = vpow2.f32 %v975_v37  ;;  %v2162_v63 = vmul.f32 0.25, %v6332_v53  ;;  %v2181_v37 = vmul.f32 0.25, %v6333_v9  ;;  %v5591_v5 = vsel %vm315_vm2, %v2179_v52, -1e+30 }
 0x218   : > { %v5464_v28 = vpop.eup %4533  ;;  %4553 = vpow2.f32 %v979_v11  ;;  %6334 = vst [vmem:[#allocation11_spill] sm:$0xff] %v5591_v5  ;;  %v6335_v11 = vld [vmem:[#allocation6_spill] sm:$0xff]  ;;  %v2168_v52 = vmul.f32 0.25, %v6342_v17  ;;  %v5632_v9 = vsel %vm315_vm2, %v2166_v48, -1e+30 }
 0x219   : > { %v5466_v27 = vpop.eup %4535  ;;  %v2164_v42 = vmul.f32 0.25, %v6335_v11  ;;  %v5603_v18 = vsel %vm315_vm2, %v2181_v37, -1e+30  ;;  %v5607_v56 = vsel %vm315_vm2, %v2162_v63, -1e+30 }
 0x21a   : > { %v5473_v3 = vpop.eup %4537  ;;  %6337 = vst [vmem:[#allocation13_spill] sm:$0xff] %v5603_v18  ;;  %v5628_v63 = vsel %vm315_vm2, %v2185_v39, -1e+30  ;;  %v2172_v39 = vmul.f32 0.25, %v6347_v10 }
 0x21b   : > { %1007 = vadd.xlane.f32.xlu0 %v5432_v43  ;;  %1029 = vadd.xlane.f32.xlu1 %v5434_v2  ;;  %v5484_v15 = vpop.eup %4539  ;;  %v5619_v19 = vsel %vm315_vm2, %v2164_v42, -1e+30  ;;  %6344 = vst [vmem:[#allocation15_spill] sm:$0xff] %v5628_v63  ;;  %v6345_v42 = vld [vmem:[#allocation12_spill] sm:$0xff] }
 0x21c   : > { %v5495_v32 = vpop.eup %4541  ;;  %v2170_v40 = vmul.f32 0.25, %v6345_v42 }
 0x21d   : > { %v5506_v61 = vpop.eup %4543 }
 0x21e   : > { %v5517_v25 = vpop.eup %4545 }
 0x21f   : > { %1011 = vadd.xlane.f32.xlu0 %v5440_v57  ;;  %1033 = vadd.xlane.f32.xlu1 %v5442_v59  ;;  %v5526_v22 = vpop.eup %4547 }
 0x220   : > { %v5535_v33 = vpop.eup %4549 }
 0x221   : > { %v5544_v6 = vpop.eup %4551 }
 0x222   : > { %v5553_v45 = vpop.eup %4553 }
 0x223   : > { %1013 = vadd.xlane.f32.xlu0 %v5448_v51  ;;  %1037 = vadd.xlane.f32.xlu1 %v5450_v49 }
 0x227   : > { %1015 = vadd.xlane.f32.xlu0 %v5456_v58  ;;  %1041 = vadd.xlane.f32.xlu1 %v5458_v4 }
 0x22b   : > { %1017 = vadd.xlane.f32.xlu0 %v5464_v28  ;;  %1045 = vadd.xlane.f32.xlu1 %v5466_v27 }
 0x22f   : > { %1019 = vadd.xlane.f32.xlu0 %v5473_v3  ;;  %2222 = vmax.xlane.f32.xlu1 %v5478_v30 }
 0x233   : > { %1021 = vadd.xlane.f32.xlu0 %v5484_v15  ;;  %2226 = vmax.xlane.f32.xlu1 %v5489_v24 }
 0x237   : > { %1023 = vadd.xlane.f32.xlu0 %v5495_v32  ;;  %2230 = vmax.xlane.f32.xlu1 %v5500_v26 }
 0x23b   : > { %1025 = vadd.xlane.f32.xlu0 %v5506_v61  ;;  %2234 = vmax.xlane.f32.xlu1 %v5511_v34 }
 0x23f   : > { %1027 = vadd.xlane.f32.xlu0 %v5517_v25  ;;  %2238 = vmax.xlane.f32.xlu1 %v5522_v20 }
 0x243   : > { %1031 = vadd.xlane.f32.xlu0 %v5526_v22  ;;  %2242 = vmax.xlane.f32.xlu1 %v5531_v16 }
 0x247   : > { %1035 = vadd.xlane.f32.xlu0 %v5535_v33  ;;  %2246 = vmax.xlane.f32.xlu1 %v5540_v47 }
 0x24b   : > { %1039 = vadd.xlane.f32.xlu0 %v5544_v6  ;;  %2250 = vmax.xlane.f32.xlu1 %v5549_v29 }
 0x24f   : > { %2254 = vmax.xlane.f32.xlu1 %v5559_v8  ;;  %1043 = vadd.xlane.f32.xlu0 %v5553_v45 }
 0x253   : > { %2258 = vmax.xlane.f32.xlu1 %v5567_v14  ;;  %2220 = vmax.xlane.f32.xlu0 %v5571_v46 }
 0x256   : > { %v986_v0 = vpop.xlane.xlu0 %985 }
 0x257   : > { %2262 = vmax.xlane.f32.xlu1 %v5579_v38  ;;  %2224 = vmax.xlane.f32.xlu0 %v5583_v54  ;;  %v984_v1 = vpop.xlane.xlu1 %983 }
 0x258   : > { %4555 = vrcp.f32 %v984_v1  ;;  %v6343_v1 = vld [vmem:[#allocation35_spill] sm:$0xff] }
 0x259   : > { %v2187_v53 = vmul.f32 0.25, %v6343_v1  ;;  %4557 = vrcp.f32 %v986_v0  ;;  %v5660_v0 = vsel %vm315_vm2, %v2172_v39, -1e+30 }
 0x25b   : > { %v990_v35 = vpop.xlane.xlu0 %989  ;;  %2266 = vmax.xlane.f32.xlu1 %v5591_v5  ;;  %2228 = vmax.xlane.f32.xlu0 %v5595_v13  ;;  %v5639_v21 = vsel %vm315_vm2, %v2187_v53, -1e+30  ;;  %v6348_v53 = vld [vmem:[#allocation16_spill] sm:$0xff] }
 0x25c   : > { %6346 = vst [vmem:[#allocation3_spill] sm:$0xff] %v5639_v21  ;;  %v2174_v42 = vmul.f32 0.25, %v6348_v53 }
 0x25f   : > { %v988_v7 = vpop.xlane.xlu0 %987  ;;  %2270 = vmax.xlane.f32.xlu1 %v5603_v18  ;;  %2232 = vmax.xlane.f32.xlu0 %v5607_v56 }
 0x260   : > { %4559 = vrcp.f32 %v988_v7 }
 0x261   : > { %4561 = vrcp.f32 %v990_v35 }
 0x262   : > { %v4556_v50 = vpop.eup %4555 }
 0x263   : > { %v994_v36 = vpop.xlane.xlu0 %993  ;;  %2274 = vmax.xlane.f32.xlu1 %v5615_v41  ;;  %2236 = vmax.xlane.f32.xlu0 %v5619_v19  ;;  %v1048_v31 = vmul.f32 %v4556_v50, %v6341_v62  ;;  %v992_v37 = vpop.xlane.xlu1 %991  ;;  %v5643_v50 = vsel %vm315_vm2, %v2168_v52, -1e+30  ;;  %v5652_v62 = vsel %vm315_vm2, %v2170_v40, -1e+30 }
 0x264   : > { %4563 = vrcp.f32 %v992_v37  ;;  %v5666_v37 = vsel %vm315_vm2, %v2174_v42, -1e+30  ;;  %v4558_v39 = vpop.eup %4557 }
 0x265   : > { %3800 = vmatprep.mubr.f32.mxu1 %v1048_v31  ;;  %4565 = vrcp.f32 %v994_v36  ;;  %v6350_v36 = vld [vmem:[#allocation23_spill] sm:$0xff] }
 0x267   : > { %v998_v11 = vpop.xlane.xlu0 %997  ;;  %2278 = vmax.xlane.f32.xlu1 %v5628_v63  ;;  %2240 = vmax.xlane.f32.xlu0 %v5632_v9  ;;  %v4748_v63 = vld [vmem:[%s4817_s24 + $0x18] sm:$0xff] }
 0x26b   : > { %v996_v12 = vpop.xlane.xlu0 %995  ;;  %2282 = vmax.xlane.f32.xlu1 %v5639_v21  ;;  %2244 = vmax.xlane.f32.xlu0 %v5643_v50  ;;  %v5647_v48 = vpop.xlane.xlu1 %1001 }
 0x26c   : > { %4567 = vrcp.f32 %v996_v12 }
 0x26d   : > { %4569 = vrcp.f32 %v998_v11 }
 0x26e   : > { %4571 = vrcp.f32 %v5647_v48 }
 0x26f   : > { %v4443_v31 = vpop.permute.xlu0 %4442  ;;  %2248 = vmax.xlane.f32.xlu0 %v5652_v62  ;;  %v5655_v17 = vpop.xlane.xlu1 %1005 }
 0x270   : > { %v4445_v52 = vunpack.i.h.bf16 %v4443_v31  ;;  %v4444_v1 = vunpack.i.l.bf16 %v4443_v31  ;;  %v6349_v31 = vld [vmem:[#allocation20_spill] sm:$0xff] }
 0x271   : > { %v2176_v35 = vmul.f32 0.25, %v6349_v31 }
 0x272   : > { %v4184_v7 = vpack.c.bf16 %v4445_v52, %v4444_v1  ;;  %v4560_v52 = vpop.eup %4559  ;;  %v4747_v1 = vld [vmem:[%s4817_s24 + $0x10] sm:$0xff] }
 0x273   : > { %2252 = vmax.xlane.f32.xlu0 %v5660_v0  ;;  %v4448_v40 = vpop.permute.xlu1 %4447  ;;  %v4456_v41 = vpack.i.bf16 %v4748_v63, %v4747_v1  ;;  %v5674_v12 = vsel %vm315_vm2, %v2176_v35, -1e+30  ;;  %v4562_v42 = vpop.eup %4561  ;;  %v6353_v63 = vld [vmem:[#allocation26_spill] sm:$0xff] }
 0x274   : > { %v4450_v10 = vunpack.i.h.bf16 %v4448_v40  ;;  %v4449_v21 = vunpack.i.l.bf16 %v4448_v40  ;;  %4185 = vmatprep.subr.bf16.mxu1 %v4184_v7  ;;  %v4564_v18 = vpop.eup %4563  ;;  %v2180_v11 = vmul.f32 0.25, %v6353_v63  ;;  %v6354_v35 = vld [vmem:[#allocation22_spill] sm:$0xff] }
 0x275   : > { %4187 = vmatpush3.bf16.msra.mxu1 %v4184_v7  ;;  %v2178_v7 = vmul.f32 0.25, %v6350_v36  ;;  %v1054_v1 = vmul.f32 %v4562_v42, %v6354_v35  ;;  %v6355_v36 = vld [vmem:[#allocation29_spill] sm:$0xff]  ;;  %v6358_v42 = vld [vmem:[#allocation34_spill] sm:$0xff] }
 0x276   : > { %v4188_v53 = vpack.c.bf16 %v4450_v10, %v4449_v21  ;;  %v6351_v21 = vld [vmem:[#allocation17_spill] sm:$0xff] }
 0x277   : > { %2256 = vmax.xlane.f32.xlu0 %v5666_v37  ;;  %v1050_v40 = vmul.f32 %v4558_v39, %v6351_v21  ;;  %v6352_v10 = vld [vmem:[#allocation25_spill] sm:$0xff]  ;;  %v4566_v39 = vpop.eup %4565  ;;  %v1056_v21 = vmul.f32 %v4564_v18, %v6355_v36 }
 0x278   : > { %4189 = vmatprep.subr.bf16.mxu1 %v4188_v53  ;;  %v1052_v31 = vmul.f32 %v4560_v52, %v6352_v10  ;;  %v4568_v52 = vpop.eup %4567  ;;  %v6359_v18 = vld [vmem:[#allocation33_spill] sm:$0xff] }
 0x279   : > { %4191 = vmatpush3.bf16.msra.mxu1 %v4188_v53  ;;  %v5683_v53 = vsel %vm315_vm2, %v2178_v7, -1e+30  ;;  %v4570_v7 = vpop.eup %4569  ;;  %v1060_v35 = vmul.f32 %v4568_v52, %v6358_v42 }
 0x27b   : > { %2260 = vmax.xlane.f32.xlu0 %v5674_v12 }
 0x27c   : > { %3801 = vmatmul.mubr.f32.vlgmr.msra.gmra.mrb[0].mxu1 %v1050_v40  ;;  %4457 = vrot.lane.b32.xlu1 %v4456_v41, %s4773_s30  ;;  %v6356_v40 = vld [vmem:[#allocation30_spill] sm:$0xff]  ;;  %v5691_v41 = vsel %vm315_vm2, %v2180_v11, -1e+30 }
 0x27d   : > { %3803 = vmatprep.mubr.f32.mxu1 %v1052_v31  ;;  %v2182_v10 = vmul.f32 0.25, %v6356_v40  ;;  %v6357_v31 = vld [vmem:[#allocation27_spill] sm:$0xff] }
 0x27e   : > { %v1058_v63 = vmul.f32 %v4566_v39, %v6357_v31  ;;  %v6361_v39 = vld [vmem:[#allocation37_spill] sm:$0xff] }
 0x27f   : > { %2264 = vmax.xlane.f32.xlu0 %v5683_v53  ;;  %v5699_v36 = vsel %vm315_vm2, %v2182_v10, -1e+30  ;;  %v2186_v40 = vmul.f32 0.25, %v6361_v39 }
 0x280   : > { %3804 = vmatmul.mubr.f32.gmra.mrb[2].mxu1 %v1054_v1  ;;  %v2184_v1 = vmul.f32 0.25, %v6359_v18 }
 0x281   : > { %3806 = vmatprep.mubr.f32.mxu1 %v1056_v21  ;;  %v6360_v21 = vld [vmem:[#allocation32_spill] sm:$0xff]  ;;  %v5711_v31 = vsel %vm315_vm2, %v2186_v40, -1e+30 }
 0x282   : > { %v1062_v11 = vmul.f32 %v4570_v7, %v6360_v21  ;;  %v5706_v52 = vsel %vm315_vm2, %v2184_v1, -1e+30  ;;  %v4750_v7 = vld [vmem:[%s4817_s24 + $0x8] sm:$0xff]  ;;  %v4572_v21 = vpop.eup %4571 }
 0x283   : > { %2268 = vmax.xlane.f32.xlu0 %v5691_v41 }
 0x284   : > { %3807 = vmatmul.mubr.f32.gmra.mrb[4].mxu1 %v1058_v63  ;;  %v4749_v63 = vld [vmem:[%s4817_s24] sm:$0xff] }
 0x285   : > { %3809 = vmatprep.mubr.f32.mxu1 %v1060_v35  ;;  %v4451_v42 = vpack.i.bf16 %v4750_v7, %v4749_v63 }
 0x287   : > { %2272 = vmax.xlane.f32.xlu0 %v5699_v36 }
 0x288   : > { %3810 = vmatmul.mubr.f32.gmra.mrb[6].mxu1 %v1062_v11 }
 0x28b   : > { %2276 = vmax.xlane.f32.xlu0 %v5706_v52 }
 0x28f   : > { %2280 = vmax.xlane.f32.xlu0 %v5711_v31 }
 0x2a0   : > { %v1000_v10 = vpop.xlane.xlu0 %999 }
 0x2a1   : > { %4573 = vrcp.f32 %v1000_v10  ;;  %v6362_v10 = vld [vmem:[#allocation36_spill] sm:$0xff] }
 0x2a2   : > { %4575 = vrcp.f32 %v5655_v17  ;;  %v1066_v17 = vmul.f32 %v4572_v21, %v6362_v10 }
 0x2a4   : > { %v1004_v35 = vpop.xlane.xlu0 %1003  ;;  %v1010_v18 = vpop.xlane.xlu1 %1009 }
 0x2a5   : > { %4577 = vrcp.f32 %v1004_v35  ;;  %4452 = vrot.lane.b32.xlu0 %v4451_v42, %s4773_s30 }
 0x2a6   : > { %4579 = vrcp.f32 %v1010_v18 }
 0x2a8   : > { %v1008_v23 = vpop.xlane.xlu0 %1007  ;;  %v5719_v1 = vpop.xlane.xlu1 %1029 }
 0x2a9   : > { %4581 = vrcp.f32 %v1008_v23  ;;  %v6363_v23 = vld [vmem:[#allocation38_spill] sm:$0xff] }
 0x2ab   : > { %v4574_v11 = vpop.eup %4573 }
 0x2ac   : > { %v1012_v48 = vpop.xlane.xlu0 %1011  ;;  %v5721_v39 = vpop.xlane.xlu1 %1033  ;;  %v1064_v40 = vmul.f32 %v4574_v11, %v5415_v55 }
 0x2ad   : > { %4583 = vrcp.f32 %v1012_v48  ;;  %v4576_v63 = vpop.eup %4575 }
 0x2ae   : > { %3812 = vmatprep.mubr.f32.mxu1 %v1064_v40  ;;  %v1070_v5 = vmul.f32 %v4576_v63, %v6363_v23 }
 0x2af   : > { %v4578_v7 = vpop.eup %4577  ;;  %3813 = vmatmul.mubr.f32.gmra.mrb[8].mxu1 %v1066_v17 }
 0x2b0   : > { %v1014_v42 = vpop.xlane.xlu0 %1013  ;;  %v5725_v35 = vpop.xlane.xlu1 %1037  ;;  %v1068_v18 = vmul.f32 %v4578_v7, %v5422_v44 }
 0x2b1   : > { %4585 = vrcp.f32 %v1014_v42  ;;  %v4580_v38 = vpop.eup %4579 }
 0x2b2   : > { %3815 = vmatprep.mubr.f32.mxu1 %v1068_v18  ;;  %v1074_v48 = vmul.f32 %v4580_v38, %v5424_v60 }
 0x2b3   : > { %v4582_v14 = vpop.eup %4581  ;;  %3816 = vmatmul.mubr.f32.gmra.mrb[10].mxu1 %v1070_v5 }
 0x2b4   : > { %v1016_v55 = vpop.xlane.xlu0 %1015  ;;  %v5729_v11 = vpop.xlane.xlu1 %1041  ;;  %v1072_v21 = vmul.f32 %v4582_v14, %v5432_v43 }
 0x2b5   : > { %4587 = vrcp.f32 %v1016_v55 }
 0x2b6   : > { %3818 = vmatprep.mubr.f32.mxu1 %v1072_v21 }
 0x2b7   : > { %v4584_v40 = vpop.eup %4583  ;;  %3819 = vmatmul.mubr.f32.gmra.mrb[12].mxu1 %v1074_v48 }
 0x2b8   : > { %v1018_v10 = vpop.xlane.xlu0 %1017  ;;  %v5733_v44 = vpop.xlane.xlu1 %1045  ;;  %v1076_v17 = vmul.f32 %v4584_v40, %v5440_v57 }
 0x2b9   : > { %4589 = vrcp.f32 %v1018_v10  ;;  %v1384_v10 = vld [vmem:[%s6259_s2] sm:$0xff] }
 0x2ba   : > { %3821 = vmatprep.mubr.f32.mxu1 %v1076_v17 }
 0x2bb   : > { %v4586_v63 = vpop.eup %4585 }
 0x2bc   : > { %v1020_v5 = vpop.xlane.xlu0 %1019  ;;  %v2223_v7 = vpop.xlane.xlu1 %2222  ;;  %v1078_v42 = vmul.f32 %v4586_v63, %v5448_v51 }
 0x2bd   : > { %4591 = vrcp.f32 %v1020_v5  ;;  %v2285_v43 = vsub.f32 %v5478_v30, %v2223_v7 }
 0x2be   : > { %3822 = vmatmul.mubr.f32.gmra.mrb[14].mxu1 %v1078_v42 }
 0x2bf   : > { %v4588_v60 = vpop.eup %4587  ;;  %v2318_v14 = vmul.f32 1.442695, %v2285_v43 }
 0x2c0   : > { %v1022_v38 = vpop.xlane.xlu0 %1021  ;;  %v1080_v18 = vmul.f32 %v4588_v60, %v5456_v58  ;;  %v5739_v23 = vpop.xlane.xlu1 %2226 }
 0x2c1   : > { %4593 = vpow2.f32 %v2318_v14 }
 0x2c2   : > { %4595 = vrcp.f32 %v1022_v38  ;;  %3824 = vmatprep.mubr.f32.mxu1 %v1080_v18 }
 0x2c3   : > { %v4590_v57 = vpop.eup %4589 }
 0x2c4   : > { %v1024_v55 = vpop.xlane.xlu0 %1023  ;;  %v1082_v21 = vmul.f32 %v4590_v57, %v5464_v28  ;;  %v5743_v40 = vpop.xlane.xlu1 %2230  ;;  %v1385_v28 = vld [vmem:[%s6259_s2 + $0x8] sm:$0xff] }
 0x2c5   : > { %4597 = vrcp.f32 %v1024_v55  ;;  %v4192_v5 = vpack.c.bf16 %v1385_v28, %v1384_v10  ;;  %v4752_v10 = vld [vmem:[%s4817_s24 + $0x28] sm:$0xff] }
 0x2c6   : > { %3825 = vmatmul.mubr.f32.gmra.mrb[16].mxu1 %v1082_v21 }
 0x2c7   : > { %v4592_v51 = vpop.eup %4591  ;;  %4193 = vmatprep.subr.bf16.mxu1 %v4192_v5 }
 0x2c8   : > { %v1026_v48 = vpop.xlane.xlu0 %1025  ;;  %v1084_v30 = vmul.f32 %v4592_v51, %v5473_v3  ;;  %v5756_v42 = vpop.xlane.xlu1 %2234  ;;  %4195 = vmatpush3.bf16.msra.mxu1 %v4192_v5 }
 0x2c9   : > { %4599 = vrcp.f32 %v1026_v48 }
 0x2ca   : > { %3827 = vmatprep.mubr.f32.mxu1 %v1084_v30  ;;  %4601 = vrcp.f32 %v5719_v1 }
 0x2cb   : > { %v5745_v58 = vpop.eup %4593 }
 0x2cc   : > { %v4596_v17 = vpop.eup %4595  ;;  %v1028_v63 = vpop.xlane.xlu0 %1027  ;;  %2382 = vadd.xlane.f32.xlu0 %v5745_v58 }
 0x2cd   : > { %v1086_v3 = vmul.f32 %v4596_v17, %v5484_v15  ;;  %4603 = vrcp.f32 %v1028_v63  ;;  %v5762_v1 = vpop.xlane.xlu1 %2238 }
 0x2ce   : > { %4605 = vrcp.f32 %v5721_v39 }
 0x2cf   : > { %3828 = vmatmul.mubr.f32.gmra.mrb[18].mxu1 %v1086_v3  ;;  %v4598_v7 = vpop.eup %4597 }
 0x2d0   : > { %v1032_v43 = vpop.xlane.xlu0 %1031  ;;  %v1088_v60 = vmul.f32 %v4598_v7, %v5495_v32 }
 0x2d1   : > { %4607 = vrcp.f32 %v1032_v43 }
 0x2d2   : > { %3830 = vmatprep.mubr.f32.mxu1 %v1088_v60  ;;  %4609 = vrcp.f32 %v5725_v35  ;;  %v2287_v60 = vsub.f32 %v5489_v24, %v5739_v23 }
 0x2d3   : > { %v4600_v14 = vpop.eup %4599 }
 0x2d4   : > { %v1036_v38 = vpop.xlane.xlu0 %1035  ;;  %v1090_v15 = vmul.f32 %v4600_v14, %v5506_v61  ;;  %v4602_v18 = vpop.eup %4601 }
 0x2d5   : > { %4611 = vrcp.f32 %v1036_v38  ;;  %v1094_v39 = vmul.f32 %v4602_v18, %v5434_v2  ;;  %v5767_v61 = vpop.xlane.xlu1 %2242 }
 0x2d6   : > { %3831 = vmatmul.mubr.f32.gmra.mrb[20].mxu1 %v1090_v15  ;;  %4613 = vrcp.f32 %v5729_v11  ;;  %v4751_v11 = vld [vmem:[%s4817_s24 + $0x20] sm:$0xff] }
 0x2d7   : > { %v4604_v57 = vpop.eup %4603 }
 0x2d8   : > { %v1040_v55 = vpop.xlane.xlu0 %1039  ;;  %v1092_v32 = vmul.f32 %v4604_v57, %v5517_v25  ;;  %v4606_v21 = vpop.eup %4605  ;;  %v4461_v25 = vpack.i.bf16 %v4752_v10, %v4751_v11 }
 0x2d9   : > { %4615 = vrcp.f32 %v1040_v55  ;;  %v1098_v30 = vmul.f32 %v4606_v21, %v5442_v59  ;;  %v5776_v3 = vpop.xlane.xlu1 %2246  ;;  %v2322_v55 = vmul.f32 1.442695, %v2287_v60  ;;  %v4755_v60 = vld [vmem:[%s4817_s24 + $0x40] sm:$0xff] }
 0x2da   : > { %3833 = vmatprep.mubr.f32.mxu1 %v1092_v32  ;;  %4617 = vrcp.f32 %v5733_v44 }
 0x2db   : > { %v4608_v35 = vpop.eup %4607  ;;  %3834 = vmatmul.mubr.f32.gmra.mrb[22].mxu1 %v1094_v39 }
 0x2dc   : > { %v1044_v51 = vpop.xlane.xlu0 %1043  ;;  %v1096_v48 = vmul.f32 %v4608_v35, %v5526_v22  ;;  %v4610_v28 = vpop.eup %4609 }
 0x2dd   : > { %4619 = vrcp.f32 %v1044_v51  ;;  %v1102_v22 = vmul.f32 %v4610_v28, %v5450_v49  ;;  %v5785_v18 = vpop.xlane.xlu1 %2250 }
 0x2de   : > { %3836 = vmatprep.mubr.f32.mxu1 %v1096_v48 }
 0x2df   : > { %v4612_v2 = vpop.eup %4611  ;;  %3837 = vmatmul.mubr.f32.gmra.mrb[24].mxu1 %v1098_v30 }
 0x2e0   : > { %v2221_v17 = vpop.xlane.xlu0 %2220  ;;  %v1100_v5 = vmul.f32 %v4612_v2, %v5535_v33  ;;  %v4614_v44 = vpop.eup %4613  ;;  %v4753_v2 = vld [vmem:[%s4817_s24 + $0x30] sm:$0xff] }
 0x2e1   : > { %v2284_v63 = vsub.f32 %v5571_v46, %v2221_v17  ;;  %v1106_v14 = vmul.f32 %v4614_v44, %v5458_v4  ;;  %v4754_v17 = vld [vmem:[%s4817_s24 + $0x38] sm:$0xff] }
 0x2e2   : > { %4462 = vrot.lane.b32.xlu0 %v4461_v25, %s4773_s30  ;;  %3839 = vmatprep.mubr.f32.mxu1 %v1100_v5 }
 0x2e3   : > { %v2316_v59 = vmul.f32 1.442695, %v2284_v63  ;;  %v4616_v7 = vpop.eup %4615  ;;  %3840 = vmatmul.mubr.f32.gmra.mrb[26].mxu1 %v1102_v22  ;;  %v4466_v63 = vpack.i.bf16 %v4754_v17, %v4753_v2 }
 0x2e4   : > { %v2225_v43 = vpop.xlane.xlu0 %2224  ;;  %v1104_v33 = vmul.f32 %v4616_v7, %v5544_v6  ;;  %v4618_v38 = vpop.eup %4617 }
 0x2e5   : > { %4621 = vpow2.f32 %v2316_v59  ;;  %v2286_v46 = vsub.f32 %v5583_v54, %v2225_v43  ;;  %v1110_v24 = vmul.f32 %v4618_v38, %v5466_v27  ;;  %v5789_v6 = vpop.xlane.xlu1 %2254 }
 0x2e6   : > { %3842 = vmatprep.mubr.f32.mxu1 %v1104_v33 }
 0x2e7   : > { %v2320_v15 = vmul.f32 1.442695, %v2286_v46  ;;  %v4620_v49 = vpop.eup %4619  ;;  %3843 = vmatmul.mubr.f32.gmra.mrb[28].mxu1 %v1106_v14  ;;  %v4756_v46 = vld [vmem:[%s4817_s24 + $0x48] sm:$0xff] }
 0x2e8   : > { %v2229_v57 = vpop.xlane.xlu0 %2228  ;;  %v1108_v32 = vmul.f32 %v4620_v49, %v5553_v45  ;;  %v4471_v33 = vpack.i.bf16 %v4756_v46, %v4755_v60  ;;  %v2289_v49 = vsub.f32 %v5500_v26, %v5743_v40  ;;  %v2291_v60 = vsub.f32 %v5511_v34, %v5756_v42 }
 0x2e9   : > { %4623 = vpow2.f32 %v2320_v15  ;;  %v2288_v4 = vsub.f32 %v5595_v13, %v2229_v57  ;;  %v5797_v45 = vpop.xlane.xlu1 %2258 }
 0x2ea   : > { %3845 = vmatprep.mubr.f32.mxu1 %v1108_v32  ;;  %4625 = vpow2.f32 %v2322_v55  ;;  %v2326_v32 = vmul.f32 1.442695, %v2289_v49  ;;  %v2330_v40 = vmul.f32 1.442695, %v2291_v60  ;;  %v4758_v49 = vld [vmem:[%s4817_s24 + $0x58] sm:$0xff]  ;;  %v2293_v60 = vsub.f32 %v5522_v20, %v5762_v1 }
 0x2eb   : > { %3846 = vmatmul.mubr.f32.gmra.mrb[30].mxu1 %v1110_v24  ;;  %v2324_v21 = vmul.f32 1.442695, %v2288_v4  ;;  %v2297_v20 = vsub.f32 %v5540_v47, %v5776_v3  ;;  %v2299_v47 = vsub.f32 %v5549_v29, %v5785_v18 }
 0x2ec   : > { %v2233_v54 = vpop.xlane.xlu0 %2232 }
 0x2ed   : > { %4627 = vpow2.f32 %v2324_v21  ;;  %v5807_v48 = vpop.xlane.xlu1 %2262  ;;  %v2290_v24 = vsub.f32 %v5607_v56, %v2233_v54 }
 0x2ee   : > { %4629 = vpow2.f32 %v2326_v32  ;;  %v4759_v32 = vld [vmem:[%s4817_s24 + $0x60] sm:$0xff] }
 0x2ef   : > { %v5792_v23 = vpop.eup %4621  ;;  %v2328_v46 = vmul.f32 1.442695, %v2290_v24  ;;  %v4760_v24 = vld [vmem:[%s4817_s24 + $0x68] sm:$0xff] }
 0x2f0   : > { %2380 = vadd.xlane.f32.xlu1 %v5792_v23  ;;  %v2237_v39 = vpop.xlane.xlu0 %2236 }
 0x2f1   : > { %v5813_v10 = vpop.xlane.xlu1 %2266  ;;  %4631 = vpow2.f32 %v2328_v46 }
 0x2f2   : > { %4633 = vpow2.f32 %v2330_v40 }
 0x2f3   : > { %v5795_v35 = vpop.eup %4623 }
 0x2f4   : > { %2384 = vadd.xlane.f32.xlu1 %v5795_v35  ;;  %v5800_v27 = vpop.xlane.xlu0 %2240  ;;  %v5802_v51 = vpop.eup %4625 }
 0x2f5   : > { %v5822_v5 = vpop.xlane.xlu1 %2270 }
 0x2f7   : > { %v5811_v11 = vpop.eup %4627 }
 0x2f8   : > { %v5804_v13 = vpop.xlane.xlu0 %2244  ;;  %2386 = vadd.xlane.f32.xlu1 %v5802_v51  ;;  %6364 = vst [vmem:[#allocation18_spill] sm:$0xff] %v5811_v11  ;;  %v5852_v34 = vpop.eup %4629 }
 0x2f9   : > { %v5827_v44 = vpop.xlane.xlu1 %2274 }
 0x2fc   : > { %v5809_v30 = vpop.xlane.xlu0 %2248 }
 0x2fd   : > { %v5833_v43 = vpop.xlane.xlu1 %2278 }
 0x300   : > { %v5815_v25 = vpop.xlane.xlu0 %2252 }
 0x301   : > { %2388 = vadd.xlane.f32.xlu0 %v5811_v11  ;;  %v5840_v38 = vpop.xlane.xlu1 %2282 }
 0x304   : > { %v5818_v28 = vpop.xlane.xlu0 %2256 }
 0x305   : > { %v4458_v55 = vpop.permute.xlu1 %4457 }
 0x306   : > { %v4460_v4 = vunpack.i.h.bf16 %v4458_v55  ;;  %v4459_v21 = vunpack.i.l.bf16 %v4458_v55 }
 0x308   : > { %v5824_v22 = vpop.xlane.xlu0 %2260  ;;  %v4248_v26 = vpack.c.bf16 %v4460_v4, %v4459_v21  ;;  %v4481_v4 = vpack.i.bf16 %v4760_v24, %v4759_v32  ;;  %v2342_v24 = vmul.f32 1.442695, %v2297_v20 }
 0x309   : > { %4467 = vrot.lane.b32.xlu1 %v4466_v63, %s4773_s30 }
 0x30c   : > { %v5829_v59 = vpop.xlane.xlu0 %2264 }
 0x310   : > { %v5831_v7 = vpop.xlane.xlu0 %2268 }
 0x314   : > { %v5837_v14 = vpop.xlane.xlu0 %2272 }
 0x317   : > { %4472 = vrot.lane.b32.xlu0 %v4471_v33, %s4773_s30  ;;  %v2292_v33 = vsub.f32 %v5619_v19, %v2237_v39  ;;  %v5855_v19 = vpop.eup %4631  ;;  %v4757_v39 = vld [vmem:[%s4817_s24 + $0x50] sm:$0xff] }
 0x318   : > { %v5842_v15 = vpop.xlane.xlu0 %2276  ;;  %v5858_v42 = vpop.eup %4633  ;;  %v4476_v55 = vpack.i.bf16 %v4758_v49, %v4757_v39  ;;  %v2294_v39 = vsub.f32 %v5632_v9, %v5800_v27  ;;  %v2298_v9 = vsub.f32 %v5652_v62, %v5809_v30  ;;  %v2301_v62 = vsub.f32 %v5559_v8, %v5789_v6 }
 0x319   : > { %v2332_v56 = vmul.f32 1.442695, %v2292_v33  ;;  %v2295_v33 = vsub.f32 %v5531_v16, %v5767_v61  ;;  %v2304_v6 = vsub.f32 %v5674_v12, %v5824_v22  ;;  %v2308_v12 = vsub.f32 %v5691_v41, %v5831_v7 }
 0x31a   : > { %v2336_v32 = vmul.f32 1.442695, %v2294_v39  ;;  %v2344_v3 = vmul.f32 1.442695, %v2298_v9 }
 0x31b   : > { %4635 = vpow2.f32 %v2332_v56 }
 0x31c   : > { %v5846_v57 = vpop.xlane.xlu0 %2280 }
 0x31d   : > { %v2314_v9 = vsub.f32 %v5711_v31, %v5846_v57 }
 0x320   : > { %v4453_v2 = vpop.permute.xlu0 %4452 }
 0x321   : > { %v4455_v17 = vunpack.i.h.bf16 %v4453_v2  ;;  %v4454_v63 = vunpack.i.l.bf16 %v4453_v2 }
 0x323   : > { %v4244_v11 = vpack.c.bf16 %v4455_v17, %v4454_v63 }
 0x325   : > { %4245 = vmatprep.subr.bf16.mxu0 %v4244_v11  ;;  %4280 = vmatprep.subr.bf16.mxu1 %v4244_v11  ;;  %v5860_v54 = vpop.eup %4635 }
 0x326   : > { %4247 = vmatpush3.bf16.msra.mxu0 %v4244_v11 }
 0x327   : > { %4249 = vmatprep.subr.bf16.mxu0 %v4248_v26 }
 0x32a   : > { %4251 = vmatpush3.bf16.msra.mxu0 %v4248_v26 }
 0x32d   : > { %2390 = vadd.xlane.f32.xlu1 %v5852_v34 }
 0x331   : > { %2392 = vadd.xlane.f32.xlu1 %v5855_v19 }
 0x335   : > { %2394 = vadd.xlane.f32.xlu1 %v5858_v42 }
 0x336   : > { %2396 = vadd.xlane.f32.xlu0 %v5860_v54 }
 0x346   : > { %4477 = vrot.lane.b32.xlu1 %v4476_v55, %s4773_s30  ;;  %v2338_v55 = vmul.f32 1.442695, %v2295_v33  ;;  %v2306_v33 = vsub.f32 %v5683_v53, %v5829_v59  ;;  %v2364_v53 = vmul.f32 1.442695, %v2308_v12  ;;  %v2310_v59 = vsub.f32 %v5699_v36, %v5837_v14  ;;  %v6366_v12 = vld [vmem:[#allocation9_spill] sm:$0xff] }
 0x348   : > { %v2360_v39 = vmul.f32 1.442695, %v2306_v33  ;;  %v2368_v7 = vmul.f32 1.442695, %v2310_v59 }
 0x34c   : > { %4482 = vrot.lane.b32.xlu0 %v4481_v4, %s4773_s30  ;;  %v2346_v4 = vmul.f32 1.442695, %v2299_v47 }
 0x34f   : > { %v3802_v21 = vpop.f32.mrb[0].mxu1 }
 0x350   : > { %v1225_v2 = vpop.f32.mrb[1].mxu1 }
 0x351   : > { %3852 = vmatprep.mubr.msk.f32.mxu1 %vm387_vm0, %v1225_v2 }
 0x352   : > { %3853 = vmatmul.mubr.msk.f32.vlgmr.msra.gmra.mrb[32].mxu1 %vm387_vm0, %v3802_v21  ;;  %v2300_v21 = vsub.f32 %v5660_v0, %v5815_v25  ;;  %v2350_v0 = vmul.f32 1.442695, %v2301_v62  ;;  %v2302_v25 = vsub.f32 %v5666_v37, %v5818_v28  ;;  %v4761_v37 = vld [vmem:[%s4817_s24 + $0x70] sm:$0xff]  ;;  %v4762_v28 = vld [vmem:[%s4817_s24 + $0x78] sm:$0xff]  ;;  %v2376_v62 = vmul.f32 1.442695, %v2314_v9 }
 0x353   : > { %4288 = vmatpush3.bf16.msra.mxu1 %v4244_v11  ;;  %v3805_v17 = vpop.f32.mrb[2].mxu1  ;;  %v2334_v11 = vmul.f32 1.442695, %v2293_v60 }
 0x354   : > { %4281 = vmatprep.subr.bf16.mxu1 %v4248_v26  ;;  %v1235_v63 = vpop.f32.mrb[3].mxu1  ;;  %v2348_v30 = vmul.f32 1.442695, %v2300_v21  ;;  %v2352_v8 = vmul.f32 1.442695, %v2302_v25 }
 0x355   : > { %3855 = vmatprep.mubr.msk.f32.mxu1 %vm387_vm0, %v1235_v63  ;;  %4637 = vpow2.f32 %v2334_v11  ;;  %v4486_v11 = vpack.i.bf16 %v4762_v28, %v4761_v37  ;;  %v6365_v37 = vld [vmem:[#allocation7_spill] sm:$0xff] }
 0x356   : > { %3856 = vmatmul.mubr.msk.f32.gmra.mrb[34].mxu1 %vm387_vm0, %v3805_v17  ;;  %4639 = vpow2.f32 %v2338_v55  ;;  %v2303_v28 = vsub.f32 %v6365_v37, %v5797_v45 }
 0x357   : > { %4289 = vmatpush3.bf16.msra.mxu1 %v4248_v26  ;;  %v3808_v46 = vpop.f32.mrb[4].mxu1  ;;  %4641 = vpow2.f32 %v2336_v32 }
 0x358   : > { %v1245_v40 = vpop.f32.mrb[5].mxu1  ;;  %4643 = vpow2.f32 %v2342_v24 }
 0x359   : > { %v5878_v56 = vpop.xlane.xlu0 %2382  ;;  %3858 = vmatprep.mubr.msk.f32.mxu1 %vm387_vm0, %v1245_v40  ;;  %4645 = vpow2.f32 %v2344_v3 }
 0x35a   : > { %3859 = vmatmul.mubr.msk.f32.gmra.mrb[36].mxu1 %vm387_vm0, %v3808_v46  ;;  %4647 = vpow2.f32 %v2346_v4  ;;  %v2356_v46 = vmul.f32 1.442695, %v2304_v6 }
 0x35b   : > { %v3811_v49 = vpop.f32.mrb[6].mxu1  ;;  %4649 = vpow2.f32 %v2348_v30 }
 0x35c   : > { %v1255_v1 = vpop.f32.mrb[7].mxu1  ;;  %4651 = vpow2.f32 %v2350_v0 }
 0x35d   : > { %3861 = vmatprep.mubr.msk.f32.mxu1 %vm387_vm0, %v1255_v1  ;;  %v4463_v16 = vpop.permute.xlu0 %4462  ;;  %4653 = vpow2.f32 %v2352_v8 }
 0x35e   : > { %3862 = vmatmul.mubr.msk.f32.gmra.mrb[38].mxu1 %vm387_vm0, %v3811_v49  ;;  %v4465_v61 = vunpack.i.h.bf16 %v4463_v16  ;;  %v4464_v26 = vunpack.i.l.bf16 %v4463_v16  ;;  %4655 = vpow2.f32 %v2356_v46  ;;  %v2312_v16 = vsub.f32 %v5706_v52, %v5842_v15 }
 0x35f   : > { %v5894_v2 = vpop.eup %4637 }
 0x360   : > { %v4252_v27 = vpack.c.bf16 %v4465_v61, %v4464_v26  ;;  %v5896_v17 = vpop.eup %4639  ;;  %v2372_v24 = vmul.f32 1.442695, %v2312_v16  ;;  %v6368_v16 = vld [vmem:[#allocation13_spill] sm:$0xff] }
 0x361   : > { %v5902_v29 = vpop.eup %4641 }
 0x362   : > { %4253 = vmatprep.subr.bf16.mxu0 %v4252_v27  ;;  %4282 = vmatprep.subr.bf16.mxu1 %v4252_v27  ;;  %v5904_v18 = vpop.eup %4643 }
 0x363   : > { %4255 = vmatpush3.bf16.msra.mxu0 %v4252_v27  ;;  %4290 = vmatpush3.bf16.msra.mxu1 %v4252_v27  ;;  %v5910_v63 = vpop.eup %4645 }
 0x364   : > { %v5915_v60 = vpop.eup %4647 }
 0x365   : > { %v5920_v40 = vpop.eup %4649 }
 0x366   : > { %v5927_v49 = vpop.eup %4651 }
 0x367   : > { %v5935_v20 = vpop.eup %4653 }
 0x368   : > { %v5944_v36 = vpop.eup %4655 }
 0x36a   : > { %2398 = vadd.xlane.f32.xlu1 %v5894_v2 }
 0x36b   : > { %2402 = vadd.xlane.f32.xlu0 %v5896_v17 }
 0x36e   : > { %2400 = vadd.xlane.f32.xlu1 %v5902_v29 }
 0x36f   : > { %2406 = vadd.xlane.f32.xlu0 %v5904_v18 }
 0x373   : > { %2408 = vadd.xlane.f32.xlu0 %v5910_v63 }
 0x377   : > { %2410 = vadd.xlane.f32.xlu0 %v5915_v60 }
 0x37b   : > { %2412 = vadd.xlane.f32.xlu0 %v5920_v40 }
 0x37d   : > { %v2381_v22 = vpop.xlane.xlu1 %2380 }
 0x37e   : > { %4657 = vrcp.f32 %v2381_v22  ;;  %v2305_v22 = vsub.f32 %v6366_v12, %v5807_v48 }
 0x37f   : > { %4487 = vrot.lane.b32.xlu1 %v4486_v11, %s4773_s30  ;;  %2414 = vadd.xlane.f32.xlu0 %v5927_v49  ;;  %4659 = vpow2.f32 %v2360_v39  ;;  %v2354_v39 = vmul.f32 1.442695, %v2303_v28 }
 0x380   : > { %4661 = vpow2.f32 %v2364_v53 }
 0x381   : > { %v5933_v55 = vpop.xlane.xlu1 %2384  ;;  %4663 = vpow2.f32 %v2368_v7 }
 0x382   : > { %v3814_v1 = vpop.f32.mrb[8].mxu1  ;;  %4665 = vpow2.f32 %v2372_v24 }
 0x383   : > { %2416 = vadd.xlane.f32.xlu0 %v5935_v20  ;;  %v1265_v41 = vpop.f32.mrb[9].mxu1  ;;  %4667 = vpow2.f32 %v2376_v62 }
 0x384   : > { %3864 = vmatprep.mubr.msk.f32.mxu1 %vm387_vm0, %v1265_v41  ;;  %v6367_v41 = vld [vmem:[#allocation11_spill] sm:$0xff] }
 0x385   : > { %v5941_v61 = vpop.xlane.xlu1 %2386  ;;  %3865 = vmatmul.mubr.msk.f32.gmra.mrb[40].mxu1 %vm387_vm0, %v3814_v1  ;;  %v2358_v1 = vmul.f32 1.442695, %v2305_v22  ;;  %v2307_v7 = vsub.f32 %v6367_v41, %v5813_v10 }
 0x386   : > { %v3817_v14 = vpop.f32.mrb[10].mxu1 }
 0x387   : > { %2420 = vadd.xlane.f32.xlu0 %v5944_v36  ;;  %v1275_v26 = vpop.f32.mrb[11].mxu1  ;;  %v2362_v48 = vmul.f32 1.442695, %v2307_v7 }
 0x388   : > { %v4658_v32 = vpop.eup %4657  ;;  %3867 = vmatprep.mubr.msk.f32.mxu1 %vm387_vm0, %v1275_v26 }
 0x389   : > { %v4468_v52 = vpop.permute.xlu1 %4467  ;;  %3868 = vmatmul.mubr.msk.f32.gmra.mrb[42].mxu1 %vm387_vm0, %v3817_v14  ;;  %v2445_v15 = vmul.f32 %v4658_v32, %v5792_v23  ;;  %v5952_v27 = vpop.eup %4659  ;;  %v2296_v23 = vsub.f32 %v5643_v50, %v5804_v13  ;;  %v2309_v14 = vsub.f32 %v6368_v16, %v5822_v5 }
 0x38a   : > { %v4470_v47 = vunpack.i.h.bf16 %v4468_v52  ;;  %v4469_v3 = vunpack.i.l.bf16 %v4468_v52  ;;  %v3820_v4 = vpop.f32.mrb[12].mxu1  ;;  %v5957_v31 = vpop.eup %4661  ;;  %v6369_v52 = vld [vmem:[#allocation2_spill] sm:$0xff] }
 0x38b   : > { %2424 = vadd.xlane.f32.xlu0 %v5952_v27  ;;  %v1285_v21 = vpop.f32.mrb[13].mxu1  ;;  %4012 = vmatprep.mubr.f32.mxu0 %v2445_v15  ;;  %v5964_v25 = vpop.eup %4663  ;;  %v2340_v11 = vmul.f32 1.442695, %v2296_v23  ;;  %v2366_v9 = vmul.f32 1.442695, %v2309_v14  ;;  %v2311_v15 = vsub.f32 %v6369_v52, %v5827_v44 }
 0x38c   : > { %v4256_v30 = vpack.c.bf16 %v4470_v47, %v4469_v3  ;;  %3870 = vmatprep.mubr.msk.f32.mxu1 %vm387_vm0, %v1285_v21  ;;  %v5971_v13 = vpop.eup %4665  ;;  %v6370_v47 = vld [vmem:[#allocation15_spill] sm:$0xff] }
 0x38d   : > { %3871 = vmatmul.mubr.msk.f32.gmra.mrb[44].mxu1 %vm387_vm0, %v3820_v4  ;;  %4669 = vpow2.f32 %v2340_v11  ;;  %v5976_v59 = vpop.eup %4667  ;;  %v2370_v5 = vmul.f32 1.442695, %v2311_v15  ;;  %v2313_v3 = vsub.f32 %v6370_v47, %v5833_v43 }
 0x38e   : > { %v5959_v57 = vpop.xlane.xlu0 %2388  ;;  %4257 = vmatprep.subr.bf16.mxu0 %v4256_v30  ;;  %4283 = vmatprep.subr.bf16.mxu1 %v4256_v30  ;;  %4671 = vpow2.f32 %v2354_v39 }
 0x38f   : > { %2428 = vadd.xlane.f32.xlu0 %v5957_v31  ;;  %4259 = vmatpush3.bf16.msra.mxu0 %v4256_v30  ;;  %4673 = vpow2.f32 %v2358_v1  ;;  %v2374_v44 = vmul.f32 1.442695, %v2313_v3 }
 0x390   : > { %4291 = vmatpush3.bf16.msra.mxu1 %v4256_v30  ;;  %4675 = vpow2.f32 %v2362_v48  ;;  %v6371_v30 = vld [vmem:[#allocation3_spill] sm:$0xff] }
 0x391   : > { %v3823_v0 = vpop.f32.mrb[14].mxu1  ;;  %4677 = vpow2.f32 %v2366_v9  ;;  %v2315_v23 = vsub.f32 %v6371_v30, %v5840_v38  ;;  %v2781_v30 = vld [vmem:[%s6259_s2 + $0x10] sm:$0xff] }
 0x392   : > { %v1295_v8 = vpop.f32.mrb[15].mxu1  ;;  %v4473_v6 = vpop.permute.xlu0 %4472  ;;  %4679 = vpow2.f32 %v2370_v5 }
 0x393   : > { %2432 = vadd.xlane.f32.xlu0 %v5964_v25  ;;  %3873 = vmatprep.mubr.msk.f32.mxu1 %vm387_vm0, %v1295_v8  ;;  %v4475_v46 = vunpack.i.h.bf16 %v4473_v6  ;;  %v4474_v33 = vunpack.i.l.bf16 %v4473_v6  ;;  %4681 = vpow2.f32 %v2374_v44  ;;  %v2378_v43 = vmul.f32 1.442695, %v2315_v23  ;;  %v2782_v23 = vld [vmem:[%s6259_s2 + $0x18] sm:$0xff] }
 0x394   : > { %3874 = vmatmul.mubr.msk.f32.gmra.mrb[46].mxu1 %vm387_vm0, %v3823_v0 }
 0x395   : > { %v4260_v50 = vpack.c.bf16 %v4475_v46, %v4474_v33  ;;  %4683 = vpow2.f32 %v2378_v43 }
 0x396   : > { %4685 = vrcp.f32 %v5878_v56 }
 0x397   : > { %2436 = vadd.xlane.f32.xlu0 %v5971_v13  ;;  %4261 = vmatprep.subr.bf16.mxu0 %v4260_v50  ;;  %v5985_v26 = vpop.eup %4669  ;;  %4687 = vrcp.f32 %v5933_v55 }
 0x398   : > { %4284 = vmatprep.subr.bf16.mxu1 %v4260_v50  ;;  %4263 = vmatpush3.bf16.msra.mxu0 %v4260_v50  ;;  %v5992_v10 = vpop.eup %4671  ;;  %4689 = vrcp.f32 %v5941_v61 }
 0x399   : > { %v3826_v53 = vpop.f32.mrb[16].mxu1  ;;  %4292 = vmatpush3.bf16.msra.mxu1 %v4260_v50  ;;  %v5997_v4 = vpop.eup %4673  ;;  %4691 = vrcp.f32 %v5959_v57 }
 0x39a   : > { %v1305_v45 = vpop.f32.mrb[17].mxu1  ;;  %v6004_v0 = vpop.eup %4675 }
 0x39b   : > { %2440 = vadd.xlane.f32.xlu0 %v5976_v59  ;;  %3876 = vmatprep.mubr.msk.f32.mxu1 %vm387_vm0, %v1305_v45  ;;  %v6008_v46 = vpop.eup %4677 }
 0x39c   : > { %3877 = vmatmul.mubr.msk.f32.gmra.mrb[48].mxu1 %vm387_vm0, %v3826_v53  ;;  %v6013_v37 = vpop.eup %4679 }
 0x39d   : > { %v6018_v50 = vpop.eup %4681 }
 0x39f   : > { %v6023_v53 = vpop.eup %4683 }
 0x3a0   : > { %v4686_v61 = vpop.eup %4685 }
 0x3a2   : > { %v3829_v32 = vpop.f32.mrb[18].mxu1 }
 0x3a3   : > { %v1315_v24 = vpop.f32.mrb[19].mxu1  ;;  %2404 = vadd.xlane.f32.xlu1 %v5985_v26 }
 0x3a4   : > { %3879 = vmatprep.mubr.msk.f32.mxu1 %vm387_vm0, %v1315_v24 }
 0x3a5   : > { %3880 = vmatmul.mubr.msk.f32.gmra.mrb[50].mxu1 %vm387_vm0, %v3829_v32 }
 0x3a7   : > { %2418 = vadd.xlane.f32.xlu1 %v5992_v10 }
 0x3a9   : > { %v3832_v21 = vpop.f32.mrb[20].mxu1 }
 0x3aa   : > { %v1325_v62 = vpop.f32.mrb[21].mxu1 }
 0x3ab   : > { %2422 = vadd.xlane.f32.xlu1 %v5997_v4  ;;  %3882 = vmatprep.mubr.msk.f32.mxu1 %vm387_vm0, %v1325_v62 }
 0x3ac   : > { %3883 = vmatmul.mubr.msk.f32.gmra.mrb[52].mxu1 %vm387_vm0, %v3832_v21 }
 0x3ae   : > { %v3835_v8 = vpop.f32.mrb[22].mxu1 }
 0x3af   : > { %2426 = vadd.xlane.f32.xlu1 %v6004_v0  ;;  %v1335_v6 = vpop.f32.mrb[23].mxu1 }
 0x3b0   : > { %3885 = vmatprep.mubr.msk.f32.mxu1 %vm387_vm0, %v1335_v6  ;;  %v6041_v6 = vpack.c.bf16 %v2782_v23, %v2781_v30 }
 0x3b1   : > { %3886 = vmatmul.mubr.msk.f32.gmra.mrb[54].mxu1 %vm387_vm0, %v3835_v8 }
 0x3b2   : > { %v3838_v33 = vpop.f32.mrb[24].mxu1 }
 0x3b3   : > { %2430 = vadd.xlane.f32.xlu1 %v6008_v46  ;;  %v1345_v38 = vpop.f32.mrb[25].mxu1 }
 0x3b4   : > { %3888 = vmatprep.mubr.msk.f32.mxu1 %vm387_vm0, %v1345_v38  ;;  %v2447_v38 = vmul.f32 %v4686_v61, %v5745_v58 }
 0x3b5   : > { %3889 = vmatmul.mubr.msk.f32.gmra.mrb[56].mxu1 %vm387_vm0, %v3838_v33  ;;  %v4688_v33 = vpop.eup %4687 }
 0x3b6   : > { %v3841_v28 = vpop.f32.mrb[26].mxu1 }
 0x3b7   : > { %2434 = vadd.xlane.f32.xlu1 %v6013_v37  ;;  %v1355_v11 = vpop.f32.mrb[27].mxu1 }
 0x3b8   : > { %3891 = vmatprep.mubr.msk.f32.mxu1 %vm387_vm0, %v1355_v11  ;;  %v2449_v11 = vmul.f32 %v4688_v33, %v5795_v35 }
 0x3b9   : > { %3892 = vmatmul.mubr.msk.f32.gmra.mrb[58].mxu1 %vm387_vm0, %v3841_v28  ;;  %v4690_v28 = vpop.eup %4689 }
 0x3ba   : > { %v2391_v39 = vpop.xlane.xlu1 %2390  ;;  %v3844_v12 = vpop.f32.mrb[28].mxu1 }
 0x3bb   : > { %2438 = vadd.xlane.f32.xlu1 %v6018_v50  ;;  %v1365_v22 = vpop.f32.mrb[29].mxu1  ;;  %4693 = vrcp.f32 %v2391_v39  ;;  %v4692_v39 = vpop.eup %4691 }
 0x3bc   : > { %3894 = vmatprep.mubr.msk.f32.mxu1 %vm387_vm0, %v1365_v22  ;;  %v2451_v22 = vmul.f32 %v4690_v28, %v5802_v51 }
 0x3bd   : > { %3895 = vmatmul.mubr.msk.f32.gmra.mrb[60].mxu1 %vm387_vm0, %v3844_v12 }
 0x3be   : > { %v2393_v45 = vpop.xlane.xlu1 %2392  ;;  %v3847_v1 = vpop.f32.mrb[30].mxu1 }
 0x3bf   : > { %2442 = vadd.xlane.f32.xlu1 %v6023_v53  ;;  %v1375_v41 = vpop.f32.mrb[31].mxu1  ;;  %4695 = vrcp.f32 %v2393_v45 }
 0x3c0   : > { %3897 = vmatprep.mubr.msk.f32.mxu1 %vm387_vm0, %v1375_v41 }
 0x3c1   : > { %3898 = vmatmul.mubr.msk.f32.gmra.mrb[62].mxu1 %vm387_vm0, %v3847_v1  ;;  %v6372_v1 = vld [vmem:[#allocation18_spill] sm:$0xff] }
 0x3c2   : > { %v2395_v7 = vpop.xlane.xlu1 %2394  ;;  %v2453_v41 = vmul.f32 %v4692_v39, %v6372_v1 }
 0x3c3   : > { %v2397_v48 = vpop.xlane.xlu0 %2396  ;;  %4697 = vrcp.f32 %v2395_v7 }
 0x3c4   : > { %4699 = vrcp.f32 %v2397_v48 }
 0x3c5   : > { %v4694_v45 = vpop.eup %4693 }
 0x3c6   : > { %v4478_v16 = vpop.permute.xlu1 %4477  ;;  %v2455_v58 = vmul.f32 %v4694_v45, %v5852_v34 }
 0x3c7   : > { %v4480_v14 = vunpack.i.h.bf16 %v4478_v16  ;;  %v4479_v32 = vunpack.i.l.bf16 %v4478_v16  ;;  %v4483_v24 = vpop.permute.xlu0 %4482 }
 0x3c8   : > { %v4485_v9 = vunpack.i.h.bf16 %v4483_v24  ;;  %v4484_v52 = vunpack.i.l.bf16 %v4483_v24 }
 0x3c9   : > { %v4264_v15 = vpack.c.bf16 %v4480_v14, %v4479_v32  ;;  %v4696_v7 = vpop.eup %4695 }
 0x3ca   : > { %v4268_v5 = vpack.c.bf16 %v4485_v9, %v4484_v52  ;;  %v2457_v35 = vmul.f32 %v4696_v7, %v5855_v19 }
 0x3cb   : > { %4265 = vmatprep.subr.bf16.mxu0 %v4264_v15  ;;  %4285 = vmatprep.subr.bf16.mxu1 %v4264_v15 }
 0x3cc   : > { %4267 = vmatpush3.bf16.msra.mxu0 %v4264_v15  ;;  %4293 = vmatpush3.bf16.msra.mxu1 %v4264_v15 }
 0x3cd   : > { %4269 = vmatprep.subr.bf16.mxu0 %v4268_v5  ;;  %4286 = vmatprep.subr.bf16.mxu1 %v4268_v5  ;;  %v4698_v48 = vpop.eup %4697 }
 0x3ce   : > { %v4700_v14 = vpop.eup %4699  ;;  %v2459_v24 = vmul.f32 %v4698_v48, %v5858_v42 }
 0x3cf   : > { %v2461_v9 = vmul.f32 %v4700_v14, %v5860_v54 }
 0x3d0   : > { %4271 = vmatpush3.bf16.msra.mxu0 %v4268_v5  ;;  %4294 = vmatpush3.bf16.msra.mxu1 %v4268_v5 }
 0x3f7   : > { %v2399_v47 = vpop.xlane.xlu1 %2398 }
 0x3f8   : > { %v2403_v3 = vpop.xlane.xlu0 %2402  ;;  %4701 = vrcp.f32 %v2399_v47 }
 0x3fb   : > { %v2401_v21 = vpop.xlane.xlu1 %2400 }
 0x3fc   : > { %v6031_v62 = vpop.xlane.xlu0 %2406  ;;  %4703 = vrcp.f32 %v2401_v21 }
 0x3fd   : > { %4705 = vrcp.f32 %v2403_v3 }
 0x3ff   : > { %v4488_v44 = vpop.permute.xlu1 %4487 }
 0x400   : > { %v4490_v8 = vunpack.i.h.bf16 %v4488_v44  ;;  %v4489_v56 = vunpack.i.l.bf16 %v4488_v44  ;;  %v2409_v43 = vpop.xlane.xlu0 %2408 }
 0x402   : > { %v4272_v55 = vpack.c.bf16 %v4490_v8, %v4489_v56  ;;  %v4702_v51 = vpop.eup %4701 }
 0x403   : > { %v2463_v5 = vmul.f32 %v4702_v51, %v5894_v2 }
 0x404   : > { %v2411_v57 = vpop.xlane.xlu0 %2410  ;;  %4273 = vmatprep.subr.bf16.mxu0 %v4272_v55  ;;  %4287 = vmatprep.subr.bf16.mxu1 %v4272_v55 }
 0x405   : > { %4275 = vmatpush3.bf16.msra.mxu0 %v4272_v55  ;;  %4295 = vmatpush3.bf16.msra.mxu1 %v4272_v55 }
 0x406   : > { %4277 = vmatprep.subr.bf16.mxu1 %v6041_v6  ;;  %v4704_v52 = vpop.eup %4703 }
 0x407   : > { %v4706_v47 = vpop.eup %4705  ;;  %v2465_v34 = vmul.f32 %v4704_v52, %v5902_v29 }
 0x408   : > { %v2413_v12 = vpop.xlane.xlu0 %2412  ;;  %4013 = vmatmul.mubr.f32.vlgmr.msra.gmra.mrb[64].mxu0 %v2447_v38  ;;  %v2467_v19 = vmul.f32 %v4706_v47, %v5896_v17 }
 0x409   : > { %4015 = vmatprep.mubr.f32.mxu0 %v2449_v11 }
 0x40c   : > { %v2415_v16 = vpop.xlane.xlu0 %2414  ;;  %4016 = vmatmul.mubr.f32.gmra.mrb[66].mxu0 %v2451_v22 }
 0x40d   : > { %4018 = vmatprep.mubr.f32.mxu0 %v2453_v41 }
 0x410   : > { %v2417_v32 = vpop.xlane.xlu0 %2416  ;;  %4019 = vmatmul.mubr.f32.gmra.mrb[68].mxu0 %v2455_v58 }
 0x411   : > { %4021 = vmatprep.mubr.f32.mxu0 %v2457_v35 }
 0x414   : > { %v2421_v15 = vpop.xlane.xlu0 %2420  ;;  %4022 = vmatmul.mubr.f32.gmra.mrb[70].mxu0 %v2459_v24 }
 0x415   : > { %4024 = vmatprep.mubr.f32.mxu0 %v2461_v9 }
 0x418   : > { %v2425_v3 = vpop.xlane.xlu0 %2424  ;;  %4025 = vmatmul.mubr.f32.gmra.mrb[72].mxu0 %v2463_v5 }
 0x419   : > { %4027 = vmatprep.mubr.f32.mxu0 %v2465_v34 }
 0x41c   : > { %v2429_v21 = vpop.xlane.xlu0 %2428  ;;  %4028 = vmatmul.mubr.f32.gmra.mrb[74].mxu0 %v2467_v19 }
 0x41d   : > { %4707 = vrcp.f32 %v2429_v21 }
 0x41e   : > { %4709 = vrcp.f32 %v6031_v62 }
 0x41f   : > { %4711 = vrcp.f32 %v2409_v43 }
 0x420   : > { %v2433_v17 = vpop.xlane.xlu0 %2432 }
 0x424   : > { %v2437_v33 = vpop.xlane.xlu0 %2436 }
 0x427   : > { %v4708_v42 = vpop.eup %4707 }
 0x428   : > { %v2493_v54 = vmul.f32 %v4708_v42, %v5957_v31  ;;  %v4710_v30 = vpop.eup %4709 }
 0x429   : > { %v4712_v23 = vpop.eup %4711  ;;  %v2471_v62 = vmul.f32 %v4710_v30, %v5904_v18 }
 0x42a   : > { %4048 = vmatprep.mubr.f32.mxu1 %v2493_v54  ;;  %v2473_v55 = vmul.f32 %v4712_v23, %v5910_v63  ;;  %v2441_v63 = vpop.xlane.xlu0 %2440 }
 0x430   : > { %v2405_v44 = vpop.xlane.xlu1 %2404 }
 0x431   : > { %4713 = vrcp.f32 %v2405_v44 }
 0x432   : > { %4715 = vrcp.f32 %v2411_v57 }
 0x433   : > { %4717 = vrcp.f32 %v2413_v12 }
 0x434   : > { %v2419_v2 = vpop.xlane.xlu1 %2418  ;;  %4719 = vrcp.f32 %v2415_v16 }
 0x435   : > { %4721 = vrcp.f32 %v2417_v32 }
 0x436   : > { %4723 = vrcp.f32 %v2419_v2 }
 0x437   : > { %4725 = vrcp.f32 %v2421_v15 }
 0x438   : > { %v2423_v29 = vpop.xlane.xlu1 %2422  ;;  %4727 = vrcp.f32 %v2425_v3 }
 0x439   : > { %4729 = vrcp.f32 %v2433_v17 }
 0x43a   : > { %4731 = vrcp.f32 %v2423_v29 }
 0x43b   : > { %v4714_v8 = vpop.eup %4713 }
 0x43c   : > { %v2427_v56 = vpop.xlane.xlu1 %2426  ;;  %v2469_v31 = vmul.f32 %v4714_v8, %v5985_v26  ;;  %v4716_v43 = vpop.eup %4715 }
 0x43d   : > { %v4718_v61 = vpop.eup %4717  ;;  %v2475_v38 = vmul.f32 %v4716_v43, %v5915_v60 }
 0x43e   : > { %4030 = vmatprep.mubr.f32.mxu0 %v2469_v31  ;;  %v4720_v28 = vpop.eup %4719  ;;  %v2477_v26 = vmul.f32 %v4718_v61, %v5920_v40 }
 0x43f   : > { %4031 = vmatmul.mubr.f32.gmra.mrb[76].mxu0 %v2471_v62  ;;  %v4722_v11 = vpop.eup %4721  ;;  %v2479_v39 = vmul.f32 %v4720_v28, %v5927_v49 }
 0x440   : > { %v2431_v57 = vpop.xlane.xlu1 %2430  ;;  %4033 = vmatprep.mubr.f32.mxu0 %v2473_v55  ;;  %v4724_v12 = vpop.eup %4723  ;;  %v2481_v22 = vmul.f32 %v4722_v11, %v5935_v20  ;;  %v318_v11 = vld [vmem:[%s6113_s16 + $0x8] sm:$0xff] }
 0x441   : > { %4733 = vrcp.f32 %v2431_v57  ;;  %v4726_v45 = vpop.eup %4725  ;;  %v2483_v41 = vmul.f32 %v4724_v12, %v5992_v10  ;;  %v320_v12 = vld [vmem:[%s6113_s16 + $0x18] sm:$0xff] }
 0x442   : > { %4735 = vrcp.f32 %v2437_v33  ;;  %v4728_v1 = vpop.eup %4727  ;;  %v2485_v16 = vmul.f32 %v4726_v45, %v5944_v36 }
 0x443   : > { %4034 = vmatmul.mubr.f32.gmra.mrb[78].mxu0 %v2475_v38  ;;  %4737 = vrcp.f32 %v2427_v56  ;;  %v4730_v40 = vpop.eup %4729  ;;  %v2489_v24 = vmul.f32 %v4728_v1, %v5952_v27 }
 0x444   : > { %v2435_v18 = vpop.xlane.xlu1 %2434  ;;  %4036 = vmatprep.mubr.f32.mxu0 %v2477_v26  ;;  %v4732_v7 = vpop.eup %4731  ;;  %v2497_v14 = vmul.f32 %v4730_v40, %v5964_v25  ;;  %v6118_v26 = vld [vmem:[%s6260_s3] ss:$0 sm:$0xff] }
 0x445   : > { %4739 = vrcp.f32 %v2435_v18  ;;  %v2487_v35 = vmul.f32 %v4732_v7, %v5997_v4  ;;  %v317_v18 = vld [vmem:[%s6113_s16] sm:$0xff]  ;;  %v358_v40 = vadd.f32 %v6118_v26, %v320_v12 }
 0x446   : > { %4741 = vrcp.f32 %v2441_v63  ;;  %v356_v63 = vadd.f32 %v6118_v26, %v318_v11 }
 0x447   : > { %4037 = vmatmul.mubr.f32.gmra.mrb[80].mxu0 %v2479_v39  ;;  %v355_v39 = vadd.f32 %v6118_v26, %v317_v18 }
 0x448   : > { %v2439_v60 = vpop.xlane.xlu1 %2438  ;;  %4039 = vmatprep.mubr.f32.mxu0 %v2481_v22  ;;  %v319_v22 = vld [vmem:[%s6113_s16 + $0x10] sm:$0xff] }
 0x449   : > { %4743 = vrcp.f32 %v2439_v60  ;;  %v357_v7 = vadd.f32 %v6118_v26, %v319_v22  ;;  %v336_v22 = vld [vmem:[%s6113_s16 + $0x98] sm:$0xff] }
 0x44b   : > { %v4734_v58 = vpop.eup %4733  ;;  %4040 = vmatmul.mubr.f32.gmra.mrb[82].mxu0 %v2483_v41 }
 0x44c   : > { %v2495_v49 = vmul.f32 %v4734_v58, %v6008_v46  ;;  %v2443_v48 = vpop.xlane.xlu1 %2442  ;;  %4042 = vmatprep.mubr.f32.mxu0 %v2485_v16  ;;  %v4736_v20 = vpop.eup %4735  ;;  %v322_v16 = vld [vmem:[%s6113_s16 + $0x28] sm:$0xff]  ;;  %v321_v58 = vld [vmem:[%s6113_s16 + $0x20] sm:$0xff] }
 0x44d   : > { %4745 = vrcp.f32 %v2443_v48  ;;  %v4738_v32 = vpop.eup %4737  ;;  %v2501_v51 = vmul.f32 %v4736_v20, %v5971_v13 }
 0x44e   : > { %4049 = vmatmul.mubr.f32.vlgmr.msra.gmra.mrb[64].mxu1 %v2495_v49  ;;  %v2491_v46 = vmul.f32 %v4738_v32, %v6004_v0  ;;  %v359_v32 = vadd.f32 %v6118_v26, %v321_v58  ;;  %v338_v58 = vld [vmem:[%s6113_s16 + $0xa8] sm:$0xff] }
 0x44f   : > { %v4740_v10 = vpop.eup %4739  ;;  %4043 = vmatmul.mubr.f32.gmra.mrb[84].mxu0 %v2487_v35  ;;  %4051 = vmatprep.mubr.f32.mxu1 %v2497_v14  ;;  %v360_v35 = vadd.f32 %v6118_v26, %v322_v16 }
 0x450   : > { %4045 = vmatprep.mubr.f32.mxu0 %v2489_v24  ;;  %v2499_v36 = vmul.f32 %v4740_v10, %v6013_v37  ;;  %4279 = vmatpush3.bf16.msra.mxu1 %v6041_v6  ;;  %v4742_v9 = vpop.eup %4741  ;;  %v324_v24 = vld [vmem:[%s6113_s16 + $0x38] sm:$0xff]  ;;  %v323_v10 = vld [vmem:[%s6113_s16 + $0x30] sm:$0xff] }
 0x451   : > { %v2505_v27 = vmul.f32 %v4742_v9, %v5976_v59  ;;  %v362_v9 = vadd.f32 %v6118_v26, %v324_v24 }
 0x452   : > { %4052 = vmatmul.mubr.f32.gmra.mrb[66].mxu1 %v2499_v36 }
 0x453   : > { %v4744_v4 = vpop.eup %4743  ;;  %4046 = vmatmul.mubr.f32.gmra.mrb[86].mxu0 %v2491_v46  ;;  %4054 = vmatprep.mubr.f32.mxu1 %v2501_v51 }
 0x454   : > { %v2503_v25 = vmul.f32 %v4744_v4, %v6018_v50 }
 0x456   : > { %4055 = vmatmul.mubr.f32.gmra.mrb[68].mxu1 %v2503_v25  ;;  %v361_v25 = vadd.f32 %v6118_v26, %v323_v10  ;;  %v340_v10 = vld [vmem:[%s6113_s16 + $0xb8] sm:$0xff] }
 0x457   : > { %v4746_v52 = vpop.eup %4745  ;;  %4057 = vmatprep.mubr.f32.mxu1 %v2505_v27  ;;  %v326_v27 = vld [vmem:[%s6113_s16 + $0x48] sm:$0xff] }
 0x458   : > { %v2507_v37 = vmul.f32 %v4746_v52, %v6023_v53  ;;  %v325_v52 = vld [vmem:[%s6113_s16 + $0x40] sm:$0xff] }
 0x45a   : > { %4058 = vmatmul.mubr.f32.gmra.mrb[70].mxu1 %v2507_v37 }
 0x4db   : > { %v4014_v6 = vpop.f32.mrb[64].mxu0 }
 0x4dc   : > { %v2622_v15 = vpop.f32.mrb[65].mxu0 }
 0x4dd   : > { %4064 = vmatprep.mubr.msk.f32.mxu1 %vm387_vm0, %v2622_v15 }
 0x4de   : > { %4065 = vmatmul.mubr.msk.f32.vlgmr.msra.gmra.mrb[32].mxu1 %vm387_vm0, %v4014_v6 }
 0x4df   : > { %v4017_v13 = vpop.f32.mrb[66].mxu0 }
 0x4e0   : > { %v2632_v0 = vpop.f32.mrb[67].mxu0 }
 0x4e1   : > { %4067 = vmatprep.mubr.msk.f32.mxu1 %vm387_vm0, %v2632_v0 }
 0x4e2   : > { %4068 = vmatmul.mubr.msk.f32.gmra.mrb[34].mxu1 %vm387_vm0, %v4017_v13  ;;  %v364_v13 = vadd.f32 %v6118_v26, %v326_v27 }
 0x4e3   : > { %v4020_v50 = vpop.f32.mrb[68].mxu0 }
 0x4e4   : > { %v2642_v59 = vpop.f32.mrb[69].mxu0 }
 0x4e5   : > { %4070 = vmatprep.mubr.msk.f32.mxu1 %vm387_vm0, %v2642_v59  ;;  %v328_v59 = vld [vmem:[%s6113_s16 + $0x58] sm:$0xff] }
 0x4e6   : > { %4071 = vmatmul.mubr.msk.f32.gmra.mrb[36].mxu1 %vm387_vm0, %v4020_v50  ;;  %v363_v50 = vadd.f32 %v6118_v26, %v325_v52  ;;  %v342_v52 = vld [vmem:[%s6113_s16 + $0xc8] sm:$0xff] }
 0x4e7   : > { %v4023_v53 = vpop.f32.mrb[70].mxu0 }
 0x4e8   : > { %v2652_v5 = vpop.f32.mrb[71].mxu0 }
 0x4e9   : > { %4073 = vmatprep.mubr.msk.f32.mxu1 %vm387_vm0, %v2652_v5 }
 0x4ea   : > { %4074 = vmatmul.mubr.msk.f32.gmra.mrb[38].mxu1 %vm387_vm0, %v4023_v53  ;;  %v327_v53 = vld [vmem:[%s6113_s16 + $0x50] sm:$0xff] }
 0x4eb   : > { %v4026_v47 = vpop.f32.mrb[72].mxu0 }
 0x4ec   : > { %v2662_v34 = vpop.f32.mrb[73].mxu0 }
 0x4ed   : > { %4076 = vmatprep.mubr.msk.f32.mxu1 %vm387_vm0, %v2662_v34 }
 0x4ee   : > { %4077 = vmatmul.mubr.msk.f32.gmra.mrb[40].mxu1 %vm387_vm0, %v4026_v47 }
 0x4ef   : > { %v4029_v3 = vpop.f32.mrb[74].mxu0 }
 0x4f0   : > { %v2672_v19 = vpop.f32.mrb[75].mxu0 }
 0x4f1   : > { %4079 = vmatprep.mubr.msk.f32.mxu1 %vm387_vm0, %v2672_v19 }
 0x4f2   : > { %4080 = vmatmul.mubr.msk.f32.gmra.mrb[42].mxu1 %vm387_vm0, %v4029_v3  ;;  %v366_v3 = vadd.f32 %v6118_v26, %v328_v59 }
 0x512   : > { %v4032_v21 = vpop.f32.mrb[76].mxu0 }
 0x513   : > { %v2682_v42 = vpop.f32.mrb[77].mxu0 }
 0x514   : > { %4082 = vmatprep.mubr.msk.f32.mxu1 %vm387_vm0, %v2682_v42 }
 0x515   : > { %4083 = vmatmul.mubr.msk.f32.gmra.mrb[44].mxu1 %vm387_vm0, %v4032_v21  ;;  %v365_v21 = vadd.f32 %v6118_v26, %v327_v53  ;;  %v344_v53 = vld [vmem:[%s6113_s16 + $0xd8] sm:$0xff] }
 0x516   : > { %v4035_v54 = vpop.f32.mrb[78].mxu0 }
 0x517   : > { %v2692_v44 = vpop.f32.mrb[79].mxu0 }
 0x518   : > { %4085 = vmatprep.mubr.msk.f32.mxu1 %vm387_vm0, %v2692_v44 }
 0x519   : > { %4086 = vmatmul.mubr.msk.f32.gmra.mrb[46].mxu1 %vm387_vm0, %v4035_v54 }
 0x51a   : > { %v4038_v2 = vpop.f32.mrb[80].mxu0 }
 0x51b   : > { %v2702_v29 = vpop.f32.mrb[81].mxu0 }
 0x51c   : > { %4088 = vmatprep.mubr.msk.f32.mxu1 %vm387_vm0, %v2702_v29  ;;  %v330_v29 = vld [vmem:[%s6113_s16 + $0x68] sm:$0xff] }
 0x51d   : > { %4089 = vmatmul.mubr.msk.f32.gmra.mrb[48].mxu1 %vm387_vm0, %v4038_v2 }
 0x51e   : > { %v4041_v30 = vpop.f32.mrb[82].mxu0 }
 0x51f   : > { %v2712_v17 = vpop.f32.mrb[83].mxu0 }
 0x520   : > { %4091 = vmatprep.mubr.msk.f32.mxu1 %vm387_vm0, %v2712_v17  ;;  %v368_v17 = vadd.f32 %v6118_v26, %v330_v29 }
 0x521   : > { %v4050_v23 = vpop.f32.mrb[64].mxu1  ;;  %4092 = vmatmul.mubr.msk.f32.gmra.mrb[50].mxu1 %vm387_vm0, %v4041_v30  ;;  %v329_v30 = vld [vmem:[%s6113_s16 + $0x60] sm:$0xff] }
 0x522   : > { %v4044_v8 = vpop.f32.mrb[84].mxu0  ;;  %v2742_v56 = vpop.f32.mrb[65].mxu1 }
 0x523   : > { %v2722_v31 = vpop.f32.mrb[85].mxu0 }
 0x524   : > { %4094 = vmatprep.mubr.msk.f32.mxu1 %vm387_vm0, %v2722_v31 }
 0x525   : > { %v4053_v62 = vpop.f32.mrb[66].mxu1  ;;  %4095 = vmatmul.mubr.msk.f32.gmra.mrb[52].mxu1 %vm387_vm0, %v4044_v8  ;;  %v332_v8 = vld [vmem:[%s6113_s16 + $0x78] sm:$0xff] }
 0x526   : > { %v4047_v43 = vpop.f32.mrb[86].mxu0  ;;  %v2752_v55 = vpop.f32.mrb[67].mxu1 }
 0x527   : > { %v2732_v61 = vpop.f32.mrb[87].mxu0 }
 0x528   : > { %4097 = vmatprep.mubr.msk.f32.mxu1 %vm387_vm0, %v2732_v61 }
 0x529   : > { %v4056_v33 = vpop.f32.mrb[68].mxu1  ;;  %4098 = vmatmul.mubr.msk.f32.gmra.mrb[54].mxu1 %vm387_vm0, %v4047_v43 }
 0x52a   : > { %v2762_v57 = vpop.f32.mrb[69].mxu1  ;;  %4100 = vmatprep.mubr.msk.f32.mxu1 %vm387_vm0, %v2742_v56  ;;  %v331_v56 = vld [vmem:[%s6113_s16 + $0x70] sm:$0xff] }
 0x52d   : > { %v4059_v38 = vpop.f32.mrb[70].mxu1  ;;  %4101 = vmatmul.mubr.msk.f32.gmra.mrb[56].mxu1 %vm387_vm0, %v4050_v23  ;;  %v367_v23 = vadd.f32 %v6118_v26, %v329_v30 }
 0x52e   : > { %v2772_v28 = vpop.f32.mrb[71].mxu1  ;;  %4103 = vmatprep.mubr.msk.f32.mxu1 %vm387_vm0, %v2752_v55  ;;  %v370_v55 = vadd.f32 %v6118_v26, %v332_v8 }
 0x531   : > { %4104 = vmatmul.mubr.msk.f32.gmra.mrb[58].mxu1 %vm387_vm0, %v4053_v62 }
 0x532   : > { %4106 = vmatprep.mubr.msk.f32.mxu1 %vm387_vm0, %v2762_v57  ;;  %v334_v57 = vld [vmem:[%s6113_s16 + $0x88] sm:$0xff] }
 0x535   : > { %4107 = vmatmul.mubr.msk.f32.gmra.mrb[60].mxu1 %vm387_vm0, %v4056_v33  ;;  %v369_v33 = vadd.f32 %v6118_v26, %v331_v56  ;;  %v348_v56 = vld [vmem:[%s6113_s16 + $0xf8] sm:$0xff] }
 0x536   : > { %4109 = vmatprep.mubr.msk.f32.mxu1 %vm387_vm0, %v2772_v28 }
 0x539   : > { %4110 = vmatmul.mubr.msk.f32.gmra.mrb[62].mxu1 %vm387_vm0, %v4059_v38  ;;  %v333_v38 = vld [vmem:[%s6113_s16 + $0x80] sm:$0xff] }
 0x53a   : > { %v371_v12 = vadd.f32 %v6118_v26, %v333_v38 }
 0x5b1   : > { %v4066_v45 = vpop.f32.mrb[32].mxu1 }
 0x5b2   : > { %v4296_v1 = vadd.f32 %v4066_v45, %v356_v63  ;;  %v2945_v60 = vpop.f32.mrb[33].mxu1  ;;  %v372_v63 = vadd.f32 %v6118_v26, %v334_v57  ;;  %v335_v45 = vld [vmem:[%s6113_s16 + $0x90] sm:$0xff] }
 0x5b3   : > { %v4297_v41 = vadd.f32 %v2945_v60, %v355_v39  ;;  %v373_v16 = vadd.f32 %v6118_v26, %v335_v45 }
 0x5b4   : > { %3138 = vst.msk [vmem:[%s6130_s23 + $0x8] sm:$0xff] %vm3136_vm3, %v4296_v1 }
 0x5b5   : > { %3137 = vst.msk [vmem:[%s6130_s23] sm:$0xff] %vm3136_vm3, %v4297_v41  ;;  %v4069_v49 = vpop.f32.mrb[34].mxu1  ;;  %v374_v41 = vadd.f32 %v6118_v26, %v336_v22 }
 0x5b6   : > { %v4298_v48 = vadd.f32 %v4069_v49, %v358_v40  ;;  %v2955_v20 = vpop.f32.mrb[35].mxu1  ;;  %v337_v49 = vld [vmem:[%s6113_s16 + $0xa0] sm:$0xff] }
 0x5b7   : > { %v4299_v14 = vadd.f32 %v2955_v20, %v357_v7  ;;  %v375_v24 = vadd.f32 %v6118_v26, %v337_v49 }
 0x5b8   : > { %3140 = vst.msk [vmem:[%s6130_s23 + $0x18] sm:$0xff] %vm3136_vm3, %v4298_v48 }
 0x5b9   : > { %3139 = vst.msk [vmem:[%s6130_s23 + $0x10] sm:$0xff] %vm3136_vm3, %v4299_v14  ;;  %v4072_v36 = vpop.f32.mrb[36].mxu1  ;;  %v376_v14 = vadd.f32 %v6118_v26, %v338_v58 }
 0x5ba   : > { %v4300_v46 = vadd.f32 %v4072_v36, %v360_v35  ;;  %v2965_v51 = vpop.f32.mrb[37].mxu1  ;;  %v339_v36 = vld [vmem:[%s6113_s16 + $0xb0] sm:$0xff] }
 0x5bb   : > { %v4301_v4 = vadd.f32 %v2965_v51, %v359_v32  ;;  %v377_v27 = vadd.f32 %v6118_v26, %v339_v36 }
 0x5bc   : > { %3142 = vst.msk [vmem:[%s6130_s23 + $0x28] sm:$0xff] %vm3136_vm3, %v4300_v46 }
 0x5bd   : > { %3141 = vst.msk [vmem:[%s6130_s23 + $0x20] sm:$0xff] %vm3136_vm3, %v4301_v4  ;;  %v4075_v37 = vpop.f32.mrb[38].mxu1  ;;  %v378_v4 = vadd.f32 %v6118_v26, %v340_v10 }
 0x5be   : > { %v4302_v6 = vadd.f32 %v4075_v37, %v362_v9  ;;  %v2975_v15 = vpop.f32.mrb[39].mxu1  ;;  %v341_v37 = vld [vmem:[%s6113_s16 + $0xc0] sm:$0xff] }
 0x5bf   : > { %v4303_v0 = vadd.f32 %v2975_v15, %v361_v25  ;;  %v379_v59 = vadd.f32 %v6118_v26, %v341_v37 }
 0x5c0   : > { %3144 = vst.msk [vmem:[%s6130_s23 + $0x38] sm:$0xff] %vm3136_vm3, %v4302_v6 }
 0x5c1   : > { %3143 = vst.msk [vmem:[%s6130_s23 + $0x30] sm:$0xff] %vm3136_vm3, %v4303_v0  ;;  %v4078_v5 = vpop.f32.mrb[40].mxu1  ;;  %v380_v0 = vadd.f32 %v6118_v26, %v342_v52 }
 0x5c2   : > { %v4304_v47 = vadd.f32 %v4078_v5, %v364_v13  ;;  %v2985_v34 = vpop.f32.mrb[41].mxu1  ;;  %v343_v5 = vld [vmem:[%s6113_s16 + $0xd0] sm:$0xff] }
 0x5c3   : > { %v4305_v19 = vadd.f32 %v2985_v34, %v363_v50 }
 0x5c4   : > { %3146 = vst.msk [vmem:[%s6130_s23 + $0x48] sm:$0xff] %vm3136_vm3, %v4304_v47 }
 0x5c5   : > { %3145 = vst.msk [vmem:[%s6130_s23 + $0x40] sm:$0xff] %vm3136_vm3, %v4305_v19  ;;  %v4081_v42 = vpop.f32.mrb[42].mxu1  ;;  %v382_v19 = vadd.f32 %v6118_v26, %v344_v53 }
 0x5c6   : > { %v4306_v54 = vadd.f32 %v4081_v42, %v366_v3  ;;  %v2995_v44 = vpop.f32.mrb[43].mxu1  ;;  %v381_v42 = vadd.f32 %v6118_v26, %v343_v5 }
 0x5c7   : > { %v4307_v2 = vadd.f32 %v2995_v44, %v365_v21  ;;  %v345_v44 = vld [vmem:[%s6113_s16 + $0xe0] sm:$0xff] }
 0x5c8   : > { %3148 = vst.msk [vmem:[%s6130_s23 + $0x58] sm:$0xff] %vm3136_vm3, %v4306_v54  ;;  %v346_v54 = vld [vmem:[%s6113_s16 + $0xe8] sm:$0xff]  ;;  %v383_v8 = vadd.f32 %v6118_v26, %v345_v44 }
 0x5c9   : > { %3147 = vst.msk [vmem:[%s6130_s23 + $0x50] sm:$0xff] %vm3136_vm3, %v4307_v2 }
 0x5e8   : > { %v4084_v31 = vpop.f32.mrb[44].mxu1 }
 0x5e9   : > { %v4308_v62 = vadd.f32 %v4084_v31, %v368_v17  ;;  %v3005_v43 = vpop.f32.mrb[45].mxu1  ;;  %v384_v17 = vadd.f32 %v6118_v26, %v346_v54  ;;  %v347_v31 = vld [vmem:[%s6113_s16 + $0xf0] sm:$0xff] }
 0x5ea   : > { %v4309_v61 = vadd.f32 %v3005_v43, %v367_v23  ;;  %v385_v57 = vadd.f32 %v6118_v26, %v347_v31 }
 0x5eb   : > { %3150 = vst.msk [vmem:[%s6130_s23 + $0x68] sm:$0xff] %vm3136_vm3, %v4308_v62 }
 0x5ec   : > { %3149 = vst.msk [vmem:[%s6130_s23 + $0x60] sm:$0xff] %vm3136_vm3, %v4309_v61  ;;  %v4087_v28 = vpop.f32.mrb[46].mxu1  ;;  %v386_v61 = vadd.f32 %v6118_v26, %v348_v56 }
 0x5ed   : > { %v4310_v11 = vadd.f32 %v4087_v28, %v370_v55  ;;  %v3015_v18 = vpop.f32.mrb[47].mxu1 }
 0x5ee   : > { %v4311_v39 = vadd.f32 %v3015_v18, %v369_v33 }
 0x5ef   : > { %3152 = vst.msk [vmem:[%s6130_s23 + $0x78] sm:$0xff] %vm3136_vm3, %v4310_v11 }
 0x5f0   : > { %3151 = vst.msk [vmem:[%s6130_s23 + $0x70] sm:$0xff] %vm3136_vm3, %v4311_v39  ;;  %v4090_v1 = vpop.f32.mrb[48].mxu1 }
 0x5f1   : > { %v4312_v60 = vadd.f32 %v4090_v1, %v372_v63  ;;  %v3025_v40 = vpop.f32.mrb[49].mxu1 }
 0x5f2   : > { %v4313_v7 = vadd.f32 %v3025_v40, %v371_v12 }
 0x5f3   : > { %3154 = vst.msk [vmem:[%s6130_s23 + $0x88] sm:$0xff] %vm3136_vm3, %v4312_v60 }
 0x5f4   : > { %3153 = vst.msk [vmem:[%s6130_s23 + $0x80] sm:$0xff] %vm3136_vm3, %v4313_v7  ;;  %v4093_v48 = vpop.f32.mrb[50].mxu1 }
 0x5f5   : > { %v4314_v20 = vadd.f32 %v4093_v48, %v374_v41  ;;  %v3035_v35 = vpop.f32.mrb[51].mxu1 }
 0x5f6   : > { %v4315_v32 = vadd.f32 %v3035_v35, %v373_v16 }
 0x5f7   : > { %3156 = vst.msk [vmem:[%s6130_s23 + $0x98] sm:$0xff] %vm3136_vm3, %v4314_v20 }
 0x5f8   : > { %3155 = vst.msk [vmem:[%s6130_s23 + $0x90] sm:$0xff] %vm3136_vm3, %v4315_v32  ;;  %v4096_v46 = vpop.f32.mrb[52].mxu1 }
 0x5f9   : > { %v4316_v51 = vadd.f32 %v4096_v46, %v376_v14  ;;  %v3045_v9 = vpop.f32.mrb[53].mxu1 }
 0x5fa   : > { %v4317_v25 = vadd.f32 %v3045_v9, %v375_v24 }
 0x5fb   : > { %3158 = vst.msk [vmem:[%s6130_s23 + $0xa8] sm:$0xff] %vm3136_vm3, %v4316_v51 }
 0x5fc   : > { %3157 = vst.msk [vmem:[%s6130_s23 + $0xa0] sm:$0xff] %vm3136_vm3, %v4317_v25  ;;  %v4099_v6 = vpop.f32.mrb[54].mxu1 }
 0x5fd   : > { %v4318_v15 = vadd.f32 %v4099_v6, %v378_v4  ;;  %v3055_v13 = vpop.f32.mrb[55].mxu1 }
 0x5fe   : > { %v4319_v50 = vadd.f32 %v3055_v13, %v377_v27 }
 0x5ff   : > { %3160 = vst.msk [vmem:[%s6130_s23 + $0xb8] sm:$0xff] %vm3136_vm3, %v4318_v15 }
 0x600   : > { %3159 = vst.msk [vmem:[%s6130_s23 + $0xb0] sm:$0xff] %vm3136_vm3, %v4319_v50  ;;  %v4102_v47 = vpop.f32.mrb[56].mxu1 }
 0x601   : > { %v4320_v34 = vadd.f32 %v4102_v47, %v380_v0  ;;  %v3065_v3 = vpop.f32.mrb[57].mxu1 }
 0x602   : > { %v4321_v21 = vadd.f32 %v3065_v3, %v379_v59 }
 0x603   : > { %3162 = vst.msk [vmem:[%s6130_s23 + $0xc8] sm:$0xff] %vm3136_vm3, %v4320_v34 }
 0x604   : > { %3161 = vst.msk [vmem:[%s6130_s23 + $0xc0] sm:$0xff] %vm3136_vm3, %v4321_v21  ;;  %v4105_v2 = vpop.f32.mrb[58].mxu1 }
 0x605   : > { %v4322_v29 = vadd.f32 %v4105_v2, %v382_v19  ;;  %v3075_v30 = vpop.f32.mrb[59].mxu1 }
 0x606   : > { %v4323_v23 = vadd.f32 %v3075_v30, %v381_v42 }
 0x607   : > { %3164 = vst.msk [vmem:[%s6130_s23 + $0xd8] sm:$0xff] %vm3136_vm3, %v4322_v29 }
 0x608   : > { %3163 = vst.msk [vmem:[%s6130_s23 + $0xd0] sm:$0xff] %vm3136_vm3, %v4323_v23  ;;  %v4108_v62 = vpop.f32.mrb[60].mxu1 }
 0x609   : > { %v4324_v43 = vadd.f32 %v4108_v62, %v384_v17  ;;  %v3085_v55 = vpop.f32.mrb[61].mxu1 }
 0x60a   : > { %v4325_v33 = vadd.f32 %v3085_v55, %v383_v8 }
 0x60b   : > { %3166 = vst.msk [vmem:[%s6130_s23 + $0xe8] sm:$0xff] %vm3136_vm3, %v4324_v43 }
 0x60c   : > { %3165 = vst.msk [vmem:[%s6130_s23 + $0xe0] sm:$0xff] %vm3136_vm3, %v4325_v33  ;;  %v4111_v38 = vpop.f32.mrb[62].mxu1 }
 0x60d   : > { %v4326_v28 = vadd.f32 %v4111_v38, %v386_v61  ;;  %v3095_v11 = vpop.f32.mrb[63].mxu1 }
 0x60e   : > { %v4327_v18 = vadd.f32 %v3095_v11, %v385_v57 }
 0x60f   : > { %3168 = vst.msk [vmem:[%s6130_s23 + $0xf8] sm:$0xff] %vm3136_vm3, %v4326_v28 }
 0x610   : > { %3167 = vst.msk [vmem:[%s6130_s23 + $0xf0] sm:$0xff] %vm3136_vm3, %v4327_v18 }
 0x611 PF: > { %s15_s18 = sadd.s32 1, %s4769_s18  }
 0x612   : > { %p12_p4 = scmp.ge.s32.totalorder %s15_s18, 4  }
 0x614   :  { %14 = sbr.rel (!%p12_p4) target bundleno = 1 (0x1), region = 76 }

// kernel: block_forward.21
= control target key start
LH: loop header
LB: loop body
LE: loop exit
PB: predicated region body
PF: predicated region fallthrough
CT: control target
= control target key end

     0   :  { %s899_s15 = smov 0   ;;  %s1143_s0 = inlined_call_operand.vmem [shape: f32[512,128], index: 0, kind: input, shape index: {}]   ;;  %s1144_s1 = inlined_call_operand.vmem [shape: f32[128,32], index: 1, kind: input, shape index: {}]   ;;  %s1145_s2 = inlined_call_operand.vmem [shape: f32[1,32], index: 2, kind: input, shape index: {}]   ;;  %s1146_s3 = inlined_call_operand.vmem [shape: f32[512,32], index: 3, kind: input, shape index: {}]   ;;  %s1147_s4 = inlined_call_operand.vmem [shape: f32[512,32], index: 4, kind: output, shape index: {}]  }
   0x1 LB: > { %s668_s16 = sadd.s32 4294967295, %s872_s15   ;;  %p672_p0 = scmp.ge.s32.totalorder %s872_s15, 1  ;;  %s872_s15 = sphi %s899_s15, %s14_s15  }
   0x2   : > { %p174_p1 = scmp.lt.s32.totalorder %s872_s15, 3 }
   0x4   : > { %p175_p2 = pnand %p672_p0, %p174_p1 }
   0x5   : > { %v255_v0 = vld [vmem:[%s1144_s1] sm:$0xff] (!%p175_p2)  ;;  %v256_v1 = vld [vmem:[%s1144_s1 + $0x8] sm:$0xff] (!%p175_p2)  ;;  %v257_v2 = vld [vmem:[%s1144_s1 + $0x10] sm:$0xff] (!%p175_p2)  ;;  %s673_s23 = sshll.u32 (!%p175_p2), %s668_s16, 5  ;;  %vm567_vm0 = vcmask (!%p175_p2), 261120  }
   0x6   : > { %178 = sbr.rel (%p175_p2) target bundleno = 287 (0x11f), region = 36  ;;  %v810_v3 = vpack.c.bf16 (!%p175_p2), %v256_v1, %v255_v0  ;;  %v258_v4 = vld [vmem:[%s1144_s1 + $0x18] sm:$0xff] (!%p175_p2)  ;;  %p206_p3 = scmp.lt.s32.totalorder (!%p175_p2), %s673_s23, 63  ;;  %v259_v6 = vld [vmem:[%s1144_s1 + $0x20] sm:$0xff] (!%p175_p2)  ;;  %v260_v7 = vld [vmem:[%s1144_s1 + $0x28] sm:$0xff] (!%p175_p2) }
   0x7   : > { %v814_v5 = vpack.c.bf16 (!%p175_p2), %v258_v4, %v257_v2  ;;  %v818_v8 = vpack.c.bf16 (!%p175_p2), %v260_v7, %v259_v6  ;;  %v261_v9 = vld [vmem:[%s1144_s1 + $0x30] sm:$0xff] (!%p175_p2)  ;;  %v262_v10 = vld [vmem:[%s1144_s1 + $0x38] sm:$0xff] (!%p175_p2)  ;;  %v263_v14 = vld [vmem:[%s1144_s1 + $0x40] sm:$0xff] (!%p175_p2) }
   0x8   : > { %811 = vmatprep.subr.bf16.mxu0 (!%p175_p2), %v810_v3  ;;  %842 = vmatprep.subr.bf16.mxu1 (!%p175_p2), %v810_v3  ;;  %v822_v13 = vpack.c.bf16 (!%p175_p2), %v262_v10, %v261_v9  ;;  %v264_v15 = vld [vmem:[%s1144_s1 + $0x48] sm:$0xff] (!%p175_p2)  ;;  %v265_v17 = vld [vmem:[%s1144_s1 + $0x50] sm:$0xff] (!%p175_p2)  ;;  %v266_v18 = vld [vmem:[%s1144_s1 + $0x58] sm:$0xff] (!%p175_p2) }
   0x9   : > { %813 = vmatpush3.bf16.msra.mxu0 (!%p175_p2), %v810_v3  ;;  %850 = vmatpush3.bf16.msra.mxu1 (!%p175_p2), %v810_v3  ;;  %v826_v16 = vpack.c.bf16 (!%p175_p2), %v264_v15, %v263_v14  ;;  %v830_v19 = vpack.c.bf16 (!%p175_p2), %v266_v18, %v265_v17  ;;  %v267_v20 = vld [vmem:[%s1144_s1 + $0x60] sm:$0xff] (!%p175_p2)  ;;  %v268_v21 = vld [vmem:[%s1144_s1 + $0x68] sm:$0xff] (!%p175_p2)  ;;  %v269_v23 = vld [vmem:[%s1144_s1 + $0x70] sm:$0xff] (!%p175_p2) }
   0xa   : > { %815 = vmatprep.subr.bf16.mxu0 (!%p175_p2), %v814_v5  ;;  %843 = vmatprep.subr.bf16.mxu1 (!%p175_p2), %v814_v5  ;;  %v834_v22 = vpack.c.bf16 (!%p175_p2), %v268_v21, %v267_v20  ;;  %v270_v24 = vld [vmem:[%s1144_s1 + $0x78] sm:$0xff] (!%p175_p2)  ;;  %v1004_v56 = vld [vmem:[%s1145_s2] ss:$0 sm:$0xff] (!%p175_p2) }
   0xb   : > { %v838_v25 = vpack.c.bf16 (!%p175_p2), %v270_v24, %v269_v23 }
   0xd   : > { %s1149_s23 = smov (!%p206_p3, %s673_s23), 63  ;;  %817 = vmatpush3.bf16.msra.mxu0 %v814_v5  ;;  %851 = vmatpush3.bf16.msra.mxu1 %v814_v5 }
   0xe   : > { %s925_s30 = sshll.u32 %s1149_s23, 3  ;;  %819 = vmatprep.subr.bf16.mxu0 %v818_v8  ;;  %844 = vmatprep.subr.bf16.mxu1 %v818_v8 }
   0xf   : > { %s937_s11 = scalar_lea.vmem %s1143_s0, %s925_s30  ;;  %s999_s6 = scalar_lea.vmem %s1146_s3, %s925_s30 }
  0x10   : > { %v223_v11 = vld [vmem:[%s937_s11] sm:$0xff]  ;;  %v224_v26 = vld [vmem:[%s937_s11 + $0x8] sm:$0xff]  ;;  %v225_v28 = vld [vmem:[%s937_s11 + $0x10] sm:$0xff] }
  0x11   : > { %v239_v12 = vld [vmem:[%s937_s11 + $0x80] sm:$0xff]  ;;  %762 = vmatprep.mubr.f32.mxu0 %v223_v11  ;;  %821 = vmatpush3.bf16.msra.mxu0 %v818_v8  ;;  %v240_v27 = vld [vmem:[%s937_s11 + $0x88] sm:$0xff]  ;;  %v241_v29 = vld [vmem:[%s937_s11 + $0x90] sm:$0xff] }
  0x12   : > { %786 = vmatprep.mubr.f32.mxu1 %v239_v12  ;;  %852 = vmatpush3.bf16.msra.mxu1 %v818_v8  ;;  %v226_v30 = vld [vmem:[%s937_s11 + $0x18] sm:$0xff]  ;;  %v227_v32 = vld [vmem:[%s937_s11 + $0x20] sm:$0xff]  ;;  %v228_v34 = vld [vmem:[%s937_s11 + $0x28] sm:$0xff] }
  0x13   : > { %823 = vmatprep.subr.bf16.mxu0 %v822_v13  ;;  %845 = vmatprep.subr.bf16.mxu1 %v822_v13  ;;  %v242_v31 = vld [vmem:[%s937_s11 + $0x98] sm:$0xff]  ;;  %v243_v33 = vld [vmem:[%s937_s11 + $0xa0] sm:$0xff]  ;;  %v244_v35 = vld [vmem:[%s937_s11 + $0xa8] sm:$0xff] }
  0x14   : > { %v229_v36 = vld [vmem:[%s937_s11 + $0x30] sm:$0xff]  ;;  %v230_v38 = vld [vmem:[%s937_s11 + $0x38] sm:$0xff]  ;;  %v231_v40 = vld [vmem:[%s937_s11 + $0x40] sm:$0xff] }
  0x15   : > { %825 = vmatpush3.bf16.msra.mxu0 %v822_v13  ;;  %v245_v37 = vld [vmem:[%s937_s11 + $0xb0] sm:$0xff]  ;;  %v246_v39 = vld [vmem:[%s937_s11 + $0xb8] sm:$0xff]  ;;  %v247_v41 = vld [vmem:[%s937_s11 + $0xc0] sm:$0xff] }
  0x16   : > { %853 = vmatpush3.bf16.msra.mxu1 %v822_v13  ;;  %827 = vmatprep.subr.bf16.mxu0 %v826_v16  ;;  %v232_v42 = vld [vmem:[%s937_s11 + $0x48] sm:$0xff]  ;;  %v233_v44 = vld [vmem:[%s937_s11 + $0x50] sm:$0xff]  ;;  %v234_v46 = vld [vmem:[%s937_s11 + $0x58] sm:$0xff] }
  0x17   : > { %846 = vmatprep.subr.bf16.mxu1 %v826_v16  ;;  %v248_v43 = vld [vmem:[%s937_s11 + $0xc8] sm:$0xff]  ;;  %v249_v45 = vld [vmem:[%s937_s11 + $0xd0] sm:$0xff]  ;;  %v250_v47 = vld [vmem:[%s937_s11 + $0xd8] sm:$0xff] }
  0x18   : > { %v235_v48 = vld [vmem:[%s937_s11 + $0x60] sm:$0xff]  ;;  %v236_v50 = vld [vmem:[%s937_s11 + $0x68] sm:$0xff]  ;;  %v237_v52 = vld [vmem:[%s937_s11 + $0x70] sm:$0xff] }
  0x19   : > { %829 = vmatpush3.bf16.msra.mxu0 %v826_v16  ;;  %v251_v49 = vld [vmem:[%s937_s11 + $0xe0] sm:$0xff]  ;;  %v252_v51 = vld [vmem:[%s937_s11 + $0xe8] sm:$0xff]  ;;  %v253_v53 = vld [vmem:[%s937_s11 + $0xf0] sm:$0xff] }
  0x1a   : > { %854 = vmatpush3.bf16.msra.mxu1 %v826_v16  ;;  %831 = vmatprep.subr.bf16.mxu0 %v830_v19  ;;  %v238_v54 = vld [vmem:[%s937_s11 + $0x78] sm:$0xff]  ;;  %v504_v58 = vld [vmem:[%s999_s6 + $0x8] sm:$0xff]  ;;  %v503_v0 = vld [vmem:[%s999_s6] sm:$0xff] }
  0x1b   : > { %847 = vmatprep.subr.bf16.mxu1 %v830_v19  ;;  %v254_v55 = vld [vmem:[%s937_s11 + $0xf8] sm:$0xff]  ;;  %v520_v60 = vld [vmem:[%s999_s6 + $0x88] sm:$0xff]  ;;  %v519_v2 = vld [vmem:[%s999_s6 + $0x80] sm:$0xff]  ;;  %s1016_s11 = scalar_lea.vmem %s1147_s4, %s925_s30 }
  0x1c   : > { %v506_v10 = vld [vmem:[%s999_s6 + $0x18] sm:$0xff]  ;;  %v505_v16 = vld [vmem:[%s999_s6 + $0x10] sm:$0xff] }
  0x1d   : > { %833 = vmatpush3.bf16.msra.mxu0 %v830_v19  ;;  %v522_v12 = vld [vmem:[%s999_s6 + $0x98] sm:$0xff]  ;;  %v521_v18 = vld [vmem:[%s999_s6 + $0x90] sm:$0xff] }
  0x1e   : > { %855 = vmatpush3.bf16.msra.mxu1 %v830_v19  ;;  %835 = vmatprep.subr.bf16.mxu0 %v834_v22 }
  0x1f   : > { %848 = vmatprep.subr.bf16.mxu1 %v834_v22 }
  0x21   : > { %837 = vmatpush3.bf16.msra.mxu0 %v834_v22 }
  0x22   : > { %856 = vmatpush3.bf16.msra.mxu1 %v834_v22  ;;  %839 = vmatprep.subr.bf16.mxu0 %v838_v25 }
  0x23   : > { %849 = vmatprep.subr.bf16.mxu1 %v838_v25 }
  0x25   : > { %841 = vmatpush3.bf16.msra.mxu0 %v838_v25 }
  0x26   : > { %857 = vmatpush3.bf16.msra.mxu1 %v838_v25 }
  0x28   : > { %763 = vmatmul.mubr.f32.vlgmr.msra.gmra.mrb[0].mxu0 %v224_v26  ;;  %v508_v26 = vld [vmem:[%s999_s6 + $0x28] sm:$0xff] }
  0x29   : > { %787 = vmatmul.mubr.f32.vlgmr.msra.gmra.mrb[0].mxu1 %v240_v27  ;;  %765 = vmatprep.mubr.f32.mxu0 %v225_v28  ;;  %v524_v28 = vld [vmem:[%s999_s6 + $0xa8] sm:$0xff] }
  0x2a   : > { %789 = vmatprep.mubr.f32.mxu1 %v241_v29 }
  0x2c   : > { %766 = vmatmul.mubr.f32.gmra.mrb[2].mxu0 %v226_v30 }
  0x2d   : > { %790 = vmatmul.mubr.f32.gmra.mrb[2].mxu1 %v242_v31  ;;  %768 = vmatprep.mubr.f32.mxu0 %v227_v32  ;;  %v507_v32 = vld [vmem:[%s999_s6 + $0x20] sm:$0xff] }
  0x2e   : > { %792 = vmatprep.mubr.f32.mxu1 %v243_v33 }
  0x30   : > { %769 = vmatmul.mubr.f32.gmra.mrb[4].mxu0 %v228_v34  ;;  %v523_v34 = vld [vmem:[%s999_s6 + $0xa0] sm:$0xff] }
  0x31   : > { %793 = vmatmul.mubr.f32.gmra.mrb[4].mxu1 %v244_v35  ;;  %771 = vmatprep.mubr.f32.mxu0 %v229_v36 }
  0x32   : > { %795 = vmatprep.mubr.f32.mxu1 %v245_v37 }
  0x34   : > { %772 = vmatmul.mubr.f32.gmra.mrb[6].mxu0 %v230_v38 }
  0x35   : > { %796 = vmatmul.mubr.f32.gmra.mrb[6].mxu1 %v246_v39  ;;  %774 = vmatprep.mubr.f32.mxu0 %v231_v40 }
  0x36   : > { %798 = vmatprep.mubr.f32.mxu1 %v247_v41 }
  0x38   : > { %775 = vmatmul.mubr.f32.gmra.mrb[8].mxu0 %v232_v42  ;;  %v510_v42 = vld [vmem:[%s999_s6 + $0x38] sm:$0xff] }
  0x39   : > { %799 = vmatmul.mubr.f32.gmra.mrb[8].mxu1 %v248_v43  ;;  %777 = vmatprep.mubr.f32.mxu0 %v233_v44  ;;  %v526_v44 = vld [vmem:[%s999_s6 + $0xb8] sm:$0xff] }
  0x3a   : > { %801 = vmatprep.mubr.f32.mxu1 %v249_v45 }
  0x3c   : > { %778 = vmatmul.mubr.f32.gmra.mrb[10].mxu0 %v234_v46 }
  0x3d   : > { %802 = vmatmul.mubr.f32.gmra.mrb[10].mxu1 %v250_v47  ;;  %780 = vmatprep.mubr.f32.mxu0 %v235_v48  ;;  %v509_v48 = vld [vmem:[%s999_s6 + $0x30] sm:$0xff] }
  0x3e   : > { %804 = vmatprep.mubr.f32.mxu1 %v251_v49 }
  0x40   : > { %781 = vmatmul.mubr.f32.gmra.mrb[12].mxu0 %v236_v50  ;;  %v525_v50 = vld [vmem:[%s999_s6 + $0xb0] sm:$0xff] }
  0x41   : > { %805 = vmatmul.mubr.f32.gmra.mrb[12].mxu1 %v252_v51  ;;  %783 = vmatprep.mubr.f32.mxu0 %v237_v52 }
  0x42   : > { %807 = vmatprep.mubr.f32.mxu1 %v253_v53 }
  0x44   : > { %784 = vmatmul.mubr.f32.gmra.mrb[14].mxu0 %v238_v54 }
  0x45   : > { %808 = vmatmul.mubr.f32.gmra.mrb[14].mxu1 %v254_v55 }
  0xfb   : > { %v764_v57 = vpop.f32.mrb[0].mxu0 }
  0xfc   : > { %v788_v59 = vpop.f32.mrb[0].mxu1  ;;  %v350_v61 = vadd.f32 %v764_v57, %v1004_v56  ;;  %v344_v63 = vpop.f32.mrb[1].mxu0 }
  0xfd   : > { %v430_v62 = vadd.f32 %v788_v59, %v1004_v56  ;;  %v424_v1 = vpop.f32.mrb[1].mxu1  ;;  %v345_v3 = vadd.f32 %v1004_v56, %v344_v63  ;;  %v512_v59 = vld [vmem:[%s999_s6 + $0x48] sm:$0xff] }
  0xfe   : > { %v425_v4 = vadd.f32 %v1004_v56, %v424_v1  ;;  %v536_v5 = vadd.f32 %v504_v58, %v350_v61  ;;  %v528_v61 = vld [vmem:[%s999_s6 + $0xc8] sm:$0xff]  ;;  %v511_v1 = vld [vmem:[%s999_s6 + $0x40] sm:$0xff] }
  0xff   : > { %v552_v6 = vadd.f32 %v520_v60, %v430_v62  ;;  %v535_v7 = vadd.f32 %v503_v0, %v345_v3  ;;  %v767_v9 = vpop.f32.mrb[2].mxu0  ;;  %v527_v3 = vld [vmem:[%s999_s6 + $0xc0] sm:$0xff] }
 0x100   : > { %v551_v8 = vadd.f32 %v519_v2, %v425_v4  ;;  %v791_v11 = vpop.f32.mrb[2].mxu1  ;;  %569 = vst.msk [vmem:[%s1016_s11 + $0x8] sm:$0xff] %vm567_vm0, %v536_v5  ;;  %v360_v13 = vadd.f32 %v767_v9, %v1004_v56  ;;  %v354_v15 = vpop.f32.mrb[3].mxu0 }
 0x101   : > { %585 = vst.msk [vmem:[%s1016_s11 + $0x88] sm:$0xff] %vm567_vm0, %v552_v6  ;;  %v440_v14 = vadd.f32 %v791_v11, %v1004_v56  ;;  %v434_v17 = vpop.f32.mrb[3].mxu1  ;;  %568 = vst.msk [vmem:[%s1016_s11] sm:$0xff] %vm567_vm0, %v535_v7  ;;  %v355_v19 = vadd.f32 %v1004_v56, %v354_v15  ;;  %v514_v11 = vld [vmem:[%s999_s6 + $0x58] sm:$0xff] }
 0x102   : > { %584 = vst.msk [vmem:[%s1016_s11 + $0x80] sm:$0xff] %vm567_vm0, %v551_v8  ;;  %v435_v20 = vadd.f32 %v1004_v56, %v434_v17  ;;  %v538_v21 = vadd.f32 %v506_v10, %v360_v13  ;;  %v530_v13 = vld [vmem:[%s999_s6 + $0xd8] sm:$0xff]  ;;  %v513_v17 = vld [vmem:[%s999_s6 + $0x50] sm:$0xff] }
 0x103   : > { %v554_v22 = vadd.f32 %v522_v12, %v440_v14  ;;  %v537_v23 = vadd.f32 %v505_v16, %v355_v19  ;;  %v770_v25 = vpop.f32.mrb[4].mxu0  ;;  %v529_v19 = vld [vmem:[%s999_s6 + $0xd0] sm:$0xff] }
 0x104   : > { %v553_v24 = vadd.f32 %v521_v18, %v435_v20  ;;  %v794_v27 = vpop.f32.mrb[4].mxu1  ;;  %571 = vst.msk [vmem:[%s1016_s11 + $0x18] sm:$0xff] %vm567_vm0, %v538_v21  ;;  %v370_v29 = vadd.f32 %v770_v25, %v1004_v56  ;;  %v364_v31 = vpop.f32.mrb[5].mxu0 }
 0x105   : > { %587 = vst.msk [vmem:[%s1016_s11 + $0x98] sm:$0xff] %vm567_vm0, %v554_v22  ;;  %v450_v30 = vadd.f32 %v794_v27, %v1004_v56  ;;  %v444_v33 = vpop.f32.mrb[5].mxu1  ;;  %570 = vst.msk [vmem:[%s1016_s11 + $0x10] sm:$0xff] %vm567_vm0, %v537_v23  ;;  %v365_v35 = vadd.f32 %v1004_v56, %v364_v31  ;;  %v516_v27 = vld [vmem:[%s999_s6 + $0x68] sm:$0xff] }
 0x106   : > { %586 = vst.msk [vmem:[%s1016_s11 + $0x90] sm:$0xff] %vm567_vm0, %v553_v24  ;;  %v445_v36 = vadd.f32 %v1004_v56, %v444_v33  ;;  %v540_v37 = vadd.f32 %v508_v26, %v370_v29  ;;  %v532_v29 = vld [vmem:[%s999_s6 + $0xe8] sm:$0xff]  ;;  %v515_v33 = vld [vmem:[%s999_s6 + $0x60] sm:$0xff] }
 0x107   : > { %v556_v38 = vadd.f32 %v524_v28, %v450_v30  ;;  %v539_v39 = vadd.f32 %v507_v32, %v365_v35  ;;  %v773_v41 = vpop.f32.mrb[6].mxu0  ;;  %v531_v35 = vld [vmem:[%s999_s6 + $0xe0] sm:$0xff] }
 0x108   : > { %v555_v40 = vadd.f32 %v523_v34, %v445_v36  ;;  %v797_v43 = vpop.f32.mrb[6].mxu1  ;;  %573 = vst.msk [vmem:[%s1016_s11 + $0x28] sm:$0xff] %vm567_vm0, %v540_v37  ;;  %v380_v45 = vadd.f32 %v773_v41, %v1004_v56  ;;  %v374_v47 = vpop.f32.mrb[7].mxu0 }
 0x109   : > { %589 = vst.msk [vmem:[%s1016_s11 + $0xa8] sm:$0xff] %vm567_vm0, %v556_v38  ;;  %v460_v46 = vadd.f32 %v797_v43, %v1004_v56  ;;  %v454_v49 = vpop.f32.mrb[7].mxu1  ;;  %572 = vst.msk [vmem:[%s1016_s11 + $0x20] sm:$0xff] %vm567_vm0, %v539_v39  ;;  %v375_v51 = vadd.f32 %v1004_v56, %v374_v47  ;;  %v518_v43 = vld [vmem:[%s999_s6 + $0x78] sm:$0xff] }
 0x10a   : > { %588 = vst.msk [vmem:[%s1016_s11 + $0xa0] sm:$0xff] %vm567_vm0, %v555_v40  ;;  %v455_v52 = vadd.f32 %v1004_v56, %v454_v49  ;;  %v542_v53 = vadd.f32 %v510_v42, %v380_v45  ;;  %v534_v45 = vld [vmem:[%s999_s6 + $0xf8] sm:$0xff]  ;;  %v517_v49 = vld [vmem:[%s999_s6 + $0x70] sm:$0xff] }
 0x10b   : > { %v558_v54 = vadd.f32 %v526_v44, %v460_v46  ;;  %v541_v55 = vadd.f32 %v509_v48, %v375_v51  ;;  %v776_v58 = vpop.f32.mrb[8].mxu0  ;;  %v533_v51 = vld [vmem:[%s999_s6 + $0xf0] sm:$0xff] }
 0x10c   : > { %v557_v57 = vadd.f32 %v525_v50, %v455_v52  ;;  %v800_v60 = vpop.f32.mrb[8].mxu1  ;;  %575 = vst.msk [vmem:[%s1016_s11 + $0x38] sm:$0xff] %vm567_vm0, %v542_v53  ;;  %v390_v62 = vadd.f32 %v776_v58, %v1004_v56  ;;  %v384_v0 = vpop.f32.mrb[9].mxu0 }
 0x10d   : > { %591 = vst.msk [vmem:[%s1016_s11 + $0xb8] sm:$0xff] %vm567_vm0, %v558_v54  ;;  %v470_v63 = vadd.f32 %v800_v60, %v1004_v56  ;;  %v464_v2 = vpop.f32.mrb[9].mxu1  ;;  %574 = vst.msk [vmem:[%s1016_s11 + $0x30] sm:$0xff] %vm567_vm0, %v541_v55  ;;  %v385_v4 = vadd.f32 %v1004_v56, %v384_v0 }
 0x10e   : > { %590 = vst.msk [vmem:[%s1016_s11 + $0xb0] sm:$0xff] %vm567_vm0, %v557_v57  ;;  %v465_v5 = vadd.f32 %v1004_v56, %v464_v2  ;;  %v544_v6 = vadd.f32 %v512_v59, %v390_v62 }
 0x10f   : > { %v560_v7 = vadd.f32 %v528_v61, %v470_v63  ;;  %v543_v8 = vadd.f32 %v511_v1, %v385_v4  ;;  %v779_v10 = vpop.f32.mrb[10].mxu0 }
 0x110   : > { %v559_v9 = vadd.f32 %v527_v3, %v465_v5  ;;  %v803_v12 = vpop.f32.mrb[10].mxu1  ;;  %577 = vst.msk [vmem:[%s1016_s11 + $0x48] sm:$0xff] %vm567_vm0, %v544_v6  ;;  %v400_v14 = vadd.f32 %v779_v10, %v1004_v56  ;;  %v394_v16 = vpop.f32.mrb[11].mxu0 }
 0x111   : > { %593 = vst.msk [vmem:[%s1016_s11 + $0xc8] sm:$0xff] %vm567_vm0, %v560_v7  ;;  %v480_v15 = vadd.f32 %v803_v12, %v1004_v56  ;;  %v474_v18 = vpop.f32.mrb[11].mxu1  ;;  %576 = vst.msk [vmem:[%s1016_s11 + $0x40] sm:$0xff] %vm567_vm0, %v543_v8  ;;  %v395_v20 = vadd.f32 %v1004_v56, %v394_v16 }
 0x112   : > { %592 = vst.msk [vmem:[%s1016_s11 + $0xc0] sm:$0xff] %vm567_vm0, %v559_v9  ;;  %v475_v21 = vadd.f32 %v1004_v56, %v474_v18  ;;  %v546_v22 = vadd.f32 %v514_v11, %v400_v14 }
 0x113   : > { %v562_v23 = vadd.f32 %v530_v13, %v480_v15  ;;  %v545_v24 = vadd.f32 %v513_v17, %v395_v20  ;;  %v782_v26 = vpop.f32.mrb[12].mxu0 }
 0x114   : > { %v561_v25 = vadd.f32 %v529_v19, %v475_v21  ;;  %v806_v28 = vpop.f32.mrb[12].mxu1  ;;  %579 = vst.msk [vmem:[%s1016_s11 + $0x58] sm:$0xff] %vm567_vm0, %v546_v22  ;;  %v410_v30 = vadd.f32 %v782_v26, %v1004_v56  ;;  %v404_v32 = vpop.f32.mrb[13].mxu0 }
 0x115   : > { %595 = vst.msk [vmem:[%s1016_s11 + $0xd8] sm:$0xff] %vm567_vm0, %v562_v23  ;;  %v490_v31 = vadd.f32 %v806_v28, %v1004_v56  ;;  %v484_v34 = vpop.f32.mrb[13].mxu1  ;;  %578 = vst.msk [vmem:[%s1016_s11 + $0x50] sm:$0xff] %vm567_vm0, %v545_v24  ;;  %v405_v36 = vadd.f32 %v1004_v56, %v404_v32 }
 0x116   : > { %594 = vst.msk [vmem:[%s1016_s11 + $0xd0] sm:$0xff] %vm567_vm0, %v561_v25  ;;  %v485_v37 = vadd.f32 %v1004_v56, %v484_v34  ;;  %v548_v38 = vadd.f32 %v516_v27, %v410_v30 }
 0x117   : > { %v564_v39 = vadd.f32 %v532_v29, %v490_v31  ;;  %v547_v40 = vadd.f32 %v515_v33, %v405_v36  ;;  %v785_v42 = vpop.f32.mrb[14].mxu0 }
 0x118   : > { %v563_v41 = vadd.f32 %v531_v35, %v485_v37  ;;  %v809_v44 = vpop.f32.mrb[14].mxu1  ;;  %581 = vst.msk [vmem:[%s1016_s11 + $0x68] sm:$0xff] %vm567_vm0, %v548_v38  ;;  %v420_v46 = vadd.f32 %v785_v42, %v1004_v56  ;;  %v414_v48 = vpop.f32.mrb[15].mxu0 }
 0x119   : > { %597 = vst.msk [vmem:[%s1016_s11 + $0xe8] sm:$0xff] %vm567_vm0, %v564_v39  ;;  %v500_v47 = vadd.f32 %v809_v44, %v1004_v56  ;;  %v494_v50 = vpop.f32.mrb[15].mxu1  ;;  %580 = vst.msk [vmem:[%s1016_s11 + $0x60] sm:$0xff] %vm567_vm0, %v547_v40  ;;  %v415_v52 = vadd.f32 %v1004_v56, %v414_v48 }
 0x11a   : > { %596 = vst.msk [vmem:[%s1016_s11 + $0xe0] sm:$0xff] %vm567_vm0, %v563_v41  ;;  %v495_v53 = vadd.f32 %v1004_v56, %v494_v50  ;;  %v550_v54 = vadd.f32 %v518_v43, %v420_v46 }
 0x11b   : > { %v566_v55 = vadd.f32 %v534_v45, %v500_v47  ;;  %v549_v57 = vadd.f32 %v517_v49, %v415_v52 }
 0x11c   : > { %v565_v58 = vadd.f32 %v533_v51, %v495_v53  ;;  %583 = vst.msk [vmem:[%s1016_s11 + $0x78] sm:$0xff] %vm567_vm0, %v550_v54 }
 0x11d   : > { %599 = vst.msk [vmem:[%s1016_s11 + $0xf8] sm:$0xff] %vm567_vm0, %v566_v55  ;;  %582 = vst.msk [vmem:[%s1016_s11 + $0x70] sm:$0xff] %vm567_vm0, %v549_v57 }
 0x11e   : > { %598 = vst.msk [vmem:[%s1016_s11 + $0xf0] sm:$0xff] %vm567_vm0, %v565_v58 }
 0x11f PF: > { %s14_s15 = sadd.s32 1, %s872_s15  }
 0x120   : > { %p11_p4 = scmp.ge.s32.totalorder %s14_s15, 4  }
 0x122   :  { %13 = sbr.rel (!%p11_p4) target bundleno = 1 (0x1), region = 69 }

// kernel: block_forward.20
= control target key start
LH: loop header
LB: loop body
LE: loop exit
PB: predicated region body
PF: predicated region fallthrough
CT: control target
= control target key end

     0   :  { %s1628_s12 = smov 0   ;;  %s2628_s0 = inlined_call_operand.vmem [shape: f32[2,18,18,128], index: 0, kind: input, shape index: {}]   ;;  %s2629_s1 = inlined_call_operand.vmem [shape: f32[9,128], index: 1, kind: input, shape index: {}]   ;;  %s2630_s2 = inlined_call_operand.vmem [shape: f32[1,128], index: 2, kind: input, shape index: {}]   ;;  %s2631_s3 = inlined_call_operand.vmem [shape: f32[2,16,16,128], index: 3, kind: output, shape index: {}]  }
   0x1 LB: > { %s1368_s13 = sadd.s32 4294967295, %s1606_s12   ;;  %p1372_p0 = scmp.ge.s32.totalorder %s1606_s12, 1  ;;  %s1606_s12 = sphi %s1628_s12, %s13_s12  }
   0x2   : > { %p137_p1 = scmp.lt.s32.totalorder %s1606_s12, 3 }
   0x4   : > { %p138_p2 = pnand %p1372_p0, %p137_p1 }
   0x5   : > { %p161_p3 = scmp.lt.s32.totalorder (!%p138_p2), %s1368_s13, 1  ;;  %v1642_v0 = vld [vmem:[%s2629_s1] ss:$0 sm:$0xff] (!%p138_p2)  ;;  %v1647_v1 = vld [vmem:[%s2629_s1 + $0x1] ss:$0 sm:$0xff] (!%p138_p2) }
   0x6   : > { %141 = sbr.rel (%p138_p2) target bundleno = 219 (0xdb), region = 32  ;;  %v1652_v2 = vld [vmem:[%s2629_s1 + $0x2] ss:$0 sm:$0xff] (!%p138_p2)  ;;  %v1657_v3 = vld [vmem:[%s2629_s1 + $0x3] ss:$0 sm:$0xff] (!%p138_p2) }
   0x7   : > { %v1662_v4 = vld [vmem:[%s2629_s1 + $0x4] ss:$0 sm:$0xff] (!%p138_p2)  ;;  %v1672_v5 = vld [vmem:[%s2629_s1 + $0x5] ss:$0 sm:$0xff] (!%p138_p2)  ;;  %v1677_v6 = vld [vmem:[%s2629_s1 + $0x6] ss:$0 sm:$0xff] (!%p138_p2) }
   0x8   : > { %v1682_v7 = vld [vmem:[%s2629_s1 + $0x7] ss:$0 sm:$0xff] (!%p138_p2)  ;;  %v1705_v22 = vld [vmem:[%s2629_s1 + $0x8] ss:$0 sm:$0xff] (!%p138_p2) }
   0xd   : > { %s2633_s13 = smov (!%p161_p3, %s1368_s13), 1 }
   0xe   : > { %s1581_s14 = smul.u32 432, %s2633_s13  ;;  %s1580_s11 = sshll.u32 %s2633_s13, 8 }
   0xf   : > { %s1849_s15 = scalar_lea.vmem %s2631_s3, %s1580_s11 }
  0x10   : > { %s1667_s27 = scalar_lea.vmem %s2628_s0, %s1581_s14 }
  0x11   : > { %v171_v8 = vld [vmem:[%s1667_s27] sm:$0xff]  ;;  %v1379_v14 = vld [vmem:[%s1667_s27 + $0x18] sm:$0xff]  ;;  %v1697_v20 = vld [vmem:[%s1667_s27 + $0x30] sm:$0xff] }
  0x12   : > { %v272_v9 = vld [vmem:[%s1667_s27 + $0x1] sm:$0xff]  ;;  %v208_v11 = vmul.f32 %v1642_v0, %v171_v8  ;;  %v1412_v15 = vld [vmem:[%s1667_s27 + $0x19] sm:$0xff]  ;;  %v512_v17 = vmul.f32 %v1657_v3, %v1379_v14  ;;  %v1700_v21 = vld [vmem:[%s1667_s27 + $0x31] sm:$0xff]  ;;  %v816_v24 = vmul.f32 %v1677_v6, %v1697_v20  ;;  %v210_v29 = vmul.f32 %v1379_v14, %v1642_v0 }
  0x13   : > { %v373_v10 = vld [vmem:[%s1667_s27 + $0x2] sm:$0xff]  ;;  %v309_v12 = vmul.f32 %v1647_v1, %v272_v9  ;;  %v1445_v16 = vld [vmem:[%s1667_s27 + $0x1a] sm:$0xff]  ;;  %v613_v18 = vmul.f32 %v1662_v4, %v1412_v15  ;;  %v917_v25 = vmul.f32 %v1682_v7, %v1700_v21  ;;  %v374_v28 = vld [vmem:[%s1667_s27 + $0xa] sm:$0xff]  ;;  %v311_v36 = vmul.f32 %v1412_v15, %v1647_v1 }
  0x14   : > { %v410_v13 = vmul.f32 %v1652_v2, %v373_v10  ;;  %v714_v19 = vmul.f32 %v1672_v5, %v1445_v16  ;;  %v172_v26 = vld [vmem:[%s1667_s27 + $0x8] sm:$0xff]  ;;  %v1544_v30 = vld [vmem:[%s1667_s27 + $0x32] sm:$0xff]  ;;  %v411_v33 = vmul.f32 %v1652_v2, %v374_v28  ;;  %v1380_v34 = vld [vmem:[%s1667_s27 + $0x20] sm:$0xff]  ;;  %v412_v51 = vmul.f32 %v1445_v16, %v1652_v2 }
  0x15   : > { %v341_v23 = vadd.f32 %v309_v12, %v208_v11  ;;  %v273_v27 = vld [vmem:[%s1667_s27 + $0x9] sm:$0xff]  ;;  %v209_v31 = vmul.f32 %v1642_v0, %v172_v26  ;;  %v1413_v35 = vld [vmem:[%s1667_s27 + $0x21] sm:$0xff]  ;;  %v1018_v38 = vmul.f32 %v1705_v22, %v1544_v30  ;;  %v513_v39 = vmul.f32 %v1657_v3, %v1380_v34  ;;  %v1727_v42 = vld [vmem:[%s1667_s27 + $0x38] sm:$0xff] }
  0x16   : > { %v310_v32 = vmul.f32 %v1647_v1, %v273_v27  ;;  %v614_v40 = vmul.f32 %v1662_v4, %v1413_v35  ;;  %v1446_v41 = vld [vmem:[%s1667_s27 + $0x22] sm:$0xff]  ;;  %v1730_v43 = vld [vmem:[%s1667_s27 + $0x39] sm:$0xff]  ;;  %v817_v46 = vmul.f32 %v1677_v6, %v1727_v42  ;;  %v343_v50 = vadd.f32 %v311_v36, %v210_v29  ;;  %v1759_v8 = vld [vmem:[%s1667_s27 + $0x4a] sm:$0xff] }
  0x17   : > { %v442_v37 = vadd.f32 %v410_v13, %v341_v23  ;;  %v715_v45 = vmul.f32 %v1672_v5, %v1446_v41  ;;  %v918_v47 = vmul.f32 %v1682_v7, %v1730_v43  ;;  %v1738_v49 = vld [vmem:[%s1667_s27 + $0x3a] sm:$0xff]  ;;  %v514_v52 = vmul.f32 %v1697_v20, %v1657_v3  ;;  %v1749_v57 = vld [vmem:[%s1667_s27 + $0x48] sm:$0xff]  ;;  %v1773_v26 = vld [vmem:[%s1667_s27 + $0x50] sm:$0xff] }
  0x18   : > { %v342_v44 = vadd.f32 %v310_v32, %v209_v31  ;;  %v1019_v54 = vmul.f32 %v1705_v22, %v1738_v49  ;;  %v615_v55 = vmul.f32 %v1700_v21, %v1662_v4  ;;  %v716_v56 = vmul.f32 %v1544_v30, %v1672_v5  ;;  %v1752_v58 = vld [vmem:[%s1667_s27 + $0x49] sm:$0xff]  ;;  %v1776_v27 = vld [vmem:[%s1667_s27 + $0x51] sm:$0xff] }
  0x19   : > { %v544_v48 = vadd.f32 %v512_v17, %v442_v37  ;;  %v444_v60 = vadd.f32 %v412_v51, %v343_v50  ;;  %v818_v61 = vmul.f32 %v1677_v6, %v1749_v57  ;;  %v919_v62 = vmul.f32 %v1682_v7, %v1752_v58 }
  0x1a   : > { %v443_v53 = vadd.f32 %v411_v33, %v342_v44  ;;  %v211_v9 = vmul.f32 %v1380_v34, %v1642_v0  ;;  %v312_v10 = vmul.f32 %v1413_v35, %v1647_v1  ;;  %v413_v11 = vmul.f32 %v1446_v41, %v1652_v2  ;;  %v1783_v34 = vld [vmem:[%s1667_s27 + $0x52] sm:$0xff]  ;;  %v1795_v41 = vld [vmem:[%s2630_s2] ss:$0 sm:$0xff] }
  0x1b   : > { %v645_v59 = vadd.f32 %v613_v18, %v544_v48  ;;  %v546_v13 = vadd.f32 %v514_v52, %v444_v60  ;;  %v1020_v14 = vmul.f32 %v1705_v22, %v1759_v8  ;;  %v515_v15 = vmul.f32 %v1727_v42, %v1657_v3 }
  0x1c   : > { %v545_v63 = vadd.f32 %v513_v39, %v443_v53  ;;  %v344_v17 = vadd.f32 %v312_v10, %v211_v9  ;;  %v616_v18 = vmul.f32 %v1730_v43, %v1662_v4  ;;  %v717_v23 = vmul.f32 %v1738_v49, %v1672_v5 }
  0x1d   : > { %v746_v12 = vadd.f32 %v714_v19, %v645_v59  ;;  %v647_v28 = vadd.f32 %v615_v55, %v546_v13  ;;  %v819_v29 = vmul.f32 %v1677_v6, %v1773_v26  ;;  %v920_v31 = vmul.f32 %v1682_v7, %v1776_v27 }
  0x1e   : > { %v646_v16 = vadd.f32 %v614_v40, %v545_v63  ;;  %v445_v33 = vadd.f32 %v413_v11, %v344_v17  ;;  %v212_v35 = vmul.f32 %v1697_v20, %v1642_v0  ;;  %v313_v36 = vmul.f32 %v1700_v21, %v1647_v1 }
  0x1f   : > { %v848_v19 = vadd.f32 %v816_v24, %v746_v12  ;;  %v748_v24 = vadd.f32 %v716_v56, %v647_v28  ;;  %v1021_v39 = vmul.f32 %v1705_v22, %v1783_v34  ;;  %v414_v40 = vmul.f32 %v1544_v30, %v1652_v2  ;;  %v1804_v30 = vld [vmem:[%s1667_s27 + $0x60] sm:$0xff] }
  0x20   : > { %v747_v32 = vadd.f32 %v715_v45, %v646_v16  ;;  %v547_v45 = vadd.f32 %v515_v15, %v445_v33  ;;  %v345_v48 = vadd.f32 %v313_v36, %v212_v35  ;;  %v516_v20 = vmul.f32 %v1749_v57, %v1657_v3  ;;  %v1809_v56 = vld [vmem:[%s1667_s27 + $0x61] sm:$0xff] }
  0x21   : > { %v949_v37 = vadd.f32 %v917_v25, %v848_v19  ;;  %v850_v25 = vadd.f32 %v818_v61, %v748_v24  ;;  %v617_v50 = vmul.f32 %v1752_v58, %v1662_v4  ;;  %v718_v51 = vmul.f32 %v1759_v8, %v1672_v5  ;;  %v1832_v33 = vld [vmem:[%s1667_s27 + $0x68] sm:$0xff] }
  0x22   : > { %v849_v44 = vadd.f32 %v817_v46, %v747_v32  ;;  %v648_v53 = vadd.f32 %v616_v18, %v547_v45  ;;  %v446_v55 = vadd.f32 %v414_v40, %v345_v48  ;;  %v820_v46 = vmul.f32 %v1677_v6, %v1804_v30  ;;  %v1840_v48 = vld [vmem:[%s1667_s27 + $0x69] sm:$0xff] }
  0x23   : > { %v1050_v21 = vadd.f32 %v1018_v38, %v949_v37  ;;  %v951_v59 = vadd.f32 %v919_v62, %v850_v25  ;;  %v921_v60 = vmul.f32 %v1682_v7, %v1809_v56  ;;  %v213_v61 = vmul.f32 %v1727_v42, %v1642_v0 }
  0x24   : > { %v950_v52 = vadd.f32 %v918_v47, %v849_v44  ;;  %v749_v9 = vadd.f32 %v717_v23, %v648_v53  ;;  %v548_v47 = vadd.f32 %v516_v20, %v446_v55  ;;  %v314_v10 = vmul.f32 %v1730_v43, %v1647_v1 }
  0x25   : > { %v1089_v38 = vadd.f32 %v1795_v41, %v1050_v21  ;;  %v1052_v12 = vadd.f32 %v1020_v14, %v951_v59  ;;  %v415_v13 = vmul.f32 %v1738_v49, %v1652_v2  ;;  %v517_v62 = vmul.f32 %v1773_v26, %v1657_v3 }
  0x26   : > { %v1051_v63 = vadd.f32 %v1019_v54, %v950_v52  ;;  %v851_v16 = vadd.f32 %v819_v29, %v749_v9  ;;  %v649_v42 = vadd.f32 %v617_v50, %v548_v47  ;;  %v1824_v54 = vld [vmem:[%s1667_s27 + $0x62] sm:$0xff]  ;;  %v346_v17 = vadd.f32 %v314_v10, %v213_v61  ;;  %v1857_v9 = vld [vmem:[%s1667_s27 + $0x6a] sm:$0xff] }
  0x27   : > { %v1121_v11 = vadd.f32 3.0, %v1089_v38  ;;  %v1091_v43 = vadd.f32 %v1795_v41, %v1052_v12  ;;  %v1022_v14 = vmul.f32 %v1705_v22, %v1824_v54  ;;  %v618_v49 = vmul.f32 %v1776_v27, %v1662_v4 }
  0x28   : > { %v1090_v15 = vadd.f32 %v1795_v41, %v1051_v63  ;;  %v952_v19 = vadd.f32 %v920_v31, %v851_v16  ;;  %v750_v28 = vadd.f32 %v718_v51, %v649_v42  ;;  %v447_v32 = vadd.f32 %v415_v13, %v346_v17 }
  0x29   : > { %v1153_v18 = vmax.f32 %v1121_v11, 0.0  ;;  %v1123_v35 = vadd.f32 3.0, %v1091_v43  ;;  %v719_v36 = vmul.f32 %v1783_v34, %v1672_v5  ;;  %v821_v37 = vmul.f32 %v1677_v6, %v1832_v33 }
  0x2a   : > { %v1122_v23 = vadd.f32 3.0, %v1090_v15  ;;  %v1053_v40 = vadd.f32 %v1021_v39, %v952_v19  ;;  %v852_v44 = vadd.f32 %v820_v46, %v750_v28  ;;  %v549_v45 = vadd.f32 %v517_v62, %v447_v32 }
  0x2b   : > { %v1185_v29 = vmin.f32 %v1153_v18, 6.0  ;;  %v1155_v20 = vmax.f32 %v1123_v35, 0.0  ;;  %v922_v21 = vmul.f32 %v1682_v7, %v1840_v48  ;;  %v214_v25 = vmul.f32 %v1749_v57, %v1642_v0 }
  0x2c   : > { %v1154_v24 = vmax.f32 %v1122_v23, 0.0  ;;  %v1092_v50 = vadd.f32 %v1795_v41, %v1053_v40  ;;  %v953_v51 = vadd.f32 %v921_v60, %v852_v44  ;;  %v650_v52 = vadd.f32 %v618_v49, %v549_v45  ;;  %v1888_v44 = vld [vmem:[%s1667_s27 + $0x7a] sm:$0xff] }
  0x2d   : > { %v1217_v31 = vmul.f32 %v1185_v29, %v1089_v38  ;;  %v1187_v55 = vmin.f32 %v1155_v20, 6.0  ;;  %v315_v46 = vmul.f32 %v1752_v58, %v1647_v1  ;;  %v416_v38 = vmul.f32 %v1759_v8, %v1652_v2 }
  0x2e   : > { %v1186_v39 = vmin.f32 %v1154_v24, 6.0  ;;  %v1124_v59 = vadd.f32 3.0, %v1092_v50  ;;  %v1054_v61 = vadd.f32 %v1022_v14, %v953_v51  ;;  %v751_v63 = vadd.f32 %v719_v36, %v650_v52  ;;  %v1871_v14 = vld [vmem:[%s1667_s27 + $0x78] sm:$0xff]  ;;  %v1900_v51 = vld [vmem:[%s1667_s27 + $0x80] sm:$0xff] }
  0x2f   : > { %v1249_v53 = vmul.f32 0.16666667, %v1217_v31  ;;  %v1219_v47 = vmul.f32 %v1187_v55, %v1091_v43  ;;  %v1023_v60 = vmul.f32 %v1705_v22, %v1857_v9  ;;  %v347_v10 = vadd.f32 %v315_v46, %v214_v25  ;;  %v1881_v36 = vld [vmem:[%s1667_s27 + $0x79] sm:$0xff] }
  0x30   : > { %v1218_v57 = vmul.f32 %v1186_v39, %v1090_v15  ;;  %v518_v58 = vmul.f32 %v1804_v30, %v1657_v3  ;;  %v1156_v8 = vmax.f32 %v1124_v59, 0.0  ;;  %v1093_v12 = vadd.f32 %v1795_v41, %v1054_v61  ;;  %v1908_v59 = vld [vmem:[%s1667_s27 + $0x81] sm:$0xff] }
  0x31   : > { %1281 = vst [vmem:[%s1849_s15] sm:$0xff] %v1249_v53  ;;  %v853_v13 = vadd.f32 %v821_v37, %v751_v63  ;;  %v1251_v62 = vmul.f32 0.16666667, %v1219_v47  ;;  %v448_v15 = vadd.f32 %v416_v38, %v347_v10  ;;  %v619_v16 = vmul.f32 %v1809_v56, %v1662_v4  ;;  %v1911_v61 = vld [vmem:[%s1667_s27 + $0x82] sm:$0xff] }
  0x32   : > { %v1250_v11 = vmul.f32 0.16666667, %v1218_v57  ;;  %v1188_v42 = vmin.f32 %v1156_v8, 6.0  ;;  %v1125_v17 = vadd.f32 3.0, %v1093_v12  ;;  %v720_v43 = vmul.f32 %v1824_v54, %v1672_v5 }
  0x33   : > { %v954_v18 = vadd.f32 %v922_v21, %v853_v13  ;;  %1283 = vst [vmem:[%s1849_s15 + $0x10] sm:$0xff] %v1251_v62  ;;  %v550_v49 = vadd.f32 %v518_v58, %v448_v15  ;;  %v822_v23 = vmul.f32 %v1677_v6, %v1871_v14  ;;  %v215_v19 = vmul.f32 %v1773_v26, %v1642_v0 }
  0x34   : > { %1282 = vst [vmem:[%s1849_s15 + $0x8] sm:$0xff] %v1250_v11  ;;  %v316_v28 = vmul.f32 %v1776_v27, %v1647_v1  ;;  %v1220_v32 = vmul.f32 %v1188_v42, %v1092_v50  ;;  %v1157_v29 = vmax.f32 %v1125_v17, 0.0  ;;  %v417_v37 = vmul.f32 %v1783_v34, %v1652_v2 }
  0x35   : > { %v1055_v35 = vadd.f32 %v1023_v60, %v954_v18  ;;  %v651_v24 = vadd.f32 %v619_v16, %v550_v49  ;;  %v923_v40 = vmul.f32 %v1682_v7, %v1881_v36  ;;  %v519_v27 = vmul.f32 %v1832_v33, %v1657_v3 }
  0x36   : > { %v348_v26 = vadd.f32 %v316_v28, %v215_v19  ;;  %v1252_v45 = vmul.f32 0.16666667, %v1220_v32  ;;  %v1189_v31 = vmin.f32 %v1157_v29, 6.0  ;;  %v1024_v21 = vmul.f32 %v1705_v22, %v1888_v44  ;;  %v1941_v28 = vld [vmem:[%s1667_s27 + $0x92] sm:$0xff] }
  0x37   : > { %v1094_v20 = vadd.f32 %v1795_v41, %v1055_v35  ;;  %v752_v34 = vadd.f32 %v720_v43, %v651_v24  ;;  %v620_v39 = vmul.f32 %v1840_v48, %v1662_v4  ;;  %v721_v50 = vmul.f32 %v1857_v9, %v1672_v5  ;;  %v1934_v43 = vld [vmem:[%s1667_s27 + $0x91] sm:$0xff] }
  0x38   : > { %v449_v25 = vadd.f32 %v417_v37, %v348_v26  ;;  %1284 = vst [vmem:[%s1849_s15 + $0x18] sm:$0xff] %v1252_v45  ;;  %v1221_v52 = vmul.f32 %v1189_v31, %v1093_v12  ;;  %v823_v55 = vmul.f32 %v1677_v6, %v1900_v51  ;;  %v216_v46 = vmul.f32 %v1804_v30, %v1642_v0 }
  0x39   : > { %v1126_v53 = vadd.f32 3.0, %v1094_v20  ;;  %v854_v38 = vadd.f32 %v822_v23, %v752_v34  ;;  %v317_v63 = vmul.f32 %v1809_v56, %v1647_v1  ;;  %v418_v47 = vmul.f32 %v1824_v54, %v1652_v2  ;;  %v1924_v56 = vld [vmem:[%s1667_s27 + $0x90] sm:$0xff] }
  0x3a   : > { %v551_v57 = vadd.f32 %v519_v27, %v449_v25  ;;  %v1253_v60 = vmul.f32 0.16666667, %v1221_v52  ;;  %v924_v58 = vmul.f32 %v1682_v7, %v1908_v59  ;;  %v1025_v30 = vmul.f32 %v1705_v22, %v1911_v61 }
  0x3b   : > { %v1158_v10 = vmax.f32 %v1126_v53, 0.0  ;;  %v955_v11 = vadd.f32 %v923_v40, %v854_v38  ;;  %v349_v12 = vadd.f32 %v317_v63, %v216_v46  ;;  %v520_v13 = vmul.f32 %v1871_v14, %v1657_v3  ;;  %v1967_v46 = vld [vmem:[%s1667_s27 + $0x99] sm:$0xff] }
  0x3c   : > { %v652_v8 = vadd.f32 %v620_v39, %v551_v57  ;;  %1285 = vst [vmem:[%s1849_s15 + $0x20] sm:$0xff] %v1253_v60  ;;  %v621_v62 = vmul.f32 %v1881_v36, %v1662_v4  ;;  %v722_v15 = vmul.f32 %v1888_v44, %v1672_v5  ;;  %v824_v16 = vmul.f32 %v1677_v6, %v1924_v56 }
  0x3d   : > { %v1190_v54 = vmin.f32 %v1158_v10, 6.0  ;;  %v1056_v42 = vadd.f32 %v1024_v21, %v955_v11  ;;  %v450_v18 = vadd.f32 %v418_v47, %v349_v12  ;;  %v217_v49 = vmul.f32 %v1832_v33, %v1642_v0  ;;  %v1957_v21 = vld [vmem:[%s1667_s27 + $0x98] sm:$0xff] }
  0x3e   : > { %v753_v17 = vadd.f32 %v721_v50, %v652_v8  ;;  %v925_v19 = vmul.f32 %v1682_v7, %v1934_v43  ;;  %v318_v32 = vmul.f32 %v1840_v48, %v1647_v1  ;;  %v419_v29 = vmul.f32 %v1857_v9, %v1652_v2  ;;  %v1974_v47 = vld [vmem:[%s1667_s27 + $0x9a] sm:$0xff] }
  0x3f   : > { %v1222_v23 = vmul.f32 %v1190_v54, %v1094_v20  ;;  %v1095_v35 = vadd.f32 %v1795_v41, %v1056_v42  ;;  %v552_v24 = vadd.f32 %v520_v13, %v450_v18  ;;  %v1026_v33 = vmul.f32 %v1705_v22, %v1941_v28  ;;  %v1986_v13 = vld [vmem:[%s1667_s27 + $0xa8] sm:$0xff] }
  0x40   : > { %v855_v37 = vadd.f32 %v823_v55, %v753_v17  ;;  %v350_v26 = vadd.f32 %v318_v32, %v217_v49  ;;  %v521_v27 = vmul.f32 %v1900_v51, %v1657_v3  ;;  %v622_v45 = vmul.f32 %v1908_v59, %v1662_v4 }
  0x41   : > { %v1254_v40 = vmul.f32 0.16666667, %v1222_v23  ;;  %v1127_v48 = vadd.f32 3.0, %v1095_v35  ;;  %v653_v9 = vadd.f32 %v621_v62, %v552_v24  ;;  %v723_v20 = vmul.f32 %v1911_v61, %v1672_v5  ;;  %v1997_v24 = vld [vmem:[%s1667_s27 + $0xa9] sm:$0xff] }
  0x42   : > { %v956_v31 = vadd.f32 %v924_v58, %v855_v37  ;;  %v451_v34 = vadd.f32 %v419_v29, %v350_v26  ;;  %v825_v25 = vmul.f32 %v1677_v6, %v1957_v21  ;;  %v218_v39 = vmul.f32 %v1871_v14, %v1642_v0 }
  0x43   : > { %1286 = vst [vmem:[%s1849_s15 + $0x28] sm:$0xff] %v1254_v40  ;;  %v319_v50 = vmul.f32 %v1881_v36, %v1647_v1  ;;  %v1159_v52 = vmax.f32 %v1127_v48, 0.0  ;;  %v754_v55 = vadd.f32 %v722_v15, %v653_v9  ;;  %v420_v38 = vmul.f32 %v1888_v44, %v1652_v2  ;;  %v2006_v48 = vld [vmem:[%s1667_s27 + $0xaa] sm:$0xff] }
  0x44   : > { %v1057_v53 = vadd.f32 %v1025_v30, %v956_v31  ;;  %v553_v57 = vadd.f32 %v521_v27, %v451_v34  ;;  %v926_v63 = vmul.f32 %v1682_v7, %v1967_v46  ;;  %v522_v14 = vmul.f32 %v1924_v56, %v1657_v3 }
  0x45   : > { %v351_v60 = vadd.f32 %v319_v50, %v218_v39  ;;  %v1191_v36 = vmin.f32 %v1159_v52, 6.0  ;;  %v856_v58 = vadd.f32 %v824_v16, %v754_v55  ;;  %v1027_v30 = vmul.f32 %v1705_v22, %v1974_v47 }
  0x46   : > { %v1096_v10 = vadd.f32 %v1795_v41, %v1057_v53  ;;  %v654_v11 = vadd.f32 %v622_v45, %v553_v57  ;;  %v623_v44 = vmul.f32 %v1934_v43, %v1662_v4  ;;  %v724_v12 = vmul.f32 %v1941_v28, %v1672_v5  ;;  %v2017_v57 = vld [vmem:[%s1667_s27 + $0xb0] sm:$0xff] }
  0x47   : > { %v452_v8 = vadd.f32 %v420_v38, %v351_v60  ;;  %v1223_v54 = vmul.f32 %v1191_v36, %v1095_v35  ;;  %v957_v15 = vadd.f32 %v925_v19, %v856_v58  ;;  %v826_v16 = vmul.f32 %v1677_v6, %v1986_v13 }
  0x48   : > { %v1128_v62 = vadd.f32 3.0, %v1096_v10  ;;  %v755_v42 = vadd.f32 %v723_v20, %v654_v11  ;;  %v219_v18 = vmul.f32 %v1900_v51, %v1642_v0  ;;  %v320_v49 = vmul.f32 %v1908_v59, %v1647_v1 }
  0x49   : > { %v554_v17 = vadd.f32 %v522_v14, %v452_v8  ;;  %v1255_v23 = vmul.f32 0.16666667, %v1223_v54  ;;  %v1058_v29 = vadd.f32 %v1026_v33, %v957_v15  ;;  %v421_v35 = vmul.f32 %v1911_v61, %v1652_v2  ;;  %v2033_v8 = vld [vmem:[%s1667_s27 + $0xb2] sm:$0xff] }
  0x4a   : > { %v1160_v32 = vmax.f32 %v1128_v62, 0.0  ;;  %v857_v37 = vadd.f32 %v825_v25, %v755_v42  ;;  %v352_v40 = vadd.f32 %v320_v49, %v219_v18  ;;  %v523_v26 = vmul.f32 %v1957_v21, %v1657_v3 }
  0x4b   : > { %v655_v19 = vadd.f32 %v623_v44, %v554_v17  ;;  %1287 = vst [vmem:[%s1849_s15 + $0x30] sm:$0xff] %v1255_v23  ;;  %v1097_v27 = vadd.f32 %v1795_v41, %v1058_v29  ;;  %v927_v59 = vmul.f32 %v1682_v7, %v1997_v24  ;;  %v624_v31 = vmul.f32 %v1967_v46, %v1662_v4 }
  0x4c   : > { %v1192_v51 = vmin.f32 %v1160_v32, 6.0  ;;  %v958_v33 = vadd.f32 %v926_v63, %v857_v37  ;;  %v453_v61 = vadd.f32 %v421_v35, %v352_v40  ;;  %v1028_v34 = vmul.f32 %v1705_v22, %v2006_v48  ;;  %v2047_v37 = vld [vmem:[%s1667_s27 + $0xc0] sm:$0xff] }
  0x4d   : > { %v756_v45 = vadd.f32 %v724_v12, %v655_v19  ;;  %v1129_v20 = vadd.f32 3.0, %v1097_v27  ;;  %v725_v25 = vmul.f32 %v1974_v47, %v1672_v5  ;;  %v220_v53 = vmul.f32 %v1924_v56, %v1642_v0 }
  0x4e   : > { %v1224_v9 = vmul.f32 %v1192_v51, %v1096_v10  ;;  %v1059_v39 = vadd.f32 %v1027_v30, %v958_v33  ;;  %v555_v52 = vadd.f32 %v523_v26, %v453_v61  ;;  %v321_v63 = vmul.f32 %v1934_v43, %v1647_v1  ;;  %v2027_v30 = vld [vmem:[%s1667_s27 + $0xb1] sm:$0xff]  ;;  %v2056_v33 = vld [vmem:[%s1667_s27 + $0xc1] sm:$0xff] }
  0x4f   : > { %v858_v50 = vadd.f32 %v826_v16, %v756_v45  ;;  %v1161_v38 = vmax.f32 %v1129_v20, 0.0  ;;  %v422_v60 = vmul.f32 %v1941_v28, %v1652_v2  ;;  %v827_v58 = vmul.f32 %v1677_v6, %v2017_v57  ;;  %v2062_v61 = vld [vmem:[%s1667_s27 + $0xc2] sm:$0xff] }
  0x50   : > { %v1256_v55 = vmul.f32 0.16666667, %v1224_v9  ;;  %v1098_v14 = vadd.f32 %v1795_v41, %v1059_v39  ;;  %v656_v10 = vadd.f32 %v624_v31, %v555_v52  ;;  %v928_v11 = vmul.f32 %v1682_v7, %v2027_v30 }
  0x51   : > { %v959_v36 = vadd.f32 %v927_v59, %v858_v50  ;;  %v1193_v56 = vmin.f32 %v1161_v38, 6.0  ;;  %v353_v43 = vadd.f32 %v321_v63, %v220_v53  ;;  %v524_v28 = vmul.f32 %v1986_v13, %v1657_v3 }
  0x52   : > { %1288 = vst [vmem:[%s1849_s15 + $0x38] sm:$0xff] %v1256_v55  ;;  %v1130_v44 = vadd.f32 3.0, %v1098_v14  ;;  %v757_v54 = vadd.f32 %v725_v25, %v656_v10  ;;  %v1029_v62 = vmul.f32 %v1705_v22, %v2033_v8  ;;  %v625_v42 = vmul.f32 %v1997_v24, %v1662_v4  ;;  %v2079_v10 = vld [vmem:[%s1667_s27 + $0xc9] sm:$0xff] }
  0x53   : > { %v1060_v12 = vadd.f32 %v1028_v34, %v959_v36  ;;  %v1225_v15 = vmul.f32 %v1193_v56, %v1097_v27  ;;  %v454_v16 = vadd.f32 %v422_v60, %v353_v43  ;;  %v726_v17 = vmul.f32 %v2006_v48, %v1672_v5  ;;  %v2076_v36 = vld [vmem:[%s1667_s27 + $0xc8] sm:$0xff] }
  0x54   : > { %v1162_v18 = vmax.f32 %v1130_v44, 0.0  ;;  %v859_v23 = vadd.f32 %v827_v58, %v757_v54  ;;  %v221_v32 = vmul.f32 %v1957_v21, %v1642_v0  ;;  %v322_v19 = vmul.f32 %v1967_v46, %v1647_v1  ;;  %v2091_v54 = vld [vmem:[%s1667_s27 + $0xca] sm:$0xff] }
  0x55   : > { %v1099_v49 = vadd.f32 %v1795_v41, %v1060_v12  ;;  %v1257_v29 = vmul.f32 0.16666667, %v1225_v15  ;;  %v556_v35 = vadd.f32 %v524_v28, %v454_v16  ;;  %v423_v40 = vmul.f32 %v1974_v47, %v1652_v2 }
  0x56   : > { %v1194_v26 = vmin.f32 %v1162_v18, 6.0  ;;  %v960_v27 = vadd.f32 %v928_v11, %v859_v23  ;;  %v828_v59 = vmul.f32 %v1677_v6, %v2047_v37  ;;  %v929_v45 = vmul.f32 %v1682_v7, %v2056_v33 }
  0x57   : > { %v1131_v51 = vadd.f32 3.0, %v1099_v49  ;;  %1289 = vst [vmem:[%s1849_s15 + $0x40] sm:$0xff] %v1257_v29  ;;  %v657_v21 = vadd.f32 %v625_v42, %v556_v35  ;;  %v354_v31 = vadd.f32 %v322_v19, %v221_v32  ;;  %v525_v46 = vmul.f32 %v2017_v57, %v1657_v3  ;;  %v2103_v29 = vld [vmem:[%s1667_s27 + $0xd8] sm:$0xff] }
  0x58   : > { %v1226_v47 = vmul.f32 %v1194_v26, %v1098_v14  ;;  %v1061_v20 = vadd.f32 %v1029_v62, %v960_v27  ;;  %v1030_v34 = vmul.f32 %v1705_v22, %v2062_v61  ;;  %v626_v50 = vmul.f32 %v2027_v30, %v1662_v4 }
  0x59   : > { %v1163_v9 = vmax.f32 %v1131_v51, 0.0  ;;  %v758_v25 = vadd.f32 %v726_v17, %v657_v21  ;;  %v455_v39 = vadd.f32 %v423_v40, %v354_v31  ;;  %v727_v52 = vmul.f32 %v2033_v8, %v1672_v5  ;;  %v2115_v21 = vld [vmem:[%s1667_s27 + $0xd9] sm:$0xff] }
  0x5a   : > { %v1258_v53 = vmul.f32 0.16666667, %v1226_v47  ;;  %v1100_v38 = vadd.f32 %v1795_v41, %v1061_v20  ;;  %v222_v63 = vmul.f32 %v1986_v13, %v1642_v0  ;;  %v323_v58 = vmul.f32 %v1997_v24, %v1647_v1  ;;  %v2120_v31 = vld [vmem:[%s1667_s27 + $0xda] sm:$0xff] }
  0x5b   : > { %v1195_v55 = vmin.f32 %v1163_v9, 6.0  ;;  %v860_v60 = vadd.f32 %v828_v59, %v758_v25  ;;  %v557_v14 = vadd.f32 %v525_v46, %v455_v39  ;;  %v424_v56 = vmul.f32 %v2006_v48, %v1652_v2 }
  0x5c   : > { %1290 = vst [vmem:[%s1849_s15 + $0x48] sm:$0xff] %v1258_v53  ;;  %v1132_v43 = vadd.f32 3.0, %v1100_v38  ;;  %v829_v28 = vmul.f32 %v1677_v6, %v2076_v36  ;;  %v930_v13 = vmul.f32 %v1682_v7, %v2079_v10  ;;  %v355_v62 = vadd.f32 %v323_v58, %v222_v63  ;;  %v2139_v58 = vld [vmem:[%s1667_s27 + $0xe1] sm:$0xff] }
  0x5d   : > { %v1227_v11 = vmul.f32 %v1195_v55, %v1099_v49  ;;  %v961_v44 = vadd.f32 %v929_v45, %v860_v60  ;;  %v658_v12 = vadd.f32 %v626_v50, %v557_v14  ;;  %v526_v24 = vmul.f32 %v2047_v37, %v1657_v3 }
  0x5e   : > { %v1164_v15 = vmax.f32 %v1132_v43, 0.0  ;;  %v1031_v16 = vmul.f32 %v1705_v22, %v2091_v54  ;;  %v627_v42 = vmul.f32 %v2056_v33, %v1662_v4  ;;  %v456_v49 = vadd.f32 %v424_v56, %v355_v62 }
  0x5f   : > { %v1259_v48 = vmul.f32 0.16666667, %v1227_v11  ;;  %v1062_v17 = vadd.f32 %v1030_v34, %v961_v44  ;;  %v759_v18 = vadd.f32 %v727_v52, %v658_v12  ;;  %v728_v23 = vmul.f32 %v2062_v61, %v1672_v5  ;;  %v2149_v44 = vld [vmem:[%s1667_s27 + $0xe2] sm:$0xff] }
  0x60   : > { %v1196_v32 = vmin.f32 %v1164_v15, 6.0  ;;  %v223_v35 = vmul.f32 %v2017_v57, %v1642_v0  ;;  %v324_v19 = vmul.f32 %v2027_v30, %v1647_v1  ;;  %v425_v40 = vmul.f32 %v2033_v8, %v1652_v2 }
  0x61   : > { %1291 = vst [vmem:[%s1849_s15 + $0x50] sm:$0xff] %v1259_v48  ;;  %v1101_v26 = vadd.f32 %v1795_v41, %v1062_v17  ;;  %v861_v51 = vadd.f32 %v829_v28, %v759_v18  ;;  %v558_v27 = vadd.f32 %v526_v24, %v456_v49  ;;  %v830_v59 = vmul.f32 %v1677_v6, %v2103_v29 }
  0x62   : > { %v1228_v45 = vmul.f32 %v1196_v32, %v1100_v38  ;;  %v931_v57 = vmul.f32 %v1682_v7, %v2115_v21  ;;  %v356_v30 = vadd.f32 %v324_v19, %v223_v35  ;;  %v527_v8 = vmul.f32 %v2076_v36, %v1657_v3  ;;  %v2131_v38 = vld [vmem:[%s1667_s27 + $0xe0] sm:$0xff]  ;;  %v2162_v19 = vld [vmem:[%s1667_s27 + $0xf0] sm:$0xff] }
  0x63   : > { %v1133_v46 = vadd.f32 3.0, %v1101_v26  ;;  %v962_v47 = vadd.f32 %v930_v13, %v861_v51  ;;  %v659_v9 = vadd.f32 %v627_v42, %v558_v27  ;;  %v1032_v20 = vmul.f32 %v1705_v22, %v2120_v31 }
  0x64   : > { %v1260_v34 = vmul.f32 0.16666667, %v1228_v45  ;;  %v457_v25 = vadd.f32 %v425_v40, %v356_v30  ;;  %v628_v39 = vmul.f32 %v2079_v10, %v1662_v4  ;;  %v729_v50 = vmul.f32 %v2091_v54, %v1672_v5  ;;  %v2176_v30 = vld [vmem:[%s1667_s27 + $0xf2] sm:$0xff] }
  0x65   : > { %v1165_v52 = vmax.f32 %v1133_v46, 0.0  ;;  %v1063_v53 = vadd.f32 %v1031_v16, %v962_v47  ;;  %v760_v55 = vadd.f32 %v728_v23, %v659_v9  ;;  %v224_v63 = vmul.f32 %v2047_v37, %v1642_v0 }
  0x66   : > { %1292 = vst [vmem:[%s1849_s15 + $0x58] sm:$0xff] %v1260_v34  ;;  %v559_v60 = vadd.f32 %v527_v8, %v457_v25  ;;  %v831_v14 = vmul.f32 %v1677_v6, %v2131_v38  ;;  %v325_v56 = vmul.f32 %v2056_v33, %v1647_v1  ;;  %v426_v11 = vmul.f32 %v2062_v61, %v1652_v2 }
  0x67   : > { %v1197_v43 = vmin.f32 %v1165_v52, 6.0  ;;  %v1102_v28 = vadd.f32 %v1795_v41, %v1063_v53  ;;  %v862_v13 = vadd.f32 %v830_v59, %v760_v55  ;;  %v932_v37 = vmul.f32 %v1682_v7, %v2139_v58 }
  0x68   : > { %v660_v12 = vadd.f32 %v628_v39, %v559_v60  ;;  %v1033_v62 = vmul.f32 %v1705_v22, %v2149_v44  ;;  %v357_v24 = vadd.f32 %v325_v56, %v224_v63  ;;  %v528_v33 = vmul.f32 %v2103_v29, %v1657_v3  ;;  %v2191_v56 = vld [vmem:[%s1667_s27 + $0xf8] sm:$0xff] }
  0x69   : > { %v1229_v48 = vmul.f32 %v1197_v43, %v1101_v26  ;;  %v1134_v61 = vadd.f32 3.0, %v1102_v28  ;;  %v963_v15 = vadd.f32 %v931_v57, %v862_v13  ;;  %v629_v16 = vmul.f32 %v2115_v21, %v1662_v4  ;;  %v2173_v57 = vld [vmem:[%s1667_s27 + $0xf1] sm:$0xff] }
  0x6a   : > { %v761_v42 = vadd.f32 %v729_v50, %v660_v12  ;;  %v458_v17 = vadd.f32 %v426_v11, %v357_v24  ;;  %v730_v18 = vmul.f32 %v2120_v31, %v1672_v5  ;;  %v225_v49 = vmul.f32 %v2076_v36, %v1642_v0  ;;  %v2205_v24 = vld [vmem:[%s1667_s27 + $0xfa] sm:$0xff] }
  0x6b   : > { %v1261_v23 = vmul.f32 0.16666667, %v1229_v48  ;;  %v1166_v32 = vmax.f32 %v1134_v61, 0.0  ;;  %v1064_v35 = vadd.f32 %v1032_v20, %v963_v15  ;;  %v326_v40 = vmul.f32 %v2079_v10, %v1647_v1 }
  0x6c   : > { %v863_v26 = vadd.f32 %v831_v14, %v761_v42  ;;  %v560_v51 = vadd.f32 %v528_v33, %v458_v17  ;;  %v832_v27 = vmul.f32 %v1677_v6, %v2162_v19  ;;  %v427_v59 = vmul.f32 %v2091_v54, %v1652_v2 }
  0x6d   : > { %1293 = vst [vmem:[%s1849_s15 + $0x60] sm:$0xff] %v1261_v23  ;;  %v1198_v45 = vmin.f32 %v1166_v32, 6.0  ;;  %v1103_v36 = vadd.f32 %v1795_v41, %v1064_v35  ;;  %v358_v8 = vadd.f32 %v326_v40, %v225_v49  ;;  %v529_v10 = vmul.f32 %v2131_v38, %v1657_v3 }
  0x6e   : > { %v964_v46 = vadd.f32 %v932_v37, %v863_v26  ;;  %v661_v47 = vadd.f32 %v629_v16, %v560_v51  ;;  %v933_v9 = vmul.f32 %v1682_v7, %v2173_v57  ;;  %v1034_v54 = vmul.f32 %v1705_v22, %v2176_v30 }
  0x6f   : > { %v1230_v20 = vmul.f32 %v1198_v45, %v1102_v28  ;;  %v1135_v34 = vadd.f32 3.0, %v1103_v36  ;;  %v459_v25 = vadd.f32 %v427_v59, %v358_v8  ;;  %v630_v39 = vmul.f32 %v2139_v58, %v1662_v4 }
  0x70   : > { %v1065_v50 = vadd.f32 %v1033_v62, %v964_v46  ;;  %v762_v52 = vadd.f32 %v730_v18, %v661_v47  ;;  %v731_v53 = vmul.f32 %v2149_v44, %v1672_v5  ;;  %v226_v55 = vmul.f32 %v2103_v29, %v1642_v0  ;;  %v2202_v62 = vld [vmem:[%s1667_s27 + $0xf9] sm:$0xff] }
  0x71   : > { %v1262_v63 = vmul.f32 0.16666667, %v1230_v20  ;;  %v1167_v60 = vmax.f32 %v1135_v34, 0.0  ;;  %v561_v14 = vadd.f32 %v529_v10, %v459_v25  ;;  %v327_v11 = vmul.f32 %v2115_v21, %v1647_v1  ;;  %v2234_v10 = vld [vmem:[%s1667_s27 + $0x10a] sm:$0xff]  ;;  %v2245_v20 = vld [vmem:[%s2629_s1 + $0x4] ss:$0 sm:$0xff] }
  0x72   : > { %v1104_v43 = vadd.f32 %v1795_v41, %v1065_v50  ;;  %v864_v28 = vadd.f32 %v832_v27, %v762_v52  ;;  %v833_v13 = vmul.f32 %v1677_v6, %v2191_v56  ;;  %v428_v37 = vmul.f32 %v2120_v31, %v1652_v2  ;;  %v2220_v27 = vld [vmem:[%s1667_s27 + $0x108] sm:$0xff] }
  0x73   : > { %1294 = vst [vmem:[%s1849_s15 + $0x68] sm:$0xff] %v1262_v63  ;;  %v1199_v12 = vmin.f32 %v1167_v60, 6.0  ;;  %v662_v29 = vadd.f32 %v630_v39, %v561_v14  ;;  %v359_v33 = vadd.f32 %v327_v11, %v226_v55  ;;  %v530_v21 = vmul.f32 %v2162_v19, %v1657_v3  ;;  %v2259_v39 = vld [vmem:[%s2629_s1] ss:$0 sm:$0xff]  ;;  %v2265_v63 = vld [vmem:[%s1667_s27 + $0x110] sm:$0xff] }
  0x74   : > { %v1136_v48 = vadd.f32 3.0, %v1104_v43  ;;  %v965_v61 = vadd.f32 %v933_v9, %v864_v28  ;;  %v934_v15 = vmul.f32 %v1682_v7, %v2202_v62  ;;  %v1035_v31 = vmul.f32 %v1705_v22, %v2205_v24  ;;  %v2270_v60 = vld [vmem:[%s2629_s1 + $0x1] ss:$0 sm:$0xff]  ;;  %v2285_v28 = vld [vmem:[%s2629_s1 + $0x2] ss:$0 sm:$0xff] }
  0x75   : > { %v1231_v16 = vmul.f32 %v1199_v12, %v1103_v36  ;;  %v763_v42 = vadd.f32 %v731_v53, %v662_v29  ;;  %v460_v17 = vadd.f32 %v428_v37, %v359_v33  ;;  %v631_v18 = vmul.f32 %v2173_v57, %v1662_v4 }
  0x76   : > { %v1168_v49 = vmax.f32 %v1136_v48, 0.0  ;;  %v1066_v23 = vadd.f32 %v1034_v54, %v965_v61  ;;  %v732_v32 = vmul.f32 %v2176_v30, %v1672_v5  ;;  %v227_v35 = vmul.f32 %v2131_v38, %v1642_v0  ;;  %v2231_v38 = vld [vmem:[%s1667_s27 + $0x109] sm:$0xff]  ;;  %v2300_v48 = vld [vmem:[%s1667_s27 + $0x112] sm:$0xff] }
  0x77   : > { %v1263_v40 = vmul.f32 0.16666667, %v1231_v16  ;;  %v865_v26 = vadd.f32 %v833_v13, %v763_v42  ;;  %v562_v51 = vadd.f32 %v530_v21, %v460_v17  ;;  %v328_v59 = vmul.f32 %v2139_v58, %v1647_v1  ;;  %v2297_v21 = vld [vmem:[%s1667_s27 + $0x111] sm:$0xff]  ;;  %v2312_v16 = vld [vmem:[%s2629_s1 + $0x8] ss:$0 sm:$0xff] }
  0x78   : > { %v1200_v45 = vmin.f32 %v1168_v49, 6.0  ;;  %v1105_v4 = vadd.f32 %v1795_v41, %v1066_v23  ;;  %v834_v36 = vmul.f32 %v1677_v6, %v2220_v27  ;;  %v429_v5 = vmul.f32 %v2149_v44, %v1652_v2 }
  0x79   : > { %1295 = vst [vmem:[%s1849_s15 + $0x70] sm:$0xff] %v1263_v40  ;;  %v966_v8 = vadd.f32 %v934_v15, %v865_v26  ;;  %v663_v0 = vadd.f32 %v631_v18, %v562_v51  ;;  %v360_v46 = vadd.f32 %v328_v59, %v227_v35  ;;  %v531_v1 = vmul.f32 %v2191_v56, %v1657_v3 }
  0x7a   : > { %v1232_v58 = vmul.f32 %v1200_v45, %v1104_v43  ;;  %v1137_v47 = vadd.f32 3.0, %v1105_v4  ;;  %v935_v9 = vmul.f32 %v1682_v7, %v2231_v38  ;;  %v1036_v2 = vmul.f32 %v1705_v22, %v2234_v10  ;;  %v2252_v7 = vld [vmem:[%s2629_s1 + $0x5] ss:$0 sm:$0xff] }
  0x7b   : > { %v1067_v6 = vadd.f32 %v1035_v31, %v966_v8  ;;  %v764_v44 = vadd.f32 %v732_v32, %v663_v0  ;;  %v461_v54 = vadd.f32 %v429_v5, %v360_v46  ;;  %v632_v3 = vmul.f32 %v2245_v20, %v2202_v62  ;;  %v2326_v5 = vld [vmem:[%s1667_s27 + $0x120] sm:$0xff] }
  0x7c   : > { %v1264_v34 = vmul.f32 0.16666667, %v1232_v58  ;;  %v1169_v25 = vmax.f32 %v1137_v47, 0.0  ;;  %v733_v22 = vmul.f32 %v2252_v7, %v2205_v24  ;;  %v228_v50 = vmul.f32 %v2259_v39, %v2162_v19  ;;  %v2278_v19 = vld [vmem:[%s2629_s1 + $0x6] ss:$0 sm:$0xff] }
  0x7d   : > { %v1106_v52 = vadd.f32 %v1795_v41, %v1067_v6  ;;  %v866_v53 = vadd.f32 %v834_v36, %v764_v44  ;;  %v563_v55 = vadd.f32 %v531_v1, %v461_v54  ;;  %v329_v14 = vmul.f32 %v2270_v60, %v2173_v57  ;;  %v2292_v57 = vld [vmem:[%s2629_s1 + $0x3] ss:$0 sm:$0xff] }
  0x7e   : > { %1296 = vst [vmem:[%s1849_s15 + $0x78] sm:$0xff] %v1264_v34  ;;  %v1201_v11 = vmin.f32 %v1169_v25, 6.0  ;;  %v835_v43 = vmul.f32 %v2278_v19, %v2265_v63  ;;  %v430_v13 = vmul.f32 %v2285_v28, %v2176_v30  ;;  %v532_v37 = vmul.f32 %v2292_v57, %v2220_v27  ;;  %v2305_v30 = vld [vmem:[%s2629_s1 + $0x7] ss:$0 sm:$0xff] }
  0x7f   : > { %v1138_v12 = vadd.f32 3.0, %v1106_v52  ;;  %v967_v29 = vadd.f32 %v935_v9, %v866_v53  ;;  %v664_v33 = vadd.f32 %v632_v3, %v563_v55  ;;  %v361_v61 = vadd.f32 %v329_v14, %v228_v50  ;;  %v2336_v9 = vld [vmem:[%s1667_s27 + $0x121] sm:$0xff] }
  0x80   : > { %v1233_v15 = vmul.f32 %v1201_v11, %v1105_v4  ;;  %v936_v31 = vmul.f32 %v2305_v30, %v2297_v21  ;;  %v1037_v42 = vmul.f32 %v2312_v16, %v2300_v48  ;;  %v633_v17 = vmul.f32 %v2245_v20, %v2231_v38 }
  0x81   : > { %v1170_v18 = vmax.f32 %v1138_v12, 0.0  ;;  %v1068_v49 = vadd.f32 %v1036_v2, %v967_v29  ;;  %v765_v23 = vadd.f32 %v733_v22, %v664_v33  ;;  %v462_v32 = vadd.f32 %v430_v13, %v361_v61  ;;  %v2339_v2 = vld [vmem:[%s1667_s27 + $0x122] sm:$0xff] }
  0x82   : > { %v1265_v35 = vmul.f32 0.16666667, %v1233_v15  ;;  %v734_v40 = vmul.f32 %v2252_v7, %v2234_v10  ;;  %v229_v26 = vmul.f32 %v2259_v39, %v2191_v56  ;;  %v330_v51 = vmul.f32 %v2270_v60, %v2202_v62  ;;  %v2356_v13 = vld [vmem:[%s1667_s27 + $0x128] sm:$0xff] }
  0x83   : > { %v1202_v59 = vmin.f32 %v1170_v18, 6.0  ;;  %v1107_v45 = vadd.f32 %v1795_v41, %v1068_v49  ;;  %v867_v4 = vadd.f32 %v835_v43, %v765_v23  ;;  %v564_v36 = vadd.f32 %v532_v37, %v462_v32  ;;  %v2363_v33 = vld [vmem:[%s1667_s27 + $0x129] sm:$0xff] }
  0x84   : > { %1297 = vst [vmem:[%s1849_s15 + $0x80] sm:$0xff] %v1265_v35  ;;  %v836_v8 = vmul.f32 %v2278_v19, %v2326_v5  ;;  %v362_v0 = vadd.f32 %v330_v51, %v229_v26  ;;  %v431_v56 = vmul.f32 %v2285_v28, %v2205_v24  ;;  %v533_v46 = vmul.f32 %v2292_v57, %v2265_v63 }
  0x85   : > { %v1234_v62 = vmul.f32 %v1202_v59, %v1106_v52  ;;  %v1139_v1 = vadd.f32 3.0, %v1107_v45  ;;  %v968_v58 = vadd.f32 %v936_v31, %v867_v4  ;;  %v665_v47 = vadd.f32 %v633_v17, %v564_v36  ;;  %v2379_v59 = vld [vmem:[%s1667_s27 + $0x138] sm:$0xff] }
  0x86   : > { %v937_v6 = vmul.f32 %v2305_v30, %v2336_v9  ;;  %v1038_v44 = vmul.f32 %v2312_v16, %v2339_v2  ;;  %v463_v24 = vadd.f32 %v431_v56, %v362_v0  ;;  %v634_v54 = vmul.f32 %v2245_v20, %v2297_v21 }
  0x87   : > { %v1266_v3 = vmul.f32 0.16666667, %v1234_v62  ;;  %v1171_v34 = vmax.f32 %v1139_v1, 0.0  ;;  %v1069_v25 = vadd.f32 %v1037_v42, %v968_v58  ;;  %v766_v22 = vadd.f32 %v734_v40, %v665_v47  ;;  %v2370_v42 = vld [vmem:[%s1667_s27 + $0x12a] sm:$0xff]  ;;  %v2397_v1 = vld [vmem:[%s1667_s27 + $0x139] sm:$0xff] }
  0x88   : > { %v565_v50 = vadd.f32 %v533_v46, %v463_v24  ;;  %v735_v52 = vmul.f32 %v2252_v7, %v2300_v48  ;;  %v230_v53 = vmul.f32 %v2259_v39, %v2220_v27  ;;  %v331_v55 = vmul.f32 %v2270_v60, %v2231_v38 }
  0x89   : > { %1298 = vst [vmem:[%s1849_s15 + $0x88] sm:$0xff] %v1266_v3  ;;  %v1203_v14 = vmin.f32 %v1171_v34, 6.0  ;;  %v1108_v11 = vadd.f32 %v1795_v41, %v1069_v25  ;;  %v868_v43 = vadd.f32 %v836_v8, %v766_v22  ;;  %v432_v37 = vmul.f32 %v2285_v28, %v2234_v10  ;;  %v2389_v8 = vld [vmem:[%s2630_s2] ss:$0 sm:$0xff] }
  0x8a   : > { %v666_v12 = vadd.f32 %v634_v54, %v565_v50  ;;  %v837_v29 = vmul.f32 %v2278_v19, %v2356_v13  ;;  %v363_v27 = vadd.f32 %v331_v55, %v230_v53  ;;  %v534_v38 = vmul.f32 %v2292_v57, %v2326_v5 }
  0x8b   : > { %v1235_v61 = vmul.f32 %v1203_v14, %v1107_v45  ;;  %v1140_v15 = vadd.f32 3.0, %v1108_v11  ;;  %v969_v41 = vadd.f32 %v937_v6, %v868_v43  ;;  %v938_v31 = vmul.f32 %v2305_v30, %v2363_v33  ;;  %v2416_v43 = vld [vmem:[%s1667_s27 + $0x140] sm:$0xff] }
  0x8c   : > { %v767_v10 = vadd.f32 %v735_v52, %v666_v12  ;;  %v1039_v17 = vmul.f32 %v2312_v16, %v2370_v42  ;;  %v464_v18 = vadd.f32 %v432_v37, %v363_v27  ;;  %v635_v49 = vmul.f32 %v2245_v20, %v2336_v9 }
  0x8d   : > { %v1267_v23 = vmul.f32 0.16666667, %v1235_v61  ;;  %v1172_v32 = vmax.f32 %v1140_v15, 0.0  ;;  %v1070_v35 = vadd.f32 %v1038_v44, %v969_v41  ;;  %v736_v40 = vmul.f32 %v2252_v7, %v2339_v2  ;;  %v2428_v41 = vld [vmem:[%s1667_s27 + $0x141] sm:$0xff] }
  0x8e   : > { %v869_v26 = vadd.f32 %v837_v29, %v767_v10  ;;  %v566_v51 = vadd.f32 %v534_v38, %v464_v18  ;;  %v231_v45 = vmul.f32 %v2259_v39, %v2265_v63  ;;  %v332_v4 = vmul.f32 %v2270_v60, %v2297_v21  ;;  %v2400_v21 = vld [vmem:[%s1667_s27 + $0x13a] sm:$0xff] }
  0x8f   : > { %1299 = vst [vmem:[%s1849_s15 + $0x90] sm:$0xff] %v1267_v23  ;;  %v1204_v36 = vmin.f32 %v1172_v32, 6.0  ;;  %v1109_v0 = vadd.f32 %v2389_v8, %v1070_v35  ;;  %v838_v56 = vmul.f32 %v2278_v19, %v2379_v59  ;;  %v433_v46 = vmul.f32 %v2285_v28, %v2300_v48 }
  0x90   : > { %v970_v62 = vadd.f32 %v938_v31, %v869_v26  ;;  %v667_v63 = vadd.f32 %v635_v49, %v566_v51  ;;  %v364_v58 = vadd.f32 %v332_v4, %v231_v45  ;;  %v535_v47 = vmul.f32 %v2292_v57, %v2356_v13  ;;  %v2431_v31 = vld [vmem:[%s1667_s27 + $0x142] sm:$0xff] }
  0x91   : > { %v1236_v6 = vmul.f32 %v1204_v36, %v1108_v11  ;;  %v1141_v44 = vadd.f32 3.0, %v1109_v0  ;;  %v939_v24 = vmul.f32 %v2305_v30, %v2397_v1  ;;  %v1040_v48 = vmul.f32 %v2312_v16, %v2400_v21 }
  0x92   : > { %v1071_v54 = vadd.f32 %v1039_v17, %v970_v62  ;;  %v768_v3 = vadd.f32 %v736_v40, %v667_v63  ;;  %v465_v34 = vadd.f32 %v433_v46, %v364_v58  ;;  %v636_v25 = vmul.f32 %v2245_v20, %v2363_v33  ;;  %v2447_v46 = vld [vmem:[%s1667_s27 + $0x150] sm:$0xff] }
  0x93   : > { %v1268_v22 = vmul.f32 0.16666667, %v1236_v6  ;;  %v1173_v50 = vmax.f32 %v1141_v44, 0.0  ;;  %v737_v52 = vmul.f32 %v2252_v7, %v2370_v42  ;;  %v232_v53 = vmul.f32 %v2259_v39, %v2326_v5 }
  0x94   : > { %v1110_v55 = vadd.f32 %v2389_v8, %v1071_v54  ;;  %v870_v14 = vadd.f32 %v838_v56, %v768_v3  ;;  %v567_v11 = vadd.f32 %v535_v47, %v465_v34  ;;  %v333_v37 = vmul.f32 %v2270_v60, %v2336_v9 }
  0x95   : > { %1300 = vst [vmem:[%s1849_s15 + $0x98] sm:$0xff] %v1268_v22  ;;  %v1205_v12 = vmin.f32 %v1173_v50, 6.0  ;;  %v839_v29 = vmul.f32 %v2278_v19, %v2416_v43  ;;  %v434_v27 = vmul.f32 %v2285_v28, %v2339_v2  ;;  %v536_v5 = vmul.f32 %v2292_v57, %v2379_v59 }
  0x96   : > { %v1142_v38 = vadd.f32 3.0, %v1110_v55  ;;  %v971_v61 = vadd.f32 %v939_v24, %v870_v14  ;;  %v668_v15 = vadd.f32 %v636_v25, %v567_v11  ;;  %v365_v10 = vadd.f32 %v333_v37, %v232_v53  ;;  %v2457_v24 = vld [vmem:[%s1667_s27 + $0x151] sm:$0xff] }
  0x97   : > { %v1237_v9 = vmul.f32 %v1205_v12, %v1109_v0  ;;  %v940_v17 = vmul.f32 %v2305_v30, %v2428_v41  ;;  %v1041_v2 = vmul.f32 %v2312_v16, %v2431_v31  ;;  %v637_v18 = vmul.f32 %v2245_v20, %v2397_v1 }
  0x98   : > { %v1174_v49 = vmax.f32 %v1142_v38, 0.0  ;;  %v1072_v23 = vadd.f32 %v1040_v48, %v971_v61  ;;  %v769_v32 = vadd.f32 %v737_v52, %v668_v15  ;;  %v466_v35 = vadd.f32 %v434_v27, %v365_v10  ;;  %v2460_v48 = vld [vmem:[%s1667_s27 + $0x152] sm:$0xff] }
  0x99   : > { %v1269_v40 = vmul.f32 0.16666667, %v1237_v9  ;;  %v738_v26 = vmul.f32 %v2252_v7, %v2400_v21  ;;  %v233_v51 = vmul.f32 %v2259_v39, %v2356_v13  ;;  %v334_v45 = vmul.f32 %v2270_v60, %v2363_v33  ;;  %v2477_v27 = vld [vmem:[%s1667_s27 + $0x158] sm:$0xff] }
  0x9a   : > { %v1206_v4 = vmin.f32 %v1174_v49, 6.0  ;;  %v1111_v36 = vadd.f32 %v2389_v8, %v1072_v23  ;;  %v871_v0 = vadd.f32 %v839_v29, %v769_v32  ;;  %v568_v56 = vadd.f32 %v536_v5, %v466_v35  ;;  %v2484_v15 = vld [vmem:[%s1667_s27 + $0x159] sm:$0xff] }
  0x9b   : > { %1301 = vst [vmem:[%s1849_s15 + $0xa0] sm:$0xff] %v1269_v40  ;;  %v840_v62 = vmul.f32 %v2278_v19, %v2447_v46  ;;  %v366_v63 = vadd.f32 %v334_v45, %v233_v51  ;;  %v435_v13 = vmul.f32 %v2285_v28, %v2370_v42  ;;  %v537_v58 = vmul.f32 %v2292_v57, %v2416_v43 }
  0x9c   : > { %v1238_v33 = vmul.f32 %v1206_v4, %v1110_v55  ;;  %v1143_v47 = vadd.f32 3.0, %v1111_v36  ;;  %v972_v6 = vadd.f32 %v940_v17, %v871_v0  ;;  %v669_v44 = vadd.f32 %v637_v18, %v568_v56  ;;  %v2491_v18 = vld [vmem:[%s1667_s27 + $0x15a] sm:$0xff] }
  0x9d   : > { %v941_v54 = vmul.f32 %v2305_v30, %v2457_v24  ;;  %v1042_v3 = vmul.f32 %v2312_v16, %v2460_v48  ;;  %v467_v42 = vadd.f32 %v435_v13, %v366_v63  ;;  %v638_v34 = vmul.f32 %v2245_v20, %v2428_v41 }
  0x9e   : > { %v1270_v25 = vmul.f32 0.16666667, %v1238_v33  ;;  %v1175_v22 = vmax.f32 %v1143_v47, 0.0  ;;  %v1073_v50 = vadd.f32 %v1041_v2, %v972_v6  ;;  %v770_v52 = vadd.f32 %v738_v26, %v669_v44  ;;  %v2513_v6 = vld [vmem:[%s1667_s27 + $0x169] sm:$0xff] }
  0x9f   : > { %v569_v53 = vadd.f32 %v537_v58, %v467_v42  ;;  %v739_v55 = vmul.f32 %v2252_v7, %v2431_v31  ;;  %v234_v14 = vmul.f32 %v2259_v39, %v2379_v59  ;;  %v335_v11 = vmul.f32 %v2270_v60, %v2397_v1  ;;  %v2516_v44 = vld [vmem:[%s1667_s27 + $0x16a] sm:$0xff] }
  0xa0   : > { %1302 = vst [vmem:[%s1849_s15 + $0xa8] sm:$0xff] %v1270_v25  ;;  %v1207_v37 = vmin.f32 %v1175_v22, 6.0  ;;  %v1112_v12 = vadd.f32 %v2389_v8, %v1073_v50  ;;  %v872_v29 = vadd.f32 %v840_v62, %v770_v52  ;;  %v436_v5 = vmul.f32 %v2285_v28, %v2400_v21 }
  0xa1   : > { %v670_v38 = vadd.f32 %v638_v34, %v569_v53  ;;  %v841_v61 = vmul.f32 %v2278_v19, %v2477_v27  ;;  %v367_v59 = vadd.f32 %v335_v11, %v234_v14  ;;  %v538_v1 = vmul.f32 %v2292_v57, %v2447_v46 }
  0xa2   : > { %v1239_v10 = vmul.f32 %v1207_v37, %v1111_v36  ;;  %v1144_v9 = vadd.f32 3.0, %v1112_v12  ;;  %v973_v17 = vadd.f32 %v941_v54, %v872_v29  ;;  %v942_v2 = vmul.f32 %v2305_v30, %v2484_v15  ;;  %v2500_v36 = vld [vmem:[%s1667_s27 + $0x168] sm:$0xff]  ;;  %v2532_v29 = vld [vmem:[%s1667_s27 + $0x170] sm:$0xff] }
  0xa3   : > { %v771_v21 = vadd.f32 %v739_v55, %v670_v38  ;;  %v1043_v49 = vmul.f32 %v2312_v16, %v2491_v18  ;;  %v468_v23 = vadd.f32 %v436_v5, %v367_v59  ;;  %v639_v32 = vmul.f32 %v2245_v20, %v2457_v24 }
  0xa4   : > { %v1271_v35 = vmul.f32 0.16666667, %v1239_v10  ;;  %v1176_v40 = vmax.f32 %v1144_v9, 0.0  ;;  %v1074_v26 = vadd.f32 %v1042_v3, %v973_v17  ;;  %v740_v51 = vmul.f32 %v2252_v7, %v2460_v48  ;;  %v2544_v17 = vld [vmem:[%s1667_s27 + $0x171] sm:$0xff] }
  0xa5   : > { %v873_v45 = vadd.f32 %v841_v61, %v771_v21  ;;  %v570_v4 = vadd.f32 %v538_v1, %v468_v23  ;;  %v235_v0 = vmul.f32 %v2259_v39, %v2416_v43  ;;  %v336_v56 = vmul.f32 %v2270_v60, %v2428_v41 }
  0xa6   : > { %1303 = vst [vmem:[%s1849_s15 + $0xb0] sm:$0xff] %v1271_v35  ;;  %v1208_v62 = vmin.f32 %v1176_v40, 6.0  ;;  %v1113_v63 = vadd.f32 %v2389_v8, %v1074_v26  ;;  %v842_v13 = vmul.f32 %v2278_v19, %v2500_v36  ;;  %v437_v58 = vmul.f32 %v2285_v28, %v2431_v31 }
  0xa7   : > { %v974_v33 = vadd.f32 %v942_v2, %v873_v45  ;;  %v671_v47 = vadd.f32 %v639_v32, %v570_v4  ;;  %v368_v43 = vadd.f32 %v336_v56, %v235_v0  ;;  %v539_v41 = vmul.f32 %v2292_v57, %v2477_v27  ;;  %v2547_v2 = vld [vmem:[%s1667_s27 + $0x172] sm:$0xff] }
  0xa8   : > { %v1240_v54 = vmul.f32 %v1208_v62, %v1112_v12  ;;  %v1145_v3 = vadd.f32 3.0, %v1113_v63  ;;  %v943_v42 = vmul.f32 %v2305_v30, %v2513_v6  ;;  %v1044_v31 = vmul.f32 %v2312_v16, %v2516_v44 }
  0xa9   : > { %v1075_v34 = vadd.f32 %v1043_v49, %v974_v33  ;;  %v772_v25 = vadd.f32 %v740_v51, %v671_v47  ;;  %v469_v22 = vadd.f32 %v437_v58, %v368_v43  ;;  %v640_v50 = vmul.f32 %v2245_v20, %v2484_v15  ;;  %v1506_v58 = vld [vmem:[%s1667_s27 + $0x180] sm:$0xff] }
  0xaa   : > { %v1272_v52 = vmul.f32 0.16666667, %v1240_v54  ;;  %v1177_v53 = vmax.f32 %v1145_v3, 0.0  ;;  %v741_v55 = vmul.f32 %v2252_v7, %v2491_v18  ;;  %v236_v14 = vmul.f32 %v2259_v39, %v2447_v46 }
  0xab   : > { %v1114_v11 = vadd.f32 %v2389_v8, %v1075_v34  ;;  %v874_v37 = vadd.f32 %v842_v13, %v772_v25  ;;  %v571_v12 = vadd.f32 %v539_v41, %v469_v22  ;;  %v337_v5 = vmul.f32 %v2270_v60, %v2457_v24 }
  0xac   : > { %1304 = vst [vmem:[%s1849_s15 + $0xb8] sm:$0xff] %v1272_v52  ;;  %v1209_v38 = vmin.f32 %v1177_v53, 6.0  ;;  %v843_v61 = vmul.f32 %v2278_v19, %v2532_v29  ;;  %v438_v59 = vmul.f32 %v2285_v28, %v2460_v48  ;;  %v540_v46 = vmul.f32 %v2292_v57, %v2500_v36 }
  0xad   : > { %v1146_v1 = vadd.f32 3.0, %v1114_v11  ;;  %v975_v10 = vadd.f32 %v943_v42, %v874_v37  ;;  %v672_v9 = vadd.f32 %v640_v50, %v571_v12  ;;  %v369_v21 = vadd.f32 %v337_v5, %v236_v14  ;;  %v1539_v42 = vld [vmem:[%s1667_s27 + $0x181] sm:$0xff] }
  0xae   : > { %v1241_v24 = vmul.f32 %v1209_v38, %v1113_v63  ;;  %v944_v49 = vmul.f32 %v2305_v30, %v2544_v17  ;;  %v1045_v48 = vmul.f32 %v2312_v16, %v2547_v2  ;;  %v641_v23 = vmul.f32 %v2245_v20, %v2513_v6 }
  0xaf   : > { %v1178_v32 = vmax.f32 %v1146_v1, 0.0  ;;  %v1076_v35 = vadd.f32 %v1044_v31, %v975_v10  ;;  %v773_v40 = vadd.f32 %v741_v55, %v672_v9  ;;  %v470_v26 = vadd.f32 %v438_v59, %v369_v21  ;;  %v1572_v31 = vld [vmem:[%s1667_s27 + $0x182] sm:$0xff] }
  0xb0   : > { %v1273_v51 = vmul.f32 0.16666667, %v1241_v24  ;;  %v742_v45 = vmul.f32 %v2252_v7, %v2516_v44  ;;  %v237_v4 = vmul.f32 %v2259_v39, %v2477_v27  ;;  %v338_v0 = vmul.f32 %v2270_v60, %v2484_v15  ;;  %v1507_v59 = vld [vmem:[%s1667_s27 + $0x188] sm:$0xff] }
  0xb1   : > { %v1210_v56 = vmin.f32 %v1178_v32, 6.0  ;;  %v1115_v62 = vadd.f32 %v2389_v8, %v1076_v35  ;;  %v875_v63 = vadd.f32 %v843_v61, %v773_v40  ;;  %v572_v13 = vadd.f32 %v540_v46, %v470_v26  ;;  %v1540_v9 = vld [vmem:[%s1667_s27 + $0x189] sm:$0xff]  ;;  %v1508_v26 = vld [vmem:[%s1667_s27 + $0x198] sm:$0xff] }
  0xb2   : > { %1305 = vst [vmem:[%s1849_s15 + $0xc0] sm:$0xff] %v1273_v51  ;;  %v844_v33 = vmul.f32 %v2278_v19, %v1506_v58  ;;  %v370_v47 = vadd.f32 %v338_v0, %v237_v4  ;;  %v439_v43 = vmul.f32 %v2285_v28, %v2491_v18  ;;  %v541_v27 = vmul.f32 %v2292_v57, %v2532_v29 }
  0xb3   : > { %v1242_v41 = vmul.f32 %v1210_v56, %v1114_v11  ;;  %v1147_v54 = vadd.f32 3.0, %v1115_v62  ;;  %v976_v15 = vadd.f32 %v944_v49, %v875_v63  ;;  %v673_v3 = vadd.f32 %v641_v23, %v572_v13  ;;  %v1573_v23 = vld [vmem:[%s1667_s27 + $0x18a] sm:$0xff]  ;;  %v1541_v63 = vld [vmem:[%s1667_s27 + $0x199] sm:$0xff] }
  0xb4   : > { %v945_v34 = vmul.f32 %v2305_v30, %v1539_v42  ;;  %v1046_v25 = vmul.f32 %v2312_v16, %v1572_v31  ;;  %v471_v22 = vadd.f32 %v439_v43, %v370_v47  ;;  %v642_v50 = vmul.f32 %v2245_v20, %v2544_v17 }
  0xb5   : > { %v1274_v18 = vmul.f32 0.16666667, %v1242_v41  ;;  %v1179_v52 = vmax.f32 %v1147_v54, 0.0  ;;  %v1077_v53 = vadd.f32 %v1045_v48, %v976_v15  ;;  %v774_v55 = vadd.f32 %v742_v45, %v673_v3  ;;  %v1574_v15 = vld [vmem:[%s1667_s27 + $0x19a] sm:$0xff] }
  0xb6   : > { %v573_v14 = vadd.f32 %v541_v27, %v471_v22  ;;  %v743_v11 = vmul.f32 %v2252_v7, %v2547_v2  ;;  %v238_v37 = vmul.f32 %v2259_v39, %v2500_v36  ;;  %v339_v12 = vmul.f32 %v2270_v60, %v2513_v6 }
  0xb7   : > { %1306 = vst [vmem:[%s1849_s15 + $0xc8] sm:$0xff] %v1274_v18  ;;  %v1211_v5 = vmin.f32 %v1179_v52, 6.0  ;;  %v1116_v38 = vadd.f32 %v2389_v8, %v1077_v53  ;;  %v876_v61 = vadd.f32 %v844_v33, %v774_v55  ;;  %v440_v46 = vmul.f32 %v2285_v28, %v2516_v44 }
  0xb8   : > { %v674_v1 = vadd.f32 %v642_v50, %v573_v14  ;;  %v845_v10 = vmul.f32 %v2278_v19, %v1507_v59  ;;  %v371_v21 = vadd.f32 %v339_v12, %v238_v37  ;;  %v542_v36 = vmul.f32 %v2292_v57, %v1506_v58  ;;  %v1509_v50 = vld [vmem:[%s1667_s27 + $0x1a0] sm:$0xff] }
  0xb9   : > { %v1243_v24 = vmul.f32 %v1211_v5, %v1115_v62  ;;  %v1148_v6 = vadd.f32 3.0, %v1116_v38  ;;  %v977_v49 = vadd.f32 %v945_v34, %v876_v61  ;;  %v946_v48 = vmul.f32 %v2305_v30, %v1540_v9  ;;  %v1542_v14 = vld [vmem:[%s1667_s27 + $0x1a1] sm:$0xff] }
  0xba   : > { %v775_v32 = vadd.f32 %v743_v11, %v674_v1  ;;  %v1047_v35 = vmul.f32 %v2312_v16, %v1573_v23  ;;  %v472_v40 = vadd.f32 %v440_v46, %v371_v21  ;;  %v643_v44 = vmul.f32 %v2245_v20, %v1539_v42 }
  0xbb   : > { %v1275_v51 = vmul.f32 0.16666667, %v1243_v24  ;;  %v1180_v45 = vmax.f32 %v1148_v6, 0.0  ;;  %v1078_v4 = vadd.f32 %v1046_v25, %v977_v49  ;;  %v744_v0 = vmul.f32 %v2252_v7, %v1572_v31 }
  0xbc   : > { %v877_v56 = vadd.f32 %v845_v10, %v775_v32  ;;  %v574_v62 = vadd.f32 %v542_v36, %v472_v40  ;;  %v239_v13 = vmul.f32 %v2259_v39, %v2532_v29  ;;  %v340_v58 = vmul.f32 %v2270_v60, %v2544_v17 }
  0xbd   : > { %1307 = vst [vmem:[%s1849_s15 + $0xd0] sm:$0xff] %v1275_v51  ;;  %v1212_v33 = vmin.f32 %v1180_v45, 6.0  ;;  %v1117_v47 = vadd.f32 %v2389_v8, %v1078_v4  ;;  %v846_v43 = vmul.f32 %v2278_v19, %v1508_v26  ;;  %v441_v27 = vmul.f32 %v2285_v28, %v2547_v2 }
  0xbe   : > { %v978_v41 = vadd.f32 %v946_v48, %v877_v56  ;;  %v675_v54 = vadd.f32 %v643_v44, %v574_v62  ;;  %v372_v3 = vadd.f32 %v340_v58, %v239_v13  ;;  %v543_v42 = vmul.f32 %v2292_v57, %v1507_v59 }
  0xbf   : > { %v1244_v39 = vmul.f32 %v1212_v33, %v1116_v38  ;;  %v1149_v29 = vadd.f32 3.0, %v1117_v47  ;;  %v947_v60 = vmul.f32 %v2305_v30, %v1541_v63  ;;  %v644_v25 = vmul.f32 %v2245_v20, %v1540_v9  ;;  %v1575_v38 = vld [vmem:[%s1667_s27 + $0x1a2] sm:$0xff] }
  0xc0   : > { %v1079_v17 = vadd.f32 %v1047_v35, %v978_v41  ;;  %v776_v31 = vadd.f32 %v744_v0, %v675_v54  ;;  %v473_v34 = vadd.f32 %v441_v27, %v372_v3  ;;  %v1048_v2 = vmul.f32 %v2312_v16, %v1574_v15 }
  0xc1   : > { %v1276_v22 = vmul.f32 0.16666667, %v1244_v39  ;;  %v1181_v28 = vmax.f32 %v1149_v29, 0.0  ;;  %v745_v53 = vmul.f32 %v2252_v7, %v1573_v23  ;;  %v847_v20 = vmul.f32 %v2278_v19, %v1509_v50 }
  0xc2   : > { %v1118_v18 = vadd.f32 %v2389_v8, %v1079_v17  ;;  %v878_v57 = vadd.f32 %v846_v43, %v776_v31  ;;  %v575_v52 = vadd.f32 %v543_v42, %v473_v34  ;;  %v948_v1 = vmul.f32 %v2305_v30, %v1542_v14 }
  0xc3   : > { %1308 = vst [vmem:[%s1849_s15 + $0xd8] sm:$0xff] %v1276_v22  ;;  %v1213_v55 = vmin.f32 %v1181_v28, 6.0  ;;  %v1049_v36 = vmul.f32 %v2312_v16, %v1575_v38 }
  0xc4   : > { %v1150_v11 = vadd.f32 3.0, %v1118_v18  ;;  %v979_v37 = vadd.f32 %v947_v60, %v878_v57  ;;  %v676_v12 = vadd.f32 %v644_v25, %v575_v52 }
  0xc5   : > { %v1245_v5 = vmul.f32 %v1213_v55, %v1117_v47 }
  0xc6   : > { %v1182_v61 = vmax.f32 %v1150_v11, 0.0  ;;  %v1080_v59 = vadd.f32 %v1048_v2, %v979_v37  ;;  %v777_v46 = vadd.f32 %v745_v53, %v676_v12 }
  0xc7   : > { %v1277_v10 = vmul.f32 0.16666667, %v1245_v5 }
  0xc8   : > { %v1214_v9 = vmin.f32 %v1182_v61, 6.0  ;;  %v1119_v7 = vadd.f32 %v2389_v8, %v1080_v59  ;;  %v879_v21 = vadd.f32 %v847_v20, %v777_v46 }
  0xc9   : > { %1309 = vst [vmem:[%s1849_s15 + $0xe0] sm:$0xff] %v1277_v10 }
  0xca   : > { %v1246_v24 = vmul.f32 %v1214_v9, %v1118_v18  ;;  %v1151_v6 = vadd.f32 3.0, %v1119_v7  ;;  %v980_v19 = vadd.f32 %v948_v1, %v879_v21 }
  0xcc   : > { %v1278_v49 = vmul.f32 0.16666667, %v1246_v24  ;;  %v1183_v48 = vmax.f32 %v1151_v6, 0.0  ;;  %v1081_v23 = vadd.f32 %v1049_v36, %v980_v19 }
  0xce   : > { %1310 = vst [vmem:[%s1849_s15 + $0xe8] sm:$0xff] %v1278_v49  ;;  %v1215_v32 = vmin.f32 %v1183_v48, 6.0  ;;  %v1120_v30 = vadd.f32 %v2389_v8, %v1081_v23 }
  0xd0   : > { %v1247_v35 = vmul.f32 %v1215_v32, %v1119_v7  ;;  %v1152_v40 = vadd.f32 3.0, %v1120_v30 }
  0xd2   : > { %v1279_v44 = vmul.f32 0.16666667, %v1247_v35  ;;  %v1184_v26 = vmax.f32 %v1152_v40, 0.0 }
  0xd4   : > { %1311 = vst [vmem:[%s1849_s15 + $0xf0] sm:$0xff] %v1279_v44  ;;  %v1216_v51 = vmin.f32 %v1184_v26, 6.0 }
  0xd6   : > { %v1248_v45 = vmul.f32 %v1216_v51, %v1120_v30 }
  0xd8   : > { %v1280_v16 = vmul.f32 0.16666667, %v1248_v45 }
  0xda   : > { %1312 = vst [vmem:[%s1849_s15 + $0xf8] sm:$0xff] %v1280_v16 }
  0xdb PF: > { %s13_s12 = sadd.s32 1, %s1606_s12  }
  0xdc   : > { %p10_p4 = scmp.ge.s32.totalorder %s13_s12, 4  }
  0xde   :  { %12 = sbr.rel (!%p10_p4) target bundleno = 1 (0x1), region = 64 }

</bundles_post_ra>
